<compile_context>
chip_gen: v6e
topology: v6e:2x2x1
jax: 0.10.0
libtpu: 0.0.40
codegen_flags: <defaults>
</compile_context>

<pallas_src>
import jax
import jax.numpy as jnp
import numpy as np
from jax.experimental import pallas as pl
from jax.experimental.pallas import tpu as pltpu


# ------------------------------ fused kernel --------------------------------
def _make_lstmfcn_kernel(num_layers, kernel_sizes, T, B, H):
    n_lstm_refs = 3 + 2 * (num_layers - 1)
    n_conv = len(kernel_sizes)
    bf16 = jnp.bfloat16
    f32 = jnp.float32

    def kernel(*refs):
        x_tb_ref = refs[0]                      # (T, B, 1) f32  (LSTM branch)
        x_flat_ref = refs[1]                    # (B*T, 1) f32   (conv branch)
        base = 2
        lstm_refs = refs[base:base + n_lstm_refs]
        base += n_lstm_refs
        conv_refs = refs[base:base + 2 * n_conv]
        base += 2 * n_conv
        smat_ref = refs[base]                   # (B, N_last)  masked-mean matrix
        fcw_ref = refs[base + 1]                # (H + F_last, 2)
        fcb_ref = refs[base + 2]                # (1, 2)
        out_ref = refs[base + 3]                # (B, 2)

        # ----------------------------- LSTM branch ---------------------------
        # Hoist weights out of the recurrence; pre-cast matmul operands to
        # bf16 so every gate matmul is a single MXU pass (f32 accumulation).
        wih0 = lstm_refs[0][...]                         # (1, 4H) f32, VPU only
        whh0 = lstm_refs[1][...].astype(bf16)            # (H, 4H)
        b0 = lstm_refs[2][...]                           # (1, 4H) f32
        wfused = [lstm_refs[3 + 2 * (l - 1)][...].astype(bf16)
                  for l in range(1, num_layers)]         # (2H, 4H)
        bl = [lstm_refs[4 + 2 * (l - 1)][...]
              for l in range(1, num_layers)]             # (1, 4H)

        def gate_act(gates, c_prev):
            # PyTorch gate order (i, f, g, o).  Sigmoid on the full 4H lanes
            # (i/f/o all need it), tanh only on the g slice.
            sig = jax.nn.sigmoid(gates)
            g = jnp.tanh(gates[:, 2 * H:3 * H])
            i = sig[:, 0:H]
            f = sig[:, H:2 * H]
            o = sig[:, 3 * H:4 * H]
            c_new = f * c_prev + i * g
            h_new = o * jnp.tanh(c_new)
            return h_new, c_new

        def step(t, carry):
            hs, cs = carry
            # Layer 0: Din == 1 -> input projection is a broadcast FMA (VPU);
            # only the hidden projection hits the MXU.
            x_t = x_tb_ref[t]                            # (B, 1)
            gates0 = (x_t * wih0 + b0 +
                      jnp.dot(hs[0].astype(bf16), whh0,
                              preferred_element_type=f32))
            h_new, c_new = gate_act(gates0, cs[0])
            new_hs, new_cs = [h_new], [c_new]
            for l in range(1, num_layers):
                # Fused input+hidden projection: one (B,2H)@(2H,4H) matmul.
                z = jnp.concatenate([new_hs[l - 1], hs[l]],
                                    axis=-1).astype(bf16)
                gates = jnp.dot(z, wfused[l - 1],
                                preferred_element_type=f32) + bl[l - 1]
                h_new, c_new = gate_act(gates, cs[l])
                new_hs.append(h_new)
                new_cs.append(c_new)
            return tuple(new_hs), tuple(new_cs)

        zero = jnp.zeros((B, H), f32)
        init = (tuple(zero for _ in range(num_layers)),
                tuple(zero for _ in range(num_layers)))
        unroll = True if T <= 64 else 8                  # bound program size
        hs, _ = jax.lax.fori_loop(0, T, step, init, unroll=unroll)
        lstm_last = hs[-1]                               # == lstm_out[:, -1, :]

        # ------------------------ FCN branch (batched) ------------------------
        # Activations stay 2-D (B*L, C), b-major / t-minor, per-sample row
        # stride fixed at T.  Each conv tap is one wide matmul (M ~= B*L rows);
        # rows that would mix adjacent samples are never selected by smat.
        h = x_flat_ref[...]                              # (B*T, 1) f32
        n_rows = B * T
        for j in range(n_conv):
            K = kernel_sizes[j]
            w = conv_refs[2 * j][...]                    # (K, Cin, Cout)
            b = conv_refs[2 * j + 1][...]                # (1, Cout)
            n_out = n_rows - K + 1
            if w.shape[1] == 1:
                # Cin == 1: K shifted broadcast FMAs on the VPU, no matmul.
                acc = h[0:n_out, :] * w[0] + b
                for k in range(1, K):
                    acc = acc + h[k:k + n_out, :] * w[k]
            else:
                acc = jnp.dot(h[0:n_out, :].astype(bf16), w[0].astype(bf16),
                              preferred_element_type=f32) + b
                for k in range(1, K):
                    acc = acc + jnp.dot(h[k:k + n_out, :].astype(bf16),
                                        w[k].astype(bf16),
                                        preferred_element_type=f32)
            h = jnp.maximum(acc, 0.0)
            n_rows = n_out

        # Per-sample mean over valid rows as a single small matmul.
        conv_mean = jnp.dot(smat_ref[...], h, preferred_element_type=f32)

        # --------------------- concat + FC (dropout = identity) --------------
        combined = jnp.concatenate([lstm_last, conv_mean], axis=-1)
        out_ref[...] = (jnp.dot(combined, fcw_ref[...],
                                preferred_element_type=f32) + fcb_ref[...])

    return kernel


def lstmfcn_pallas_call(x_tb, x_flat, lstm_inputs, conv_inputs, smat,
                        fc_w, fc_b, kernel_sizes, num_layers, B, T, H):
    inputs = [x_tb, x_flat] + lstm_inputs + conv_inputs + [smat, fc_w, fc_b]

    def full_spec(a):
        nd = a.ndim
        return pl.BlockSpec(a.shape, lambda i, nd=nd: (0,) * nd)

    kernel = _make_lstmfcn_kernel(num_layers, tuple(kernel_sizes), T, B, H)

    # TODO(synk): on v7x, add a leading "parallel" grid axis over batch chunks
    # to use both TensorCores once B is large enough; moot at B=4.
    return pl.pallas_call(
        kernel,
        out_shape=jax.ShapeDtypeStruct((B, 2), jnp.float32),
        grid_spec=pltpu.PrefetchScalarGridSpec(
            num_scalar_prefetch=0,
            grid=(1,),
            in_specs=[full_spec(a) for a in inputs],
            out_specs=pl.BlockSpec((B, 2), lambda i: (0, 0)),
        ),
        compiler_params=pltpu.CompilerParams(
            dimension_semantics=("arbitrary",)),
    )(*inputs)


# ------------------------------ parameter setup ------------------------------
def init_params(key, lstm_size, filter_sizes, kernel_sizes, num_layers):
    n_keys = 4 * num_layers + 2 * len(kernel_sizes) + 2
    keys = jax.random.split(key, n_keys)
    ki = iter(range(n_keys))

    def unif(k, shape, scale):
        return jax.random.uniform(k, shape, jnp.float32, -scale, scale)

    H = lstm_size
    lstm_params = []
    for layer in range(num_layers):
        din = 1 if layer == 0 else H
        s = 1.0 / np.sqrt(H)
        wih_t = unif(keys[next(ki)], (din, 4 * H), s)      # (Din, 4H) == Wih^T
        whh_t = unif(keys[next(ki)], (H, 4 * H), s)        # (H, 4H)   == Whh^T
        b_ih = unif(keys[next(ki)], (1, 4 * H), s)
        b_hh = unif(keys[next(ki)], (1, 4 * H), s)
        lstm_params.append((wih_t, whh_t, b_ih + b_hh))

    convs = []
    cin = 1
    for f, k in zip(filter_sizes, kernel_sizes):
        s = 1.0 / np.sqrt(cin * k)
        w = unif(keys[next(ki)], (k, cin, f), s)           # (K, Cin, Cout)
        b = unif(keys[next(ki)], (1, f), s)
        convs.append((w, b))
        cin = f

    d_comb = H + filter_sizes[-1]
    s = 1.0 / np.sqrt(d_comb)
    fc_w = unif(keys[next(ki)], (d_comb, 2), s)
    fc_b = unif(keys[next(ki)], (1, 2), s)
    return {"lstm": lstm_params, "convs": convs, "fc": (fc_w, fc_b)}


# ------------------------------- full forward --------------------------------
@jax.jit
def lstmfcn_forward(x, params):
    # x: (B, T, 1) float32 — same as the PyTorch batch_first LSTM input.
    B, T, _ = x.shape
    lstm_params = params["lstm"]
    convs = params["convs"]
    fc_w, fc_b = params["fc"]
    num_layers = len(lstm_params)
    H = lstm_params[0][1].shape[0]

    x_tb = jnp.transpose(x, (1, 0, 2))            # (T, B, 1) for the recurrence
    x_flat = jnp.reshape(x, (B * T, 1))           # (B*T, 1), b-major / t-minor

    # LSTM weights: layer 0 as-is; layers >= 1 pre-fused [Wih; Whh] -> (2H, 4H).
    wih0, whh0, b0 = lstm_params[0]
    lstm_inputs = [wih0, whh0, b0]
    for wih, whh, b in lstm_params[1:]:
        lstm_inputs += [jnp.concatenate([wih, whh], axis=0), b]

    conv_inputs = []
    kernel_sizes = []
    n_valid = T
    for w, b in convs:
        kernel_sizes.append(int(w.shape[0]))
        conv_inputs += [w, b]
        n_valid -= int(w.shape[0]) - 1
    # Masked-mean selection matrix (static): picks the n_valid valid rows of
    # each sample (row stride T in the flat layout) and scales by 1/n_valid.
    n_rows_last = B * T - sum(k - 1 for k in kernel_sizes)
    smat_np = np.zeros((B, n_rows_last), np.float32)
    for b_idx in range(B):
        smat_np[b_idx, b_idx * T: b_idx * T + n_valid] = 1.0 / n_valid
    smat = jnp.asarray(smat_np)

    return lstmfcn_pallas_call(x_tb, x_flat, lstm_inputs, conv_inputs, smat,
                               fc_w, fc_b, tuple(kernel_sizes),
                               num_layers, B, T, H)


# ------------------------------ pure-JAX reference ----------------------------
def reference_forward(x, params):
    h_seq = jnp.transpose(x, (1, 0, 2))                      # (T, B, 1)
    for wih_t, whh_t, b_row in params["lstm"]:
        _, B_, _ = h_seq.shape
        H = whh_t.shape[0]

        def step(carry, x_t, wih_t=wih_t, whh_t=whh_t, b_row=b_row, H=H):
            h, c = carry
            gates = x_t @ wih_t + h @ whh_t + b_row
            i = jax.nn.sigmoid(gates[:, :H])
            f = jax.nn.sigmoid(gates[:, H:2 * H])
            g = jnp.tanh(gates[:, 2 * H:3 * H])
            o = jax.nn.sigmoid(gates[:, 3 * H:])
            c = f * c + i * g
            h = o * jnp.tanh(c)
            return (h, c), h

        _, h_seq = jax.lax.scan(
            step,
            (jnp.zeros((B_, H), jnp.float32), jnp.zeros((B_, H), jnp.float32)),
            h_seq)
    lstm_last = h_seq[-1]

    h = x                                                    # (B, T, 1) NWC
    for w, b in params["convs"]:
        K = w.shape[0]
        Cout = w.shape[2]
        Lout = h.shape[1] - K + 1
        acc = jnp.zeros((h.shape[0], Lout, Cout), jnp.float32)
        for k in range(K):
            acc = acc + jnp.einsum("blc,cf->blf", h[:, k:k + Lout, :], w[k])
        h = jnp.maximum(acc + b[None], 0.0)
    conv_mean = jnp.mean(h, axis=1)

    combined = jnp.concatenate([lstm_last, conv_mean], axis=-1)
    fc_w, fc_b = params["fc"]
    return combined @ fc_w + fc_b


if __name__ == "__main__":
    lstm_size = 32
    filter_sizes = (8, 16, 16)
    kernel_sizes = (5, 3, 3)
    num_layers = 2
    B, T = 4, 32

    key = jax.random.PRNGKey(0)
    pkey, xkey = jax.random.split(key)
    params = init_params(pkey, lstm_size, filter_sizes, kernel_sizes, num_layers)
    x = jax.random.normal(xkey, (B, T, 1), jnp.float32)

    out = lstmfcn_forward(x, params)
    out = jax.block_until_ready(out)
    assert out.shape == (B, 2)

    ref = reference_forward(x, params)
    # Kernel uses bf16 matmul operands (f32 accumulation) on the recurrence /
    # conv path, hence the slightly relaxed tolerance vs the f32 reference.
    np.testing.assert_allclose(np.asarray(out), np.asarray(ref),
                               rtol=2e-2, atol=2e-2)

    print("KERNEL_OK")
</pallas_src>

<mosaic_0001>
module attributes {stable_mosaic.version = 11 : i64} {
  func.func @kernel(%arg0: i32, %arg1: memref<32x4x1xf32, #tpu.memory_space<vmem>>, %arg2: memref<128x1xf32, #tpu.memory_space<vmem>>, %arg3: memref<1x128xf32, #tpu.memory_space<vmem>>, %arg4: memref<32x128xf32, #tpu.memory_space<vmem>>, %arg5: memref<1x128xf32, #tpu.memory_space<vmem>>, %arg6: memref<64x128xf32, #tpu.memory_space<vmem>>, %arg7: memref<1x128xf32, #tpu.memory_space<vmem>>, %arg8: memref<5x1x8xf32, #tpu.memory_space<vmem>>, %arg9: memref<1x8xf32, #tpu.memory_space<vmem>>, %arg10: memref<3x8x16xf32, #tpu.memory_space<vmem>>, %arg11: memref<1x16xf32, #tpu.memory_space<vmem>>, %arg12: memref<3x16x16xf32, #tpu.memory_space<vmem>>, %arg13: memref<1x16xf32, #tpu.memory_space<vmem>>, %arg14: memref<4x120xf32, #tpu.memory_space<vmem>>, %arg15: memref<48x2xf32, #tpu.memory_space<vmem>>, %arg16: memref<1x2xf32, #tpu.memory_space<vmem>>, %arg17: memref<4x2xf32, #tpu.memory_space<vmem>>) attributes {dimension_semantics = [#tpu.dimension_semantics<arbitrary>], iteration_bounds = array<i64: 1>, scalar_prefetch = 0 : i64, scratch_operands = 0 : i64, tpu.core_type = #tpu.core_type<tc>, window_params = [{pipeline_mode = #tpu.pipeline_mode<synchronous>, transform_indices = @transform_0, window_bounds = array<i64: 32, 4, 1>}, {pipeline_mode = #tpu.pipeline_mode<synchronous>, transform_indices = @transform_1, window_bounds = array<i64: 128, 1>}, {pipeline_mode = #tpu.pipeline_mode<synchronous>, transform_indices = @transform_2, window_bounds = array<i64: 1, 128>}, {pipeline_mode = #tpu.pipeline_mode<synchronous>, transform_indices = @transform_3, window_bounds = array<i64: 32, 128>}, {pipeline_mode = #tpu.pipeline_mode<synchronous>, transform_indices = @transform_4, window_bounds = array<i64: 1, 128>}, {pipeline_mode = #tpu.pipeline_mode<synchronous>, transform_indices = @transform_5, window_bounds = array<i64: 64, 128>}, {pipeline_mode = #tpu.pipeline_mode<synchronous>, transform_indices = @transform_6, window_bounds = array<i64: 1, 128>}, {pipeline_mode = #tpu.pipeline_mode<synchronous>, transform_indices = @transform_7, window_bounds = array<i64: 5, 1, 8>}, {pipeline_mode = #tpu.pipeline_mode<synchronous>, transform_indices = @transform_8, window_bounds = array<i64: 1, 8>}, {pipeline_mode = #tpu.pipeline_mode<synchronous>, transform_indices = @transform_9, window_bounds = array<i64: 3, 8, 16>}, {pipeline_mode = #tpu.pipeline_mode<synchronous>, transform_indices = @transform_10, window_bounds = array<i64: 1, 16>}, {pipeline_mode = #tpu.pipeline_mode<synchronous>, transform_indices = @transform_11, window_bounds = array<i64: 3, 16, 16>}, {pipeline_mode = #tpu.pipeline_mode<synchronous>, transform_indices = @transform_12, window_bounds = array<i64: 1, 16>}, {pipeline_mode = #tpu.pipeline_mode<synchronous>, transform_indices = @transform_13, window_bounds = array<i64: 4, 120>}, {pipeline_mode = #tpu.pipeline_mode<synchronous>, transform_indices = @transform_14, window_bounds = array<i64: 48, 2>}, {pipeline_mode = #tpu.pipeline_mode<synchronous>, transform_indices = @transform_15, window_bounds = array<i64: 1, 2>}, {pipeline_mode = #tpu.pipeline_mode<synchronous>, transform_indices = @transform_16, window_bounds = array<i64: 4, 2>}]} {
    %c0 = arith.constant 0 : index
    %c0_0 = arith.constant 0 : index
    %0 = vector.load %arg3[%c0, %c0_0] : memref<1x128xf32, #tpu.memory_space<vmem>>, vector<1x128xf32>
    %c0_1 = arith.constant 0 : index
    %c0_2 = arith.constant 0 : index
    %1 = vector.load %arg4[%c0_1, %c0_2] : memref<32x128xf32, #tpu.memory_space<vmem>>, vector<32x128xf32>
    %2 = arith.truncf %1 : vector<32x128xf32> to vector<32x128xbf16>
    %c0_3 = arith.constant 0 : index
    %c0_4 = arith.constant 0 : index
    %3 = vector.load %arg5[%c0_3, %c0_4] : memref<1x128xf32, #tpu.memory_space<vmem>>, vector<1x128xf32>
    %c0_5 = arith.constant 0 : index
    %c0_6 = arith.constant 0 : index
    %4 = vector.load %arg6[%c0_5, %c0_6] : memref<64x128xf32, #tpu.memory_space<vmem>>, vector<64x128xf32>
    %5 = arith.truncf %4 : vector<64x128xf32> to vector<64x128xbf16>
    %c0_7 = arith.constant 0 : index
    %c0_8 = arith.constant 0 : index
    %6 = vector.load %arg7[%c0_7, %c0_8] : memref<1x128xf32, #tpu.memory_space<vmem>>, vector<1x128xf32>
    %cst = arith.constant 0.000000e+00 : f32
    %7 = vector.broadcast %cst : f32 to vector<4x32xf32>
    %c0_i32 = arith.constant 0 : i32
    %8 = arith.index_cast %c0_i32 : i32 to index
    %c0_9 = arith.constant 0 : index
    %c0_10 = arith.constant 0 : index
    %9 = vector.load %arg1[%8, %c0_9, %c0_10] : memref<32x4x1xf32, #tpu.memory_space<vmem>>, vector<1x4x1xf32>
    %10 = vector.shape_cast %9 : vector<1x4x1xf32> to vector<4x1xf32>
    %11 = vector.broadcast %10 : vector<4x1xf32> to vector<4x128xf32>
    %12 = vector.broadcast %0 : vector<1x128xf32> to vector<4x128xf32>
    %13 = arith.mulf %11, %12 : vector<4x128xf32>
    %14 = vector.broadcast %3 : vector<1x128xf32> to vector<4x128xf32>
    %15 = arith.addf %13, %14 : vector<4x128xf32>
    %16 = arith.truncf %7 : vector<4x32xf32> to vector<4x32xbf16>
    %cst_11 = arith.constant dense<0.000000e+00> : vector<4x128xf32>
    %17 = tpu.matmul %16, %2, %cst_11 {dimension_numbers = #tpu.dot_dimension_numbers<[1], [0], [0], [1], [0, 0, 1, 1], [], []>} : vector<4x32xbf16>, vector<32x128xbf16>, vector<4x128xf32> -> vector<4x128xf32>
    %18 = arith.addf %15, %17 : vector<4x128xf32>
    %19 = arith.negf %18 : vector<4x128xf32>
    %20 = math.exp %19 : vector<4x128xf32>
    %cst_12 = arith.constant 1.000000e+00 : f32
    %21 = vector.broadcast %cst_12 : f32 to vector<4x128xf32>
    %22 = arith.addf %21, %20 : vector<4x128xf32>
    %23 = arith.divf %21, %22 : vector<4x128xf32>
    %24 = vector.extract_strided_slice %18 {offsets = [0, 64], sizes = [4, 32], strides = [1, 1]} : vector<4x128xf32> to vector<4x32xf32>
    %25 = math.tanh %24 : vector<4x32xf32>
    %26 = vector.extract_strided_slice %23 {offsets = [0, 0], sizes = [4, 32], strides = [1, 1]} : vector<4x128xf32> to vector<4x32xf32>
    %27 = vector.extract_strided_slice %23 {offsets = [0, 32], sizes = [4, 32], strides = [1, 1]} : vector<4x128xf32> to vector<4x32xf32>
    %28 = vector.extract_strided_slice %23 {offsets = [0, 96], sizes = [4, 32], strides = [1, 1]} : vector<4x128xf32> to vector<4x32xf32>
    %29 = arith.mulf %27, %7 : vector<4x32xf32>
    %30 = arith.mulf %26, %25 : vector<4x32xf32>
    %31 = arith.addf %29, %30 : vector<4x32xf32>
    %32 = math.tanh %31 : vector<4x32xf32>
    %33 = arith.mulf %28, %32 : vector<4x32xf32>
    %34 = tpu.concatenate %33, %7 in 1 : vector<4x32xf32>, vector<4x32xf32> -> vector<4x64xf32>
    %35 = arith.truncf %34 : vector<4x64xf32> to vector<4x64xbf16>
    %cst_13 = arith.constant dense<0.000000e+00> : vector<4x128xf32>
    %36 = tpu.matmul %35, %5, %cst_13 {dimension_numbers = #tpu.dot_dimension_numbers<[1], [0], [0], [1], [0, 0, 1, 1], [], []>} : vector<4x64xbf16>, vector<64x128xbf16>, vector<4x128xf32> -> vector<4x128xf32>
    %37 = vector.broadcast %6 : vector<1x128xf32> to vector<4x128xf32>
    %38 = arith.addf %36, %37 : vector<4x128xf32>
    %39 = arith.negf %38 : vector<4x128xf32>
    %40 = math.exp %39 : vector<4x128xf32>
    %cst_14 = arith.constant 1.000000e+00 : f32
    %41 = vector.broadcast %cst_14 : f32 to vector<4x128xf32>
    %42 = arith.addf %41, %40 : vector<4x128xf32>
    %43 = arith.divf %41, %42 : vector<4x128xf32>
    %44 = vector.extract_strided_slice %38 {offsets = [0, 64], sizes = [4, 32], strides = [1, 1]} : vector<4x128xf32> to vector<4x32xf32>
    %45 = math.tanh %44 : vector<4x32xf32>
    %46 = vector.extract_strided_slice %43 {offsets = [0, 0], sizes = [4, 32], strides = [1, 1]} : vector<4x128xf32> to vector<4x32xf32>
    %47 = vector.extract_strided_slice %43 {offsets = [0, 32], sizes = [4, 32], strides = [1, 1]} : vector<4x128xf32> to vector<4x32xf32>
    %48 = vector.extract_strided_slice %43 {offsets = [0, 96], sizes = [4, 32], strides = [1, 1]} : vector<4x128xf32> to vector<4x32xf32>
    %49 = arith.mulf %47, %7 : vector<4x32xf32>
    %50 = arith.mulf %46, %45 : vector<4x32xf32>
    %51 = arith.addf %49, %50 : vector<4x32xf32>
    %52 = math.tanh %51 : vector<4x32xf32>
    %53 = arith.mulf %48, %52 : vector<4x32xf32>
    %c1_i32 = arith.constant 1 : i32
    %54 = arith.index_cast %c1_i32 : i32 to index
    %c0_15 = arith.constant 0 : index
    %c0_16 = arith.constant 0 : index
    %55 = vector.load %arg1[%54, %c0_15, %c0_16] : memref<32x4x1xf32, #tpu.memory_space<vmem>>, vector<1x4x1xf32>
    %56 = vector.shape_cast %55 : vector<1x4x1xf32> to vector<4x1xf32>
    %57 = vector.broadcast %56 : vector<4x1xf32> to vector<4x128xf32>
    %58 = vector.broadcast %0 : vector<1x128xf32> to vector<4x128xf32>
    %59 = arith.mulf %57, %58 : vector<4x128xf32>
    %60 = vector.broadcast %3 : vector<1x128xf32> to vector<4x128xf32>
    %61 = arith.addf %59, %60 : vector<4x128xf32>
    %62 = arith.truncf %33 : vector<4x32xf32> to vector<4x32xbf16>
    %cst_17 = arith.constant dense<0.000000e+00> : vector<4x128xf32>
    %63 = tpu.matmul %62, %2, %cst_17 {dimension_numbers = #tpu.dot_dimension_numbers<[1], [0], [0], [1], [0, 0, 1, 1], [], []>} : vector<4x32xbf16>, vector<32x128xbf16>, vector<4x128xf32> -> vector<4x128xf32>
    %64 = arith.addf %61, %63 : vector<4x128xf32>
    %65 = arith.negf %64 : vector<4x128xf32>
    %66 = math.exp %65 : vector<4x128xf32>
    %cst_18 = arith.constant 1.000000e+00 : f32
    %67 = vector.broadcast %cst_18 : f32 to vector<4x128xf32>
    %68 = arith.addf %67, %66 : vector<4x128xf32>
    %69 = arith.divf %67, %68 : vector<4x128xf32>
    %70 = vector.extract_strided_slice %64 {offsets = [0, 64], sizes = [4, 32], strides = [1, 1]} : vector<4x128xf32> to vector<4x32xf32>
    %71 = math.tanh %70 : vector<4x32xf32>
    %72 = vector.extract_strided_slice %69 {offsets = [0, 0], sizes = [4, 32], strides = [1, 1]} : vector<4x128xf32> to vector<4x32xf32>
    %73 = vector.extract_strided_slice %69 {offsets = [0, 32], sizes = [4, 32], strides = [1, 1]} : vector<4x128xf32> to vector<4x32xf32>
    %74 = vector.extract_strided_slice %69 {offsets = [0, 96], sizes = [4, 32], strides = [1, 1]} : vector<4x128xf32> to vector<4x32xf32>
    %75 = arith.mulf %73, %31 : vector<4x32xf32>
    %76 = arith.mulf %72, %71 : vector<4x32xf32>
    %77 = arith.addf %75, %76 : vector<4x32xf32>
    %78 = math.tanh %77 : vector<4x32xf32>
    %79 = arith.mulf %74, %78 : vector<4x32xf32>
    %80 = tpu.concatenate %79, %53 in 1 : vector<4x32xf32>, vector<4x32xf32> -> vector<4x64xf32>
    %81 = arith.truncf %80 : vector<4x64xf32> to vector<4x64xbf16>
    %cst_19 = arith.constant dense<0.000000e+00> : vector<4x128xf32>
    %82 = tpu.matmul %81, %5, %cst_19 {dimension_numbers = #tpu.dot_dimension_numbers<[1], [0], [0], [1], [0, 0, 1, 1], [], []>} : vector<4x64xbf16>, vector<64x128xbf16>, vector<4x128xf32> -> vector<4x128xf32>
    %83 = vector.broadcast %6 : vector<1x128xf32> to vector<4x128xf32>
    %84 = arith.addf %82, %83 : vector<4x128xf32>
    %85 = arith.negf %84 : vector<4x128xf32>
    %86 = math.exp %85 : vector<4x128xf32>
    %cst_20 = arith.constant 1.000000e+00 : f32
    %87 = vector.broadcast %cst_20 : f32 to vector<4x128xf32>
    %88 = arith.addf %87, %86 : vector<4x128xf32>
    %89 = arith.divf %87, %88 : vector<4x128xf32>
    %90 = vector.extract_strided_slice %84 {offsets = [0, 64], sizes = [4, 32], strides = [1, 1]} : vector<4x128xf32> to vector<4x32xf32>
    %91 = math.tanh %90 : vector<4x32xf32>
    %92 = vector.extract_strided_slice %89 {offsets = [0, 0], sizes = [4, 32], strides = [1, 1]} : vector<4x128xf32> to vector<4x32xf32>
    %93 = vector.extract_strided_slice %89 {offsets = [0, 32], sizes = [4, 32], strides = [1, 1]} : vector<4x128xf32> to vector<4x32xf32>
    %94 = vector.extract_strided_slice %89 {offsets = [0, 96], sizes = [4, 32], strides = [1, 1]} : vector<4x128xf32> to vector<4x32xf32>
    %95 = arith.mulf %93, %51 : vector<4x32xf32>
    %96 = arith.mulf %92, %91 : vector<4x32xf32>
    %97 = arith.addf %95, %96 : vector<4x32xf32>
    %98 = math.tanh %97 : vector<4x32xf32>
    %99 = arith.mulf %94, %98 : vector<4x32xf32>
    %c2_i32 = arith.constant 2 : i32
    %100 = arith.index_cast %c2_i32 : i32 to index
    %c0_21 = arith.constant 0 : index
    %c0_22 = arith.constant 0 : index
    %101 = vector.load %arg1[%100, %c0_21, %c0_22] : memref<32x4x1xf32, #tpu.memory_space<vmem>>, vector<1x4x1xf32>
    %102 = vector.shape_cast %101 : vector<1x4x1xf32> to vector<4x1xf32>
    %103 = vector.broadcast %102 : vector<4x1xf32> to vector<4x128xf32>
    %104 = vector.broadcast %0 : vector<1x128xf32> to vector<4x128xf32>
    %105 = arith.mulf %103, %104 : vector<4x128xf32>
    %106 = vector.broadcast %3 : vector<1x128xf32> to vector<4x128xf32>
    %107 = arith.addf %105, %106 : vector<4x128xf32>
    %108 = arith.truncf %79 : vector<4x32xf32> to vector<4x32xbf16>
    %cst_23 = arith.constant dense<0.000000e+00> : vector<4x128xf32>
    %109 = tpu.matmul %108, %2, %cst_23 {dimension_numbers = #tpu.dot_dimension_numbers<[1], [0], [0], [1], [0, 0, 1, 1], [], []>} : vector<4x32xbf16>, vector<32x128xbf16>, vector<4x128xf32> -> vector<4x128xf32>
    %110 = arith.addf %107, %109 : vector<4x128xf32>
    %111 = arith.negf %110 : vector<4x128xf32>
    %112 = math.exp %111 : vector<4x128xf32>
    %cst_24 = arith.constant 1.000000e+00 : f32
    %113 = vector.broadcast %cst_24 : f32 to vector<4x128xf32>
    %114 = arith.addf %113, %112 : vector<4x128xf32>
    %115 = arith.divf %113, %114 : vector<4x128xf32>
    %116 = vector.extract_strided_slice %110 {offsets = [0, 64], sizes = [4, 32], strides = [1, 1]} : vector<4x128xf32> to vector<4x32xf32>
    %117 = math.tanh %116 : vector<4x32xf32>
    %118 = vector.extract_strided_slice %115 {offsets = [0, 0], sizes = [4, 32], strides = [1, 1]} : vector<4x128xf32> to vector<4x32xf32>
    %119 = vector.extract_strided_slice %115 {offsets = [0, 32], sizes = [4, 32], strides = [1, 1]} : vector<4x128xf32> to vector<4x32xf32>
    %120 = vector.extract_strided_slice %115 {offsets = [0, 96], sizes = [4, 32], strides = [1, 1]} : vector<4x128xf32> to vector<4x32xf32>
    %121 = arith.mulf %119, %77 : vector<4x32xf32>
    %122 = arith.mulf %118, %117 : vector<4x32xf32>
    %123 = arith.addf %121, %122 : vector<4x32xf32>
    %124 = math.tanh %123 : vector<4x32xf32>
    %125 = arith.mulf %120, %124 : vector<4x32xf32>
    %126 = tpu.concatenate %125, %99 in 1 : vector<4x32xf32>, vector<4x32xf32> -> vector<4x64xf32>
    %127 = arith.truncf %126 : vector<4x64xf32> to vector<4x64xbf16>
    %cst_25 = arith.constant dense<0.000000e+00> : vector<4x128xf32>
    %128 = tpu.matmul %127, %5, %cst_25 {dimension_numbers = #tpu.dot_dimension_numbers<[1], [0], [0], [1], [0, 0, 1, 1], [], []>} : vector<4x64xbf16>, vector<64x128xbf16>, vector<4x128xf32> -> vector<4x128xf32>
    %129 = vector.broadcast %6 : vector<1x128xf32> to vector<4x128xf32>
    %130 = arith.addf %128, %129 : vector<4x128xf32>
    %131 = arith.negf %130 : vector<4x128xf32>
    %132 = math.exp %131 : vector<4x128xf32>
    %cst_26 = arith.constant 1.000000e+00 : f32
    %133 = vector.broadcast %cst_26 : f32 to vector<4x128xf32>
    %134 = arith.addf %133, %132 : vector<4x128xf32>
    %135 = arith.divf %133, %134 : vector<4x128xf32>
    %136 = vector.extract_strided_slice %130 {offsets = [0, 64], sizes = [4, 32], strides = [1, 1]} : vector<4x128xf32> to vector<4x32xf32>
    %137 = math.tanh %136 : vector<4x32xf32>
    %138 = vector.extract_strided_slice %135 {offsets = [0, 0], sizes = [4, 32], strides = [1, 1]} : vector<4x128xf32> to vector<4x32xf32>
    %139 = vector.extract_strided_slice %135 {offsets = [0, 32], sizes = [4, 32], strides = [1, 1]} : vector<4x128xf32> to vector<4x32xf32>
    %140 = vector.extract_strided_slice %135 {offsets = [0, 96], sizes = [4, 32], strides = [1, 1]} : vector<4x128xf32> to vector<4x32xf32>
    %141 = arith.mulf %139, %97 : vector<4x32xf32>
    %142 = arith.mulf %138, %137 : vector<4x32xf32>
    %143 = arith.addf %141, %142 : vector<4x32xf32>
    %144 = math.tanh %143 : vector<4x32xf32>
    %145 = arith.mulf %140, %144 : vector<4x32xf32>
    %c3_i32 = arith.constant 3 : i32
    %146 = arith.index_cast %c3_i32 : i32 to index
    %c0_27 = arith.constant 0 : index
    %c0_28 = arith.constant 0 : index
    %147 = vector.load %arg1[%146, %c0_27, %c0_28] : memref<32x4x1xf32, #tpu.memory_space<vmem>>, vector<1x4x1xf32>
    %148 = vector.shape_cast %147 : vector<1x4x1xf32> to vector<4x1xf32>
    %149 = vector.broadcast %148 : vector<4x1xf32> to vector<4x128xf32>
    %150 = vector.broadcast %0 : vector<1x128xf32> to vector<4x128xf32>
    %151 = arith.mulf %149, %150 : vector<4x128xf32>
    %152 = vector.broadcast %3 : vector<1x128xf32> to vector<4x128xf32>
    %153 = arith.addf %151, %152 : vector<4x128xf32>
    %154 = arith.truncf %125 : vector<4x32xf32> to vector<4x32xbf16>
    %cst_29 = arith.constant dense<0.000000e+00> : vector<4x128xf32>
    %155 = tpu.matmul %154, %2, %cst_29 {dimension_numbers = #tpu.dot_dimension_numbers<[1], [0], [0], [1], [0, 0, 1, 1], [], []>} : vector<4x32xbf16>, vector<32x128xbf16>, vector<4x128xf32> -> vector<4x128xf32>
    %156 = arith.addf %153, %155 : vector<4x128xf32>
    %157 = arith.negf %156 : vector<4x128xf32>
    %158 = math.exp %157 : vector<4x128xf32>
    %cst_30 = arith.constant 1.000000e+00 : f32
    %159 = vector.broadcast %cst_30 : f32 to vector<4x128xf32>
    %160 = arith.addf %159, %158 : vector<4x128xf32>
    %161 = arith.divf %159, %160 : vector<4x128xf32>
    %162 = vector.extract_strided_slice %156 {offsets = [0, 64], sizes = [4, 32], strides = [1, 1]} : vector<4x128xf32> to vector<4x32xf32>
    %163 = math.tanh %162 : vector<4x32xf32>
    %164 = vector.extract_strided_slice %161 {offsets = [0, 0], sizes = [4, 32], strides = [1, 1]} : vector<4x128xf32> to vector<4x32xf32>
    %165 = vector.extract_strided_slice %161 {offsets = [0, 32], sizes = [4, 32], strides = [1, 1]} : vector<4x128xf32> to vector<4x32xf32>
    %166 = vector.extract_strided_slice %161 {offsets = [0, 96], sizes = [4, 32], strides = [1, 1]} : vector<4x128xf32> to vector<4x32xf32>
    %167 = arith.mulf %165, %123 : vector<4x32xf32>
    %168 = arith.mulf %164, %163 : vector<4x32xf32>
    %169 = arith.addf %167, %168 : vector<4x32xf32>
    %170 = math.tanh %169 : vector<4x32xf32>
    %171 = arith.mulf %166, %170 : vector<4x32xf32>
    %172 = tpu.concatenate %171, %145 in 1 : vector<4x32xf32>, vector<4x32xf32> -> vector<4x64xf32>
    %173 = arith.truncf %172 : vector<4x64xf32> to vector<4x64xbf16>
    %cst_31 = arith.constant dense<0.000000e+00> : vector<4x128xf32>
    %174 = tpu.matmul %173, %5, %cst_31 {dimension_numbers = #tpu.dot_dimension_numbers<[1], [0], [0], [1], [0, 0, 1, 1], [], []>} : vector<4x64xbf16>, vector<64x128xbf16>, vector<4x128xf32> -> vector<4x128xf32>
    %175 = vector.broadcast %6 : vector<1x128xf32> to vector<4x128xf32>
    %176 = arith.addf %174, %175 : vector<4x128xf32>
    %177 = arith.negf %176 : vector<4x128xf32>
    %178 = math.exp %177 : vector<4x128xf32>
    %cst_32 = arith.constant 1.000000e+00 : f32
    %179 = vector.broadcast %cst_32 : f32 to vector<4x128xf32>
    %180 = arith.addf %179, %178 : vector<4x128xf32>
    %181 = arith.divf %179, %180 : vector<4x128xf32>
    %182 = vector.extract_strided_slice %176 {offsets = [0, 64], sizes = [4, 32], strides = [1, 1]} : vector<4x128xf32> to vector<4x32xf32>
    %183 = math.tanh %182 : vector<4x32xf32>
    %184 = vector.extract_strided_slice %181 {offsets = [0, 0], sizes = [4, 32], strides = [1, 1]} : vector<4x128xf32> to vector<4x32xf32>
    %185 = vector.extract_strided_slice %181 {offsets = [0, 32], sizes = [4, 32], strides = [1, 1]} : vector<4x128xf32> to vector<4x32xf32>
    %186 = vector.extract_strided_slice %181 {offsets = [0, 96], sizes = [4, 32], strides = [1, 1]} : vector<4x128xf32> to vector<4x32xf32>
    %187 = arith.mulf %185, %143 : vector<4x32xf32>
    %188 = arith.mulf %184, %183 : vector<4x32xf32>
    %189 = arith.addf %187, %188 : vector<4x32xf32>
    %190 = math.tanh %189 : vector<4x32xf32>
    %191 = arith.mulf %186, %190 : vector<4x32xf32>
    %c4_i32 = arith.constant 4 : i32
    %192 = arith.index_cast %c4_i32 : i32 to index
    %c0_33 = arith.constant 0 : index
    %c0_34 = arith.constant 0 : index
    %193 = vector.load %arg1[%192, %c0_33, %c0_34] : memref<32x4x1xf32, #tpu.memory_space<vmem>>, vector<1x4x1xf32>
    %194 = vector.shape_cast %193 : vector<1x4x1xf32> to vector<4x1xf32>
    %195 = vector.broadcast %194 : vector<4x1xf32> to vector<4x128xf32>
    %196 = vector.broadcast %0 : vector<1x128xf32> to vector<4x128xf32>
    %197 = arith.mulf %195, %196 : vector<4x128xf32>
    %198 = vector.broadcast %3 : vector<1x128xf32> to vector<4x128xf32>
    %199 = arith.addf %197, %198 : vector<4x128xf32>
    %200 = arith.truncf %171 : vector<4x32xf32> to vector<4x32xbf16>
    %cst_35 = arith.constant dense<0.000000e+00> : vector<4x128xf32>
    %201 = tpu.matmul %200, %2, %cst_35 {dimension_numbers = #tpu.dot_dimension_numbers<[1], [0], [0], [1], [0, 0, 1, 1], [], []>} : vector<4x32xbf16>, vector<32x128xbf16>, vector<4x128xf32> -> vector<4x128xf32>
    %202 = arith.addf %199, %201 : vector<4x128xf32>
    %203 = arith.negf %202 : vector<4x128xf32>
    %204 = math.exp %203 : vector<4x128xf32>
    %cst_36 = arith.constant 1.000000e+00 : f32
    %205 = vector.broadcast %cst_36 : f32 to vector<4x128xf32>
    %206 = arith.addf %205, %204 : vector<4x128xf32>
    %207 = arith.divf %205, %206 : vector<4x128xf32>
    %208 = vector.extract_strided_slice %202 {offsets = [0, 64], sizes = [4, 32], strides = [1, 1]} : vector<4x128xf32> to vector<4x32xf32>
    %209 = math.tanh %208 : vector<4x32xf32>
    %210 = vector.extract_strided_slice %207 {offsets = [0, 0], sizes = [4, 32], strides = [1, 1]} : vector<4x128xf32> to vector<4x32xf32>
    %211 = vector.extract_strided_slice %207 {offsets = [0, 32], sizes = [4, 32], strides = [1, 1]} : vector<4x128xf32> to vector<4x32xf32>
    %212 = vector.extract_strided_slice %207 {offsets = [0, 96], sizes = [4, 32], strides = [1, 1]} : vector<4x128xf32> to vector<4x32xf32>
    %213 = arith.mulf %211, %169 : vector<4x32xf32>
    %214 = arith.mulf %210, %209 : vector<4x32xf32>
    %215 = arith.addf %213, %214 : vector<4x32xf32>
    %216 = math.tanh %215 : vector<4x32xf32>
    %217 = arith.mulf %212, %216 : vector<4x32xf32>
    %218 = tpu.concatenate %217, %191 in 1 : vector<4x32xf32>, vector<4x32xf32> -> vector<4x64xf32>
    %219 = arith.truncf %218 : vector<4x64xf32> to vector<4x64xbf16>
    %cst_37 = arith.constant dense<0.000000e+00> : vector<4x128xf32>
    %220 = tpu.matmul %219, %5, %cst_37 {dimension_numbers = #tpu.dot_dimension_numbers<[1], [0], [0], [1], [0, 0, 1, 1], [], []>} : vector<4x64xbf16>, vector<64x128xbf16>, vector<4x128xf32> -> vector<4x128xf32>
    %221 = vector.broadcast %6 : vector<1x128xf32> to vector<4x128xf32>
    %222 = arith.addf %220, %221 : vector<4x128xf32>
    %223 = arith.negf %222 : vector<4x128xf32>
    %224 = math.exp %223 : vector<4x128xf32>
    %cst_38 = arith.constant 1.000000e+00 : f32
    %225 = vector.broadcast %cst_38 : f32 to vector<4x128xf32>
    %226 = arith.addf %225, %224 : vector<4x128xf32>
    %227 = arith.divf %225, %226 : vector<4x128xf32>
    %228 = vector.extract_strided_slice %222 {offsets = [0, 64], sizes = [4, 32], strides = [1, 1]} : vector<4x128xf32> to vector<4x32xf32>
    %229 = math.tanh %228 : vector<4x32xf32>
    %230 = vector.extract_strided_slice %227 {offsets = [0, 0], sizes = [4, 32], strides = [1, 1]} : vector<4x128xf32> to vector<4x32xf32>
    %231 = vector.extract_strided_slice %227 {offsets = [0, 32], sizes = [4, 32], strides = [1, 1]} : vector<4x128xf32> to vector<4x32xf32>
    %232 = vector.extract_strided_slice %227 {offsets = [0, 96], sizes = [4, 32], strides = [1, 1]} : vector<4x128xf32> to vector<4x32xf32>
    %233 = arith.mulf %231, %189 : vector<4x32xf32>
    %234 = arith.mulf %230, %229 : vector<4x32xf32>
    %235 = arith.addf %233, %234 : vector<4x32xf32>
    %236 = math.tanh %235 : vector<4x32xf32>
    %237 = arith.mulf %232, %236 : vector<4x32xf32>
    %c5_i32 = arith.constant 5 : i32
    %238 = arith.index_cast %c5_i32 : i32 to index
    %c0_39 = arith.constant 0 : index
    %c0_40 = arith.constant 0 : index
    %239 = vector.load %arg1[%238, %c0_39, %c0_40] : memref<32x4x1xf32, #tpu.memory_space<vmem>>, vector<1x4x1xf32>
    %240 = vector.shape_cast %239 : vector<1x4x1xf32> to vector<4x1xf32>
    %241 = vector.broadcast %240 : vector<4x1xf32> to vector<4x128xf32>
    %242 = vector.broadcast %0 : vector<1x128xf32> to vector<4x128xf32>
    %243 = arith.mulf %241, %242 : vector<4x128xf32>
    %244 = vector.broadcast %3 : vector<1x128xf32> to vector<4x128xf32>
    %245 = arith.addf %243, %244 : vector<4x128xf32>
    %246 = arith.truncf %217 : vector<4x32xf32> to vector<4x32xbf16>
    %cst_41 = arith.constant dense<0.000000e+00> : vector<4x128xf32>
    %247 = tpu.matmul %246, %2, %cst_41 {dimension_numbers = #tpu.dot_dimension_numbers<[1], [0], [0], [1], [0, 0, 1, 1], [], []>} : vector<4x32xbf16>, vector<32x128xbf16>, vector<4x128xf32> -> vector<4x128xf32>
    %248 = arith.addf %245, %247 : vector<4x128xf32>
    %249 = arith.negf %248 : vector<4x128xf32>
    %250 = math.exp %249 : vector<4x128xf32>
    %cst_42 = arith.constant 1.000000e+00 : f32
    %251 = vector.broadcast %cst_42 : f32 to vector<4x128xf32>
    %252 = arith.addf %251, %250 : vector<4x128xf32>
    %253 = arith.divf %251, %252 : vector<4x128xf32>
    %254 = vector.extract_strided_slice %248 {offsets = [0, 64], sizes = [4, 32], strides = [1, 1]} : vector<4x128xf32> to vector<4x32xf32>
    %255 = math.tanh %254 : vector<4x32xf32>
    %256 = vector.extract_strided_slice %253 {offsets = [0, 0], sizes = [4, 32], strides = [1, 1]} : vector<4x128xf32> to vector<4x32xf32>
    %257 = vector.extract_strided_slice %253 {offsets = [0, 32], sizes = [4, 32], strides = [1, 1]} : vector<4x128xf32> to vector<4x32xf32>
    %258 = vector.extract_strided_slice %253 {offsets = [0, 96], sizes = [4, 32], strides = [1, 1]} : vector<4x128xf32> to vector<4x32xf32>
    %259 = arith.mulf %257, %215 : vector<4x32xf32>
    %260 = arith.mulf %256, %255 : vector<4x32xf32>
    %261 = arith.addf %259, %260 : vector<4x32xf32>
    %262 = math.tanh %261 : vector<4x32xf32>
    %263 = arith.mulf %258, %262 : vector<4x32xf32>
    %264 = tpu.concatenate %263, %237 in 1 : vector<4x32xf32>, vector<4x32xf32> -> vector<4x64xf32>
    %265 = arith.truncf %264 : vector<4x64xf32> to vector<4x64xbf16>
    %cst_43 = arith.constant dense<0.000000e+00> : vector<4x128xf32>
    %266 = tpu.matmul %265, %5, %cst_43 {dimension_numbers = #tpu.dot_dimension_numbers<[1], [0], [0], [1], [0, 0, 1, 1], [], []>} : vector<4x64xbf16>, vector<64x128xbf16>, vector<4x128xf32> -> vector<4x128xf32>
    %267 = vector.broadcast %6 : vector<1x128xf32> to vector<4x128xf32>
    %268 = arith.addf %266, %267 : vector<4x128xf32>
    %269 = arith.negf %268 : vector<4x128xf32>
    %270 = math.exp %269 : vector<4x128xf32>
    %cst_44 = arith.constant 1.000000e+00 : f32
    %271 = vector.broadcast %cst_44 : f32 to vector<4x128xf32>
    %272 = arith.addf %271, %270 : vector<4x128xf32>
    %273 = arith.divf %271, %272 : vector<4x128xf32>
    %274 = vector.extract_strided_slice %268 {offsets = [0, 64], sizes = [4, 32], strides = [1, 1]} : vector<4x128xf32> to vector<4x32xf32>
    %275 = math.tanh %274 : vector<4x32xf32>
    %276 = vector.extract_strided_slice %273 {offsets = [0, 0], sizes = [4, 32], strides = [1, 1]} : vector<4x128xf32> to vector<4x32xf32>
    %277 = vector.extract_strided_slice %273 {offsets = [0, 32], sizes = [4, 32], strides = [1, 1]} : vector<4x128xf32> to vector<4x32xf32>
    %278 = vector.extract_strided_slice %273 {offsets = [0, 96], sizes = [4, 32], strides = [1, 1]} : vector<4x128xf32> to vector<4x32xf32>
    %279 = arith.mulf %277, %235 : vector<4x32xf32>
    %280 = arith.mulf %276, %275 : vector<4x32xf32>
    %281 = arith.addf %279, %280 : vector<4x32xf32>
    %282 = math.tanh %281 : vector<4x32xf32>
    %283 = arith.mulf %278, %282 : vector<4x32xf32>
    %c6_i32 = arith.constant 6 : i32
    %284 = arith.index_cast %c6_i32 : i32 to index
    %c0_45 = arith.constant 0 : index
    %c0_46 = arith.constant 0 : index
    %285 = vector.load %arg1[%284, %c0_45, %c0_46] : memref<32x4x1xf32, #tpu.memory_space<vmem>>, vector<1x4x1xf32>
    %286 = vector.shape_cast %285 : vector<1x4x1xf32> to vector<4x1xf32>
    %287 = vector.broadcast %286 : vector<4x1xf32> to vector<4x128xf32>
    %288 = vector.broadcast %0 : vector<1x128xf32> to vector<4x128xf32>
    %289 = arith.mulf %287, %288 : vector<4x128xf32>
    %290 = vector.broadcast %3 : vector<1x128xf32> to vector<4x128xf32>
    %291 = arith.addf %289, %290 : vector<4x128xf32>
    %292 = arith.truncf %263 : vector<4x32xf32> to vector<4x32xbf16>
    %cst_47 = arith.constant dense<0.000000e+00> : vector<4x128xf32>
    %293 = tpu.matmul %292, %2, %cst_47 {dimension_numbers = #tpu.dot_dimension_numbers<[1], [0], [0], [1], [0, 0, 1, 1], [], []>} : vector<4x32xbf16>, vector<32x128xbf16>, vector<4x128xf32> -> vector<4x128xf32>
    %294 = arith.addf %291, %293 : vector<4x128xf32>
    %295 = arith.negf %294 : vector<4x128xf32>
    %296 = math.exp %295 : vector<4x128xf32>
    %cst_48 = arith.constant 1.000000e+00 : f32
    %297 = vector.broadcast %cst_48 : f32 to vector<4x128xf32>
    %298 = arith.addf %297, %296 : vector<4x128xf32>
    %299 = arith.divf %297, %298 : vector<4x128xf32>
    %300 = vector.extract_strided_slice %294 {offsets = [0, 64], sizes = [4, 32], strides = [1, 1]} : vector<4x128xf32> to vector<4x32xf32>
    %301 = math.tanh %300 : vector<4x32xf32>
    %302 = vector.extract_strided_slice %299 {offsets = [0, 0], sizes = [4, 32], strides = [1, 1]} : vector<4x128xf32> to vector<4x32xf32>
    %303 = vector.extract_strided_slice %299 {offsets = [0, 32], sizes = [4, 32], strides = [1, 1]} : vector<4x128xf32> to vector<4x32xf32>
    %304 = vector.extract_strided_slice %299 {offsets = [0, 96], sizes = [4, 32], strides = [1, 1]} : vector<4x128xf32> to vector<4x32xf32>
    %305 = arith.mulf %303, %261 : vector<4x32xf32>
    %306 = arith.mulf %302, %301 : vector<4x32xf32>
    %307 = arith.addf %305, %306 : vector<4x32xf32>
    %308 = math.tanh %307 : vector<4x32xf32>
    %309 = arith.mulf %304, %308 : vector<4x32xf32>
    %310 = tpu.concatenate %309, %283 in 1 : vector<4x32xf32>, vector<4x32xf32> -> vector<4x64xf32>
    %311 = arith.truncf %310 : vector<4x64xf32> to vector<4x64xbf16>
    %cst_49 = arith.constant dense<0.000000e+00> : vector<4x128xf32>
    %312 = tpu.matmul %311, %5, %cst_49 {dimension_numbers = #tpu.dot_dimension_numbers<[1], [0], [0], [1], [0, 0, 1, 1], [], []>} : vector<4x64xbf16>, vector<64x128xbf16>, vector<4x128xf32> -> vector<4x128xf32>
    %313 = vector.broadcast %6 : vector<1x128xf32> to vector<4x128xf32>
    %314 = arith.addf %312, %313 : vector<4x128xf32>
    %315 = arith.negf %314 : vector<4x128xf32>
    %316 = math.exp %315 : vector<4x128xf32>
    %cst_50 = arith.constant 1.000000e+00 : f32
    %317 = vector.broadcast %cst_50 : f32 to vector<4x128xf32>
    %318 = arith.addf %317, %316 : vector<4x128xf32>
    %319 = arith.divf %317, %318 : vector<4x128xf32>
    %320 = vector.extract_strided_slice %314 {offsets = [0, 64], sizes = [4, 32], strides = [1, 1]} : vector<4x128xf32> to vector<4x32xf32>
    %321 = math.tanh %320 : vector<4x32xf32>
    %322 = vector.extract_strided_slice %319 {offsets = [0, 0], sizes = [4, 32], strides = [1, 1]} : vector<4x128xf32> to vector<4x32xf32>
    %323 = vector.extract_strided_slice %319 {offsets = [0, 32], sizes = [4, 32], strides = [1, 1]} : vector<4x128xf32> to vector<4x32xf32>
    %324 = vector.extract_strided_slice %319 {offsets = [0, 96], sizes = [4, 32], strides = [1, 1]} : vector<4x128xf32> to vector<4x32xf32>
    %325 = arith.mulf %323, %281 : vector<4x32xf32>
    %326 = arith.mulf %322, %321 : vector<4x32xf32>
    %327 = arith.addf %325, %326 : vector<4x32xf32>
    %328 = math.tanh %327 : vector<4x32xf32>
    %329 = arith.mulf %324, %328 : vector<4x32xf32>
    %c7_i32 = arith.constant 7 : i32
    %330 = arith.index_cast %c7_i32 : i32 to index
    %c0_51 = arith.constant 0 : index
    %c0_52 = arith.constant 0 : index
    %331 = vector.load %arg1[%330, %c0_51, %c0_52] : memref<32x4x1xf32, #tpu.memory_space<vmem>>, vector<1x4x1xf32>
    %332 = vector.shape_cast %331 : vector<1x4x1xf32> to vector<4x1xf32>
    %333 = vector.broadcast %332 : vector<4x1xf32> to vector<4x128xf32>
    %334 = vector.broadcast %0 : vector<1x128xf32> to vector<4x128xf32>
    %335 = arith.mulf %333, %334 : vector<4x128xf32>
    %336 = vector.broadcast %3 : vector<1x128xf32> to vector<4x128xf32>
    %337 = arith.addf %335, %336 : vector<4x128xf32>
    %338 = arith.truncf %309 : vector<4x32xf32> to vector<4x32xbf16>
    %cst_53 = arith.constant dense<0.000000e+00> : vector<4x128xf32>
    %339 = tpu.matmul %338, %2, %cst_53 {dimension_numbers = #tpu.dot_dimension_numbers<[1], [0], [0], [1], [0, 0, 1, 1], [], []>} : vector<4x32xbf16>, vector<32x128xbf16>, vector<4x128xf32> -> vector<4x128xf32>
    %340 = arith.addf %337, %339 : vector<4x128xf32>
    %341 = arith.negf %340 : vector<4x128xf32>
    %342 = math.exp %341 : vector<4x128xf32>
    %cst_54 = arith.constant 1.000000e+00 : f32
    %343 = vector.broadcast %cst_54 : f32 to vector<4x128xf32>
    %344 = arith.addf %343, %342 : vector<4x128xf32>
    %345 = arith.divf %343, %344 : vector<4x128xf32>
    %346 = vector.extract_strided_slice %340 {offsets = [0, 64], sizes = [4, 32], strides = [1, 1]} : vector<4x128xf32> to vector<4x32xf32>
    %347 = math.tanh %346 : vector<4x32xf32>
    %348 = vector.extract_strided_slice %345 {offsets = [0, 0], sizes = [4, 32], strides = [1, 1]} : vector<4x128xf32> to vector<4x32xf32>
    %349 = vector.extract_strided_slice %345 {offsets = [0, 32], sizes = [4, 32], strides = [1, 1]} : vector<4x128xf32> to vector<4x32xf32>
    %350 = vector.extract_strided_slice %345 {offsets = [0, 96], sizes = [4, 32], strides = [1, 1]} : vector<4x128xf32> to vector<4x32xf32>
    %351 = arith.mulf %349, %307 : vector<4x32xf32>
    %352 = arith.mulf %348, %347 : vector<4x32xf32>
    %353 = arith.addf %351, %352 : vector<4x32xf32>
    %354 = math.tanh %353 : vector<4x32xf32>
    %355 = arith.mulf %350, %354 : vector<4x32xf32>
    %356 = tpu.concatenate %355, %329 in 1 : vector<4x32xf32>, vector<4x32xf32> -> vector<4x64xf32>
    %357 = arith.truncf %356 : vector<4x64xf32> to vector<4x64xbf16>
    %cst_55 = arith.constant dense<0.000000e+00> : vector<4x128xf32>
    %358 = tpu.matmul %357, %5, %cst_55 {dimension_numbers = #tpu.dot_dimension_numbers<[1], [0], [0], [1], [0, 0, 1, 1], [], []>} : vector<4x64xbf16>, vector<64x128xbf16>, vector<4x128xf32> -> vector<4x128xf32>
    %359 = vector.broadcast %6 : vector<1x128xf32> to vector<4x128xf32>
    %360 = arith.addf %358, %359 : vector<4x128xf32>
    %361 = arith.negf %360 : vector<4x128xf32>
    %362 = math.exp %361 : vector<4x128xf32>
    %cst_56 = arith.constant 1.000000e+00 : f32
    %363 = vector.broadcast %cst_56 : f32 to vector<4x128xf32>
    %364 = arith.addf %363, %362 : vector<4x128xf32>
    %365 = arith.divf %363, %364 : vector<4x128xf32>
    %366 = vector.extract_strided_slice %360 {offsets = [0, 64], sizes = [4, 32], strides = [1, 1]} : vector<4x128xf32> to vector<4x32xf32>
    %367 = math.tanh %366 : vector<4x32xf32>
    %368 = vector.extract_strided_slice %365 {offsets = [0, 0], sizes = [4, 32], strides = [1, 1]} : vector<4x128xf32> to vector<4x32xf32>
    %369 = vector.extract_strided_slice %365 {offsets = [0, 32], sizes = [4, 32], strides = [1, 1]} : vector<4x128xf32> to vector<4x32xf32>
    %370 = vector.extract_strided_slice %365 {offsets = [0, 96], sizes = [4, 32], strides = [1, 1]} : vector<4x128xf32> to vector<4x32xf32>
    %371 = arith.mulf %369, %327 : vector<4x32xf32>
    %372 = arith.mulf %368, %367 : vector<4x32xf32>
    %373 = arith.addf %371, %372 : vector<4x32xf32>
    %374 = math.tanh %373 : vector<4x32xf32>
    %375 = arith.mulf %370, %374 : vector<4x32xf32>
    %c8_i32 = arith.constant 8 : i32
    %376 = arith.index_cast %c8_i32 : i32 to index
    %c0_57 = arith.constant 0 : index
    %c0_58 = arith.constant 0 : index
    %377 = vector.load %arg1[%376, %c0_57, %c0_58] : memref<32x4x1xf32, #tpu.memory_space<vmem>>, vector<1x4x1xf32>
    %378 = vector.shape_cast %377 : vector<1x4x1xf32> to vector<4x1xf32>
    %379 = vector.broadcast %378 : vector<4x1xf32> to vector<4x128xf32>
    %380 = vector.broadcast %0 : vector<1x128xf32> to vector<4x128xf32>
    %381 = arith.mulf %379, %380 : vector<4x128xf32>
    %382 = vector.broadcast %3 : vector<1x128xf32> to vector<4x128xf32>
    %383 = arith.addf %381, %382 : vector<4x128xf32>
    %384 = arith.truncf %355 : vector<4x32xf32> to vector<4x32xbf16>
    %cst_59 = arith.constant dense<0.000000e+00> : vector<4x128xf32>
    %385 = tpu.matmul %384, %2, %cst_59 {dimension_numbers = #tpu.dot_dimension_numbers<[1], [0], [0], [1], [0, 0, 1, 1], [], []>} : vector<4x32xbf16>, vector<32x128xbf16>, vector<4x128xf32> -> vector<4x128xf32>
    %386 = arith.addf %383, %385 : vector<4x128xf32>
    %387 = arith.negf %386 : vector<4x128xf32>
    %388 = math.exp %387 : vector<4x128xf32>
    %cst_60 = arith.constant 1.000000e+00 : f32
    %389 = vector.broadcast %cst_60 : f32 to vector<4x128xf32>
    %390 = arith.addf %389, %388 : vector<4x128xf32>
    %391 = arith.divf %389, %390 : vector<4x128xf32>
    %392 = vector.extract_strided_slice %386 {offsets = [0, 64], sizes = [4, 32], strides = [1, 1]} : vector<4x128xf32> to vector<4x32xf32>
    %393 = math.tanh %392 : vector<4x32xf32>
    %394 = vector.extract_strided_slice %391 {offsets = [0, 0], sizes = [4, 32], strides = [1, 1]} : vector<4x128xf32> to vector<4x32xf32>
    %395 = vector.extract_strided_slice %391 {offsets = [0, 32], sizes = [4, 32], strides = [1, 1]} : vector<4x128xf32> to vector<4x32xf32>
    %396 = vector.extract_strided_slice %391 {offsets = [0, 96], sizes = [4, 32], strides = [1, 1]} : vector<4x128xf32> to vector<4x32xf32>
    %397 = arith.mulf %395, %353 : vector<4x32xf32>
    %398 = arith.mulf %394, %393 : vector<4x32xf32>
    %399 = arith.addf %397, %398 : vector<4x32xf32>
    %400 = math.tanh %399 : vector<4x32xf32>
    %401 = arith.mulf %396, %400 : vector<4x32xf32>
    %402 = tpu.concatenate %401, %375 in 1 : vector<4x32xf32>, vector<4x32xf32> -> vector<4x64xf32>
    %403 = arith.truncf %402 : vector<4x64xf32> to vector<4x64xbf16>
    %cst_61 = arith.constant dense<0.000000e+00> : vector<4x128xf32>
    %404 = tpu.matmul %403, %5, %cst_61 {dimension_numbers = #tpu.dot_dimension_numbers<[1], [0], [0], [1], [0, 0, 1, 1], [], []>} : vector<4x64xbf16>, vector<64x128xbf16>, vector<4x128xf32> -> vector<4x128xf32>
    %405 = vector.broadcast %6 : vector<1x128xf32> to vector<4x128xf32>
    %406 = arith.addf %404, %405 : vector<4x128xf32>
    %407 = arith.negf %406 : vector<4x128xf32>
    %408 = math.exp %407 : vector<4x128xf32>
    %cst_62 = arith.constant 1.000000e+00 : f32
    %409 = vector.broadcast %cst_62 : f32 to vector<4x128xf32>
    %410 = arith.addf %409, %408 : vector<4x128xf32>
    %411 = arith.divf %409, %410 : vector<4x128xf32>
    %412 = vector.extract_strided_slice %406 {offsets = [0, 64], sizes = [4, 32], strides = [1, 1]} : vector<4x128xf32> to vector<4x32xf32>
    %413 = math.tanh %412 : vector<4x32xf32>
    %414 = vector.extract_strided_slice %411 {offsets = [0, 0], sizes = [4, 32], strides = [1, 1]} : vector<4x128xf32> to vector<4x32xf32>
    %415 = vector.extract_strided_slice %411 {offsets = [0, 32], sizes = [4, 32], strides = [1, 1]} : vector<4x128xf32> to vector<4x32xf32>
    %416 = vector.extract_strided_slice %411 {offsets = [0, 96], sizes = [4, 32], strides = [1, 1]} : vector<4x128xf32> to vector<4x32xf32>
    %417 = arith.mulf %415, %373 : vector<4x32xf32>
    %418 = arith.mulf %414, %413 : vector<4x32xf32>
    %419 = arith.addf %417, %418 : vector<4x32xf32>
    %420 = math.tanh %419 : vector<4x32xf32>
    %421 = arith.mulf %416, %420 : vector<4x32xf32>
    %c9_i32 = arith.constant 9 : i32
    %422 = arith.index_cast %c9_i32 : i32 to index
    %c0_63 = arith.constant 0 : index
    %c0_64 = arith.constant 0 : index
    %423 = vector.load %arg1[%422, %c0_63, %c0_64] : memref<32x4x1xf32, #tpu.memory_space<vmem>>, vector<1x4x1xf32>
    %424 = vector.shape_cast %423 : vector<1x4x1xf32> to vector<4x1xf32>
    %425 = vector.broadcast %424 : vector<4x1xf32> to vector<4x128xf32>
    %426 = vector.broadcast %0 : vector<1x128xf32> to vector<4x128xf32>
    %427 = arith.mulf %425, %426 : vector<4x128xf32>
    %428 = vector.broadcast %3 : vector<1x128xf32> to vector<4x128xf32>
    %429 = arith.addf %427, %428 : vector<4x128xf32>
    %430 = arith.truncf %401 : vector<4x32xf32> to vector<4x32xbf16>
    %cst_65 = arith.constant dense<0.000000e+00> : vector<4x128xf32>
    %431 = tpu.matmul %430, %2, %cst_65 {dimension_numbers = #tpu.dot_dimension_numbers<[1], [0], [0], [1], [0, 0, 1, 1], [], []>} : vector<4x32xbf16>, vector<32x128xbf16>, vector<4x128xf32> -> vector<4x128xf32>
    %432 = arith.addf %429, %431 : vector<4x128xf32>
    %433 = arith.negf %432 : vector<4x128xf32>
    %434 = math.exp %433 : vector<4x128xf32>
    %cst_66 = arith.constant 1.000000e+00 : f32
    %435 = vector.broadcast %cst_66 : f32 to vector<4x128xf32>
    %436 = arith.addf %435, %434 : vector<4x128xf32>
    %437 = arith.divf %435, %436 : vector<4x128xf32>
    %438 = vector.extract_strided_slice %432 {offsets = [0, 64], sizes = [4, 32], strides = [1, 1]} : vector<4x128xf32> to vector<4x32xf32>
    %439 = math.tanh %438 : vector<4x32xf32>
    %440 = vector.extract_strided_slice %437 {offsets = [0, 0], sizes = [4, 32], strides = [1, 1]} : vector<4x128xf32> to vector<4x32xf32>
    %441 = vector.extract_strided_slice %437 {offsets = [0, 32], sizes = [4, 32], strides = [1, 1]} : vector<4x128xf32> to vector<4x32xf32>
    %442 = vector.extract_strided_slice %437 {offsets = [0, 96], sizes = [4, 32], strides = [1, 1]} : vector<4x128xf32> to vector<4x32xf32>
    %443 = arith.mulf %441, %399 : vector<4x32xf32>
    %444 = arith.mulf %440, %439 : vector<4x32xf32>
    %445 = arith.addf %443, %444 : vector<4x32xf32>
    %446 = math.tanh %445 : vector<4x32xf32>
    %447 = arith.mulf %442, %446 : vector<4x32xf32>
    %448 = tpu.concatenate %447, %421 in 1 : vector<4x32xf32>, vector<4x32xf32> -> vector<4x64xf32>
    %449 = arith.truncf %448 : vector<4x64xf32> to vector<4x64xbf16>
    %cst_67 = arith.constant dense<0.000000e+00> : vector<4x128xf32>
    %450 = tpu.matmul %449, %5, %cst_67 {dimension_numbers = #tpu.dot_dimension_numbers<[1], [0], [0], [1], [0, 0, 1, 1], [], []>} : vector<4x64xbf16>, vector<64x128xbf16>, vector<4x128xf32> -> vector<4x128xf32>
    %451 = vector.broadcast %6 : vector<1x128xf32> to vector<4x128xf32>
    %452 = arith.addf %450, %451 : vector<4x128xf32>
    %453 = arith.negf %452 : vector<4x128xf32>
    %454 = math.exp %453 : vector<4x128xf32>
    %cst_68 = arith.constant 1.000000e+00 : f32
    %455 = vector.broadcast %cst_68 : f32 to vector<4x128xf32>
    %456 = arith.addf %455, %454 : vector<4x128xf32>
    %457 = arith.divf %455, %456 : vector<4x128xf32>
    %458 = vector.extract_strided_slice %452 {offsets = [0, 64], sizes = [4, 32], strides = [1, 1]} : vector<4x128xf32> to vector<4x32xf32>
    %459 = math.tanh %458 : vector<4x32xf32>
    %460 = vector.extract_strided_slice %457 {offsets = [0, 0], sizes = [4, 32], strides = [1, 1]} : vector<4x128xf32> to vector<4x32xf32>
    %461 = vector.extract_strided_slice %457 {offsets = [0, 32], sizes = [4, 32], strides = [1, 1]} : vector<4x128xf32> to vector<4x32xf32>
    %462 = vector.extract_strided_slice %457 {offsets = [0, 96], sizes = [4, 32], strides = [1, 1]} : vector<4x128xf32> to vector<4x32xf32>
    %463 = arith.mulf %461, %419 : vector<4x32xf32>
    %464 = arith.mulf %460, %459 : vector<4x32xf32>
    %465 = arith.addf %463, %464 : vector<4x32xf32>
    %466 = math.tanh %465 : vector<4x32xf32>
    %467 = arith.mulf %462, %466 : vector<4x32xf32>
    %c10_i32 = arith.constant 10 : i32
    %468 = arith.index_cast %c10_i32 : i32 to index
    %c0_69 = arith.constant 0 : index
    %c0_70 = arith.constant 0 : index
    %469 = vector.load %arg1[%468, %c0_69, %c0_70] : memref<32x4x1xf32, #tpu.memory_space<vmem>>, vector<1x4x1xf32>
    %470 = vector.shape_cast %469 : vector<1x4x1xf32> to vector<4x1xf32>
    %471 = vector.broadcast %470 : vector<4x1xf32> to vector<4x128xf32>
    %472 = vector.broadcast %0 : vector<1x128xf32> to vector<4x128xf32>
    %473 = arith.mulf %471, %472 : vector<4x128xf32>
    %474 = vector.broadcast %3 : vector<1x128xf32> to vector<4x128xf32>
    %475 = arith.addf %473, %474 : vector<4x128xf32>
    %476 = arith.truncf %447 : vector<4x32xf32> to vector<4x32xbf16>
    %cst_71 = arith.constant dense<0.000000e+00> : vector<4x128xf32>
    %477 = tpu.matmul %476, %2, %cst_71 {dimension_numbers = #tpu.dot_dimension_numbers<[1], [0], [0], [1], [0, 0, 1, 1], [], []>} : vector<4x32xbf16>, vector<32x128xbf16>, vector<4x128xf32> -> vector<4x128xf32>
    %478 = arith.addf %475, %477 : vector<4x128xf32>
    %479 = arith.negf %478 : vector<4x128xf32>
    %480 = math.exp %479 : vector<4x128xf32>
    %cst_72 = arith.constant 1.000000e+00 : f32
    %481 = vector.broadcast %cst_72 : f32 to vector<4x128xf32>
    %482 = arith.addf %481, %480 : vector<4x128xf32>
    %483 = arith.divf %481, %482 : vector<4x128xf32>
    %484 = vector.extract_strided_slice %478 {offsets = [0, 64], sizes = [4, 32], strides = [1, 1]} : vector<4x128xf32> to vector<4x32xf32>
    %485 = math.tanh %484 : vector<4x32xf32>
    %486 = vector.extract_strided_slice %483 {offsets = [0, 0], sizes = [4, 32], strides = [1, 1]} : vector<4x128xf32> to vector<4x32xf32>
    %487 = vector.extract_strided_slice %483 {offsets = [0, 32], sizes = [4, 32], strides = [1, 1]} : vector<4x128xf32> to vector<4x32xf32>
    %488 = vector.extract_strided_slice %483 {offsets = [0, 96], sizes = [4, 32], strides = [1, 1]} : vector<4x128xf32> to vector<4x32xf32>
    %489 = arith.mulf %487, %445 : vector<4x32xf32>
    %490 = arith.mulf %486, %485 : vector<4x32xf32>
    %491 = arith.addf %489, %490 : vector<4x32xf32>
    %492 = math.tanh %491 : vector<4x32xf32>
    %493 = arith.mulf %488, %492 : vector<4x32xf32>
    %494 = tpu.concatenate %493, %467 in 1 : vector<4x32xf32>, vector<4x32xf32> -> vector<4x64xf32>
    %495 = arith.truncf %494 : vector<4x64xf32> to vector<4x64xbf16>
    %cst_73 = arith.constant dense<0.000000e+00> : vector<4x128xf32>
    %496 = tpu.matmul %495, %5, %cst_73 {dimension_numbers = #tpu.dot_dimension_numbers<[1], [0], [0], [1], [0, 0, 1, 1], [], []>} : vector<4x64xbf16>, vector<64x128xbf16>, vector<4x128xf32> -> vector<4x128xf32>
    %497 = vector.broadcast %6 : vector<1x128xf32> to vector<4x128xf32>
    %498 = arith.addf %496, %497 : vector<4x128xf32>
    %499 = arith.negf %498 : vector<4x128xf32>
    %500 = math.exp %499 : vector<4x128xf32>
    %cst_74 = arith.constant 1.000000e+00 : f32
    %501 = vector.broadcast %cst_74 : f32 to vector<4x128xf32>
    %502 = arith.addf %501, %500 : vector<4x128xf32>
    %503 = arith.divf %501, %502 : vector<4x128xf32>
    %504 = vector.extract_strided_slice %498 {offsets = [0, 64], sizes = [4, 32], strides = [1, 1]} : vector<4x128xf32> to vector<4x32xf32>
    %505 = math.tanh %504 : vector<4x32xf32>
    %506 = vector.extract_strided_slice %503 {offsets = [0, 0], sizes = [4, 32], strides = [1, 1]} : vector<4x128xf32> to vector<4x32xf32>
    %507 = vector.extract_strided_slice %503 {offsets = [0, 32], sizes = [4, 32], strides = [1, 1]} : vector<4x128xf32> to vector<4x32xf32>
    %508 = vector.extract_strided_slice %503 {offsets = [0, 96], sizes = [4, 32], strides = [1, 1]} : vector<4x128xf32> to vector<4x32xf32>
    %509 = arith.mulf %507, %465 : vector<4x32xf32>
    %510 = arith.mulf %506, %505 : vector<4x32xf32>
    %511 = arith.addf %509, %510 : vector<4x32xf32>
    %512 = math.tanh %511 : vector<4x32xf32>
    %513 = arith.mulf %508, %512 : vector<4x32xf32>
    %c11_i32 = arith.constant 11 : i32
    %514 = arith.index_cast %c11_i32 : i32 to index
    %c0_75 = arith.constant 0 : index
    %c0_76 = arith.constant 0 : index
    %515 = vector.load %arg1[%514, %c0_75, %c0_76] : memref<32x4x1xf32, #tpu.memory_space<vmem>>, vector<1x4x1xf32>
    %516 = vector.shape_cast %515 : vector<1x4x1xf32> to vector<4x1xf32>
    %517 = vector.broadcast %516 : vector<4x1xf32> to vector<4x128xf32>
    %518 = vector.broadcast %0 : vector<1x128xf32> to vector<4x128xf32>
    %519 = arith.mulf %517, %518 : vector<4x128xf32>
    %520 = vector.broadcast %3 : vector<1x128xf32> to vector<4x128xf32>
    %521 = arith.addf %519, %520 : vector<4x128xf32>
    %522 = arith.truncf %493 : vector<4x32xf32> to vector<4x32xbf16>
    %cst_77 = arith.constant dense<0.000000e+00> : vector<4x128xf32>
    %523 = tpu.matmul %522, %2, %cst_77 {dimension_numbers = #tpu.dot_dimension_numbers<[1], [0], [0], [1], [0, 0, 1, 1], [], []>} : vector<4x32xbf16>, vector<32x128xbf16>, vector<4x128xf32> -> vector<4x128xf32>
    %524 = arith.addf %521, %523 : vector<4x128xf32>
    %525 = arith.negf %524 : vector<4x128xf32>
    %526 = math.exp %525 : vector<4x128xf32>
    %cst_78 = arith.constant 1.000000e+00 : f32
    %527 = vector.broadcast %cst_78 : f32 to vector<4x128xf32>
    %528 = arith.addf %527, %526 : vector<4x128xf32>
    %529 = arith.divf %527, %528 : vector<4x128xf32>
    %530 = vector.extract_strided_slice %524 {offsets = [0, 64], sizes = [4, 32], strides = [1, 1]} : vector<4x128xf32> to vector<4x32xf32>
    %531 = math.tanh %530 : vector<4x32xf32>
    %532 = vector.extract_strided_slice %529 {offsets = [0, 0], sizes = [4, 32], strides = [1, 1]} : vector<4x128xf32> to vector<4x32xf32>
    %533 = vector.extract_strided_slice %529 {offsets = [0, 32], sizes = [4, 32], strides = [1, 1]} : vector<4x128xf32> to vector<4x32xf32>
    %534 = vector.extract_strided_slice %529 {offsets = [0, 96], sizes = [4, 32], strides = [1, 1]} : vector<4x128xf32> to vector<4x32xf32>
    %535 = arith.mulf %533, %491 : vector<4x32xf32>
    %536 = arith.mulf %532, %531 : vector<4x32xf32>
    %537 = arith.addf %535, %536 : vector<4x32xf32>
    %538 = math.tanh %537 : vector<4x32xf32>
    %539 = arith.mulf %534, %538 : vector<4x32xf32>
    %540 = tpu.concatenate %539, %513 in 1 : vector<4x32xf32>, vector<4x32xf32> -> vector<4x64xf32>
    %541 = arith.truncf %540 : vector<4x64xf32> to vector<4x64xbf16>
    %cst_79 = arith.constant dense<0.000000e+00> : vector<4x128xf32>
    %542 = tpu.matmul %541, %5, %cst_79 {dimension_numbers = #tpu.dot_dimension_numbers<[1], [0], [0], [1], [0, 0, 1, 1], [], []>} : vector<4x64xbf16>, vector<64x128xbf16>, vector<4x128xf32> -> vector<4x128xf32>
    %543 = vector.broadcast %6 : vector<1x128xf32> to vector<4x128xf32>
    %544 = arith.addf %542, %543 : vector<4x128xf32>
    %545 = arith.negf %544 : vector<4x128xf32>
    %546 = math.exp %545 : vector<4x128xf32>
    %cst_80 = arith.constant 1.000000e+00 : f32
    %547 = vector.broadcast %cst_80 : f32 to vector<4x128xf32>
    %548 = arith.addf %547, %546 : vector<4x128xf32>
    %549 = arith.divf %547, %548 : vector<4x128xf32>
    %550 = vector.extract_strided_slice %544 {offsets = [0, 64], sizes = [4, 32], strides = [1, 1]} : vector<4x128xf32> to vector<4x32xf32>
    %551 = math.tanh %550 : vector<4x32xf32>
    %552 = vector.extract_strided_slice %549 {offsets = [0, 0], sizes = [4, 32], strides = [1, 1]} : vector<4x128xf32> to vector<4x32xf32>
    %553 = vector.extract_strided_slice %549 {offsets = [0, 32], sizes = [4, 32], strides = [1, 1]} : vector<4x128xf32> to vector<4x32xf32>
    %554 = vector.extract_strided_slice %549 {offsets = [0, 96], sizes = [4, 32], strides = [1, 1]} : vector<4x128xf32> to vector<4x32xf32>
    %555 = arith.mulf %553, %511 : vector<4x32xf32>
    %556 = arith.mulf %552, %551 : vector<4x32xf32>
    %557 = arith.addf %555, %556 : vector<4x32xf32>
    %558 = math.tanh %557 : vector<4x32xf32>
    %559 = arith.mulf %554, %558 : vector<4x32xf32>
    %c12_i32 = arith.constant 12 : i32
    %560 = arith.index_cast %c12_i32 : i32 to index
    %c0_81 = arith.constant 0 : index
    %c0_82 = arith.constant 0 : index
    %561 = vector.load %arg1[%560, %c0_81, %c0_82] : memref<32x4x1xf32, #tpu.memory_space<vmem>>, vector<1x4x1xf32>
    %562 = vector.shape_cast %561 : vector<1x4x1xf32> to vector<4x1xf32>
    %563 = vector.broadcast %562 : vector<4x1xf32> to vector<4x128xf32>
    %564 = vector.broadcast %0 : vector<1x128xf32> to vector<4x128xf32>
    %565 = arith.mulf %563, %564 : vector<4x128xf32>
    %566 = vector.broadcast %3 : vector<1x128xf32> to vector<4x128xf32>
    %567 = arith.addf %565, %566 : vector<4x128xf32>
    %568 = arith.truncf %539 : vector<4x32xf32> to vector<4x32xbf16>
    %cst_83 = arith.constant dense<0.000000e+00> : vector<4x128xf32>
    %569 = tpu.matmul %568, %2, %cst_83 {dimension_numbers = #tpu.dot_dimension_numbers<[1], [0], [0], [1], [0, 0, 1, 1], [], []>} : vector<4x32xbf16>, vector<32x128xbf16>, vector<4x128xf32> -> vector<4x128xf32>
    %570 = arith.addf %567, %569 : vector<4x128xf32>
    %571 = arith.negf %570 : vector<4x128xf32>
    %572 = math.exp %571 : vector<4x128xf32>
    %cst_84 = arith.constant 1.000000e+00 : f32
    %573 = vector.broadcast %cst_84 : f32 to vector<4x128xf32>
    %574 = arith.addf %573, %572 : vector<4x128xf32>
    %575 = arith.divf %573, %574 : vector<4x128xf32>
    %576 = vector.extract_strided_slice %570 {offsets = [0, 64], sizes = [4, 32], strides = [1, 1]} : vector<4x128xf32> to vector<4x32xf32>
    %577 = math.tanh %576 : vector<4x32xf32>
    %578 = vector.extract_strided_slice %575 {offsets = [0, 0], sizes = [4, 32], strides = [1, 1]} : vector<4x128xf32> to vector<4x32xf32>
    %579 = vector.extract_strided_slice %575 {offsets = [0, 32], sizes = [4, 32], strides = [1, 1]} : vector<4x128xf32> to vector<4x32xf32>
    %580 = vector.extract_strided_slice %575 {offsets = [0, 96], sizes = [4, 32], strides = [1, 1]} : vector<4x128xf32> to vector<4x32xf32>
    %581 = arith.mulf %579, %537 : vector<4x32xf32>
    %582 = arith.mulf %578, %577 : vector<4x32xf32>
    %583 = arith.addf %581, %582 : vector<4x32xf32>
    %584 = math.tanh %583 : vector<4x32xf32>
    %585 = arith.mulf %580, %584 : vector<4x32xf32>
    %586 = tpu.concatenate %585, %559 in 1 : vector<4x32xf32>, vector<4x32xf32> -> vector<4x64xf32>
    %587 = arith.truncf %586 : vector<4x64xf32> to vector<4x64xbf16>
    %cst_85 = arith.constant dense<0.000000e+00> : vector<4x128xf32>
    %588 = tpu.matmul %587, %5, %cst_85 {dimension_numbers = #tpu.dot_dimension_numbers<[1], [0], [0], [1], [0, 0, 1, 1], [], []>} : vector<4x64xbf16>, vector<64x128xbf16>, vector<4x128xf32> -> vector<4x128xf32>
    %589 = vector.broadcast %6 : vector<1x128xf32> to vector<4x128xf32>
    %590 = arith.addf %588, %589 : vector<4x128xf32>
    %591 = arith.negf %590 : vector<4x128xf32>
    %592 = math.exp %591 : vector<4x128xf32>
    %cst_86 = arith.constant 1.000000e+00 : f32
    %593 = vector.broadcast %cst_86 : f32 to vector<4x128xf32>
    %594 = arith.addf %593, %592 : vector<4x128xf32>
    %595 = arith.divf %593, %594 : vector<4x128xf32>
    %596 = vector.extract_strided_slice %590 {offsets = [0, 64], sizes = [4, 32], strides = [1, 1]} : vector<4x128xf32> to vector<4x32xf32>
    %597 = math.tanh %596 : vector<4x32xf32>
    %598 = vector.extract_strided_slice %595 {offsets = [0, 0], sizes = [4, 32], strides = [1, 1]} : vector<4x128xf32> to vector<4x32xf32>
    %599 = vector.extract_strided_slice %595 {offsets = [0, 32], sizes = [4, 32], strides = [1, 1]} : vector<4x128xf32> to vector<4x32xf32>
    %600 = vector.extract_strided_slice %595 {offsets = [0, 96], sizes = [4, 32], strides = [1, 1]} : vector<4x128xf32> to vector<4x32xf32>
    %601 = arith.mulf %599, %557 : vector<4x32xf32>
    %602 = arith.mulf %598, %597 : vector<4x32xf32>
    %603 = arith.addf %601, %602 : vector<4x32xf32>
    %604 = math.tanh %603 : vector<4x32xf32>
    %605 = arith.mulf %600, %604 : vector<4x32xf32>
    %c13_i32 = arith.constant 13 : i32
    %606 = arith.index_cast %c13_i32 : i32 to index
    %c0_87 = arith.constant 0 : index
    %c0_88 = arith.constant 0 : index
    %607 = vector.load %arg1[%606, %c0_87, %c0_88] : memref<32x4x1xf32, #tpu.memory_space<vmem>>, vector<1x4x1xf32>
    %608 = vector.shape_cast %607 : vector<1x4x1xf32> to vector<4x1xf32>
    %609 = vector.broadcast %608 : vector<4x1xf32> to vector<4x128xf32>
    %610 = vector.broadcast %0 : vector<1x128xf32> to vector<4x128xf32>
    %611 = arith.mulf %609, %610 : vector<4x128xf32>
    %612 = vector.broadcast %3 : vector<1x128xf32> to vector<4x128xf32>
    %613 = arith.addf %611, %612 : vector<4x128xf32>
    %614 = arith.truncf %585 : vector<4x32xf32> to vector<4x32xbf16>
    %cst_89 = arith.constant dense<0.000000e+00> : vector<4x128xf32>
    %615 = tpu.matmul %614, %2, %cst_89 {dimension_numbers = #tpu.dot_dimension_numbers<[1], [0], [0], [1], [0, 0, 1, 1], [], []>} : vector<4x32xbf16>, vector<32x128xbf16>, vector<4x128xf32> -> vector<4x128xf32>
    %616 = arith.addf %613, %615 : vector<4x128xf32>
    %617 = arith.negf %616 : vector<4x128xf32>
    %618 = math.exp %617 : vector<4x128xf32>
    %cst_90 = arith.constant 1.000000e+00 : f32
    %619 = vector.broadcast %cst_90 : f32 to vector<4x128xf32>
    %620 = arith.addf %619, %618 : vector<4x128xf32>
    %621 = arith.divf %619, %620 : vector<4x128xf32>
    %622 = vector.extract_strided_slice %616 {offsets = [0, 64], sizes = [4, 32], strides = [1, 1]} : vector<4x128xf32> to vector<4x32xf32>
    %623 = math.tanh %622 : vector<4x32xf32>
    %624 = vector.extract_strided_slice %621 {offsets = [0, 0], sizes = [4, 32], strides = [1, 1]} : vector<4x128xf32> to vector<4x32xf32>
    %625 = vector.extract_strided_slice %621 {offsets = [0, 32], sizes = [4, 32], strides = [1, 1]} : vector<4x128xf32> to vector<4x32xf32>
    %626 = vector.extract_strided_slice %621 {offsets = [0, 96], sizes = [4, 32], strides = [1, 1]} : vector<4x128xf32> to vector<4x32xf32>
    %627 = arith.mulf %625, %583 : vector<4x32xf32>
    %628 = arith.mulf %624, %623 : vector<4x32xf32>
    %629 = arith.addf %627, %628 : vector<4x32xf32>
    %630 = math.tanh %629 : vector<4x32xf32>
    %631 = arith.mulf %626, %630 : vector<4x32xf32>
    %632 = tpu.concatenate %631, %605 in 1 : vector<4x32xf32>, vector<4x32xf32> -> vector<4x64xf32>
    %633 = arith.truncf %632 : vector<4x64xf32> to vector<4x64xbf16>
    %cst_91 = arith.constant dense<0.000000e+00> : vector<4x128xf32>
    %634 = tpu.matmul %633, %5, %cst_91 {dimension_numbers = #tpu.dot_dimension_numbers<[1], [0], [0], [1], [0, 0, 1, 1], [], []>} : vector<4x64xbf16>, vector<64x128xbf16>, vector<4x128xf32> -> vector<4x128xf32>
    %635 = vector.broadcast %6 : vector<1x128xf32> to vector<4x128xf32>
    %636 = arith.addf %634, %635 : vector<4x128xf32>
    %637 = arith.negf %636 : vector<4x128xf32>
    %638 = math.exp %637 : vector<4x128xf32>
    %cst_92 = arith.constant 1.000000e+00 : f32
    %639 = vector.broadcast %cst_92 : f32 to vector<4x128xf32>
    %640 = arith.addf %639, %638 : vector<4x128xf32>
    %641 = arith.divf %639, %640 : vector<4x128xf32>
    %642 = vector.extract_strided_slice %636 {offsets = [0, 64], sizes = [4, 32], strides = [1, 1]} : vector<4x128xf32> to vector<4x32xf32>
    %643 = math.tanh %642 : vector<4x32xf32>
    %644 = vector.extract_strided_slice %641 {offsets = [0, 0], sizes = [4, 32], strides = [1, 1]} : vector<4x128xf32> to vector<4x32xf32>
    %645 = vector.extract_strided_slice %641 {offsets = [0, 32], sizes = [4, 32], strides = [1, 1]} : vector<4x128xf32> to vector<4x32xf32>
    %646 = vector.extract_strided_slice %641 {offsets = [0, 96], sizes = [4, 32], strides = [1, 1]} : vector<4x128xf32> to vector<4x32xf32>
    %647 = arith.mulf %645, %603 : vector<4x32xf32>
    %648 = arith.mulf %644, %643 : vector<4x32xf32>
    %649 = arith.addf %647, %648 : vector<4x32xf32>
    %650 = math.tanh %649 : vector<4x32xf32>
    %651 = arith.mulf %646, %650 : vector<4x32xf32>
    %c14_i32 = arith.constant 14 : i32
    %652 = arith.index_cast %c14_i32 : i32 to index
    %c0_93 = arith.constant 0 : index
    %c0_94 = arith.constant 0 : index
    %653 = vector.load %arg1[%652, %c0_93, %c0_94] : memref<32x4x1xf32, #tpu.memory_space<vmem>>, vector<1x4x1xf32>
    %654 = vector.shape_cast %653 : vector<1x4x1xf32> to vector<4x1xf32>
    %655 = vector.broadcast %654 : vector<4x1xf32> to vector<4x128xf32>
    %656 = vector.broadcast %0 : vector<1x128xf32> to vector<4x128xf32>
    %657 = arith.mulf %655, %656 : vector<4x128xf32>
    %658 = vector.broadcast %3 : vector<1x128xf32> to vector<4x128xf32>
    %659 = arith.addf %657, %658 : vector<4x128xf32>
    %660 = arith.truncf %631 : vector<4x32xf32> to vector<4x32xbf16>
    %cst_95 = arith.constant dense<0.000000e+00> : vector<4x128xf32>
    %661 = tpu.matmul %660, %2, %cst_95 {dimension_numbers = #tpu.dot_dimension_numbers<[1], [0], [0], [1], [0, 0, 1, 1], [], []>} : vector<4x32xbf16>, vector<32x128xbf16>, vector<4x128xf32> -> vector<4x128xf32>
    %662 = arith.addf %659, %661 : vector<4x128xf32>
    %663 = arith.negf %662 : vector<4x128xf32>
    %664 = math.exp %663 : vector<4x128xf32>
    %cst_96 = arith.constant 1.000000e+00 : f32
    %665 = vector.broadcast %cst_96 : f32 to vector<4x128xf32>
    %666 = arith.addf %665, %664 : vector<4x128xf32>
    %667 = arith.divf %665, %666 : vector<4x128xf32>
    %668 = vector.extract_strided_slice %662 {offsets = [0, 64], sizes = [4, 32], strides = [1, 1]} : vector<4x128xf32> to vector<4x32xf32>
    %669 = math.tanh %668 : vector<4x32xf32>
    %670 = vector.extract_strided_slice %667 {offsets = [0, 0], sizes = [4, 32], strides = [1, 1]} : vector<4x128xf32> to vector<4x32xf32>
    %671 = vector.extract_strided_slice %667 {offsets = [0, 32], sizes = [4, 32], strides = [1, 1]} : vector<4x128xf32> to vector<4x32xf32>
    %672 = vector.extract_strided_slice %667 {offsets = [0, 96], sizes = [4, 32], strides = [1, 1]} : vector<4x128xf32> to vector<4x32xf32>
    %673 = arith.mulf %671, %629 : vector<4x32xf32>
    %674 = arith.mulf %670, %669 : vector<4x32xf32>
    %675 = arith.addf %673, %674 : vector<4x32xf32>
    %676 = math.tanh %675 : vector<4x32xf32>
    %677 = arith.mulf %672, %676 : vector<4x32xf32>
    %678 = tpu.concatenate %677, %651 in 1 : vector<4x32xf32>, vector<4x32xf32> -> vector<4x64xf32>
    %679 = arith.truncf %678 : vector<4x64xf32> to vector<4x64xbf16>
    %cst_97 = arith.constant dense<0.000000e+00> : vector<4x128xf32>
    %680 = tpu.matmul %679, %5, %cst_97 {dimension_numbers = #tpu.dot_dimension_numbers<[1], [0], [0], [1], [0, 0, 1, 1], [], []>} : vector<4x64xbf16>, vector<64x128xbf16>, vector<4x128xf32> -> vector<4x128xf32>
    %681 = vector.broadcast %6 : vector<1x128xf32> to vector<4x128xf32>
    %682 = arith.addf %680, %681 : vector<4x128xf32>
    %683 = arith.negf %682 : vector<4x128xf32>
    %684 = math.exp %683 : vector<4x128xf32>
    %cst_98 = arith.constant 1.000000e+00 : f32
    %685 = vector.broadcast %cst_98 : f32 to vector<4x128xf32>
    %686 = arith.addf %685, %684 : vector<4x128xf32>
    %687 = arith.divf %685, %686 : vector<4x128xf32>
    %688 = vector.extract_strided_slice %682 {offsets = [0, 64], sizes = [4, 32], strides = [1, 1]} : vector<4x128xf32> to vector<4x32xf32>
    %689 = math.tanh %688 : vector<4x32xf32>
    %690 = vector.extract_strided_slice %687 {offsets = [0, 0], sizes = [4, 32], strides = [1, 1]} : vector<4x128xf32> to vector<4x32xf32>
    %691 = vector.extract_strided_slice %687 {offsets = [0, 32], sizes = [4, 32], strides = [1, 1]} : vector<4x128xf32> to vector<4x32xf32>
    %692 = vector.extract_strided_slice %687 {offsets = [0, 96], sizes = [4, 32], strides = [1, 1]} : vector<4x128xf32> to vector<4x32xf32>
    %693 = arith.mulf %691, %649 : vector<4x32xf32>
    %694 = arith.mulf %690, %689 : vector<4x32xf32>
    %695 = arith.addf %693, %694 : vector<4x32xf32>
    %696 = math.tanh %695 : vector<4x32xf32>
    %697 = arith.mulf %692, %696 : vector<4x32xf32>
    %c15_i32 = arith.constant 15 : i32
    %698 = arith.index_cast %c15_i32 : i32 to index
    %c0_99 = arith.constant 0 : index
    %c0_100 = arith.constant 0 : index
    %699 = vector.load %arg1[%698, %c0_99, %c0_100] : memref<32x4x1xf32, #tpu.memory_space<vmem>>, vector<1x4x1xf32>
    %700 = vector.shape_cast %699 : vector<1x4x1xf32> to vector<4x1xf32>
    %701 = vector.broadcast %700 : vector<4x1xf32> to vector<4x128xf32>
    %702 = vector.broadcast %0 : vector<1x128xf32> to vector<4x128xf32>
    %703 = arith.mulf %701, %702 : vector<4x128xf32>
    %704 = vector.broadcast %3 : vector<1x128xf32> to vector<4x128xf32>
    %705 = arith.addf %703, %704 : vector<4x128xf32>
    %706 = arith.truncf %677 : vector<4x32xf32> to vector<4x32xbf16>
    %cst_101 = arith.constant dense<0.000000e+00> : vector<4x128xf32>
    %707 = tpu.matmul %706, %2, %cst_101 {dimension_numbers = #tpu.dot_dimension_numbers<[1], [0], [0], [1], [0, 0, 1, 1], [], []>} : vector<4x32xbf16>, vector<32x128xbf16>, vector<4x128xf32> -> vector<4x128xf32>
    %708 = arith.addf %705, %707 : vector<4x128xf32>
    %709 = arith.negf %708 : vector<4x128xf32>
    %710 = math.exp %709 : vector<4x128xf32>
    %cst_102 = arith.constant 1.000000e+00 : f32
    %711 = vector.broadcast %cst_102 : f32 to vector<4x128xf32>
    %712 = arith.addf %711, %710 : vector<4x128xf32>
    %713 = arith.divf %711, %712 : vector<4x128xf32>
    %714 = vector.extract_strided_slice %708 {offsets = [0, 64], sizes = [4, 32], strides = [1, 1]} : vector<4x128xf32> to vector<4x32xf32>
    %715 = math.tanh %714 : vector<4x32xf32>
    %716 = vector.extract_strided_slice %713 {offsets = [0, 0], sizes = [4, 32], strides = [1, 1]} : vector<4x128xf32> to vector<4x32xf32>
    %717 = vector.extract_strided_slice %713 {offsets = [0, 32], sizes = [4, 32], strides = [1, 1]} : vector<4x128xf32> to vector<4x32xf32>
    %718 = vector.extract_strided_slice %713 {offsets = [0, 96], sizes = [4, 32], strides = [1, 1]} : vector<4x128xf32> to vector<4x32xf32>
    %719 = arith.mulf %717, %675 : vector<4x32xf32>
    %720 = arith.mulf %716, %715 : vector<4x32xf32>
    %721 = arith.addf %719, %720 : vector<4x32xf32>
    %722 = math.tanh %721 : vector<4x32xf32>
    %723 = arith.mulf %718, %722 : vector<4x32xf32>
    %724 = tpu.concatenate %723, %697 in 1 : vector<4x32xf32>, vector<4x32xf32> -> vector<4x64xf32>
    %725 = arith.truncf %724 : vector<4x64xf32> to vector<4x64xbf16>
    %cst_103 = arith.constant dense<0.000000e+00> : vector<4x128xf32>
    %726 = tpu.matmul %725, %5, %cst_103 {dimension_numbers = #tpu.dot_dimension_numbers<[1], [0], [0], [1], [0, 0, 1, 1], [], []>} : vector<4x64xbf16>, vector<64x128xbf16>, vector<4x128xf32> -> vector<4x128xf32>
    %727 = vector.broadcast %6 : vector<1x128xf32> to vector<4x128xf32>
    %728 = arith.addf %726, %727 : vector<4x128xf32>
    %729 = arith.negf %728 : vector<4x128xf32>
    %730 = math.exp %729 : vector<4x128xf32>
    %cst_104 = arith.constant 1.000000e+00 : f32
    %731 = vector.broadcast %cst_104 : f32 to vector<4x128xf32>
    %732 = arith.addf %731, %730 : vector<4x128xf32>
    %733 = arith.divf %731, %732 : vector<4x128xf32>
    %734 = vector.extract_strided_slice %728 {offsets = [0, 64], sizes = [4, 32], strides = [1, 1]} : vector<4x128xf32> to vector<4x32xf32>
    %735 = math.tanh %734 : vector<4x32xf32>
    %736 = vector.extract_strided_slice %733 {offsets = [0, 0], sizes = [4, 32], strides = [1, 1]} : vector<4x128xf32> to vector<4x32xf32>
    %737 = vector.extract_strided_slice %733 {offsets = [0, 32], sizes = [4, 32], strides = [1, 1]} : vector<4x128xf32> to vector<4x32xf32>
    %738 = vector.extract_strided_slice %733 {offsets = [0, 96], sizes = [4, 32], strides = [1, 1]} : vector<4x128xf32> to vector<4x32xf32>
    %739 = arith.mulf %737, %695 : vector<4x32xf32>
    %740 = arith.mulf %736, %735 : vector<4x32xf32>
    %741 = arith.addf %739, %740 : vector<4x32xf32>
    %742 = math.tanh %741 : vector<4x32xf32>
    %743 = arith.mulf %738, %742 : vector<4x32xf32>
    %c16_i32 = arith.constant 16 : i32
    %744 = arith.index_cast %c16_i32 : i32 to index
    %c0_105 = arith.constant 0 : index
    %c0_106 = arith.constant 0 : index
    %745 = vector.load %arg1[%744, %c0_105, %c0_106] : memref<32x4x1xf32, #tpu.memory_space<vmem>>, vector<1x4x1xf32>
    %746 = vector.shape_cast %745 : vector<1x4x1xf32> to vector<4x1xf32>
    %747 = vector.broadcast %746 : vector<4x1xf32> to vector<4x128xf32>
    %748 = vector.broadcast %0 : vector<1x128xf32> to vector<4x128xf32>
    %749 = arith.mulf %747, %748 : vector<4x128xf32>
    %750 = vector.broadcast %3 : vector<1x128xf32> to vector<4x128xf32>
    %751 = arith.addf %749, %750 : vector<4x128xf32>
    %752 = arith.truncf %723 : vector<4x32xf32> to vector<4x32xbf16>
    %cst_107 = arith.constant dense<0.000000e+00> : vector<4x128xf32>
    %753 = tpu.matmul %752, %2, %cst_107 {dimension_numbers = #tpu.dot_dimension_numbers<[1], [0], [0], [1], [0, 0, 1, 1], [], []>} : vector<4x32xbf16>, vector<32x128xbf16>, vector<4x128xf32> -> vector<4x128xf32>
    %754 = arith.addf %751, %753 : vector<4x128xf32>
    %755 = arith.negf %754 : vector<4x128xf32>
    %756 = math.exp %755 : vector<4x128xf32>
    %cst_108 = arith.constant 1.000000e+00 : f32
    %757 = vector.broadcast %cst_108 : f32 to vector<4x128xf32>
    %758 = arith.addf %757, %756 : vector<4x128xf32>
    %759 = arith.divf %757, %758 : vector<4x128xf32>
    %760 = vector.extract_strided_slice %754 {offsets = [0, 64], sizes = [4, 32], strides = [1, 1]} : vector<4x128xf32> to vector<4x32xf32>
    %761 = math.tanh %760 : vector<4x32xf32>
    %762 = vector.extract_strided_slice %759 {offsets = [0, 0], sizes = [4, 32], strides = [1, 1]} : vector<4x128xf32> to vector<4x32xf32>
    %763 = vector.extract_strided_slice %759 {offsets = [0, 32], sizes = [4, 32], strides = [1, 1]} : vector<4x128xf32> to vector<4x32xf32>
    %764 = vector.extract_strided_slice %759 {offsets = [0, 96], sizes = [4, 32], strides = [1, 1]} : vector<4x128xf32> to vector<4x32xf32>
    %765 = arith.mulf %763, %721 : vector<4x32xf32>
    %766 = arith.mulf %762, %761 : vector<4x32xf32>
    %767 = arith.addf %765, %766 : vector<4x32xf32>
    %768 = math.tanh %767 : vector<4x32xf32>
    %769 = arith.mulf %764, %768 : vector<4x32xf32>
    %770 = tpu.concatenate %769, %743 in 1 : vector<4x32xf32>, vector<4x32xf32> -> vector<4x64xf32>
    %771 = arith.truncf %770 : vector<4x64xf32> to vector<4x64xbf16>
    %cst_109 = arith.constant dense<0.000000e+00> : vector<4x128xf32>
    %772 = tpu.matmul %771, %5, %cst_109 {dimension_numbers = #tpu.dot_dimension_numbers<[1], [0], [0], [1], [0, 0, 1, 1], [], []>} : vector<4x64xbf16>, vector<64x128xbf16>, vector<4x128xf32> -> vector<4x128xf32>
    %773 = vector.broadcast %6 : vector<1x128xf32> to vector<4x128xf32>
    %774 = arith.addf %772, %773 : vector<4x128xf32>
    %775 = arith.negf %774 : vector<4x128xf32>
    %776 = math.exp %775 : vector<4x128xf32>
    %cst_110 = arith.constant 1.000000e+00 : f32
    %777 = vector.broadcast %cst_110 : f32 to vector<4x128xf32>
    %778 = arith.addf %777, %776 : vector<4x128xf32>
    %779 = arith.divf %777, %778 : vector<4x128xf32>
    %780 = vector.extract_strided_slice %774 {offsets = [0, 64], sizes = [4, 32], strides = [1, 1]} : vector<4x128xf32> to vector<4x32xf32>
    %781 = math.tanh %780 : vector<4x32xf32>
    %782 = vector.extract_strided_slice %779 {offsets = [0, 0], sizes = [4, 32], strides = [1, 1]} : vector<4x128xf32> to vector<4x32xf32>
    %783 = vector.extract_strided_slice %779 {offsets = [0, 32], sizes = [4, 32], strides = [1, 1]} : vector<4x128xf32> to vector<4x32xf32>
    %784 = vector.extract_strided_slice %779 {offsets = [0, 96], sizes = [4, 32], strides = [1, 1]} : vector<4x128xf32> to vector<4x32xf32>
    %785 = arith.mulf %783, %741 : vector<4x32xf32>
    %786 = arith.mulf %782, %781 : vector<4x32xf32>
    %787 = arith.addf %785, %786 : vector<4x32xf32>
    %788 = math.tanh %787 : vector<4x32xf32>
    %789 = arith.mulf %784, %788 : vector<4x32xf32>
    %c17_i32 = arith.constant 17 : i32
    %790 = arith.index_cast %c17_i32 : i32 to index
    %c0_111 = arith.constant 0 : index
    %c0_112 = arith.constant 0 : index
    %791 = vector.load %arg1[%790, %c0_111, %c0_112] : memref<32x4x1xf32, #tpu.memory_space<vmem>>, vector<1x4x1xf32>
    %792 = vector.shape_cast %791 : vector<1x4x1xf32> to vector<4x1xf32>
    %793 = vector.broadcast %792 : vector<4x1xf32> to vector<4x128xf32>
    %794 = vector.broadcast %0 : vector<1x128xf32> to vector<4x128xf32>
    %795 = arith.mulf %793, %794 : vector<4x128xf32>
    %796 = vector.broadcast %3 : vector<1x128xf32> to vector<4x128xf32>
    %797 = arith.addf %795, %796 : vector<4x128xf32>
    %798 = arith.truncf %769 : vector<4x32xf32> to vector<4x32xbf16>
    %cst_113 = arith.constant dense<0.000000e+00> : vector<4x128xf32>
    %799 = tpu.matmul %798, %2, %cst_113 {dimension_numbers = #tpu.dot_dimension_numbers<[1], [0], [0], [1], [0, 0, 1, 1], [], []>} : vector<4x32xbf16>, vector<32x128xbf16>, vector<4x128xf32> -> vector<4x128xf32>
    %800 = arith.addf %797, %799 : vector<4x128xf32>
    %801 = arith.negf %800 : vector<4x128xf32>
    %802 = math.exp %801 : vector<4x128xf32>
    %cst_114 = arith.constant 1.000000e+00 : f32
    %803 = vector.broadcast %cst_114 : f32 to vector<4x128xf32>
    %804 = arith.addf %803, %802 : vector<4x128xf32>
    %805 = arith.divf %803, %804 : vector<4x128xf32>
    %806 = vector.extract_strided_slice %800 {offsets = [0, 64], sizes = [4, 32], strides = [1, 1]} : vector<4x128xf32> to vector<4x32xf32>
    %807 = math.tanh %806 : vector<4x32xf32>
    %808 = vector.extract_strided_slice %805 {offsets = [0, 0], sizes = [4, 32], strides = [1, 1]} : vector<4x128xf32> to vector<4x32xf32>
    %809 = vector.extract_strided_slice %805 {offsets = [0, 32], sizes = [4, 32], strides = [1, 1]} : vector<4x128xf32> to vector<4x32xf32>
    %810 = vector.extract_strided_slice %805 {offsets = [0, 96], sizes = [4, 32], strides = [1, 1]} : vector<4x128xf32> to vector<4x32xf32>
    %811 = arith.mulf %809, %767 : vector<4x32xf32>
    %812 = arith.mulf %808, %807 : vector<4x32xf32>
    %813 = arith.addf %811, %812 : vector<4x32xf32>
    %814 = math.tanh %813 : vector<4x32xf32>
    %815 = arith.mulf %810, %814 : vector<4x32xf32>
    %816 = tpu.concatenate %815, %789 in 1 : vector<4x32xf32>, vector<4x32xf32> -> vector<4x64xf32>
    %817 = arith.truncf %816 : vector<4x64xf32> to vector<4x64xbf16>
    %cst_115 = arith.constant dense<0.000000e+00> : vector<4x128xf32>
    %818 = tpu.matmul %817, %5, %cst_115 {dimension_numbers = #tpu.dot_dimension_numbers<[1], [0], [0], [1], [0, 0, 1, 1], [], []>} : vector<4x64xbf16>, vector<64x128xbf16>, vector<4x128xf32> -> vector<4x128xf32>
    %819 = vector.broadcast %6 : vector<1x128xf32> to vector<4x128xf32>
    %820 = arith.addf %818, %819 : vector<4x128xf32>
    %821 = arith.negf %820 : vector<4x128xf32>
    %822 = math.exp %821 : vector<4x128xf32>
    %cst_116 = arith.constant 1.000000e+00 : f32
    %823 = vector.broadcast %cst_116 : f32 to vector<4x128xf32>
    %824 = arith.addf %823, %822 : vector<4x128xf32>
    %825 = arith.divf %823, %824 : vector<4x128xf32>
    %826 = vector.extract_strided_slice %820 {offsets = [0, 64], sizes = [4, 32], strides = [1, 1]} : vector<4x128xf32> to vector<4x32xf32>
    %827 = math.tanh %826 : vector<4x32xf32>
    %828 = vector.extract_strided_slice %825 {offsets = [0, 0], sizes = [4, 32], strides = [1, 1]} : vector<4x128xf32> to vector<4x32xf32>
    %829 = vector.extract_strided_slice %825 {offsets = [0, 32], sizes = [4, 32], strides = [1, 1]} : vector<4x128xf32> to vector<4x32xf32>
    %830 = vector.extract_strided_slice %825 {offsets = [0, 96], sizes = [4, 32], strides = [1, 1]} : vector<4x128xf32> to vector<4x32xf32>
    %831 = arith.mulf %829, %787 : vector<4x32xf32>
    %832 = arith.mulf %828, %827 : vector<4x32xf32>
    %833 = arith.addf %831, %832 : vector<4x32xf32>
    %834 = math.tanh %833 : vector<4x32xf32>
    %835 = arith.mulf %830, %834 : vector<4x32xf32>
    %c18_i32 = arith.constant 18 : i32
    %836 = arith.index_cast %c18_i32 : i32 to index
    %c0_117 = arith.constant 0 : index
    %c0_118 = arith.constant 0 : index
    %837 = vector.load %arg1[%836, %c0_117, %c0_118] : memref<32x4x1xf32, #tpu.memory_space<vmem>>, vector<1x4x1xf32>
    %838 = vector.shape_cast %837 : vector<1x4x1xf32> to vector<4x1xf32>
    %839 = vector.broadcast %838 : vector<4x1xf32> to vector<4x128xf32>
    %840 = vector.broadcast %0 : vector<1x128xf32> to vector<4x128xf32>
    %841 = arith.mulf %839, %840 : vector<4x128xf32>
    %842 = vector.broadcast %3 : vector<1x128xf32> to vector<4x128xf32>
    %843 = arith.addf %841, %842 : vector<4x128xf32>
    %844 = arith.truncf %815 : vector<4x32xf32> to vector<4x32xbf16>
    %cst_119 = arith.constant dense<0.000000e+00> : vector<4x128xf32>
    %845 = tpu.matmul %844, %2, %cst_119 {dimension_numbers = #tpu.dot_dimension_numbers<[1], [0], [0], [1], [0, 0, 1, 1], [], []>} : vector<4x32xbf16>, vector<32x128xbf16>, vector<4x128xf32> -> vector<4x128xf32>
    %846 = arith.addf %843, %845 : vector<4x128xf32>
    %847 = arith.negf %846 : vector<4x128xf32>
    %848 = math.exp %847 : vector<4x128xf32>
    %cst_120 = arith.constant 1.000000e+00 : f32
    %849 = vector.broadcast %cst_120 : f32 to vector<4x128xf32>
    %850 = arith.addf %849, %848 : vector<4x128xf32>
    %851 = arith.divf %849, %850 : vector<4x128xf32>
    %852 = vector.extract_strided_slice %846 {offsets = [0, 64], sizes = [4, 32], strides = [1, 1]} : vector<4x128xf32> to vector<4x32xf32>
    %853 = math.tanh %852 : vector<4x32xf32>
    %854 = vector.extract_strided_slice %851 {offsets = [0, 0], sizes = [4, 32], strides = [1, 1]} : vector<4x128xf32> to vector<4x32xf32>
    %855 = vector.extract_strided_slice %851 {offsets = [0, 32], sizes = [4, 32], strides = [1, 1]} : vector<4x128xf32> to vector<4x32xf32>
    %856 = vector.extract_strided_slice %851 {offsets = [0, 96], sizes = [4, 32], strides = [1, 1]} : vector<4x128xf32> to vector<4x32xf32>
    %857 = arith.mulf %855, %813 : vector<4x32xf32>
    %858 = arith.mulf %854, %853 : vector<4x32xf32>
    %859 = arith.addf %857, %858 : vector<4x32xf32>
    %860 = math.tanh %859 : vector<4x32xf32>
    %861 = arith.mulf %856, %860 : vector<4x32xf32>
    %862 = tpu.concatenate %861, %835 in 1 : vector<4x32xf32>, vector<4x32xf32> -> vector<4x64xf32>
    %863 = arith.truncf %862 : vector<4x64xf32> to vector<4x64xbf16>
    %cst_121 = arith.constant dense<0.000000e+00> : vector<4x128xf32>
    %864 = tpu.matmul %863, %5, %cst_121 {dimension_numbers = #tpu.dot_dimension_numbers<[1], [0], [0], [1], [0, 0, 1, 1], [], []>} : vector<4x64xbf16>, vector<64x128xbf16>, vector<4x128xf32> -> vector<4x128xf32>
    %865 = vector.broadcast %6 : vector<1x128xf32> to vector<4x128xf32>
    %866 = arith.addf %864, %865 : vector<4x128xf32>
    %867 = arith.negf %866 : vector<4x128xf32>
    %868 = math.exp %867 : vector<4x128xf32>
    %cst_122 = arith.constant 1.000000e+00 : f32
    %869 = vector.broadcast %cst_122 : f32 to vector<4x128xf32>
    %870 = arith.addf %869, %868 : vector<4x128xf32>
    %871 = arith.divf %869, %870 : vector<4x128xf32>
    %872 = vector.extract_strided_slice %866 {offsets = [0, 64], sizes = [4, 32], strides = [1, 1]} : vector<4x128xf32> to vector<4x32xf32>
    %873 = math.tanh %872 : vector<4x32xf32>
    %874 = vector.extract_strided_slice %871 {offsets = [0, 0], sizes = [4, 32], strides = [1, 1]} : vector<4x128xf32> to vector<4x32xf32>
    %875 = vector.extract_strided_slice %871 {offsets = [0, 32], sizes = [4, 32], strides = [1, 1]} : vector<4x128xf32> to vector<4x32xf32>
    %876 = vector.extract_strided_slice %871 {offsets = [0, 96], sizes = [4, 32], strides = [1, 1]} : vector<4x128xf32> to vector<4x32xf32>
    %877 = arith.mulf %875, %833 : vector<4x32xf32>
    %878 = arith.mulf %874, %873 : vector<4x32xf32>
    %879 = arith.addf %877, %878 : vector<4x32xf32>
    %880 = math.tanh %879 : vector<4x32xf32>
    %881 = arith.mulf %876, %880 : vector<4x32xf32>
    %c19_i32 = arith.constant 19 : i32
    %882 = arith.index_cast %c19_i32 : i32 to index
    %c0_123 = arith.constant 0 : index
    %c0_124 = arith.constant 0 : index
    %883 = vector.load %arg1[%882, %c0_123, %c0_124] : memref<32x4x1xf32, #tpu.memory_space<vmem>>, vector<1x4x1xf32>
    %884 = vector.shape_cast %883 : vector<1x4x1xf32> to vector<4x1xf32>
    %885 = vector.broadcast %884 : vector<4x1xf32> to vector<4x128xf32>
    %886 = vector.broadcast %0 : vector<1x128xf32> to vector<4x128xf32>
    %887 = arith.mulf %885, %886 : vector<4x128xf32>
    %888 = vector.broadcast %3 : vector<1x128xf32> to vector<4x128xf32>
    %889 = arith.addf %887, %888 : vector<4x128xf32>
    %890 = arith.truncf %861 : vector<4x32xf32> to vector<4x32xbf16>
    %cst_125 = arith.constant dense<0.000000e+00> : vector<4x128xf32>
    %891 = tpu.matmul %890, %2, %cst_125 {dimension_numbers = #tpu.dot_dimension_numbers<[1], [0], [0], [1], [0, 0, 1, 1], [], []>} : vector<4x32xbf16>, vector<32x128xbf16>, vector<4x128xf32> -> vector<4x128xf32>
    %892 = arith.addf %889, %891 : vector<4x128xf32>
    %893 = arith.negf %892 : vector<4x128xf32>
    %894 = math.exp %893 : vector<4x128xf32>
    %cst_126 = arith.constant 1.000000e+00 : f32
    %895 = vector.broadcast %cst_126 : f32 to vector<4x128xf32>
    %896 = arith.addf %895, %894 : vector<4x128xf32>
    %897 = arith.divf %895, %896 : vector<4x128xf32>
    %898 = vector.extract_strided_slice %892 {offsets = [0, 64], sizes = [4, 32], strides = [1, 1]} : vector<4x128xf32> to vector<4x32xf32>
    %899 = math.tanh %898 : vector<4x32xf32>
    %900 = vector.extract_strided_slice %897 {offsets = [0, 0], sizes = [4, 32], strides = [1, 1]} : vector<4x128xf32> to vector<4x32xf32>
    %901 = vector.extract_strided_slice %897 {offsets = [0, 32], sizes = [4, 32], strides = [1, 1]} : vector<4x128xf32> to vector<4x32xf32>
    %902 = vector.extract_strided_slice %897 {offsets = [0, 96], sizes = [4, 32], strides = [1, 1]} : vector<4x128xf32> to vector<4x32xf32>
    %903 = arith.mulf %901, %859 : vector<4x32xf32>
    %904 = arith.mulf %900, %899 : vector<4x32xf32>
    %905 = arith.addf %903, %904 : vector<4x32xf32>
    %906 = math.tanh %905 : vector<4x32xf32>
    %907 = arith.mulf %902, %906 : vector<4x32xf32>
    %908 = tpu.concatenate %907, %881 in 1 : vector<4x32xf32>, vector<4x32xf32> -> vector<4x64xf32>
    %909 = arith.truncf %908 : vector<4x64xf32> to vector<4x64xbf16>
    %cst_127 = arith.constant dense<0.000000e+00> : vector<4x128xf32>
    %910 = tpu.matmul %909, %5, %cst_127 {dimension_numbers = #tpu.dot_dimension_numbers<[1], [0], [0], [1], [0, 0, 1, 1], [], []>} : vector<4x64xbf16>, vector<64x128xbf16>, vector<4x128xf32> -> vector<4x128xf32>
    %911 = vector.broadcast %6 : vector<1x128xf32> to vector<4x128xf32>
    %912 = arith.addf %910, %911 : vector<4x128xf32>
    %913 = arith.negf %912 : vector<4x128xf32>
    %914 = math.exp %913 : vector<4x128xf32>
    %cst_128 = arith.constant 1.000000e+00 : f32
    %915 = vector.broadcast %cst_128 : f32 to vector<4x128xf32>
    %916 = arith.addf %915, %914 : vector<4x128xf32>
    %917 = arith.divf %915, %916 : vector<4x128xf32>
    %918 = vector.extract_strided_slice %912 {offsets = [0, 64], sizes = [4, 32], strides = [1, 1]} : vector<4x128xf32> to vector<4x32xf32>
    %919 = math.tanh %918 : vector<4x32xf32>
    %920 = vector.extract_strided_slice %917 {offsets = [0, 0], sizes = [4, 32], strides = [1, 1]} : vector<4x128xf32> to vector<4x32xf32>
    %921 = vector.extract_strided_slice %917 {offsets = [0, 32], sizes = [4, 32], strides = [1, 1]} : vector<4x128xf32> to vector<4x32xf32>
    %922 = vector.extract_strided_slice %917 {offsets = [0, 96], sizes = [4, 32], strides = [1, 1]} : vector<4x128xf32> to vector<4x32xf32>
    %923 = arith.mulf %921, %879 : vector<4x32xf32>
    %924 = arith.mulf %920, %919 : vector<4x32xf32>
    %925 = arith.addf %923, %924 : vector<4x32xf32>
    %926 = math.tanh %925 : vector<4x32xf32>
    %927 = arith.mulf %922, %926 : vector<4x32xf32>
    %c20_i32 = arith.constant 20 : i32
    %928 = arith.index_cast %c20_i32 : i32 to index
    %c0_129 = arith.constant 0 : index
    %c0_130 = arith.constant 0 : index
    %929 = vector.load %arg1[%928, %c0_129, %c0_130] : memref<32x4x1xf32, #tpu.memory_space<vmem>>, vector<1x4x1xf32>
    %930 = vector.shape_cast %929 : vector<1x4x1xf32> to vector<4x1xf32>
    %931 = vector.broadcast %930 : vector<4x1xf32> to vector<4x128xf32>
    %932 = vector.broadcast %0 : vector<1x128xf32> to vector<4x128xf32>
    %933 = arith.mulf %931, %932 : vector<4x128xf32>
    %934 = vector.broadcast %3 : vector<1x128xf32> to vector<4x128xf32>
    %935 = arith.addf %933, %934 : vector<4x128xf32>
    %936 = arith.truncf %907 : vector<4x32xf32> to vector<4x32xbf16>
    %cst_131 = arith.constant dense<0.000000e+00> : vector<4x128xf32>
    %937 = tpu.matmul %936, %2, %cst_131 {dimension_numbers = #tpu.dot_dimension_numbers<[1], [0], [0], [1], [0, 0, 1, 1], [], []>} : vector<4x32xbf16>, vector<32x128xbf16>, vector<4x128xf32> -> vector<4x128xf32>
    %938 = arith.addf %935, %937 : vector<4x128xf32>
    %939 = arith.negf %938 : vector<4x128xf32>
    %940 = math.exp %939 : vector<4x128xf32>
    %cst_132 = arith.constant 1.000000e+00 : f32
    %941 = vector.broadcast %cst_132 : f32 to vector<4x128xf32>
    %942 = arith.addf %941, %940 : vector<4x128xf32>
    %943 = arith.divf %941, %942 : vector<4x128xf32>
    %944 = vector.extract_strided_slice %938 {offsets = [0, 64], sizes = [4, 32], strides = [1, 1]} : vector<4x128xf32> to vector<4x32xf32>
    %945 = math.tanh %944 : vector<4x32xf32>
    %946 = vector.extract_strided_slice %943 {offsets = [0, 0], sizes = [4, 32], strides = [1, 1]} : vector<4x128xf32> to vector<4x32xf32>
    %947 = vector.extract_strided_slice %943 {offsets = [0, 32], sizes = [4, 32], strides = [1, 1]} : vector<4x128xf32> to vector<4x32xf32>
    %948 = vector.extract_strided_slice %943 {offsets = [0, 96], sizes = [4, 32], strides = [1, 1]} : vector<4x128xf32> to vector<4x32xf32>
    %949 = arith.mulf %947, %905 : vector<4x32xf32>
    %950 = arith.mulf %946, %945 : vector<4x32xf32>
    %951 = arith.addf %949, %950 : vector<4x32xf32>
    %952 = math.tanh %951 : vector<4x32xf32>
    %953 = arith.mulf %948, %952 : vector<4x32xf32>
    %954 = tpu.concatenate %953, %927 in 1 : vector<4x32xf32>, vector<4x32xf32> -> vector<4x64xf32>
    %955 = arith.truncf %954 : vector<4x64xf32> to vector<4x64xbf16>
    %cst_133 = arith.constant dense<0.000000e+00> : vector<4x128xf32>
    %956 = tpu.matmul %955, %5, %cst_133 {dimension_numbers = #tpu.dot_dimension_numbers<[1], [0], [0], [1], [0, 0, 1, 1], [], []>} : vector<4x64xbf16>, vector<64x128xbf16>, vector<4x128xf32> -> vector<4x128xf32>
    %957 = vector.broadcast %6 : vector<1x128xf32> to vector<4x128xf32>
    %958 = arith.addf %956, %957 : vector<4x128xf32>
    %959 = arith.negf %958 : vector<4x128xf32>
    %960 = math.exp %959 : vector<4x128xf32>
    %cst_134 = arith.constant 1.000000e+00 : f32
    %961 = vector.broadcast %cst_134 : f32 to vector<4x128xf32>
    %962 = arith.addf %961, %960 : vector<4x128xf32>
    %963 = arith.divf %961, %962 : vector<4x128xf32>
    %964 = vector.extract_strided_slice %958 {offsets = [0, 64], sizes = [4, 32], strides = [1, 1]} : vector<4x128xf32> to vector<4x32xf32>
    %965 = math.tanh %964 : vector<4x32xf32>
    %966 = vector.extract_strided_slice %963 {offsets = [0, 0], sizes = [4, 32], strides = [1, 1]} : vector<4x128xf32> to vector<4x32xf32>
    %967 = vector.extract_strided_slice %963 {offsets = [0, 32], sizes = [4, 32], strides = [1, 1]} : vector<4x128xf32> to vector<4x32xf32>
    %968 = vector.extract_strided_slice %963 {offsets = [0, 96], sizes = [4, 32], strides = [1, 1]} : vector<4x128xf32> to vector<4x32xf32>
    %969 = arith.mulf %967, %925 : vector<4x32xf32>
    %970 = arith.mulf %966, %965 : vector<4x32xf32>
    %971 = arith.addf %969, %970 : vector<4x32xf32>
    %972 = math.tanh %971 : vector<4x32xf32>
    %973 = arith.mulf %968, %972 : vector<4x32xf32>
    %c21_i32 = arith.constant 21 : i32
    %974 = arith.index_cast %c21_i32 : i32 to index
    %c0_135 = arith.constant 0 : index
    %c0_136 = arith.constant 0 : index
    %975 = vector.load %arg1[%974, %c0_135, %c0_136] : memref<32x4x1xf32, #tpu.memory_space<vmem>>, vector<1x4x1xf32>
    %976 = vector.shape_cast %975 : vector<1x4x1xf32> to vector<4x1xf32>
    %977 = vector.broadcast %976 : vector<4x1xf32> to vector<4x128xf32>
    %978 = vector.broadcast %0 : vector<1x128xf32> to vector<4x128xf32>
    %979 = arith.mulf %977, %978 : vector<4x128xf32>
    %980 = vector.broadcast %3 : vector<1x128xf32> to vector<4x128xf32>
    %981 = arith.addf %979, %980 : vector<4x128xf32>
    %982 = arith.truncf %953 : vector<4x32xf32> to vector<4x32xbf16>
    %cst_137 = arith.constant dense<0.000000e+00> : vector<4x128xf32>
    %983 = tpu.matmul %982, %2, %cst_137 {dimension_numbers = #tpu.dot_dimension_numbers<[1], [0], [0], [1], [0, 0, 1, 1], [], []>} : vector<4x32xbf16>, vector<32x128xbf16>, vector<4x128xf32> -> vector<4x128xf32>
    %984 = arith.addf %981, %983 : vector<4x128xf32>
    %985 = arith.negf %984 : vector<4x128xf32>
    %986 = math.exp %985 : vector<4x128xf32>
    %cst_138 = arith.constant 1.000000e+00 : f32
    %987 = vector.broadcast %cst_138 : f32 to vector<4x128xf32>
    %988 = arith.addf %987, %986 : vector<4x128xf32>
    %989 = arith.divf %987, %988 : vector<4x128xf32>
    %990 = vector.extract_strided_slice %984 {offsets = [0, 64], sizes = [4, 32], strides = [1, 1]} : vector<4x128xf32> to vector<4x32xf32>
    %991 = math.tanh %990 : vector<4x32xf32>
    %992 = vector.extract_strided_slice %989 {offsets = [0, 0], sizes = [4, 32], strides = [1, 1]} : vector<4x128xf32> to vector<4x32xf32>
    %993 = vector.extract_strided_slice %989 {offsets = [0, 32], sizes = [4, 32], strides = [1, 1]} : vector<4x128xf32> to vector<4x32xf32>
    %994 = vector.extract_strided_slice %989 {offsets = [0, 96], sizes = [4, 32], strides = [1, 1]} : vector<4x128xf32> to vector<4x32xf32>
    %995 = arith.mulf %993, %951 : vector<4x32xf32>
    %996 = arith.mulf %992, %991 : vector<4x32xf32>
    %997 = arith.addf %995, %996 : vector<4x32xf32>
    %998 = math.tanh %997 : vector<4x32xf32>
    %999 = arith.mulf %994, %998 : vector<4x32xf32>
    %1000 = tpu.concatenate %999, %973 in 1 : vector<4x32xf32>, vector<4x32xf32> -> vector<4x64xf32>
    %1001 = arith.truncf %1000 : vector<4x64xf32> to vector<4x64xbf16>
    %cst_139 = arith.constant dense<0.000000e+00> : vector<4x128xf32>
    %1002 = tpu.matmul %1001, %5, %cst_139 {dimension_numbers = #tpu.dot_dimension_numbers<[1], [0], [0], [1], [0, 0, 1, 1], [], []>} : vector<4x64xbf16>, vector<64x128xbf16>, vector<4x128xf32> -> vector<4x128xf32>
    %1003 = vector.broadcast %6 : vector<1x128xf32> to vector<4x128xf32>
    %1004 = arith.addf %1002, %1003 : vector<4x128xf32>
    %1005 = arith.negf %1004 : vector<4x128xf32>
    %1006 = math.exp %1005 : vector<4x128xf32>
    %cst_140 = arith.constant 1.000000e+00 : f32
    %1007 = vector.broadcast %cst_140 : f32 to vector<4x128xf32>
    %1008 = arith.addf %1007, %1006 : vector<4x128xf32>
    %1009 = arith.divf %1007, %1008 : vector<4x128xf32>
    %1010 = vector.extract_strided_slice %1004 {offsets = [0, 64], sizes = [4, 32], strides = [1, 1]} : vector<4x128xf32> to vector<4x32xf32>
    %1011 = math.tanh %1010 : vector<4x32xf32>
    %1012 = vector.extract_strided_slice %1009 {offsets = [0, 0], sizes = [4, 32], strides = [1, 1]} : vector<4x128xf32> to vector<4x32xf32>
    %1013 = vector.extract_strided_slice %1009 {offsets = [0, 32], sizes = [4, 32], strides = [1, 1]} : vector<4x128xf32> to vector<4x32xf32>
    %1014 = vector.extract_strided_slice %1009 {offsets = [0, 96], sizes = [4, 32], strides = [1, 1]} : vector<4x128xf32> to vector<4x32xf32>
    %1015 = arith.mulf %1013, %971 : vector<4x32xf32>
    %1016 = arith.mulf %1012, %1011 : vector<4x32xf32>
    %1017 = arith.addf %1015, %1016 : vector<4x32xf32>
    %1018 = math.tanh %1017 : vector<4x32xf32>
    %1019 = arith.mulf %1014, %1018 : vector<4x32xf32>
    %c22_i32 = arith.constant 22 : i32
    %1020 = arith.index_cast %c22_i32 : i32 to index
    %c0_141 = arith.constant 0 : index
    %c0_142 = arith.constant 0 : index
    %1021 = vector.load %arg1[%1020, %c0_141, %c0_142] : memref<32x4x1xf32, #tpu.memory_space<vmem>>, vector<1x4x1xf32>
    %1022 = vector.shape_cast %1021 : vector<1x4x1xf32> to vector<4x1xf32>
    %1023 = vector.broadcast %1022 : vector<4x1xf32> to vector<4x128xf32>
    %1024 = vector.broadcast %0 : vector<1x128xf32> to vector<4x128xf32>
    %1025 = arith.mulf %1023, %1024 : vector<4x128xf32>
    %1026 = vector.broadcast %3 : vector<1x128xf32> to vector<4x128xf32>
    %1027 = arith.addf %1025, %1026 : vector<4x128xf32>
    %1028 = arith.truncf %999 : vector<4x32xf32> to vector<4x32xbf16>
    %cst_143 = arith.constant dense<0.000000e+00> : vector<4x128xf32>
    %1029 = tpu.matmul %1028, %2, %cst_143 {dimension_numbers = #tpu.dot_dimension_numbers<[1], [0], [0], [1], [0, 0, 1, 1], [], []>} : vector<4x32xbf16>, vector<32x128xbf16>, vector<4x128xf32> -> vector<4x128xf32>
    %1030 = arith.addf %1027, %1029 : vector<4x128xf32>
    %1031 = arith.negf %1030 : vector<4x128xf32>
    %1032 = math.exp %1031 : vector<4x128xf32>
    %cst_144 = arith.constant 1.000000e+00 : f32
    %1033 = vector.broadcast %cst_144 : f32 to vector<4x128xf32>
    %1034 = arith.addf %1033, %1032 : vector<4x128xf32>
    %1035 = arith.divf %1033, %1034 : vector<4x128xf32>
    %1036 = vector.extract_strided_slice %1030 {offsets = [0, 64], sizes = [4, 32], strides = [1, 1]} : vector<4x128xf32> to vector<4x32xf32>
    %1037 = math.tanh %1036 : vector<4x32xf32>
    %1038 = vector.extract_strided_slice %1035 {offsets = [0, 0], sizes = [4, 32], strides = [1, 1]} : vector<4x128xf32> to vector<4x32xf32>
    %1039 = vector.extract_strided_slice %1035 {offsets = [0, 32], sizes = [4, 32], strides = [1, 1]} : vector<4x128xf32> to vector<4x32xf32>
    %1040 = vector.extract_strided_slice %1035 {offsets = [0, 96], sizes = [4, 32], strides = [1, 1]} : vector<4x128xf32> to vector<4x32xf32>
    %1041 = arith.mulf %1039, %997 : vector<4x32xf32>
    %1042 = arith.mulf %1038, %1037 : vector<4x32xf32>
    %1043 = arith.addf %1041, %1042 : vector<4x32xf32>
    %1044 = math.tanh %1043 : vector<4x32xf32>
    %1045 = arith.mulf %1040, %1044 : vector<4x32xf32>
    %1046 = tpu.concatenate %1045, %1019 in 1 : vector<4x32xf32>, vector<4x32xf32> -> vector<4x64xf32>
    %1047 = arith.truncf %1046 : vector<4x64xf32> to vector<4x64xbf16>
    %cst_145 = arith.constant dense<0.000000e+00> : vector<4x128xf32>
    %1048 = tpu.matmul %1047, %5, %cst_145 {dimension_numbers = #tpu.dot_dimension_numbers<[1], [0], [0], [1], [0, 0, 1, 1], [], []>} : vector<4x64xbf16>, vector<64x128xbf16>, vector<4x128xf32> -> vector<4x128xf32>
    %1049 = vector.broadcast %6 : vector<1x128xf32> to vector<4x128xf32>
    %1050 = arith.addf %1048, %1049 : vector<4x128xf32>
    %1051 = arith.negf %1050 : vector<4x128xf32>
    %1052 = math.exp %1051 : vector<4x128xf32>
    %cst_146 = arith.constant 1.000000e+00 : f32
    %1053 = vector.broadcast %cst_146 : f32 to vector<4x128xf32>
    %1054 = arith.addf %1053, %1052 : vector<4x128xf32>
    %1055 = arith.divf %1053, %1054 : vector<4x128xf32>
    %1056 = vector.extract_strided_slice %1050 {offsets = [0, 64], sizes = [4, 32], strides = [1, 1]} : vector<4x128xf32> to vector<4x32xf32>
    %1057 = math.tanh %1056 : vector<4x32xf32>
    %1058 = vector.extract_strided_slice %1055 {offsets = [0, 0], sizes = [4, 32], strides = [1, 1]} : vector<4x128xf32> to vector<4x32xf32>
    %1059 = vector.extract_strided_slice %1055 {offsets = [0, 32], sizes = [4, 32], strides = [1, 1]} : vector<4x128xf32> to vector<4x32xf32>
    %1060 = vector.extract_strided_slice %1055 {offsets = [0, 96], sizes = [4, 32], strides = [1, 1]} : vector<4x128xf32> to vector<4x32xf32>
    %1061 = arith.mulf %1059, %1017 : vector<4x32xf32>
    %1062 = arith.mulf %1058, %1057 : vector<4x32xf32>
    %1063 = arith.addf %1061, %1062 : vector<4x32xf32>
    %1064 = math.tanh %1063 : vector<4x32xf32>
    %1065 = arith.mulf %1060, %1064 : vector<4x32xf32>
    %c23_i32 = arith.constant 23 : i32
    %1066 = arith.index_cast %c23_i32 : i32 to index
    %c0_147 = arith.constant 0 : index
    %c0_148 = arith.constant 0 : index
    %1067 = vector.load %arg1[%1066, %c0_147, %c0_148] : memref<32x4x1xf32, #tpu.memory_space<vmem>>, vector<1x4x1xf32>
    %1068 = vector.shape_cast %1067 : vector<1x4x1xf32> to vector<4x1xf32>
    %1069 = vector.broadcast %1068 : vector<4x1xf32> to vector<4x128xf32>
    %1070 = vector.broadcast %0 : vector<1x128xf32> to vector<4x128xf32>
    %1071 = arith.mulf %1069, %1070 : vector<4x128xf32>
    %1072 = vector.broadcast %3 : vector<1x128xf32> to vector<4x128xf32>
    %1073 = arith.addf %1071, %1072 : vector<4x128xf32>
    %1074 = arith.truncf %1045 : vector<4x32xf32> to vector<4x32xbf16>
    %cst_149 = arith.constant dense<0.000000e+00> : vector<4x128xf32>
    %1075 = tpu.matmul %1074, %2, %cst_149 {dimension_numbers = #tpu.dot_dimension_numbers<[1], [0], [0], [1], [0, 0, 1, 1], [], []>} : vector<4x32xbf16>, vector<32x128xbf16>, vector<4x128xf32> -> vector<4x128xf32>
    %1076 = arith.addf %1073, %1075 : vector<4x128xf32>
    %1077 = arith.negf %1076 : vector<4x128xf32>
    %1078 = math.exp %1077 : vector<4x128xf32>
    %cst_150 = arith.constant 1.000000e+00 : f32
    %1079 = vector.broadcast %cst_150 : f32 to vector<4x128xf32>
    %1080 = arith.addf %1079, %1078 : vector<4x128xf32>
    %1081 = arith.divf %1079, %1080 : vector<4x128xf32>
    %1082 = vector.extract_strided_slice %1076 {offsets = [0, 64], sizes = [4, 32], strides = [1, 1]} : vector<4x128xf32> to vector<4x32xf32>
    %1083 = math.tanh %1082 : vector<4x32xf32>
    %1084 = vector.extract_strided_slice %1081 {offsets = [0, 0], sizes = [4, 32], strides = [1, 1]} : vector<4x128xf32> to vector<4x32xf32>
    %1085 = vector.extract_strided_slice %1081 {offsets = [0, 32], sizes = [4, 32], strides = [1, 1]} : vector<4x128xf32> to vector<4x32xf32>
    %1086 = vector.extract_strided_slice %1081 {offsets = [0, 96], sizes = [4, 32], strides = [1, 1]} : vector<4x128xf32> to vector<4x32xf32>
    %1087 = arith.mulf %1085, %1043 : vector<4x32xf32>
    %1088 = arith.mulf %1084, %1083 : vector<4x32xf32>
    %1089 = arith.addf %1087, %1088 : vector<4x32xf32>
    %1090 = math.tanh %1089 : vector<4x32xf32>
    %1091 = arith.mulf %1086, %1090 : vector<4x32xf32>
    %1092 = tpu.concatenate %1091, %1065 in 1 : vector<4x32xf32>, vector<4x32xf32> -> vector<4x64xf32>
    %1093 = arith.truncf %1092 : vector<4x64xf32> to vector<4x64xbf16>
    %cst_151 = arith.constant dense<0.000000e+00> : vector<4x128xf32>
    %1094 = tpu.matmul %1093, %5, %cst_151 {dimension_numbers = #tpu.dot_dimension_numbers<[1], [0], [0], [1], [0, 0, 1, 1], [], []>} : vector<4x64xbf16>, vector<64x128xbf16>, vector<4x128xf32> -> vector<4x128xf32>
    %1095 = vector.broadcast %6 : vector<1x128xf32> to vector<4x128xf32>
    %1096 = arith.addf %1094, %1095 : vector<4x128xf32>
    %1097 = arith.negf %1096 : vector<4x128xf32>
    %1098 = math.exp %1097 : vector<4x128xf32>
    %cst_152 = arith.constant 1.000000e+00 : f32
    %1099 = vector.broadcast %cst_152 : f32 to vector<4x128xf32>
    %1100 = arith.addf %1099, %1098 : vector<4x128xf32>
    %1101 = arith.divf %1099, %1100 : vector<4x128xf32>
    %1102 = vector.extract_strided_slice %1096 {offsets = [0, 64], sizes = [4, 32], strides = [1, 1]} : vector<4x128xf32> to vector<4x32xf32>
    %1103 = math.tanh %1102 : vector<4x32xf32>
    %1104 = vector.extract_strided_slice %1101 {offsets = [0, 0], sizes = [4, 32], strides = [1, 1]} : vector<4x128xf32> to vector<4x32xf32>
    %1105 = vector.extract_strided_slice %1101 {offsets = [0, 32], sizes = [4, 32], strides = [1, 1]} : vector<4x128xf32> to vector<4x32xf32>
    %1106 = vector.extract_strided_slice %1101 {offsets = [0, 96], sizes = [4, 32], strides = [1, 1]} : vector<4x128xf32> to vector<4x32xf32>
    %1107 = arith.mulf %1105, %1063 : vector<4x32xf32>
    %1108 = arith.mulf %1104, %1103 : vector<4x32xf32>
    %1109 = arith.addf %1107, %1108 : vector<4x32xf32>
    %1110 = math.tanh %1109 : vector<4x32xf32>
    %1111 = arith.mulf %1106, %1110 : vector<4x32xf32>
    %c24_i32 = arith.constant 24 : i32
    %1112 = arith.index_cast %c24_i32 : i32 to index
    %c0_153 = arith.constant 0 : index
    %c0_154 = arith.constant 0 : index
    %1113 = vector.load %arg1[%1112, %c0_153, %c0_154] : memref<32x4x1xf32, #tpu.memory_space<vmem>>, vector<1x4x1xf32>
    %1114 = vector.shape_cast %1113 : vector<1x4x1xf32> to vector<4x1xf32>
    %1115 = vector.broadcast %1114 : vector<4x1xf32> to vector<4x128xf32>
    %1116 = vector.broadcast %0 : vector<1x128xf32> to vector<4x128xf32>
    %1117 = arith.mulf %1115, %1116 : vector<4x128xf32>
    %1118 = vector.broadcast %3 : vector<1x128xf32> to vector<4x128xf32>
    %1119 = arith.addf %1117, %1118 : vector<4x128xf32>
    %1120 = arith.truncf %1091 : vector<4x32xf32> to vector<4x32xbf16>
    %cst_155 = arith.constant dense<0.000000e+00> : vector<4x128xf32>
    %1121 = tpu.matmul %1120, %2, %cst_155 {dimension_numbers = #tpu.dot_dimension_numbers<[1], [0], [0], [1], [0, 0, 1, 1], [], []>} : vector<4x32xbf16>, vector<32x128xbf16>, vector<4x128xf32> -> vector<4x128xf32>
    %1122 = arith.addf %1119, %1121 : vector<4x128xf32>
    %1123 = arith.negf %1122 : vector<4x128xf32>
    %1124 = math.exp %1123 : vector<4x128xf32>
    %cst_156 = arith.constant 1.000000e+00 : f32
    %1125 = vector.broadcast %cst_156 : f32 to vector<4x128xf32>
    %1126 = arith.addf %1125, %1124 : vector<4x128xf32>
    %1127 = arith.divf %1125, %1126 : vector<4x128xf32>
    %1128 = vector.extract_strided_slice %1122 {offsets = [0, 64], sizes = [4, 32], strides = [1, 1]} : vector<4x128xf32> to vector<4x32xf32>
    %1129 = math.tanh %1128 : vector<4x32xf32>
    %1130 = vector.extract_strided_slice %1127 {offsets = [0, 0], sizes = [4, 32], strides = [1, 1]} : vector<4x128xf32> to vector<4x32xf32>
    %1131 = vector.extract_strided_slice %1127 {offsets = [0, 32], sizes = [4, 32], strides = [1, 1]} : vector<4x128xf32> to vector<4x32xf32>
    %1132 = vector.extract_strided_slice %1127 {offsets = [0, 96], sizes = [4, 32], strides = [1, 1]} : vector<4x128xf32> to vector<4x32xf32>
    %1133 = arith.mulf %1131, %1089 : vector<4x32xf32>
    %1134 = arith.mulf %1130, %1129 : vector<4x32xf32>
    %1135 = arith.addf %1133, %1134 : vector<4x32xf32>
    %1136 = math.tanh %1135 : vector<4x32xf32>
    %1137 = arith.mulf %1132, %1136 : vector<4x32xf32>
    %1138 = tpu.concatenate %1137, %1111 in 1 : vector<4x32xf32>, vector<4x32xf32> -> vector<4x64xf32>
    %1139 = arith.truncf %1138 : vector<4x64xf32> to vector<4x64xbf16>
    %cst_157 = arith.constant dense<0.000000e+00> : vector<4x128xf32>
    %1140 = tpu.matmul %1139, %5, %cst_157 {dimension_numbers = #tpu.dot_dimension_numbers<[1], [0], [0], [1], [0, 0, 1, 1], [], []>} : vector<4x64xbf16>, vector<64x128xbf16>, vector<4x128xf32> -> vector<4x128xf32>
    %1141 = vector.broadcast %6 : vector<1x128xf32> to vector<4x128xf32>
    %1142 = arith.addf %1140, %1141 : vector<4x128xf32>
    %1143 = arith.negf %1142 : vector<4x128xf32>
    %1144 = math.exp %1143 : vector<4x128xf32>
    %cst_158 = arith.constant 1.000000e+00 : f32
    %1145 = vector.broadcast %cst_158 : f32 to vector<4x128xf32>
    %1146 = arith.addf %1145, %1144 : vector<4x128xf32>
    %1147 = arith.divf %1145, %1146 : vector<4x128xf32>
    %1148 = vector.extract_strided_slice %1142 {offsets = [0, 64], sizes = [4, 32], strides = [1, 1]} : vector<4x128xf32> to vector<4x32xf32>
    %1149 = math.tanh %1148 : vector<4x32xf32>
    %1150 = vector.extract_strided_slice %1147 {offsets = [0, 0], sizes = [4, 32], strides = [1, 1]} : vector<4x128xf32> to vector<4x32xf32>
    %1151 = vector.extract_strided_slice %1147 {offsets = [0, 32], sizes = [4, 32], strides = [1, 1]} : vector<4x128xf32> to vector<4x32xf32>
    %1152 = vector.extract_strided_slice %1147 {offsets = [0, 96], sizes = [4, 32], strides = [1, 1]} : vector<4x128xf32> to vector<4x32xf32>
    %1153 = arith.mulf %1151, %1109 : vector<4x32xf32>
    %1154 = arith.mulf %1150, %1149 : vector<4x32xf32>
    %1155 = arith.addf %1153, %1154 : vector<4x32xf32>
    %1156 = math.tanh %1155 : vector<4x32xf32>
    %1157 = arith.mulf %1152, %1156 : vector<4x32xf32>
    %c25_i32 = arith.constant 25 : i32
    %1158 = arith.index_cast %c25_i32 : i32 to index
    %c0_159 = arith.constant 0 : index
    %c0_160 = arith.constant 0 : index
    %1159 = vector.load %arg1[%1158, %c0_159, %c0_160] : memref<32x4x1xf32, #tpu.memory_space<vmem>>, vector<1x4x1xf32>
    %1160 = vector.shape_cast %1159 : vector<1x4x1xf32> to vector<4x1xf32>
    %1161 = vector.broadcast %1160 : vector<4x1xf32> to vector<4x128xf32>
    %1162 = vector.broadcast %0 : vector<1x128xf32> to vector<4x128xf32>
    %1163 = arith.mulf %1161, %1162 : vector<4x128xf32>
    %1164 = vector.broadcast %3 : vector<1x128xf32> to vector<4x128xf32>
    %1165 = arith.addf %1163, %1164 : vector<4x128xf32>
    %1166 = arith.truncf %1137 : vector<4x32xf32> to vector<4x32xbf16>
    %cst_161 = arith.constant dense<0.000000e+00> : vector<4x128xf32>
    %1167 = tpu.matmul %1166, %2, %cst_161 {dimension_numbers = #tpu.dot_dimension_numbers<[1], [0], [0], [1], [0, 0, 1, 1], [], []>} : vector<4x32xbf16>, vector<32x128xbf16>, vector<4x128xf32> -> vector<4x128xf32>
    %1168 = arith.addf %1165, %1167 : vector<4x128xf32>
    %1169 = arith.negf %1168 : vector<4x128xf32>
    %1170 = math.exp %1169 : vector<4x128xf32>
    %cst_162 = arith.constant 1.000000e+00 : f32
    %1171 = vector.broadcast %cst_162 : f32 to vector<4x128xf32>
    %1172 = arith.addf %1171, %1170 : vector<4x128xf32>
    %1173 = arith.divf %1171, %1172 : vector<4x128xf32>
    %1174 = vector.extract_strided_slice %1168 {offsets = [0, 64], sizes = [4, 32], strides = [1, 1]} : vector<4x128xf32> to vector<4x32xf32>
    %1175 = math.tanh %1174 : vector<4x32xf32>
    %1176 = vector.extract_strided_slice %1173 {offsets = [0, 0], sizes = [4, 32], strides = [1, 1]} : vector<4x128xf32> to vector<4x32xf32>
    %1177 = vector.extract_strided_slice %1173 {offsets = [0, 32], sizes = [4, 32], strides = [1, 1]} : vector<4x128xf32> to vector<4x32xf32>
    %1178 = vector.extract_strided_slice %1173 {offsets = [0, 96], sizes = [4, 32], strides = [1, 1]} : vector<4x128xf32> to vector<4x32xf32>
    %1179 = arith.mulf %1177, %1135 : vector<4x32xf32>
    %1180 = arith.mulf %1176, %1175 : vector<4x32xf32>
    %1181 = arith.addf %1179, %1180 : vector<4x32xf32>
    %1182 = math.tanh %1181 : vector<4x32xf32>
    %1183 = arith.mulf %1178, %1182 : vector<4x32xf32>
    %1184 = tpu.concatenate %1183, %1157 in 1 : vector<4x32xf32>, vector<4x32xf32> -> vector<4x64xf32>
    %1185 = arith.truncf %1184 : vector<4x64xf32> to vector<4x64xbf16>
    %cst_163 = arith.constant dense<0.000000e+00> : vector<4x128xf32>
    %1186 = tpu.matmul %1185, %5, %cst_163 {dimension_numbers = #tpu.dot_dimension_numbers<[1], [0], [0], [1], [0, 0, 1, 1], [], []>} : vector<4x64xbf16>, vector<64x128xbf16>, vector<4x128xf32> -> vector<4x128xf32>
    %1187 = vector.broadcast %6 : vector<1x128xf32> to vector<4x128xf32>
    %1188 = arith.addf %1186, %1187 : vector<4x128xf32>
    %1189 = arith.negf %1188 : vector<4x128xf32>
    %1190 = math.exp %1189 : vector<4x128xf32>
    %cst_164 = arith.constant 1.000000e+00 : f32
    %1191 = vector.broadcast %cst_164 : f32 to vector<4x128xf32>
    %1192 = arith.addf %1191, %1190 : vector<4x128xf32>
    %1193 = arith.divf %1191, %1192 : vector<4x128xf32>
    %1194 = vector.extract_strided_slice %1188 {offsets = [0, 64], sizes = [4, 32], strides = [1, 1]} : vector<4x128xf32> to vector<4x32xf32>
    %1195 = math.tanh %1194 : vector<4x32xf32>
    %1196 = vector.extract_strided_slice %1193 {offsets = [0, 0], sizes = [4, 32], strides = [1, 1]} : vector<4x128xf32> to vector<4x32xf32>
    %1197 = vector.extract_strided_slice %1193 {offsets = [0, 32], sizes = [4, 32], strides = [1, 1]} : vector<4x128xf32> to vector<4x32xf32>
    %1198 = vector.extract_strided_slice %1193 {offsets = [0, 96], sizes = [4, 32], strides = [1, 1]} : vector<4x128xf32> to vector<4x32xf32>
    %1199 = arith.mulf %1197, %1155 : vector<4x32xf32>
    %1200 = arith.mulf %1196, %1195 : vector<4x32xf32>
    %1201 = arith.addf %1199, %1200 : vector<4x32xf32>
    %1202 = math.tanh %1201 : vector<4x32xf32>
    %1203 = arith.mulf %1198, %1202 : vector<4x32xf32>
    %c26_i32 = arith.constant 26 : i32
    %1204 = arith.index_cast %c26_i32 : i32 to index
    %c0_165 = arith.constant 0 : index
    %c0_166 = arith.constant 0 : index
    %1205 = vector.load %arg1[%1204, %c0_165, %c0_166] : memref<32x4x1xf32, #tpu.memory_space<vmem>>, vector<1x4x1xf32>
    %1206 = vector.shape_cast %1205 : vector<1x4x1xf32> to vector<4x1xf32>
    %1207 = vector.broadcast %1206 : vector<4x1xf32> to vector<4x128xf32>
    %1208 = vector.broadcast %0 : vector<1x128xf32> to vector<4x128xf32>
    %1209 = arith.mulf %1207, %1208 : vector<4x128xf32>
    %1210 = vector.broadcast %3 : vector<1x128xf32> to vector<4x128xf32>
    %1211 = arith.addf %1209, %1210 : vector<4x128xf32>
    %1212 = arith.truncf %1183 : vector<4x32xf32> to vector<4x32xbf16>
    %cst_167 = arith.constant dense<0.000000e+00> : vector<4x128xf32>
    %1213 = tpu.matmul %1212, %2, %cst_167 {dimension_numbers = #tpu.dot_dimension_numbers<[1], [0], [0], [1], [0, 0, 1, 1], [], []>} : vector<4x32xbf16>, vector<32x128xbf16>, vector<4x128xf32> -> vector<4x128xf32>
    %1214 = arith.addf %1211, %1213 : vector<4x128xf32>
    %1215 = arith.negf %1214 : vector<4x128xf32>
    %1216 = math.exp %1215 : vector<4x128xf32>
    %cst_168 = arith.constant 1.000000e+00 : f32
    %1217 = vector.broadcast %cst_168 : f32 to vector<4x128xf32>
    %1218 = arith.addf %1217, %1216 : vector<4x128xf32>
    %1219 = arith.divf %1217, %1218 : vector<4x128xf32>
    %1220 = vector.extract_strided_slice %1214 {offsets = [0, 64], sizes = [4, 32], strides = [1, 1]} : vector<4x128xf32> to vector<4x32xf32>
    %1221 = math.tanh %1220 : vector<4x32xf32>
    %1222 = vector.extract_strided_slice %1219 {offsets = [0, 0], sizes = [4, 32], strides = [1, 1]} : vector<4x128xf32> to vector<4x32xf32>
    %1223 = vector.extract_strided_slice %1219 {offsets = [0, 32], sizes = [4, 32], strides = [1, 1]} : vector<4x128xf32> to vector<4x32xf32>
    %1224 = vector.extract_strided_slice %1219 {offsets = [0, 96], sizes = [4, 32], strides = [1, 1]} : vector<4x128xf32> to vector<4x32xf32>
    %1225 = arith.mulf %1223, %1181 : vector<4x32xf32>
    %1226 = arith.mulf %1222, %1221 : vector<4x32xf32>
    %1227 = arith.addf %1225, %1226 : vector<4x32xf32>
    %1228 = math.tanh %1227 : vector<4x32xf32>
    %1229 = arith.mulf %1224, %1228 : vector<4x32xf32>
    %1230 = tpu.concatenate %1229, %1203 in 1 : vector<4x32xf32>, vector<4x32xf32> -> vector<4x64xf32>
    %1231 = arith.truncf %1230 : vector<4x64xf32> to vector<4x64xbf16>
    %cst_169 = arith.constant dense<0.000000e+00> : vector<4x128xf32>
    %1232 = tpu.matmul %1231, %5, %cst_169 {dimension_numbers = #tpu.dot_dimension_numbers<[1], [0], [0], [1], [0, 0, 1, 1], [], []>} : vector<4x64xbf16>, vector<64x128xbf16>, vector<4x128xf32> -> vector<4x128xf32>
    %1233 = vector.broadcast %6 : vector<1x128xf32> to vector<4x128xf32>
    %1234 = arith.addf %1232, %1233 : vector<4x128xf32>
    %1235 = arith.negf %1234 : vector<4x128xf32>
    %1236 = math.exp %1235 : vector<4x128xf32>
    %cst_170 = arith.constant 1.000000e+00 : f32
    %1237 = vector.broadcast %cst_170 : f32 to vector<4x128xf32>
    %1238 = arith.addf %1237, %1236 : vector<4x128xf32>
    %1239 = arith.divf %1237, %1238 : vector<4x128xf32>
    %1240 = vector.extract_strided_slice %1234 {offsets = [0, 64], sizes = [4, 32], strides = [1, 1]} : vector<4x128xf32> to vector<4x32xf32>
    %1241 = math.tanh %1240 : vector<4x32xf32>
    %1242 = vector.extract_strided_slice %1239 {offsets = [0, 0], sizes = [4, 32], strides = [1, 1]} : vector<4x128xf32> to vector<4x32xf32>
    %1243 = vector.extract_strided_slice %1239 {offsets = [0, 32], sizes = [4, 32], strides = [1, 1]} : vector<4x128xf32> to vector<4x32xf32>
    %1244 = vector.extract_strided_slice %1239 {offsets = [0, 96], sizes = [4, 32], strides = [1, 1]} : vector<4x128xf32> to vector<4x32xf32>
    %1245 = arith.mulf %1243, %1201 : vector<4x32xf32>
    %1246 = arith.mulf %1242, %1241 : vector<4x32xf32>
    %1247 = arith.addf %1245, %1246 : vector<4x32xf32>
    %1248 = math.tanh %1247 : vector<4x32xf32>
    %1249 = arith.mulf %1244, %1248 : vector<4x32xf32>
    %c27_i32 = arith.constant 27 : i32
    %1250 = arith.index_cast %c27_i32 : i32 to index
    %c0_171 = arith.constant 0 : index
    %c0_172 = arith.constant 0 : index
    %1251 = vector.load %arg1[%1250, %c0_171, %c0_172] : memref<32x4x1xf32, #tpu.memory_space<vmem>>, vector<1x4x1xf32>
    %1252 = vector.shape_cast %1251 : vector<1x4x1xf32> to vector<4x1xf32>
    %1253 = vector.broadcast %1252 : vector<4x1xf32> to vector<4x128xf32>
    %1254 = vector.broadcast %0 : vector<1x128xf32> to vector<4x128xf32>
    %1255 = arith.mulf %1253, %1254 : vector<4x128xf32>
    %1256 = vector.broadcast %3 : vector<1x128xf32> to vector<4x128xf32>
    %1257 = arith.addf %1255, %1256 : vector<4x128xf32>
    %1258 = arith.truncf %1229 : vector<4x32xf32> to vector<4x32xbf16>
    %cst_173 = arith.constant dense<0.000000e+00> : vector<4x128xf32>
    %1259 = tpu.matmul %1258, %2, %cst_173 {dimension_numbers = #tpu.dot_dimension_numbers<[1], [0], [0], [1], [0, 0, 1, 1], [], []>} : vector<4x32xbf16>, vector<32x128xbf16>, vector<4x128xf32> -> vector<4x128xf32>
    %1260 = arith.addf %1257, %1259 : vector<4x128xf32>
    %1261 = arith.negf %1260 : vector<4x128xf32>
    %1262 = math.exp %1261 : vector<4x128xf32>
    %cst_174 = arith.constant 1.000000e+00 : f32
    %1263 = vector.broadcast %cst_174 : f32 to vector<4x128xf32>
    %1264 = arith.addf %1263, %1262 : vector<4x128xf32>
    %1265 = arith.divf %1263, %1264 : vector<4x128xf32>
    %1266 = vector.extract_strided_slice %1260 {offsets = [0, 64], sizes = [4, 32], strides = [1, 1]} : vector<4x128xf32> to vector<4x32xf32>
    %1267 = math.tanh %1266 : vector<4x32xf32>
    %1268 = vector.extract_strided_slice %1265 {offsets = [0, 0], sizes = [4, 32], strides = [1, 1]} : vector<4x128xf32> to vector<4x32xf32>
    %1269 = vector.extract_strided_slice %1265 {offsets = [0, 32], sizes = [4, 32], strides = [1, 1]} : vector<4x128xf32> to vector<4x32xf32>
    %1270 = vector.extract_strided_slice %1265 {offsets = [0, 96], sizes = [4, 32], strides = [1, 1]} : vector<4x128xf32> to vector<4x32xf32>
    %1271 = arith.mulf %1269, %1227 : vector<4x32xf32>
    %1272 = arith.mulf %1268, %1267 : vector<4x32xf32>
    %1273 = arith.addf %1271, %1272 : vector<4x32xf32>
    %1274 = math.tanh %1273 : vector<4x32xf32>
    %1275 = arith.mulf %1270, %1274 : vector<4x32xf32>
    %1276 = tpu.concatenate %1275, %1249 in 1 : vector<4x32xf32>, vector<4x32xf32> -> vector<4x64xf32>
    %1277 = arith.truncf %1276 : vector<4x64xf32> to vector<4x64xbf16>
    %cst_175 = arith.constant dense<0.000000e+00> : vector<4x128xf32>
    %1278 = tpu.matmul %1277, %5, %cst_175 {dimension_numbers = #tpu.dot_dimension_numbers<[1], [0], [0], [1], [0, 0, 1, 1], [], []>} : vector<4x64xbf16>, vector<64x128xbf16>, vector<4x128xf32> -> vector<4x128xf32>
    %1279 = vector.broadcast %6 : vector<1x128xf32> to vector<4x128xf32>
    %1280 = arith.addf %1278, %1279 : vector<4x128xf32>
    %1281 = arith.negf %1280 : vector<4x128xf32>
    %1282 = math.exp %1281 : vector<4x128xf32>
    %cst_176 = arith.constant 1.000000e+00 : f32
    %1283 = vector.broadcast %cst_176 : f32 to vector<4x128xf32>
    %1284 = arith.addf %1283, %1282 : vector<4x128xf32>
    %1285 = arith.divf %1283, %1284 : vector<4x128xf32>
    %1286 = vector.extract_strided_slice %1280 {offsets = [0, 64], sizes = [4, 32], strides = [1, 1]} : vector<4x128xf32> to vector<4x32xf32>
    %1287 = math.tanh %1286 : vector<4x32xf32>
    %1288 = vector.extract_strided_slice %1285 {offsets = [0, 0], sizes = [4, 32], strides = [1, 1]} : vector<4x128xf32> to vector<4x32xf32>
    %1289 = vector.extract_strided_slice %1285 {offsets = [0, 32], sizes = [4, 32], strides = [1, 1]} : vector<4x128xf32> to vector<4x32xf32>
    %1290 = vector.extract_strided_slice %1285 {offsets = [0, 96], sizes = [4, 32], strides = [1, 1]} : vector<4x128xf32> to vector<4x32xf32>
    %1291 = arith.mulf %1289, %1247 : vector<4x32xf32>
    %1292 = arith.mulf %1288, %1287 : vector<4x32xf32>
    %1293 = arith.addf %1291, %1292 : vector<4x32xf32>
    %1294 = math.tanh %1293 : vector<4x32xf32>
    %1295 = arith.mulf %1290, %1294 : vector<4x32xf32>
    %c28_i32 = arith.constant 28 : i32
    %1296 = arith.index_cast %c28_i32 : i32 to index
    %c0_177 = arith.constant 0 : index
    %c0_178 = arith.constant 0 : index
    %1297 = vector.load %arg1[%1296, %c0_177, %c0_178] : memref<32x4x1xf32, #tpu.memory_space<vmem>>, vector<1x4x1xf32>
    %1298 = vector.shape_cast %1297 : vector<1x4x1xf32> to vector<4x1xf32>
    %1299 = vector.broadcast %1298 : vector<4x1xf32> to vector<4x128xf32>
    %1300 = vector.broadcast %0 : vector<1x128xf32> to vector<4x128xf32>
    %1301 = arith.mulf %1299, %1300 : vector<4x128xf32>
    %1302 = vector.broadcast %3 : vector<1x128xf32> to vector<4x128xf32>
    %1303 = arith.addf %1301, %1302 : vector<4x128xf32>
    %1304 = arith.truncf %1275 : vector<4x32xf32> to vector<4x32xbf16>
    %cst_179 = arith.constant dense<0.000000e+00> : vector<4x128xf32>
    %1305 = tpu.matmul %1304, %2, %cst_179 {dimension_numbers = #tpu.dot_dimension_numbers<[1], [0], [0], [1], [0, 0, 1, 1], [], []>} : vector<4x32xbf16>, vector<32x128xbf16>, vector<4x128xf32> -> vector<4x128xf32>
    %1306 = arith.addf %1303, %1305 : vector<4x128xf32>
    %1307 = arith.negf %1306 : vector<4x128xf32>
    %1308 = math.exp %1307 : vector<4x128xf32>
    %cst_180 = arith.constant 1.000000e+00 : f32
    %1309 = vector.broadcast %cst_180 : f32 to vector<4x128xf32>
    %1310 = arith.addf %1309, %1308 : vector<4x128xf32>
    %1311 = arith.divf %1309, %1310 : vector<4x128xf32>
    %1312 = vector.extract_strided_slice %1306 {offsets = [0, 64], sizes = [4, 32], strides = [1, 1]} : vector<4x128xf32> to vector<4x32xf32>
    %1313 = math.tanh %1312 : vector<4x32xf32>
    %1314 = vector.extract_strided_slice %1311 {offsets = [0, 0], sizes = [4, 32], strides = [1, 1]} : vector<4x128xf32> to vector<4x32xf32>
    %1315 = vector.extract_strided_slice %1311 {offsets = [0, 32], sizes = [4, 32], strides = [1, 1]} : vector<4x128xf32> to vector<4x32xf32>
    %1316 = vector.extract_strided_slice %1311 {offsets = [0, 96], sizes = [4, 32], strides = [1, 1]} : vector<4x128xf32> to vector<4x32xf32>
    %1317 = arith.mulf %1315, %1273 : vector<4x32xf32>
    %1318 = arith.mulf %1314, %1313 : vector<4x32xf32>
    %1319 = arith.addf %1317, %1318 : vector<4x32xf32>
    %1320 = math.tanh %1319 : vector<4x32xf32>
    %1321 = arith.mulf %1316, %1320 : vector<4x32xf32>
    %1322 = tpu.concatenate %1321, %1295 in 1 : vector<4x32xf32>, vector<4x32xf32> -> vector<4x64xf32>
    %1323 = arith.truncf %1322 : vector<4x64xf32> to vector<4x64xbf16>
    %cst_181 = arith.constant dense<0.000000e+00> : vector<4x128xf32>
    %1324 = tpu.matmul %1323, %5, %cst_181 {dimension_numbers = #tpu.dot_dimension_numbers<[1], [0], [0], [1], [0, 0, 1, 1], [], []>} : vector<4x64xbf16>, vector<64x128xbf16>, vector<4x128xf32> -> vector<4x128xf32>
    %1325 = vector.broadcast %6 : vector<1x128xf32> to vector<4x128xf32>
    %1326 = arith.addf %1324, %1325 : vector<4x128xf32>
    %1327 = arith.negf %1326 : vector<4x128xf32>
    %1328 = math.exp %1327 : vector<4x128xf32>
    %cst_182 = arith.constant 1.000000e+00 : f32
    %1329 = vector.broadcast %cst_182 : f32 to vector<4x128xf32>
    %1330 = arith.addf %1329, %1328 : vector<4x128xf32>
    %1331 = arith.divf %1329, %1330 : vector<4x128xf32>
    %1332 = vector.extract_strided_slice %1326 {offsets = [0, 64], sizes = [4, 32], strides = [1, 1]} : vector<4x128xf32> to vector<4x32xf32>
    %1333 = math.tanh %1332 : vector<4x32xf32>
    %1334 = vector.extract_strided_slice %1331 {offsets = [0, 0], sizes = [4, 32], strides = [1, 1]} : vector<4x128xf32> to vector<4x32xf32>
    %1335 = vector.extract_strided_slice %1331 {offsets = [0, 32], sizes = [4, 32], strides = [1, 1]} : vector<4x128xf32> to vector<4x32xf32>
    %1336 = vector.extract_strided_slice %1331 {offsets = [0, 96], sizes = [4, 32], strides = [1, 1]} : vector<4x128xf32> to vector<4x32xf32>
    %1337 = arith.mulf %1335, %1293 : vector<4x32xf32>
    %1338 = arith.mulf %1334, %1333 : vector<4x32xf32>
    %1339 = arith.addf %1337, %1338 : vector<4x32xf32>
    %1340 = math.tanh %1339 : vector<4x32xf32>
    %1341 = arith.mulf %1336, %1340 : vector<4x32xf32>
    %c29_i32 = arith.constant 29 : i32
    %1342 = arith.index_cast %c29_i32 : i32 to index
    %c0_183 = arith.constant 0 : index
    %c0_184 = arith.constant 0 : index
    %1343 = vector.load %arg1[%1342, %c0_183, %c0_184] : memref<32x4x1xf32, #tpu.memory_space<vmem>>, vector<1x4x1xf32>
    %1344 = vector.shape_cast %1343 : vector<1x4x1xf32> to vector<4x1xf32>
    %1345 = vector.broadcast %1344 : vector<4x1xf32> to vector<4x128xf32>
    %1346 = vector.broadcast %0 : vector<1x128xf32> to vector<4x128xf32>
    %1347 = arith.mulf %1345, %1346 : vector<4x128xf32>
    %1348 = vector.broadcast %3 : vector<1x128xf32> to vector<4x128xf32>
    %1349 = arith.addf %1347, %1348 : vector<4x128xf32>
    %1350 = arith.truncf %1321 : vector<4x32xf32> to vector<4x32xbf16>
    %cst_185 = arith.constant dense<0.000000e+00> : vector<4x128xf32>
    %1351 = tpu.matmul %1350, %2, %cst_185 {dimension_numbers = #tpu.dot_dimension_numbers<[1], [0], [0], [1], [0, 0, 1, 1], [], []>} : vector<4x32xbf16>, vector<32x128xbf16>, vector<4x128xf32> -> vector<4x128xf32>
    %1352 = arith.addf %1349, %1351 : vector<4x128xf32>
    %1353 = arith.negf %1352 : vector<4x128xf32>
    %1354 = math.exp %1353 : vector<4x128xf32>
    %cst_186 = arith.constant 1.000000e+00 : f32
    %1355 = vector.broadcast %cst_186 : f32 to vector<4x128xf32>
    %1356 = arith.addf %1355, %1354 : vector<4x128xf32>
    %1357 = arith.divf %1355, %1356 : vector<4x128xf32>
    %1358 = vector.extract_strided_slice %1352 {offsets = [0, 64], sizes = [4, 32], strides = [1, 1]} : vector<4x128xf32> to vector<4x32xf32>
    %1359 = math.tanh %1358 : vector<4x32xf32>
    %1360 = vector.extract_strided_slice %1357 {offsets = [0, 0], sizes = [4, 32], strides = [1, 1]} : vector<4x128xf32> to vector<4x32xf32>
    %1361 = vector.extract_strided_slice %1357 {offsets = [0, 32], sizes = [4, 32], strides = [1, 1]} : vector<4x128xf32> to vector<4x32xf32>
    %1362 = vector.extract_strided_slice %1357 {offsets = [0, 96], sizes = [4, 32], strides = [1, 1]} : vector<4x128xf32> to vector<4x32xf32>
    %1363 = arith.mulf %1361, %1319 : vector<4x32xf32>
    %1364 = arith.mulf %1360, %1359 : vector<4x32xf32>
    %1365 = arith.addf %1363, %1364 : vector<4x32xf32>
    %1366 = math.tanh %1365 : vector<4x32xf32>
    %1367 = arith.mulf %1362, %1366 : vector<4x32xf32>
    %1368 = tpu.concatenate %1367, %1341 in 1 : vector<4x32xf32>, vector<4x32xf32> -> vector<4x64xf32>
    %1369 = arith.truncf %1368 : vector<4x64xf32> to vector<4x64xbf16>
    %cst_187 = arith.constant dense<0.000000e+00> : vector<4x128xf32>
    %1370 = tpu.matmul %1369, %5, %cst_187 {dimension_numbers = #tpu.dot_dimension_numbers<[1], [0], [0], [1], [0, 0, 1, 1], [], []>} : vector<4x64xbf16>, vector<64x128xbf16>, vector<4x128xf32> -> vector<4x128xf32>
    %1371 = vector.broadcast %6 : vector<1x128xf32> to vector<4x128xf32>
    %1372 = arith.addf %1370, %1371 : vector<4x128xf32>
    %1373 = arith.negf %1372 : vector<4x128xf32>
    %1374 = math.exp %1373 : vector<4x128xf32>
    %cst_188 = arith.constant 1.000000e+00 : f32
    %1375 = vector.broadcast %cst_188 : f32 to vector<4x128xf32>
    %1376 = arith.addf %1375, %1374 : vector<4x128xf32>
    %1377 = arith.divf %1375, %1376 : vector<4x128xf32>
    %1378 = vector.extract_strided_slice %1372 {offsets = [0, 64], sizes = [4, 32], strides = [1, 1]} : vector<4x128xf32> to vector<4x32xf32>
    %1379 = math.tanh %1378 : vector<4x32xf32>
    %1380 = vector.extract_strided_slice %1377 {offsets = [0, 0], sizes = [4, 32], strides = [1, 1]} : vector<4x128xf32> to vector<4x32xf32>
    %1381 = vector.extract_strided_slice %1377 {offsets = [0, 32], sizes = [4, 32], strides = [1, 1]} : vector<4x128xf32> to vector<4x32xf32>
    %1382 = vector.extract_strided_slice %1377 {offsets = [0, 96], sizes = [4, 32], strides = [1, 1]} : vector<4x128xf32> to vector<4x32xf32>
    %1383 = arith.mulf %1381, %1339 : vector<4x32xf32>
    %1384 = arith.mulf %1380, %1379 : vector<4x32xf32>
    %1385 = arith.addf %1383, %1384 : vector<4x32xf32>
    %1386 = math.tanh %1385 : vector<4x32xf32>
    %1387 = arith.mulf %1382, %1386 : vector<4x32xf32>
    %c30_i32 = arith.constant 30 : i32
    %1388 = arith.index_cast %c30_i32 : i32 to index
    %c0_189 = arith.constant 0 : index
    %c0_190 = arith.constant 0 : index
    %1389 = vector.load %arg1[%1388, %c0_189, %c0_190] : memref<32x4x1xf32, #tpu.memory_space<vmem>>, vector<1x4x1xf32>
    %1390 = vector.shape_cast %1389 : vector<1x4x1xf32> to vector<4x1xf32>
    %1391 = vector.broadcast %1390 : vector<4x1xf32> to vector<4x128xf32>
    %1392 = vector.broadcast %0 : vector<1x128xf32> to vector<4x128xf32>
    %1393 = arith.mulf %1391, %1392 : vector<4x128xf32>
    %1394 = vector.broadcast %3 : vector<1x128xf32> to vector<4x128xf32>
    %1395 = arith.addf %1393, %1394 : vector<4x128xf32>
    %1396 = arith.truncf %1367 : vector<4x32xf32> to vector<4x32xbf16>
    %cst_191 = arith.constant dense<0.000000e+00> : vector<4x128xf32>
    %1397 = tpu.matmul %1396, %2, %cst_191 {dimension_numbers = #tpu.dot_dimension_numbers<[1], [0], [0], [1], [0, 0, 1, 1], [], []>} : vector<4x32xbf16>, vector<32x128xbf16>, vector<4x128xf32> -> vector<4x128xf32>
    %1398 = arith.addf %1395, %1397 : vector<4x128xf32>
    %1399 = arith.negf %1398 : vector<4x128xf32>
    %1400 = math.exp %1399 : vector<4x128xf32>
    %cst_192 = arith.constant 1.000000e+00 : f32
    %1401 = vector.broadcast %cst_192 : f32 to vector<4x128xf32>
    %1402 = arith.addf %1401, %1400 : vector<4x128xf32>
    %1403 = arith.divf %1401, %1402 : vector<4x128xf32>
    %1404 = vector.extract_strided_slice %1398 {offsets = [0, 64], sizes = [4, 32], strides = [1, 1]} : vector<4x128xf32> to vector<4x32xf32>
    %1405 = math.tanh %1404 : vector<4x32xf32>
    %1406 = vector.extract_strided_slice %1403 {offsets = [0, 0], sizes = [4, 32], strides = [1, 1]} : vector<4x128xf32> to vector<4x32xf32>
    %1407 = vector.extract_strided_slice %1403 {offsets = [0, 32], sizes = [4, 32], strides = [1, 1]} : vector<4x128xf32> to vector<4x32xf32>
    %1408 = vector.extract_strided_slice %1403 {offsets = [0, 96], sizes = [4, 32], strides = [1, 1]} : vector<4x128xf32> to vector<4x32xf32>
    %1409 = arith.mulf %1407, %1365 : vector<4x32xf32>
    %1410 = arith.mulf %1406, %1405 : vector<4x32xf32>
    %1411 = arith.addf %1409, %1410 : vector<4x32xf32>
    %1412 = math.tanh %1411 : vector<4x32xf32>
    %1413 = arith.mulf %1408, %1412 : vector<4x32xf32>
    %1414 = tpu.concatenate %1413, %1387 in 1 : vector<4x32xf32>, vector<4x32xf32> -> vector<4x64xf32>
    %1415 = arith.truncf %1414 : vector<4x64xf32> to vector<4x64xbf16>
    %cst_193 = arith.constant dense<0.000000e+00> : vector<4x128xf32>
    %1416 = tpu.matmul %1415, %5, %cst_193 {dimension_numbers = #tpu.dot_dimension_numbers<[1], [0], [0], [1], [0, 0, 1, 1], [], []>} : vector<4x64xbf16>, vector<64x128xbf16>, vector<4x128xf32> -> vector<4x128xf32>
    %1417 = vector.broadcast %6 : vector<1x128xf32> to vector<4x128xf32>
    %1418 = arith.addf %1416, %1417 : vector<4x128xf32>
    %1419 = arith.negf %1418 : vector<4x128xf32>
    %1420 = math.exp %1419 : vector<4x128xf32>
    %cst_194 = arith.constant 1.000000e+00 : f32
    %1421 = vector.broadcast %cst_194 : f32 to vector<4x128xf32>
    %1422 = arith.addf %1421, %1420 : vector<4x128xf32>
    %1423 = arith.divf %1421, %1422 : vector<4x128xf32>
    %1424 = vector.extract_strided_slice %1418 {offsets = [0, 64], sizes = [4, 32], strides = [1, 1]} : vector<4x128xf32> to vector<4x32xf32>
    %1425 = math.tanh %1424 : vector<4x32xf32>
    %1426 = vector.extract_strided_slice %1423 {offsets = [0, 0], sizes = [4, 32], strides = [1, 1]} : vector<4x128xf32> to vector<4x32xf32>
    %1427 = vector.extract_strided_slice %1423 {offsets = [0, 32], sizes = [4, 32], strides = [1, 1]} : vector<4x128xf32> to vector<4x32xf32>
    %1428 = vector.extract_strided_slice %1423 {offsets = [0, 96], sizes = [4, 32], strides = [1, 1]} : vector<4x128xf32> to vector<4x32xf32>
    %1429 = arith.mulf %1427, %1385 : vector<4x32xf32>
    %1430 = arith.mulf %1426, %1425 : vector<4x32xf32>
    %1431 = arith.addf %1429, %1430 : vector<4x32xf32>
    %1432 = math.tanh %1431 : vector<4x32xf32>
    %1433 = arith.mulf %1428, %1432 : vector<4x32xf32>
    %c31_i32 = arith.constant 31 : i32
    %1434 = arith.index_cast %c31_i32 : i32 to index
    %c0_195 = arith.constant 0 : index
    %c0_196 = arith.constant 0 : index
    %1435 = vector.load %arg1[%1434, %c0_195, %c0_196] : memref<32x4x1xf32, #tpu.memory_space<vmem>>, vector<1x4x1xf32>
    %1436 = vector.shape_cast %1435 : vector<1x4x1xf32> to vector<4x1xf32>
    %1437 = vector.broadcast %1436 : vector<4x1xf32> to vector<4x128xf32>
    %1438 = vector.broadcast %0 : vector<1x128xf32> to vector<4x128xf32>
    %1439 = arith.mulf %1437, %1438 : vector<4x128xf32>
    %1440 = vector.broadcast %3 : vector<1x128xf32> to vector<4x128xf32>
    %1441 = arith.addf %1439, %1440 : vector<4x128xf32>
    %1442 = arith.truncf %1413 : vector<4x32xf32> to vector<4x32xbf16>
    %cst_197 = arith.constant dense<0.000000e+00> : vector<4x128xf32>
    %1443 = tpu.matmul %1442, %2, %cst_197 {dimension_numbers = #tpu.dot_dimension_numbers<[1], [0], [0], [1], [0, 0, 1, 1], [], []>} : vector<4x32xbf16>, vector<32x128xbf16>, vector<4x128xf32> -> vector<4x128xf32>
    %1444 = arith.addf %1441, %1443 : vector<4x128xf32>
    %1445 = arith.negf %1444 : vector<4x128xf32>
    %1446 = math.exp %1445 : vector<4x128xf32>
    %cst_198 = arith.constant 1.000000e+00 : f32
    %1447 = vector.broadcast %cst_198 : f32 to vector<4x128xf32>
    %1448 = arith.addf %1447, %1446 : vector<4x128xf32>
    %1449 = arith.divf %1447, %1448 : vector<4x128xf32>
    %1450 = vector.extract_strided_slice %1444 {offsets = [0, 64], sizes = [4, 32], strides = [1, 1]} : vector<4x128xf32> to vector<4x32xf32>
    %1451 = math.tanh %1450 : vector<4x32xf32>
    %1452 = vector.extract_strided_slice %1449 {offsets = [0, 0], sizes = [4, 32], strides = [1, 1]} : vector<4x128xf32> to vector<4x32xf32>
    %1453 = vector.extract_strided_slice %1449 {offsets = [0, 32], sizes = [4, 32], strides = [1, 1]} : vector<4x128xf32> to vector<4x32xf32>
    %1454 = vector.extract_strided_slice %1449 {offsets = [0, 96], sizes = [4, 32], strides = [1, 1]} : vector<4x128xf32> to vector<4x32xf32>
    %1455 = arith.mulf %1453, %1411 : vector<4x32xf32>
    %1456 = arith.mulf %1452, %1451 : vector<4x32xf32>
    %1457 = arith.addf %1455, %1456 : vector<4x32xf32>
    %1458 = math.tanh %1457 : vector<4x32xf32>
    %1459 = arith.mulf %1454, %1458 : vector<4x32xf32>
    %1460 = tpu.concatenate %1459, %1433 in 1 : vector<4x32xf32>, vector<4x32xf32> -> vector<4x64xf32>
    %1461 = arith.truncf %1460 : vector<4x64xf32> to vector<4x64xbf16>
    %cst_199 = arith.constant dense<0.000000e+00> : vector<4x128xf32>
    %1462 = tpu.matmul %1461, %5, %cst_199 {dimension_numbers = #tpu.dot_dimension_numbers<[1], [0], [0], [1], [0, 0, 1, 1], [], []>} : vector<4x64xbf16>, vector<64x128xbf16>, vector<4x128xf32> -> vector<4x128xf32>
    %1463 = vector.broadcast %6 : vector<1x128xf32> to vector<4x128xf32>
    %1464 = arith.addf %1462, %1463 : vector<4x128xf32>
    %1465 = arith.negf %1464 : vector<4x128xf32>
    %1466 = math.exp %1465 : vector<4x128xf32>
    %cst_200 = arith.constant 1.000000e+00 : f32
    %1467 = vector.broadcast %cst_200 : f32 to vector<4x128xf32>
    %1468 = arith.addf %1467, %1466 : vector<4x128xf32>
    %1469 = arith.divf %1467, %1468 : vector<4x128xf32>
    %1470 = vector.extract_strided_slice %1464 {offsets = [0, 64], sizes = [4, 32], strides = [1, 1]} : vector<4x128xf32> to vector<4x32xf32>
    %1471 = math.tanh %1470 : vector<4x32xf32>
    %1472 = vector.extract_strided_slice %1469 {offsets = [0, 0], sizes = [4, 32], strides = [1, 1]} : vector<4x128xf32> to vector<4x32xf32>
    %1473 = vector.extract_strided_slice %1469 {offsets = [0, 32], sizes = [4, 32], strides = [1, 1]} : vector<4x128xf32> to vector<4x32xf32>
    %1474 = vector.extract_strided_slice %1469 {offsets = [0, 96], sizes = [4, 32], strides = [1, 1]} : vector<4x128xf32> to vector<4x32xf32>
    %1475 = arith.mulf %1473, %1431 : vector<4x32xf32>
    %1476 = arith.mulf %1472, %1471 : vector<4x32xf32>
    %1477 = arith.addf %1475, %1476 : vector<4x32xf32>
    %1478 = math.tanh %1477 : vector<4x32xf32>
    %1479 = arith.mulf %1474, %1478 : vector<4x32xf32>
    %c32_i32 = arith.constant 32 : i32
    %c0_201 = arith.constant 0 : index
    %c0_202 = arith.constant 0 : index
    %1480 = vector.load %arg2[%c0_201, %c0_202] : memref<128x1xf32, #tpu.memory_space<vmem>>, vector<128x1xf32>
    %c0_203 = arith.constant 0 : index
    %c0_204 = arith.constant 0 : index
    %c0_205 = arith.constant 0 : index
    %1481 = vector.load %arg8[%c0_203, %c0_204, %c0_205] : memref<5x1x8xf32, #tpu.memory_space<vmem>>, vector<5x1x8xf32>
    %c0_206 = arith.constant 0 : index
    %c0_207 = arith.constant 0 : index
    %1482 = vector.load %arg9[%c0_206, %c0_207] : memref<1x8xf32, #tpu.memory_space<vmem>>, vector<1x8xf32>
    %1483 = vector.extract_strided_slice %1480 {offsets = [0, 0], sizes = [124, 1], strides = [1, 1]} : vector<128x1xf32> to vector<124x1xf32>
    %1484 = vector.extract_strided_slice %1481 {offsets = [0, 0, 0], sizes = [1, 1, 8], strides = [1, 1, 1]} : vector<5x1x8xf32> to vector<1x1x8xf32>
    %1485 = vector.shape_cast %1484 : vector<1x1x8xf32> to vector<1x8xf32>
    %1486 = vector.broadcast %1483 : vector<124x1xf32> to vector<124x8xf32>
    %1487 = vector.broadcast %1485 : vector<1x8xf32> to vector<124x8xf32>
    %1488 = arith.mulf %1486, %1487 : vector<124x8xf32>
    %1489 = vector.broadcast %1482 : vector<1x8xf32> to vector<124x8xf32>
    %1490 = arith.addf %1488, %1489 : vector<124x8xf32>
    %1491 = vector.extract_strided_slice %1480 {offsets = [1, 0], sizes = [124, 1], strides = [1, 1]} : vector<128x1xf32> to vector<124x1xf32>
    %1492 = vector.extract_strided_slice %1481 {offsets = [1, 0, 0], sizes = [1, 1, 8], strides = [1, 1, 1]} : vector<5x1x8xf32> to vector<1x1x8xf32>
    %1493 = vector.shape_cast %1492 : vector<1x1x8xf32> to vector<1x8xf32>
    %1494 = vector.broadcast %1491 : vector<124x1xf32> to vector<124x8xf32>
    %1495 = vector.broadcast %1493 : vector<1x8xf32> to vector<124x8xf32>
    %1496 = arith.mulf %1494, %1495 : vector<124x8xf32>
    %1497 = arith.addf %1490, %1496 : vector<124x8xf32>
    %1498 = vector.extract_strided_slice %1480 {offsets = [2, 0], sizes = [124, 1], strides = [1, 1]} : vector<128x1xf32> to vector<124x1xf32>
    %1499 = vector.extract_strided_slice %1481 {offsets = [2, 0, 0], sizes = [1, 1, 8], strides = [1, 1, 1]} : vector<5x1x8xf32> to vector<1x1x8xf32>
    %1500 = vector.shape_cast %1499 : vector<1x1x8xf32> to vector<1x8xf32>
    %1501 = vector.broadcast %1498 : vector<124x1xf32> to vector<124x8xf32>
    %1502 = vector.broadcast %1500 : vector<1x8xf32> to vector<124x8xf32>
    %1503 = arith.mulf %1501, %1502 : vector<124x8xf32>
    %1504 = arith.addf %1497, %1503 : vector<124x8xf32>
    %1505 = vector.extract_strided_slice %1480 {offsets = [3, 0], sizes = [124, 1], strides = [1, 1]} : vector<128x1xf32> to vector<124x1xf32>
    %1506 = vector.extract_strided_slice %1481 {offsets = [3, 0, 0], sizes = [1, 1, 8], strides = [1, 1, 1]} : vector<5x1x8xf32> to vector<1x1x8xf32>
    %1507 = vector.shape_cast %1506 : vector<1x1x8xf32> to vector<1x8xf32>
    %1508 = vector.broadcast %1505 : vector<124x1xf32> to vector<124x8xf32>
    %1509 = vector.broadcast %1507 : vector<1x8xf32> to vector<124x8xf32>
    %1510 = arith.mulf %1508, %1509 : vector<124x8xf32>
    %1511 = arith.addf %1504, %1510 : vector<124x8xf32>
    %1512 = vector.extract_strided_slice %1480 {offsets = [4, 0], sizes = [124, 1], strides = [1, 1]} : vector<128x1xf32> to vector<124x1xf32>
    %1513 = vector.extract_strided_slice %1481 {offsets = [4, 0, 0], sizes = [1, 1, 8], strides = [1, 1, 1]} : vector<5x1x8xf32> to vector<1x1x8xf32>
    %1514 = vector.shape_cast %1513 : vector<1x1x8xf32> to vector<1x8xf32>
    %1515 = vector.broadcast %1512 : vector<124x1xf32> to vector<124x8xf32>
    %1516 = vector.broadcast %1514 : vector<1x8xf32> to vector<124x8xf32>
    %1517 = arith.mulf %1515, %1516 : vector<124x8xf32>
    %1518 = arith.addf %1511, %1517 : vector<124x8xf32>
    %cst_208 = arith.constant 0.000000e+00 : f32
    %1519 = vector.broadcast %cst_208 : f32 to vector<124x8xf32>
    %1520 = arith.maximumf %1518, %1519 : vector<124x8xf32>
    %c0_209 = arith.constant 0 : index
    %c0_210 = arith.constant 0 : index
    %c0_211 = arith.constant 0 : index
    %1521 = vector.load %arg10[%c0_209, %c0_210, %c0_211] : memref<3x8x16xf32, #tpu.memory_space<vmem>>, vector<3x8x16xf32>
    %c0_212 = arith.constant 0 : index
    %c0_213 = arith.constant 0 : index
    %1522 = vector.load %arg11[%c0_212, %c0_213] : memref<1x16xf32, #tpu.memory_space<vmem>>, vector<1x16xf32>
    %1523 = vector.extract_strided_slice %1520 {offsets = [0, 0], sizes = [122, 8], strides = [1, 1]} : vector<124x8xf32> to vector<122x8xf32>
    %1524 = arith.truncf %1523 : vector<122x8xf32> to vector<122x8xbf16>
    %1525 = vector.extract_strided_slice %1521 {offsets = [0, 0, 0], sizes = [1, 8, 16], strides = [1, 1, 1]} : vector<3x8x16xf32> to vector<1x8x16xf32>
    %1526 = vector.shape_cast %1525 : vector<1x8x16xf32> to vector<8x16xf32>
    %1527 = arith.truncf %1526 : vector<8x16xf32> to vector<8x16xbf16>
    %cst_214 = arith.constant dense<0.000000e+00> : vector<122x16xf32>
    %1528 = tpu.matmul %1524, %1527, %cst_214 {dimension_numbers = #tpu.dot_dimension_numbers<[1], [0], [0], [1], [0, 0, 1, 1], [], []>} : vector<122x8xbf16>, vector<8x16xbf16>, vector<122x16xf32> -> vector<122x16xf32>
    %1529 = vector.broadcast %1522 : vector<1x16xf32> to vector<122x16xf32>
    %1530 = arith.addf %1528, %1529 : vector<122x16xf32>
    %1531 = vector.extract_strided_slice %1520 {offsets = [1, 0], sizes = [122, 8], strides = [1, 1]} : vector<124x8xf32> to vector<122x8xf32>
    %1532 = arith.truncf %1531 : vector<122x8xf32> to vector<122x8xbf16>
    %1533 = vector.extract_strided_slice %1521 {offsets = [1, 0, 0], sizes = [1, 8, 16], strides = [1, 1, 1]} : vector<3x8x16xf32> to vector<1x8x16xf32>
    %1534 = vector.shape_cast %1533 : vector<1x8x16xf32> to vector<8x16xf32>
    %1535 = arith.truncf %1534 : vector<8x16xf32> to vector<8x16xbf16>
    %cst_215 = arith.constant dense<0.000000e+00> : vector<122x16xf32>
    %1536 = tpu.matmul %1532, %1535, %cst_215 {dimension_numbers = #tpu.dot_dimension_numbers<[1], [0], [0], [1], [0, 0, 1, 1], [], []>} : vector<122x8xbf16>, vector<8x16xbf16>, vector<122x16xf32> -> vector<122x16xf32>
    %1537 = arith.addf %1530, %1536 : vector<122x16xf32>
    %1538 = vector.extract_strided_slice %1520 {offsets = [2, 0], sizes = [122, 8], strides = [1, 1]} : vector<124x8xf32> to vector<122x8xf32>
    %1539 = arith.truncf %1538 : vector<122x8xf32> to vector<122x8xbf16>
    %1540 = vector.extract_strided_slice %1521 {offsets = [2, 0, 0], sizes = [1, 8, 16], strides = [1, 1, 1]} : vector<3x8x16xf32> to vector<1x8x16xf32>
    %1541 = vector.shape_cast %1540 : vector<1x8x16xf32> to vector<8x16xf32>
    %1542 = arith.truncf %1541 : vector<8x16xf32> to vector<8x16xbf16>
    %cst_216 = arith.constant dense<0.000000e+00> : vector<122x16xf32>
    %1543 = tpu.matmul %1539, %1542, %cst_216 {dimension_numbers = #tpu.dot_dimension_numbers<[1], [0], [0], [1], [0, 0, 1, 1], [], []>} : vector<122x8xbf16>, vector<8x16xbf16>, vector<122x16xf32> -> vector<122x16xf32>
    %1544 = arith.addf %1537, %1543 : vector<122x16xf32>
    %cst_217 = arith.constant 0.000000e+00 : f32
    %1545 = vector.broadcast %cst_217 : f32 to vector<122x16xf32>
    %1546 = arith.maximumf %1544, %1545 : vector<122x16xf32>
    %c0_218 = arith.constant 0 : index
    %c0_219 = arith.constant 0 : index
    %c0_220 = arith.constant 0 : index
    %1547 = vector.load %arg12[%c0_218, %c0_219, %c0_220] : memref<3x16x16xf32, #tpu.memory_space<vmem>>, vector<3x16x16xf32>
    %c0_221 = arith.constant 0 : index
    %c0_222 = arith.constant 0 : index
    %1548 = vector.load %arg13[%c0_221, %c0_222] : memref<1x16xf32, #tpu.memory_space<vmem>>, vector<1x16xf32>
    %1549 = vector.extract_strided_slice %1546 {offsets = [0, 0], sizes = [120, 16], strides = [1, 1]} : vector<122x16xf32> to vector<120x16xf32>
    %1550 = arith.truncf %1549 : vector<120x16xf32> to vector<120x16xbf16>
    %1551 = vector.extract_strided_slice %1547 {offsets = [0, 0, 0], sizes = [1, 16, 16], strides = [1, 1, 1]} : vector<3x16x16xf32> to vector<1x16x16xf32>
    %1552 = vector.shape_cast %1551 : vector<1x16x16xf32> to vector<16x16xf32>
    %1553 = arith.truncf %1552 : vector<16x16xf32> to vector<16x16xbf16>
    %cst_223 = arith.constant dense<0.000000e+00> : vector<120x16xf32>
    %1554 = tpu.matmul %1550, %1553, %cst_223 {dimension_numbers = #tpu.dot_dimension_numbers<[1], [0], [0], [1], [0, 0, 1, 1], [], []>} : vector<120x16xbf16>, vector<16x16xbf16>, vector<120x16xf32> -> vector<120x16xf32>
    %1555 = vector.broadcast %1548 : vector<1x16xf32> to vector<120x16xf32>
    %1556 = arith.addf %1554, %1555 : vector<120x16xf32>
    %1557 = vector.extract_strided_slice %1546 {offsets = [1, 0], sizes = [120, 16], strides = [1, 1]} : vector<122x16xf32> to vector<120x16xf32>
    %1558 = arith.truncf %1557 : vector<120x16xf32> to vector<120x16xbf16>
    %1559 = vector.extract_strided_slice %1547 {offsets = [1, 0, 0], sizes = [1, 16, 16], strides = [1, 1, 1]} : vector<3x16x16xf32> to vector<1x16x16xf32>
    %1560 = vector.shape_cast %1559 : vector<1x16x16xf32> to vector<16x16xf32>
    %1561 = arith.truncf %1560 : vector<16x16xf32> to vector<16x16xbf16>
    %cst_224 = arith.constant dense<0.000000e+00> : vector<120x16xf32>
    %1562 = tpu.matmul %1558, %1561, %cst_224 {dimension_numbers = #tpu.dot_dimension_numbers<[1], [0], [0], [1], [0, 0, 1, 1], [], []>} : vector<120x16xbf16>, vector<16x16xbf16>, vector<120x16xf32> -> vector<120x16xf32>
    %1563 = arith.addf %1556, %1562 : vector<120x16xf32>
    %1564 = vector.extract_strided_slice %1546 {offsets = [2, 0], sizes = [120, 16], strides = [1, 1]} : vector<122x16xf32> to vector<120x16xf32>
    %1565 = arith.truncf %1564 : vector<120x16xf32> to vector<120x16xbf16>
    %1566 = vector.extract_strided_slice %1547 {offsets = [2, 0, 0], sizes = [1, 16, 16], strides = [1, 1, 1]} : vector<3x16x16xf32> to vector<1x16x16xf32>
    %1567 = vector.shape_cast %1566 : vector<1x16x16xf32> to vector<16x16xf32>
    %1568 = arith.truncf %1567 : vector<16x16xf32> to vector<16x16xbf16>
    %cst_225 = arith.constant dense<0.000000e+00> : vector<120x16xf32>
    %1569 = tpu.matmul %1565, %1568, %cst_225 {dimension_numbers = #tpu.dot_dimension_numbers<[1], [0], [0], [1], [0, 0, 1, 1], [], []>} : vector<120x16xbf16>, vector<16x16xbf16>, vector<120x16xf32> -> vector<120x16xf32>
    %1570 = arith.addf %1563, %1569 : vector<120x16xf32>
    %cst_226 = arith.constant 0.000000e+00 : f32
    %1571 = vector.broadcast %cst_226 : f32 to vector<120x16xf32>
    %1572 = arith.maximumf %1570, %1571 : vector<120x16xf32>
    %c0_227 = arith.constant 0 : index
    %c0_228 = arith.constant 0 : index
    %1573 = vector.load %arg14[%c0_227, %c0_228] : memref<4x120xf32, #tpu.memory_space<vmem>>, vector<4x120xf32>
    %cst_229 = arith.constant dense<0.000000e+00> : vector<4x16xf32>
    %1574 = tpu.matmul %1573, %1572, %cst_229 {dimension_numbers = #tpu.dot_dimension_numbers<[1], [0], [0], [1], [0, 0, 1, 1], [], []>} : vector<4x120xf32>, vector<120x16xf32>, vector<4x16xf32> -> vector<4x16xf32>
    %1575 = tpu.concatenate %1479, %1574 in 1 : vector<4x32xf32>, vector<4x16xf32> -> vector<4x48xf32>
    %c0_230 = arith.constant 0 : index
    %c0_231 = arith.constant 0 : index
    %1576 = vector.load %arg15[%c0_230, %c0_231] : memref<48x2xf32, #tpu.memory_space<vmem>>, vector<48x2xf32>
    %cst_232 = arith.constant dense<0.000000e+00> : vector<4x2xf32>
    %1577 = tpu.matmul %1575, %1576, %cst_232 {dimension_numbers = #tpu.dot_dimension_numbers<[1], [0], [0], [1], [0, 0, 1, 1], [], []>} : vector<4x48xf32>, vector<48x2xf32>, vector<4x2xf32> -> vector<4x2xf32>
    %c0_233 = arith.constant 0 : index
    %c0_234 = arith.constant 0 : index
    %1578 = vector.load %arg16[%c0_233, %c0_234] : memref<1x2xf32, #tpu.memory_space<vmem>>, vector<1x2xf32>
    %1579 = vector.broadcast %1578 : vector<1x2xf32> to vector<4x2xf32>
    %1580 = arith.addf %1577, %1579 : vector<4x2xf32>
    %c0_235 = arith.constant 0 : index
    %c0_236 = arith.constant 0 : index
    %1581 = vector.load %arg17[%c0_235, %c0_236] : memref<4x2xf32, #tpu.memory_space<vmem>>, vector<4x2xf32>
    tpu.vector_store %arg17[%c0_235, %c0_236], %1580 {strides = array<i32>} : memref<4x2xf32, #tpu.memory_space<vmem>>, vector<4x2xf32>,
    return
  }
  func.func @transform_0(%arg0: i32) -> (i32, i32, i32) {
    %c0_i32 = arith.constant 0 : i32
    %c0_i32_0 = arith.constant 0 : i32
    %c0_i32_1 = arith.constant 0 : i32
    %c0_i32_2 = arith.constant 0 : i32
    return %c0_i32, %c0_i32_0, %c0_i32_1 : i32, i32, i32
  }
  func.func @transform_1(%arg0: i32) -> (i32, i32) {
    %c0_i32 = arith.constant 0 : i32
    %c0_i32_0 = arith.constant 0 : i32
    %c0_i32_1 = arith.constant 0 : i32
    return %c0_i32, %c0_i32_0 : i32, i32
  }
  func.func @transform_2(%arg0: i32) -> (i32, i32) {
    %c0_i32 = arith.constant 0 : i32
    %c0_i32_0 = arith.constant 0 : i32
    %c0_i32_1 = arith.constant 0 : i32
    return %c0_i32, %c0_i32_0 : i32, i32
  }
  func.func @transform_3(%arg0: i32) -> (i32, i32) {
    %c0_i32 = arith.constant 0 : i32
    %c0_i32_0 = arith.constant 0 : i32
    %c0_i32_1 = arith.constant 0 : i32
    return %c0_i32, %c0_i32_0 : i32, i32
  }
  func.func @transform_4(%arg0: i32) -> (i32, i32) {
    %c0_i32 = arith.constant 0 : i32
    %c0_i32_0 = arith.constant 0 : i32
    %c0_i32_1 = arith.constant 0 : i32
    return %c0_i32, %c0_i32_0 : i32, i32
  }
  func.func @transform_5(%arg0: i32) -> (i32, i32) {
    %c0_i32 = arith.constant 0 : i32
    %c0_i32_0 = arith.constant 0 : i32
    %c0_i32_1 = arith.constant 0 : i32
    return %c0_i32, %c0_i32_0 : i32, i32
  }
  func.func @transform_6(%arg0: i32) -> (i32, i32) {
    %c0_i32 = arith.constant 0 : i32
    %c0_i32_0 = arith.constant 0 : i32
    %c0_i32_1 = arith.constant 0 : i32
    return %c0_i32, %c0_i32_0 : i32, i32
  }
  func.func @transform_7(%arg0: i32) -> (i32, i32, i32) {
    %c0_i32 = arith.constant 0 : i32
    %c0_i32_0 = arith.constant 0 : i32
    %c0_i32_1 = arith.constant 0 : i32
    %c0_i32_2 = arith.constant 0 : i32
    return %c0_i32, %c0_i32_0, %c0_i32_1 : i32, i32, i32
  }
  func.func @transform_8(%arg0: i32) -> (i32, i32) {
    %c0_i32 = arith.constant 0 : i32
    %c0_i32_0 = arith.constant 0 : i32
    %c0_i32_1 = arith.constant 0 : i32
    return %c0_i32, %c0_i32_0 : i32, i32
  }
  func.func @transform_9(%arg0: i32) -> (i32, i32, i32) {
    %c0_i32 = arith.constant 0 : i32
    %c0_i32_0 = arith.constant 0 : i32
    %c0_i32_1 = arith.constant 0 : i32
    %c0_i32_2 = arith.constant 0 : i32
    return %c0_i32, %c0_i32_0, %c0_i32_1 : i32, i32, i32
  }
  func.func @transform_10(%arg0: i32) -> (i32, i32) {
    %c0_i32 = arith.constant 0 : i32
    %c0_i32_0 = arith.constant 0 : i32
    %c0_i32_1 = arith.constant 0 : i32
    return %c0_i32, %c0_i32_0 : i32, i32
  }
  func.func @transform_11(%arg0: i32) -> (i32, i32, i32) {
    %c0_i32 = arith.constant 0 : i32
    %c0_i32_0 = arith.constant 0 : i32
    %c0_i32_1 = arith.constant 0 : i32
    %c0_i32_2 = arith.constant 0 : i32
    return %c0_i32, %c0_i32_0, %c0_i32_1 : i32, i32, i32
  }
  func.func @transform_12(%arg0: i32) -> (i32, i32) {
    %c0_i32 = arith.constant 0 : i32
    %c0_i32_0 = arith.constant 0 : i32
    %c0_i32_1 = arith.constant 0 : i32
    return %c0_i32, %c0_i32_0 : i32, i32
  }
  func.func @transform_13(%arg0: i32) -> (i32, i32) {
    %c0_i32 = arith.constant 0 : i32
    %c0_i32_0 = arith.constant 0 : i32
    %c0_i32_1 = arith.constant 0 : i32
    return %c0_i32, %c0_i32_0 : i32, i32
  }
  func.func @transform_14(%arg0: i32) -> (i32, i32) {
    %c0_i32 = arith.constant 0 : i32
    %c0_i32_0 = arith.constant 0 : i32
    %c0_i32_1 = arith.constant 0 : i32
    return %c0_i32, %c0_i32_0 : i32, i32
  }
  func.func @transform_15(%arg0: i32) -> (i32, i32) {
    %c0_i32 = arith.constant 0 : i32
    %c0_i32_0 = arith.constant 0 : i32
    %c0_i32_1 = arith.constant 0 : i32
    return %c0_i32, %c0_i32_0 : i32, i32
  }
  func.func @transform_16(%arg0: i32) -> (i32, i32) {
    %c0_i32 = arith.constant 0 : i32
    %c0_i32_0 = arith.constant 0 : i32
    %c0_i32_1 = arith.constant 0 : i32
    return %c0_i32, %c0_i32_0 : i32, i32
  }
}

</mosaic_0001>

<bundles_post_ra>
// kernel: lstmfcn_forward.1
= control target key start
LH: loop header
LB: loop body
LE: loop exit
PB: predicated region body
PF: predicated region fallthrough
CT: control target
= control target key end

     0   :  { %v11220_v0 = vmov 0.0   ;;  %vm8806_vm0 = vmmov 0   ;;  %v8807_v6 = vmov 0   ;;  %s8808_s21 = smov 64   ;;  %s8809_s22 = smov 32   ;;  %vm95_vm1 = vcmask 261120   ;;  %s11202_s3 = inlined_call_operand.vmem [shape: f32[32,128], index: 3, kind: input, shape index: {}]   ;;  %s11203_s0 = inlined_call_operand.vmem [shape: f32[32,4,1], index: 0, kind: input, shape index: {}]   ;;  %s11204_s2 = inlined_call_operand.vmem [shape: f32[1,128], index: 2, kind: input, shape index: {}]   ;;  %s11205_s4 = inlined_call_operand.vmem [shape: f32[1,128], index: 4, kind: input, shape index: {}]   ;;  %s11206_s5 = inlined_call_operand.vmem [shape: f32[64,128], index: 5, kind: input, shape index: {}]   ;;  %s11207_s6 = inlined_call_operand.vmem [shape: f32[1,128], index: 6, kind: input, shape index: {}]   ;;  %s11208_s1 = inlined_call_operand.vmem [shape: f32[128,1], index: 1, kind: input, shape index: {}]   ;;  %s11209_s9 = inlined_call_operand.vmem [shape: f32[3,8,16], index: 9, kind: input, shape index: {}]   ;;  %s11210_s7 = inlined_call_operand.vmem [shape: f32[5,1,8], index: 7, kind: input, shape index: {}]   ;;  %s11211_s8 = inlined_call_operand.vmem [shape: f32[1,8], index: 8, kind: input, shape index: {}]   ;;  %s11212_s11 = inlined_call_operand.vmem [shape: f32[3,16,16], index: 11, kind: input, shape index: {}]   ;;  %s11213_s10 = inlined_call_operand.vmem [shape: f32[1,16], index: 10, kind: input, shape index: {}]   ;;  %s11214_s12 = inlined_call_operand.vmem [shape: f32[1,16], index: 12, kind: input, shape index: {}]   ;;  %s11215_s13 = inlined_call_operand.vmem [shape: f32[4,120], index: 13, kind: input, shape index: {}]   ;;  %s11216_s14 = inlined_call_operand.vmem [shape: f32[48,2], index: 14, kind: input, shape index: {}]   ;;  %s11217_s15 = inlined_call_operand.vmem [shape: f32[1,2], index: 15, kind: input, shape index: {}]   ;;  %s11218_s16 = inlined_call_operand.vmem [shape: f32[4,2], index: 16, kind: output, shape index: {}]  }
   0x1   :  { %11234 = sst [smem:[#allocation4_spill]] %s11202_s3  ;;  %7474 = vmatprep.subr.bf16.mxu0 %v11220_v0  ;;  %7478 = vmatprep.mubr.msk.bf16.mxu0 %vm8806_vm0, %v11220_v0  ;;  %v75_v7 = vld [vmem:[%s11203_s0] sm:$0xf]  ;;  %v68_v29 = vld [vmem:[%s11206_s5 + $0x30] sm:$0xff]  ;;  %v69_v30 = vld [vmem:[%s11206_s5 + $0x38] sm:$0xff]  ;;  %vm176_vm2 = vcmask 523264  }
   0x2   :  { %s11235_s23 = sld [smem:[#allocation4_spill]]  ;;  %8278 = vset.pattern.permute.xlu0 %v8807_v6  ;;  %7482 = vmatprep.subr.bf16.mxu1 %v11220_v0  ;;  %v8933_v9 = vld [vmem:[%s11204_s2] ss:$0 sm:$0xff]  ;;  %v8956_v32 = vpack.c.bf16 %v69_v30, %v68_v29  ;;  %v67_v33 = vld [vmem:[%s11206_s5 + $0x28] sm:$0xff]  ;;  %v64_v35 = vld [vmem:[%s11206_s5 + $0x10] sm:$0xff]  ;;  %vm5632_vm3 = vcmask 1043456  }
   0x3   :  { %78 = vperm.xlu0 %8278, %v75_v7   ;;  %7490 = vmatprep.mubr.msk.bf16.mxu1 %vm8806_vm0, %v11220_v0  ;;  %v8939_v12 = vld [vmem:[%s11205_s4] ss:$0 sm:$0xff]  ;;  %v65_v36 = vld [vmem:[%s11206_s5 + $0x18] sm:$0xff]  ;;  %v63_v40 = vld [vmem:[%s11206_s5 + $0x8] sm:$0xff]  ;;  %vm5326_vm4 = vcmask 1046528   ;;  %vm5428_vm5 = vcmask 1045504  }
   0x4   :  { %8279 = vset.pattern.permute.xlu1 %v8807_v6  ;;  %v66_v31 = vld [vmem:[%s11206_s5 + $0x20] sm:$0xff]  ;;  %7483 = vmatpush3.bf16.msra.mxu1 %v8956_v32  ;;  %v8973_v38 = vpack.c.bf16 %v65_v36, %v64_v35  ;;  %vm5530_vm6 = vcmask 1044480   ;;  %vm5731_vm7 = vcmask 64512   ;;  %vm5857_vm8 = vsmask.f32 7424 }
   0x5   :  { %v8962_v34 = vpack.c.bf16 %v67_v33, %v66_v31  ;;  %7484 = vmatprep.subr.bf16.mxu1 %v11220_v0  ;;  %v62_v39 = vld [vmem:[%s11206_s5] sm:$0xff]  ;;  %v6932_v33 = vld [vmem:[%s11203_s0 + $0x8] sm:$0xf]  ;;  %vm6256_vm9 = vcmask 130048   ;;  %vm6745_vm10 = vcmask 982016   ;;  %vm6841_vm11 = vcmask 392192  }
   0x6   :  { %v8984_v41 = vpack.c.bf16 %v63_v40, %v62_v39  ;;  %v6927_v45 = vld [vmem:[%s11203_s0 + $0x4] sm:$0xf]  ;;  %v9017_v53 = vld [vmem:[%s11207_s6] ss:$0 sm:$0xff]  ;;  %vm6915_vm12 = vcmask 11264  }
   0x8   :  { %v57_v1 = vld [vmem:[%s11235_s23 + $0x10] sm:$0xff]  ;;  %v58_v2 = vld [vmem:[%s11235_s23 + $0x18] sm:$0xff]  ;;  %v55_v3 = vld [vmem:[%s11235_s23] sm:$0xff]  ;;  %7485 = vmatpush3.bf16.msra.mxu1 %v8962_v34 }
   0x9   :  { %v8907_v4 = vpack.c.bf16 %v58_v2, %v57_v1  ;;  %v56_v5 = vld [vmem:[%s11235_s23 + $0x8] sm:$0xff]  ;;  %7486 = vmatprep.subr.bf16.mxu1 %v11220_v0 }
   0xa   :  { %v8919_v8 = vpack.c.bf16 %v56_v5, %v55_v3 }
   0xb   :  { %7475 = vmatpush3.bf16.msra.mxu0 %v8907_v4 }
   0xc   :  { %7476 = vmatprep.subr.bf16.mxu0 %v11220_v0  ;;  %7487 = vmatpush3.bf16.msra.mxu1 %v8973_v38 }
   0xd   :  { %7488 = vmatprep.subr.bf16.mxu1 %v11220_v0 }
   0xf   :  { %7477 = vmatpush3.bf16.msra.mxu0 %v8919_v8 }
  0x10   :  { %7494 = vmatprep.subr.bf16.mxu0 %v11220_v0  ;;  %7489 = vmatpush3.bf16.msra.mxu1 %v8984_v41 }
  0x11   :  { %7514 = vmatprep.subr.bf16.mxu1 %v11220_v0 }
  0x12   :  { %7479 = vmatmul.mubr.bf16.vlgmr.msra.gmra.mxu0 %v8807_v6 }
  0x13   :  { %7495 = vmatpush3.bf16.msra.mxu0 %v8907_v4  ;;  %7498 = vmatprep.mubr.msk.bf16.mxu0 %vm8806_vm0, %v11220_v0 }
  0x14   :  { %7496 = vmatprep.subr.bf16.mxu0 %v11220_v0 }
  0x17   :  { %7497 = vmatpush3.bf16.msra.mxu0 %v8919_v8 }
  0x18   :  { %7502 = vmatprep.subr.bf16.mxu0 %v11220_v0 }
  0x7e   :  { %v79_v10 = vpop.permute.xlu0 %78 }
  0x7f   :  { %v87_v11 = vmul.f32 %v8933_v9, %v79_v10 }
  0x81   :  { %v94_v13 = vadd.f32 %v8939_v12, %v87_v11 }
  0xd2   :  { %v133_v14 = vpop.f32.mrf.mxu0 }
  0xd3   :  { %v139_v15 = vadd.f32 %v133_v14, %v94_v13 }
  0xd4   :  { %v7480_v16 = vpop.f32.mrf.mxu0 }
  0xd5   :  { %8280 = vtanh.f32 %v139_v15  ;;  %v6923_v20 = vmul.f32 -1.442695, %v139_v15 }
  0xd6   :  { %v136_v17 = vpop.f32.mrf.mxu0 }
  0xd7   :  { %8282 = vpow2.f32 %v6923_v20 }
  0xd8   :  { %v7481_v18 = vpop.f32.mrf.mxu0 }
  0xe2   :  { %v8281_v19 = vpop.eup %8280 }
  0xe3   :  { %149 = vrot.lane.b32.xlu0 %v8281_v19, %s8808_s21 }
  0xe4   :  { %v8283_v21 = vpop.eup %8282 }
  0xe5   :  { %v143_v22 = vadd.f32 1.0, %v8283_v21 }
  0xe7   :  { %8284 = vrcp.f32 %v143_v22 }
  0xf4   :  { %v8285_v23 = vpop.eup %8284 }
  0xf5   :  { %v147_v26 = vmul.f32 0.0, %v8285_v23 }
 0x155   :  { %v150_v24 = vpop.permute.xlu0 %149 }
 0x156   :  { %v152_v25 = vmul.f32 %v8285_v23, %v150_v24 }
 0x158   :  { %154 = vrot.lane.b32.xlu1 %v152_v25, %s8809_s22 }
 0x1ca   :  { %v155_v27 = vpop.permute.xlu1 %154 }
 0x1cb   :  { %v8944_v28 = vadd.f32 %v155_v27, %v147_v26 }
 0x1cd   :  { %8286 = vtanh.f32 %v8944_v28 }
 0x1da   :  { %v8287_v37 = vpop.eup %8286 }
 0x1db   :  { %160 = vrot.lane.b32.xlu1 %v8287_v37, %s8808_s21 }
 0x24d   :  { %v161_v42 = vpop.permute.xlu1 %160 }
 0x24e   :  { %v163_v43 = vmul.f32 %v8285_v23, %v161_v42 }
 0x250   :  { %v253_v44 = vpack.c.bf16 %v163_v43, %v163_v43  ;;  %165 = vrot.lane.b32.xlu0 %v163_v43, %s8809_s22 }
 0x252   :  { %255 = vrot.lane.b32.xlu1 %v253_v44, %s8809_s22 }
 0x254   :  { %248 = vperm.xlu0 %8278, %v6927_v45  }
 0x2c2   :  { %v166_v46 = vpop.permute.xlu0 %165 }
 0x2c3   :  { %v168_v47 = vsel %vm95_vm1, %v166_v46, 0.0 }
 0x2c4   :  { %v169_v48 = vpack.c.bf16 %v168_v47, %v168_v47  ;;  %v256_v49 = vpop.permute.xlu1 %255 }
 0x2c5   :  { %7499 = vmatmul.mubr.msk.bf16.vlgmr.msra.gmra.mxu0 %vm95_vm1, %v256_v49 }
 0x2c6   :  { %7491 = vmatmul.mubr.msk.bf16.vlgmr.msra.gmra.mxu1 %vm176_vm2, %v169_v48  ;;  %7503 = vmatpush3.bf16.msra.mxu0 %v8956_v32 }
 0x2c7   :  { %7504 = vmatprep.subr.bf16.mxu0 %v11220_v0  ;;  %7515 = vmatpush3.bf16.msra.mxu1 %v8907_v4 }
 0x2c8   :  { %7516 = vmatprep.subr.bf16.mxu1 %v11220_v0  ;;  %7510 = vmatprep.mubr.msk.bf16.mxu0 %vm8806_vm0, %v11220_v0 }
 0x2c9   :  { %7518 = vmatprep.mubr.msk.bf16.mxu1 %vm8806_vm0, %v11220_v0 }
 0x2ca   :  { %7505 = vmatpush3.bf16.msra.mxu0 %v8962_v34 }
 0x2cb   :  { %7506 = vmatprep.subr.bf16.mxu0 %v11220_v0  ;;  %7517 = vmatpush3.bf16.msra.mxu1 %v8919_v8 }
 0x2cc   :  { %7522 = vmatprep.subr.bf16.mxu1 %v11220_v0 }
 0x2ce   :  { %7507 = vmatpush3.bf16.msra.mxu0 %v8973_v38 }
 0x2cf   :  { %7508 = vmatprep.subr.bf16.mxu0 %v11220_v0  ;;  %v249_v50 = vpop.permute.xlu0 %248 }
 0x2d0   :  { %v251_v51 = vmul.f32 %v8933_v9, %v249_v50 }
 0x2d2   :  { %7509 = vmatpush3.bf16.msra.mxu0 %v8984_v41  ;;  %v252_v52 = vadd.f32 %v8939_v12, %v251_v51 }
 0x2d3   :  { %7534 = vmatprep.subr.bf16.mxu0 %v11220_v0 }
 0x385   :  { %v294_v54 = vpop.f32.mrf.mxu0 }
 0x386   :  { %v300_v55 = vadd.f32 %v294_v54, %v252_v52  ;;  %v214_v56 = vpop.f32.mrf.mxu1 }
 0x387   :  { %v215_v57 = vadd.f32 %v9017_v53, %v214_v56  ;;  %v7500_v58 = vpop.f32.mrf.mxu0 }
 0x388   :  { %8288 = vtanh.f32 %v300_v55  ;;  %v7492_v59 = vpop.f32.mrf.mxu1  ;;  %v6929_v3 = vmul.f32 -1.442695, %v300_v55 }
 0x389   :  { %8290 = vtanh.f32 %v215_v57  ;;  %v297_v60 = vpop.f32.mrf.mxu0  ;;  %v6926_v5 = vmul.f32 -1.442695, %v215_v57 }
 0x38a   :  { %v217_v61 = vpop.f32.mrf.mxu1  ;;  %8292 = vpow2.f32 %v6929_v3 }
 0x38b   :  { %v7501_v62 = vpop.f32.mrf.mxu0  ;;  %8294 = vpow2.f32 %v6926_v5 }
 0x38c   :  { %v7493_v63 = vpop.f32.mrf.mxu1 }
 0x395   :  { %v8289_v1 = vpop.eup %8288 }
 0x396   :  { %v8291_v2 = vpop.eup %8290  ;;  %310 = vrot.lane.b32.xlu0 %v8289_v1, %s8808_s21 }
 0x397   :  { %229 = vrot.lane.b32.xlu1 %v8291_v2, %s8808_s21  ;;  %v8293_v6 = vpop.eup %8292 }
 0x398   :  { %v8295_v7 = vpop.eup %8294  ;;  %v304_v10 = vadd.f32 1.0, %v8293_v6 }
 0x399   :  { %v223_v11 = vadd.f32 1.0, %v8295_v7 }
 0x39a   :  { %8296 = vrcp.f32 %v304_v10 }
 0x39b   :  { %8298 = vrcp.f32 %v223_v11 }
 0x3a7   :  { %v8297_v13 = vpop.eup %8296 }
 0x3a8   :  { %v8299_v15 = vpop.eup %8298  ;;  %v308_v19 = vmul.f32 %v8297_v13, %v8944_v28 }
 0x3a9   :  { %v227_v21 = vmul.f32 0.0, %v8299_v15 }
 0x408   :  { %v311_v14 = vpop.permute.xlu0 %310 }
 0x409   :  { %v313_v16 = vmul.f32 %v8297_v13, %v311_v14  ;;  %v230_v17 = vpop.permute.xlu1 %229 }
 0x40a   :  { %v232_v18 = vmul.f32 %v8299_v15, %v230_v17 }
 0x40b   :  { %315 = vrot.lane.b32.xlu0 %v313_v16, %s8809_s22 }
 0x40c   :  { %234 = vrot.lane.b32.xlu1 %v232_v18, %s8809_s22 }
 0x47d   :  { %v316_v20 = vpop.permute.xlu0 %315 }
 0x47e   :  { %v9025_v22 = vadd.f32 %v316_v20, %v308_v19  ;;  %v235_v23 = vpop.permute.xlu1 %234 }
 0x47f   :  { %v9027_v24 = vadd.f32 %v235_v23, %v227_v21  ;;  %v6937_v23 = vld [vmem:[%s11203_s0 + $0xc] sm:$0xf] }
 0x480   :  { %8300 = vtanh.f32 %v9025_v22 }
 0x481   :  { %8302 = vtanh.f32 %v9027_v24 }
 0x48d   :  { %v8301_v25 = vpop.eup %8300 }
 0x48e   :  { %v8303_v26 = vpop.eup %8302  ;;  %321 = vrot.lane.b32.xlu0 %v8301_v25, %s8808_s21 }
 0x48f   :  { %240 = vrot.lane.b32.xlu1 %v8303_v26, %s8808_s21 }
 0x500   :  { %v322_v27 = vpop.permute.xlu0 %321 }
 0x501   :  { %v324_v29 = vmul.f32 %v8297_v13, %v322_v27  ;;  %v241_v28 = vpop.permute.xlu1 %240 }
 0x502   :  { %v243_v30 = vmul.f32 %v8299_v15, %v241_v28 }
 0x503   :  { %326 = vrot.lane.b32.xlu1 %v324_v29, %s8809_s22  ;;  %v411_v31 = vpack.c.bf16 %v324_v29, %v324_v29 }
 0x504   :  { %330 = vrot.lane.b32.xlu0 %v243_v30, %s8808_s21 }
 0x507   :  { %413 = vrot.lane.b32.xlu1 %v411_v31, %s8809_s22 }
 0x508   :  { %406 = vperm.xlu0 %8278, %v6932_v33  }
 0x575   :  { %v327_v35 = vpop.permute.xlu1 %326 }
 0x576   :  { %v331_v36 = vpop.permute.xlu0 %330 }
 0x577   :  { %v333_v37 = vsel %vm95_vm1, %v327_v35, %v331_v36 }
 0x578   :  { %v334_v39 = vpack.c.bf16 %v333_v37, %v333_v37 }
 0x579   :  { %v414_v40 = vpop.permute.xlu1 %413 }
 0x57a   :  { %7511 = vmatmul.mubr.msk.bf16.vlgmr.msra.gmra.mxu0 %vm176_vm2, %v334_v39  ;;  %7519 = vmatmul.mubr.msk.bf16.vlgmr.msra.gmra.mxu1 %vm95_vm1, %v414_v40 }
 0x57b   :  { %7523 = vmatpush3.bf16.msra.mxu1 %v8956_v32  ;;  %7535 = vmatpush3.bf16.msra.mxu0 %v8907_v4 }
 0x57c   :  { %7524 = vmatprep.subr.bf16.mxu1 %v11220_v0  ;;  %7536 = vmatprep.subr.bf16.mxu0 %v11220_v0 }
 0x57d   :  { %7530 = vmatprep.mubr.msk.bf16.mxu1 %vm8806_vm0, %v11220_v0  ;;  %7538 = vmatprep.mubr.msk.bf16.mxu0 %vm8806_vm0, %v11220_v0 }
 0x57f   :  { %7525 = vmatpush3.bf16.msra.mxu1 %v8962_v34  ;;  %7537 = vmatpush3.bf16.msra.mxu0 %v8919_v8 }
 0x580   :  { %7526 = vmatprep.subr.bf16.mxu1 %v11220_v0  ;;  %7542 = vmatprep.subr.bf16.mxu0 %v11220_v0 }
 0x583   :  { %7527 = vmatpush3.bf16.msra.mxu1 %v8973_v38  ;;  %v407_v42 = vpop.permute.xlu0 %406 }
 0x584   :  { %7528 = vmatprep.subr.bf16.mxu1 %v11220_v0  ;;  %v409_v43 = vmul.f32 %v8933_v9, %v407_v42 }
 0x586   :  { %v410_v44 = vadd.f32 %v8939_v12, %v409_v43 }
 0x587   :  { %7529 = vmatpush3.bf16.msra.mxu1 %v8984_v41 }
 0x588   :  { %7554 = vmatprep.subr.bf16.mxu1 %v11220_v0 }
 0x63a   :  { %v372_v45 = vpop.f32.mrf.mxu0  ;;  %v452_v46 = vpop.f32.mrf.mxu1 }
 0x63b   :  { %v373_v47 = vadd.f32 %v9017_v53, %v372_v45  ;;  %v458_v48 = vadd.f32 %v452_v46, %v410_v44 }
 0x63c   :  { %v7512_v49 = vpop.f32.mrf.mxu0  ;;  %v7520_v50 = vpop.f32.mrf.mxu1 }
 0x63d   :  { %8304 = vtanh.f32 %v373_v47  ;;  %v6931_v58 = vmul.f32 -1.442695, %v373_v47  ;;  %v6934_v59 = vmul.f32 -1.442695, %v458_v48 }
 0x63e   :  { %8306 = vtanh.f32 %v458_v48  ;;  %v375_v51 = vpop.f32.mrf.mxu0  ;;  %v455_v52 = vpop.f32.mrf.mxu1 }
 0x63f   :  { %8308 = vpow2.f32 %v6931_v58 }
 0x640   :  { %v7513_v54 = vpop.f32.mrf.mxu0  ;;  %v7521_v55 = vpop.f32.mrf.mxu1  ;;  %8310 = vpow2.f32 %v6934_v59 }
 0x64a   :  { %v8305_v56 = vpop.eup %8304 }
 0x64b   :  { %v8307_v57 = vpop.eup %8306  ;;  %387 = vrot.lane.b32.xlu1 %v8305_v56, %s8808_s21 }
 0x64c   :  { %468 = vrot.lane.b32.xlu0 %v8307_v57, %s8808_s21  ;;  %v8309_v60 = vpop.eup %8308 }
 0x64d   :  { %v8311_v61 = vpop.eup %8310  ;;  %v381_v62 = vadd.f32 1.0, %v8309_v60 }
 0x64e   :  { %v462_v63 = vadd.f32 1.0, %v8311_v61 }
 0x64f   :  { %8312 = vrcp.f32 %v381_v62 }
 0x650   :  { %8314 = vrcp.f32 %v462_v63 }
 0x65c   :  { %v8313_v1 = vpop.eup %8312 }
 0x65d   :  { %v8315_v3 = vpop.eup %8314  ;;  %v385_v10 = vmul.f32 %v8313_v1, %v9027_v24 }
 0x65e   :  { %v466_v11 = vmul.f32 %v8315_v3, %v9025_v22 }
 0x6bd   :  { %v388_v2 = vpop.permute.xlu1 %387 }
 0x6be   :  { %v469_v5 = vpop.permute.xlu0 %468  ;;  %v390_v6 = vmul.f32 %v8313_v1, %v388_v2 }
 0x6bf   :  { %v471_v7 = vmul.f32 %v8315_v3, %v469_v5 }
 0x6c0   :  { %392 = vrot.lane.b32.xlu1 %v390_v6, %s8809_s22 }
 0x6c1   :  { %473 = vrot.lane.b32.xlu0 %v471_v7, %s8809_s22 }
 0x732   :  { %v393_v13 = vpop.permute.xlu1 %392 }
 0x733   :  { %v474_v14 = vpop.permute.xlu0 %473  ;;  %v9067_v15 = vadd.f32 %v393_v13, %v385_v10 }
 0x734   :  { %v9069_v16 = vadd.f32 %v474_v14, %v466_v11 }
 0x735   :  { %8316 = vtanh.f32 %v9067_v15 }
 0x736   :  { %8318 = vtanh.f32 %v9069_v16 }
 0x742   :  { %v8317_v17 = vpop.eup %8316 }
 0x743   :  { %v8319_v18 = vpop.eup %8318  ;;  %398 = vrot.lane.b32.xlu1 %v8317_v17, %s8808_s21 }
 0x744   :  { %479 = vrot.lane.b32.xlu0 %v8319_v18, %s8808_s21 }
 0x7b5   :  { %v399_v19 = vpop.permute.xlu1 %398 }
 0x7b6   :  { %v480_v20 = vpop.permute.xlu0 %479  ;;  %v401_v21 = vmul.f32 %v8313_v1, %v399_v19 }
 0x7b7   :  { %v482_v22 = vmul.f32 %v8315_v3, %v480_v20 }
 0x7b8   :  { %488 = vrot.lane.b32.xlu0 %v401_v21, %s8808_s21 }
 0x7b9   :  { %484 = vrot.lane.b32.xlu1 %v482_v22, %s8809_s22  ;;  %v569_v24 = vpack.c.bf16 %v482_v22, %v482_v22 }
 0x7bc   :  { %564 = vperm.xlu0 %8278, %v6937_v23  }
 0x7bd   :  { %571 = vrot.lane.b32.xlu1 %v569_v24, %s8809_s22 }
 0x82a   :  { %v489_v25 = vpop.permute.xlu0 %488 }
 0x82b   :  { %v485_v26 = vpop.permute.xlu1 %484 }
 0x82c   :  { %v491_v27 = vsel %vm95_vm1, %v485_v26, %v489_v25 }
 0x82d   :  { %v492_v29 = vpack.c.bf16 %v491_v27, %v491_v27 }
 0x82f   :  { %7531 = vmatmul.mubr.msk.bf16.vlgmr.msra.gmra.mxu1 %vm176_vm2, %v492_v29  ;;  %v572_v28 = vpop.permute.xlu1 %571 }
 0x830   :  { %7539 = vmatmul.mubr.msk.bf16.vlgmr.msra.gmra.mxu0 %vm95_vm1, %v572_v28  ;;  %7555 = vmatpush3.bf16.msra.mxu1 %v8907_v4 }
 0x831   :  { %7543 = vmatpush3.bf16.msra.mxu0 %v8956_v32  ;;  %7556 = vmatprep.subr.bf16.mxu1 %v11220_v0 }
 0x832   :  { %7544 = vmatprep.subr.bf16.mxu0 %v11220_v0  ;;  %7550 = vmatprep.mubr.msk.bf16.mxu0 %vm8806_vm0, %v11220_v0 }
 0x833   :  { %7558 = vmatprep.mubr.msk.bf16.mxu1 %vm8806_vm0, %v11220_v0 }
 0x834   :  { %7557 = vmatpush3.bf16.msra.mxu1 %v8919_v8 }
 0x835   :  { %7545 = vmatpush3.bf16.msra.mxu0 %v8962_v34  ;;  %7562 = vmatprep.subr.bf16.mxu1 %v11220_v0 }
 0x836   :  { %7546 = vmatprep.subr.bf16.mxu0 %v11220_v0 }
 0x837   :  { %v565_v30 = vpop.permute.xlu0 %564 }
 0x838   :  { %v567_v31 = vmul.f32 %v8933_v9, %v565_v30 }
 0x839   :  { %7547 = vmatpush3.bf16.msra.mxu0 %v8973_v38 }
 0x83a   :  { %7548 = vmatprep.subr.bf16.mxu0 %v11220_v0  ;;  %v568_v35 = vadd.f32 %v8939_v12, %v567_v31 }
 0x83d   :  { %7549 = vmatpush3.bf16.msra.mxu0 %v8984_v41 }
 0x83e   :  { %7574 = vmatprep.subr.bf16.mxu0 %v11220_v0 }
 0x8ef   :  { %v530_v33 = vpop.f32.mrf.mxu1 }
 0x8f0   :  { %v531_v36 = vadd.f32 %v9017_v53, %v530_v33  ;;  %v610_v37 = vpop.f32.mrf.mxu0 }
 0x8f1   :  { %v616_v39 = vadd.f32 %v610_v37, %v568_v35  ;;  %v7532_v40 = vpop.f32.mrf.mxu1 }
 0x8f2   :  { %8320 = vtanh.f32 %v531_v36  ;;  %v7540_v42 = vpop.f32.mrf.mxu0  ;;  %v6936_v49 = vmul.f32 -1.442695, %v531_v36 }
 0x8f3   :  { %8322 = vtanh.f32 %v616_v39  ;;  %v533_v43 = vpop.f32.mrf.mxu1  ;;  %v6939_v50 = vmul.f32 -1.442695, %v616_v39 }
 0x8f4   :  { %v613_v44 = vpop.f32.mrf.mxu0  ;;  %8324 = vpow2.f32 %v6936_v49 }
 0x8f5   :  { %v7533_v45 = vpop.f32.mrf.mxu1  ;;  %8326 = vpow2.f32 %v6939_v50 }
 0x8f6   :  { %v7541_v46 = vpop.f32.mrf.mxu0 }
 0x8ff   :  { %v8321_v47 = vpop.eup %8320 }
 0x900   :  { %v8323_v48 = vpop.eup %8322  ;;  %545 = vrot.lane.b32.xlu1 %v8321_v47, %s8808_s21 }
 0x901   :  { %626 = vrot.lane.b32.xlu0 %v8323_v48, %s8808_s21  ;;  %v8325_v51 = vpop.eup %8324 }
 0x902   :  { %v8327_v52 = vpop.eup %8326  ;;  %v539_v54 = vadd.f32 1.0, %v8325_v51 }
 0x903   :  { %v620_v55 = vadd.f32 1.0, %v8327_v52 }
 0x904   :  { %8328 = vrcp.f32 %v539_v54 }
 0x905   :  { %8330 = vrcp.f32 %v620_v55 }
 0x911   :  { %v8329_v56 = vpop.eup %8328 }
 0x912   :  { %v8331_v58 = vpop.eup %8330  ;;  %v543_v62 = vmul.f32 %v8329_v56, %v9067_v15  ;;  %v6942_v15 = vld [vmem:[%s11203_s0 + $0x10] sm:$0xf] }
 0x913   :  { %v624_v1 = vmul.f32 %v8331_v58, %v9069_v16 }
 0x972   :  { %v546_v57 = vpop.permute.xlu1 %545 }
 0x973   :  { %v548_v59 = vmul.f32 %v8329_v56, %v546_v57  ;;  %v627_v60 = vpop.permute.xlu0 %626 }
 0x974   :  { %v629_v61 = vmul.f32 %v8331_v58, %v627_v60 }
 0x975   :  { %550 = vrot.lane.b32.xlu1 %v548_v59, %s8809_s22 }
 0x976   :  { %631 = vrot.lane.b32.xlu0 %v629_v61, %s8809_s22 }
 0x9e7   :  { %v551_v63 = vpop.permute.xlu1 %550 }
 0x9e8   :  { %v9109_v2 = vadd.f32 %v551_v63, %v543_v62  ;;  %v632_v3 = vpop.permute.xlu0 %631 }
 0x9e9   :  { %v9111_v5 = vadd.f32 %v632_v3, %v624_v1  ;;  %v6947_v3 = vld [vmem:[%s11203_s0 + $0x14] sm:$0xf] }
 0x9ea   :  { %8332 = vtanh.f32 %v9109_v2 }
 0x9eb   :  { %8334 = vtanh.f32 %v9111_v5 }
 0x9f7   :  { %v8333_v6 = vpop.eup %8332 }
 0x9f8   :  { %v8335_v7 = vpop.eup %8334  ;;  %556 = vrot.lane.b32.xlu1 %v8333_v6, %s8808_s21 }
 0x9f9   :  { %637 = vrot.lane.b32.xlu0 %v8335_v7, %s8808_s21 }
 0xa6a   :  { %v557_v10 = vpop.permute.xlu1 %556 }
 0xa6b   :  { %v559_v11 = vmul.f32 %v8329_v56, %v557_v10  ;;  %v638_v13 = vpop.permute.xlu0 %637 }
 0xa6c   :  { %v640_v14 = vmul.f32 %v8331_v58, %v638_v13 }
 0xa6d   :  { %646 = vrot.lane.b32.xlu0 %v559_v11, %s8808_s21 }
 0xa6e   :  { %642 = vrot.lane.b32.xlu1 %v640_v14, %s8809_s22  ;;  %v727_v16 = vpack.c.bf16 %v640_v14, %v640_v14 }
 0xa71   :  { %722 = vperm.xlu0 %8278, %v6942_v15  }
 0xa72   :  { %729 = vrot.lane.b32.xlu1 %v727_v16, %s8809_s22 }
 0xadf   :  { %v647_v17 = vpop.permute.xlu0 %646 }
 0xae0   :  { %v643_v18 = vpop.permute.xlu1 %642 }
 0xae1   :  { %v649_v19 = vsel %vm95_vm1, %v643_v18, %v647_v17 }
 0xae2   :  { %v650_v20 = vpack.c.bf16 %v649_v19, %v649_v19 }
 0xae4   :  { %7551 = vmatmul.mubr.msk.bf16.vlgmr.msra.gmra.mxu0 %vm176_vm2, %v650_v20  ;;  %v730_v21 = vpop.permute.xlu1 %729 }
 0xae5   :  { %7559 = vmatmul.mubr.msk.bf16.vlgmr.msra.gmra.mxu1 %vm95_vm1, %v730_v21  ;;  %7575 = vmatpush3.bf16.msra.mxu0 %v8907_v4 }
 0xae6   :  { %7563 = vmatpush3.bf16.msra.mxu1 %v8956_v32  ;;  %7576 = vmatprep.subr.bf16.mxu0 %v11220_v0 }
 0xae7   :  { %7564 = vmatprep.subr.bf16.mxu1 %v11220_v0  ;;  %7570 = vmatprep.mubr.msk.bf16.mxu1 %vm8806_vm0, %v11220_v0 }
 0xae8   :  { %7578 = vmatprep.mubr.msk.bf16.mxu0 %vm8806_vm0, %v11220_v0 }
 0xae9   :  { %7577 = vmatpush3.bf16.msra.mxu0 %v8919_v8 }
 0xaea   :  { %7565 = vmatpush3.bf16.msra.mxu1 %v8962_v34  ;;  %7582 = vmatprep.subr.bf16.mxu0 %v11220_v0 }
 0xaeb   :  { %7566 = vmatprep.subr.bf16.mxu1 %v11220_v0 }
 0xaec   :  { %v723_v22 = vpop.permute.xlu0 %722 }
 0xaed   :  { %v725_v23 = vmul.f32 %v8933_v9, %v723_v22 }
 0xaee   :  { %7567 = vmatpush3.bf16.msra.mxu1 %v8973_v38 }
 0xaef   :  { %7568 = vmatprep.subr.bf16.mxu1 %v11220_v0  ;;  %v726_v25 = vadd.f32 %v8939_v12, %v725_v23 }
 0xaf2   :  { %7569 = vmatpush3.bf16.msra.mxu1 %v8984_v41 }
 0xaf3   :  { %7594 = vmatprep.subr.bf16.mxu1 %v11220_v0 }
 0xba4   :  { %v688_v24 = vpop.f32.mrf.mxu0 }
 0xba5   :  { %v689_v26 = vadd.f32 %v9017_v53, %v688_v24  ;;  %v768_v27 = vpop.f32.mrf.mxu1 }
 0xba6   :  { %v774_v29 = vadd.f32 %v768_v27, %v726_v25  ;;  %v7552_v28 = vpop.f32.mrf.mxu0 }
 0xba7   :  { %8336 = vtanh.f32 %v689_v26  ;;  %v7560_v30 = vpop.f32.mrf.mxu1  ;;  %v6941_v40 = vmul.f32 -1.442695, %v689_v26 }
 0xba8   :  { %8338 = vtanh.f32 %v774_v29  ;;  %v691_v31 = vpop.f32.mrf.mxu0  ;;  %v6944_v42 = vmul.f32 -1.442695, %v774_v29 }
 0xba9   :  { %v771_v33 = vpop.f32.mrf.mxu1  ;;  %8340 = vpow2.f32 %v6941_v40 }
 0xbaa   :  { %v7553_v35 = vpop.f32.mrf.mxu0  ;;  %8342 = vpow2.f32 %v6944_v42 }
 0xbab   :  { %v7561_v36 = vpop.f32.mrf.mxu1 }
 0xbb4   :  { %v8337_v37 = vpop.eup %8336 }
 0xbb5   :  { %v8339_v39 = vpop.eup %8338  ;;  %703 = vrot.lane.b32.xlu1 %v8337_v37, %s8808_s21 }
 0xbb6   :  { %784 = vrot.lane.b32.xlu0 %v8339_v39, %s8808_s21  ;;  %v8341_v43 = vpop.eup %8340 }
 0xbb7   :  { %v8343_v44 = vpop.eup %8342  ;;  %v697_v45 = vadd.f32 1.0, %v8341_v43 }
 0xbb8   :  { %v778_v46 = vadd.f32 1.0, %v8343_v44 }
 0xbb9   :  { %8344 = vrcp.f32 %v697_v45 }
 0xbba   :  { %8346 = vrcp.f32 %v778_v46 }
 0xbc6   :  { %v8345_v47 = vpop.eup %8344 }
 0xbc7   :  { %v8347_v49 = vpop.eup %8346  ;;  %v701_v54 = vmul.f32 %v8345_v47, %v9109_v2 }
 0xbc8   :  { %v782_v56 = vmul.f32 %v8347_v49, %v9111_v5 }
 0xc27   :  { %v704_v48 = vpop.permute.xlu1 %703 }
 0xc28   :  { %v706_v50 = vmul.f32 %v8345_v47, %v704_v48  ;;  %v785_v51 = vpop.permute.xlu0 %784 }
 0xc29   :  { %v787_v52 = vmul.f32 %v8347_v49, %v785_v51 }
 0xc2a   :  { %708 = vrot.lane.b32.xlu1 %v706_v50, %s8809_s22 }
 0xc2b   :  { %789 = vrot.lane.b32.xlu0 %v787_v52, %s8809_s22 }
 0xc9c   :  { %v709_v55 = vpop.permute.xlu1 %708 }
 0xc9d   :  { %v9151_v57 = vadd.f32 %v709_v55, %v701_v54  ;;  %v790_v58 = vpop.permute.xlu0 %789 }
 0xc9e   :  { %v9153_v59 = vadd.f32 %v790_v58, %v782_v56  ;;  %v6952_v58 = vld [vmem:[%s11203_s0 + $0x18] sm:$0xf] }
 0xc9f   :  { %8348 = vtanh.f32 %v9151_v57 }
 0xca0   :  { %8350 = vtanh.f32 %v9153_v59 }
 0xcac   :  { %v8349_v60 = vpop.eup %8348 }
 0xcad   :  { %v8351_v61 = vpop.eup %8350  ;;  %714 = vrot.lane.b32.xlu1 %v8349_v60, %s8808_s21 }
 0xcae   :  { %795 = vrot.lane.b32.xlu0 %v8351_v61, %s8808_s21 }
 0xd1f   :  { %v715_v62 = vpop.permute.xlu1 %714 }
 0xd20   :  { %v717_v63 = vmul.f32 %v8345_v47, %v715_v62  ;;  %v796_v1 = vpop.permute.xlu0 %795 }
 0xd21   :  { %v798_v2 = vmul.f32 %v8347_v49, %v796_v1 }
 0xd22   :  { %804 = vrot.lane.b32.xlu0 %v717_v63, %s8808_s21 }
 0xd23   :  { %800 = vrot.lane.b32.xlu1 %v798_v2, %s8809_s22  ;;  %v885_v5 = vpack.c.bf16 %v798_v2, %v798_v2 }
 0xd26   :  { %880 = vperm.xlu0 %8278, %v6947_v3  }
 0xd27   :  { %887 = vrot.lane.b32.xlu1 %v885_v5, %s8809_s22 }
 0xd94   :  { %v805_v6 = vpop.permute.xlu0 %804 }
 0xd95   :  { %v801_v7 = vpop.permute.xlu1 %800 }
 0xd96   :  { %v807_v10 = vsel %vm95_vm1, %v801_v7, %v805_v6 }
 0xd97   :  { %v808_v11 = vpack.c.bf16 %v807_v10, %v807_v10 }
 0xd99   :  { %7571 = vmatmul.mubr.msk.bf16.vlgmr.msra.gmra.mxu1 %vm176_vm2, %v808_v11  ;;  %v888_v13 = vpop.permute.xlu1 %887 }
 0xd9a   :  { %7579 = vmatmul.mubr.msk.bf16.vlgmr.msra.gmra.mxu0 %vm95_vm1, %v888_v13  ;;  %7595 = vmatpush3.bf16.msra.mxu1 %v8907_v4 }
 0xd9b   :  { %7583 = vmatpush3.bf16.msra.mxu0 %v8956_v32  ;;  %7596 = vmatprep.subr.bf16.mxu1 %v11220_v0 }
 0xd9c   :  { %7584 = vmatprep.subr.bf16.mxu0 %v11220_v0  ;;  %7590 = vmatprep.mubr.msk.bf16.mxu0 %vm8806_vm0, %v11220_v0 }
 0xd9d   :  { %7598 = vmatprep.mubr.msk.bf16.mxu1 %vm8806_vm0, %v11220_v0 }
 0xd9e   :  { %7597 = vmatpush3.bf16.msra.mxu1 %v8919_v8 }
 0xd9f   :  { %7585 = vmatpush3.bf16.msra.mxu0 %v8962_v34  ;;  %7602 = vmatprep.subr.bf16.mxu1 %v11220_v0 }
 0xda0   :  { %7586 = vmatprep.subr.bf16.mxu0 %v11220_v0 }
 0xda1   :  { %v881_v14 = vpop.permute.xlu0 %880 }
 0xda2   :  { %v883_v15 = vmul.f32 %v8933_v9, %v881_v14 }
 0xda3   :  { %7587 = vmatpush3.bf16.msra.mxu0 %v8973_v38 }
 0xda4   :  { %7588 = vmatprep.subr.bf16.mxu0 %v11220_v0  ;;  %v884_v17 = vadd.f32 %v8939_v12, %v883_v15 }
 0xda7   :  { %7589 = vmatpush3.bf16.msra.mxu0 %v8984_v41 }
 0xda8   :  { %7614 = vmatprep.subr.bf16.mxu0 %v11220_v0 }
 0xe59   :  { %v846_v16 = vpop.f32.mrf.mxu1 }
 0xe5a   :  { %v847_v18 = vadd.f32 %v9017_v53, %v846_v16  ;;  %v926_v19 = vpop.f32.mrf.mxu0 }
 0xe5b   :  { %v932_v20 = vadd.f32 %v926_v19, %v884_v17  ;;  %v7572_v21 = vpop.f32.mrf.mxu1 }
 0xe5c   :  { %8352 = vtanh.f32 %v847_v18  ;;  %v7580_v22 = vpop.f32.mrf.mxu0  ;;  %v6946_v28 = vmul.f32 -1.442695, %v847_v18 }
 0xe5d   :  { %8354 = vtanh.f32 %v932_v20  ;;  %v849_v23 = vpop.f32.mrf.mxu1  ;;  %v6949_v30 = vmul.f32 -1.442695, %v932_v20 }
 0xe5e   :  { %v929_v24 = vpop.f32.mrf.mxu0  ;;  %8356 = vpow2.f32 %v6946_v28 }
 0xe5f   :  { %v7573_v25 = vpop.f32.mrf.mxu1  ;;  %8358 = vpow2.f32 %v6949_v30 }
 0xe60   :  { %v7581_v26 = vpop.f32.mrf.mxu0 }
 0xe69   :  { %v8353_v27 = vpop.eup %8352 }
 0xe6a   :  { %v8355_v29 = vpop.eup %8354  ;;  %861 = vrot.lane.b32.xlu1 %v8353_v27, %s8808_s21 }
 0xe6b   :  { %942 = vrot.lane.b32.xlu0 %v8355_v29, %s8808_s21  ;;  %v8357_v31 = vpop.eup %8356 }
 0xe6c   :  { %v8359_v33 = vpop.eup %8358  ;;  %v855_v35 = vadd.f32 1.0, %v8357_v31 }
 0xe6d   :  { %v936_v36 = vadd.f32 1.0, %v8359_v33 }
 0xe6e   :  { %8360 = vrcp.f32 %v855_v35 }
 0xe6f   :  { %8362 = vrcp.f32 %v936_v36 }
 0xe7b   :  { %v8361_v37 = vpop.eup %8360 }
 0xe7c   :  { %v8363_v40 = vpop.eup %8362  ;;  %v859_v45 = vmul.f32 %v8361_v37, %v9151_v57 }
 0xe7d   :  { %v940_v47 = vmul.f32 %v8363_v40, %v9153_v59 }
 0xedc   :  { %v862_v39 = vpop.permute.xlu1 %861 }
 0xedd   :  { %v864_v42 = vmul.f32 %v8361_v37, %v862_v39  ;;  %v943_v43 = vpop.permute.xlu0 %942 }
 0xede   :  { %v945_v44 = vmul.f32 %v8363_v40, %v943_v43 }
 0xedf   :  { %866 = vrot.lane.b32.xlu1 %v864_v42, %s8809_s22 }
 0xee0   :  { %947 = vrot.lane.b32.xlu0 %v945_v44, %s8809_s22 }
 0xf51   :  { %v867_v46 = vpop.permute.xlu1 %866 }
 0xf52   :  { %v9193_v48 = vadd.f32 %v867_v46, %v859_v45  ;;  %v948_v49 = vpop.permute.xlu0 %947 }
 0xf53   :  { %v9195_v50 = vadd.f32 %v948_v49, %v940_v47  ;;  %v6957_v47 = vld [vmem:[%s11203_s0 + $0x1c] sm:$0xf] }
 0xf54   :  { %8364 = vtanh.f32 %v9193_v48 }
 0xf55   :  { %8366 = vtanh.f32 %v9195_v50 }
 0xf61   :  { %v8365_v51 = vpop.eup %8364 }
 0xf62   :  { %v8367_v52 = vpop.eup %8366  ;;  %872 = vrot.lane.b32.xlu1 %v8365_v51, %s8808_s21 }
 0xf63   :  { %953 = vrot.lane.b32.xlu0 %v8367_v52, %s8808_s21 }
 0xfd4   :  { %v873_v54 = vpop.permute.xlu1 %872 }
 0xfd5   :  { %v875_v55 = vmul.f32 %v8361_v37, %v873_v54  ;;  %v954_v56 = vpop.permute.xlu0 %953 }
 0xfd6   :  { %v956_v57 = vmul.f32 %v8363_v40, %v954_v56  ;;  %v9271_v56 = vld [vmem:[%s11204_s2] ss:$0 sm:$0xff] }
 0xfd7   :  { %962 = vrot.lane.b32.xlu0 %v875_v55, %s8808_s21 }
 0xfd8   :  { %958 = vrot.lane.b32.xlu1 %v956_v57, %s8809_s22  ;;  %v1043_v59 = vpack.c.bf16 %v956_v57, %v956_v57 }
 0xfdb   :  { %1038 = vperm.xlu0 %8278, %v6952_v58  }
 0xfdc   :  { %1045 = vrot.lane.b32.xlu1 %v1043_v59, %s8809_s22  ;;  %v9277_v59 = vld [vmem:[%s11205_s4] ss:$0 sm:$0xff] }
0x1049   :  { %v963_v60 = vpop.permute.xlu0 %962 }
0x104a   :  { %v959_v61 = vpop.permute.xlu1 %958 }
0x104b   :  { %v965_v62 = vsel %vm95_vm1, %v959_v61, %v963_v60 }
0x104c   :  { %v966_v63 = vpack.c.bf16 %v965_v62, %v965_v62 }
0x104e   :  { %7591 = vmatmul.mubr.msk.bf16.vlgmr.msra.gmra.mxu0 %vm176_vm2, %v966_v63  ;;  %v1046_v1 = vpop.permute.xlu1 %1045 }
0x104f   :  { %7599 = vmatmul.mubr.msk.bf16.vlgmr.msra.gmra.mxu1 %vm95_vm1, %v1046_v1  ;;  %7615 = vmatpush3.bf16.msra.mxu0 %v8907_v4 }
0x1050   :  { %7603 = vmatpush3.bf16.msra.mxu1 %v8956_v32  ;;  %7616 = vmatprep.subr.bf16.mxu0 %v11220_v0 }
0x1051   :  { %7604 = vmatprep.subr.bf16.mxu1 %v11220_v0  ;;  %7610 = vmatprep.mubr.msk.bf16.mxu1 %vm8806_vm0, %v11220_v0 }
0x1052   :  { %7618 = vmatprep.mubr.msk.bf16.mxu0 %vm8806_vm0, %v11220_v0 }
0x1053   :  { %7617 = vmatpush3.bf16.msra.mxu0 %v8919_v8 }
0x1054   :  { %7605 = vmatpush3.bf16.msra.mxu1 %v8962_v34  ;;  %7622 = vmatprep.subr.bf16.mxu0 %v11220_v0 }
0x1055   :  { %7606 = vmatprep.subr.bf16.mxu1 %v11220_v0 }
0x1056   :  { %v1039_v2 = vpop.permute.xlu0 %1038 }
0x1057   :  { %v1041_v3 = vmul.f32 %v8933_v9, %v1039_v2 }
0x1058   :  { %7607 = vmatpush3.bf16.msra.mxu1 %v8973_v38 }
0x1059   :  { %7608 = vmatprep.subr.bf16.mxu1 %v11220_v0  ;;  %v1042_v6 = vadd.f32 %v8939_v12, %v1041_v3 }
0x105c   :  { %7609 = vmatpush3.bf16.msra.mxu1 %v8984_v41 }
0x105d   :  { %7634 = vmatprep.subr.bf16.mxu1 %v11220_v0 }
0x110e   :  { %v1004_v5 = vpop.f32.mrf.mxu0 }
0x110f   :  { %v1005_v7 = vadd.f32 %v9017_v53, %v1004_v5  ;;  %v1084_v10 = vpop.f32.mrf.mxu1 }
0x1110   :  { %v1090_v11 = vadd.f32 %v1084_v10, %v1042_v6  ;;  %v7592_v13 = vpop.f32.mrf.mxu0 }
0x1111   :  { %8368 = vtanh.f32 %v1005_v7  ;;  %v7600_v14 = vpop.f32.mrf.mxu1  ;;  %v6951_v9 = vmul.f32 -1.442695, %v1005_v7 }
0x1112   :  { %8370 = vtanh.f32 %v1090_v11  ;;  %v1007_v15 = vpop.f32.mrf.mxu0  ;;  %v6954_v12 = vmul.f32 -1.442695, %v1090_v11 }
0x1113   :  { %v1087_v16 = vpop.f32.mrf.mxu1  ;;  %8372 = vpow2.f32 %v6951_v9 }
0x1114   :  { %v7593_v17 = vpop.f32.mrf.mxu0  ;;  %8374 = vpow2.f32 %v6954_v12 }
0x1115   :  { %v7601_v18 = vpop.f32.mrf.mxu1 }
0x111e   :  { %v8369_v19 = vpop.eup %8368 }
0x111f   :  { %v8371_v20 = vpop.eup %8370  ;;  %1019 = vrot.lane.b32.xlu1 %v8369_v19, %s8808_s21 }
0x1120   :  { %1100 = vrot.lane.b32.xlu0 %v8371_v20, %s8808_s21  ;;  %v8373_v21 = vpop.eup %8372 }
0x1121   :  { %v8375_v22 = vpop.eup %8374  ;;  %v1013_v23 = vadd.f32 1.0, %v8373_v21 }
0x1122   :  { %v1094_v24 = vadd.f32 1.0, %v8375_v22 }
0x1123   :  { %8376 = vrcp.f32 %v1013_v23 }
0x1124   :  { %8378 = vrcp.f32 %v1094_v24 }
0x1130   :  { %v8377_v25 = vpop.eup %8376 }
0x1131   :  { %v8379_v27 = vpop.eup %8378  ;;  %v1017_v31 = vmul.f32 %v8377_v25, %v9193_v48 }
0x1132   :  { %v1098_v35 = vmul.f32 %v8379_v27, %v9195_v50 }
0x1191   :  { %v1020_v26 = vpop.permute.xlu1 %1019 }
0x1192   :  { %v1022_v29 = vmul.f32 %v8377_v25, %v1020_v26  ;;  %v1101_v28 = vpop.permute.xlu0 %1100 }
0x1193   :  { %v1103_v30 = vmul.f32 %v8379_v27, %v1101_v28 }
0x1194   :  { %1024 = vrot.lane.b32.xlu1 %v1022_v29, %s8809_s22 }
0x1195   :  { %1105 = vrot.lane.b32.xlu0 %v1103_v30, %s8809_s22 }
0x1206   :  { %v1025_v33 = vpop.permute.xlu1 %1024 }
0x1207   :  { %v9235_v36 = vadd.f32 %v1025_v33, %v1017_v31  ;;  %v1106_v37 = vpop.permute.xlu0 %1105 }
0x1208   :  { %v9237_v39 = vadd.f32 %v1106_v37, %v1098_v35 }
0x1209   :  { %8380 = vtanh.f32 %v9235_v36 }
0x120a   :  { %8382 = vtanh.f32 %v9237_v39 }
0x1216   :  { %v8381_v40 = vpop.eup %8380 }
0x1217   :  { %v8383_v42 = vpop.eup %8382  ;;  %1030 = vrot.lane.b32.xlu1 %v8381_v40, %s8808_s21 }
0x1218   :  { %1111 = vrot.lane.b32.xlu0 %v8383_v42, %s8808_s21 }
0x1289   :  { %v1031_v43 = vpop.permute.xlu1 %1030 }
0x128a   :  { %v1033_v44 = vmul.f32 %v8377_v25, %v1031_v43  ;;  %v1112_v45 = vpop.permute.xlu0 %1111 }
0x128b   :  { %v1114_v46 = vmul.f32 %v8379_v27, %v1112_v45 }
0x128c   :  { %1120 = vrot.lane.b32.xlu0 %v1033_v44, %s8808_s21 }
0x128d   :  { %1116 = vrot.lane.b32.xlu1 %v1114_v46, %s8809_s22  ;;  %v1201_v48 = vpack.c.bf16 %v1114_v46, %v1114_v46 }
0x1290   :  { %1196 = vperm.xlu0 %8278, %v6957_v47  }
0x1291   :  { %1203 = vrot.lane.b32.xlu1 %v1201_v48, %s8809_s22 }
0x12fe   :  { %v1121_v49 = vpop.permute.xlu0 %1120 }
0x12ff   :  { %v1117_v50 = vpop.permute.xlu1 %1116 }
0x1300   :  { %v1123_v51 = vsel %vm95_vm1, %v1117_v50, %v1121_v49  ;;  %v9325_v49 = vld [vmem:[%s11207_s6] ss:$0 sm:$0xff] }
0x1301   :  { %v1124_v52 = vpack.c.bf16 %v1123_v51, %v1123_v51 }
0x1303   :  { %7611 = vmatmul.mubr.msk.bf16.vlgmr.msra.gmra.mxu1 %vm176_vm2, %v1124_v52  ;;  %v1204_v54 = vpop.permute.xlu1 %1203 }
0x1304   :  { %7619 = vmatmul.mubr.msk.bf16.vlgmr.msra.gmra.mxu0 %vm95_vm1, %v1204_v54  ;;  %7635 = vmatpush3.bf16.msra.mxu1 %v8907_v4 }
0x1305   :  { %7623 = vmatpush3.bf16.msra.mxu0 %v8956_v32  ;;  %7636 = vmatprep.subr.bf16.mxu1 %v11220_v0 }
0x1306   :  { %7624 = vmatprep.subr.bf16.mxu0 %v11220_v0  ;;  %7630 = vmatprep.mubr.msk.bf16.mxu0 %vm8806_vm0, %v11220_v0 }
0x1307   :  { %7638 = vmatprep.mubr.msk.bf16.mxu1 %vm8806_vm0, %v11220_v0 }
0x1308   :  { %7637 = vmatpush3.bf16.msra.mxu1 %v8919_v8 }
0x1309   :  { %7625 = vmatpush3.bf16.msra.mxu0 %v8962_v34  ;;  %7642 = vmatprep.subr.bf16.mxu1 %v11220_v0 }
0x130a   :  { %7626 = vmatprep.subr.bf16.mxu0 %v11220_v0 }
0x130b   :  { %v1197_v55 = vpop.permute.xlu0 %1196 }
0x130c   :  { %v1199_v57 = vmul.f32 %v9271_v56, %v1197_v55 }
0x130d   :  { %7627 = vmatpush3.bf16.msra.mxu0 %v8973_v38 }
0x130e   :  { %7628 = vmatprep.subr.bf16.mxu0 %v11220_v0  ;;  %v1200_v60 = vadd.f32 %v9277_v59, %v1199_v57 }
0x1311   :  { %7629 = vmatpush3.bf16.msra.mxu0 %v8984_v41 }
0x1312   :  { %7654 = vmatprep.subr.bf16.mxu0 %v11220_v0 }
0x13c3   :  { %v1162_v58 = vpop.f32.mrf.mxu1 }
0x13c4   :  { %v1163_v61 = vadd.f32 %v9017_v53, %v1162_v58  ;;  %v1242_v62 = vpop.f32.mrf.mxu0 }
0x13c5   :  { %v1248_v63 = vadd.f32 %v1242_v62, %v1200_v60  ;;  %v7612_v1 = vpop.f32.mrf.mxu1 }
0x13c6   :  { %8384 = vtanh.f32 %v1163_v61  ;;  %v7620_v2 = vpop.f32.mrf.mxu0  ;;  %v6956_v13 = vmul.f32 -1.442695, %v1163_v61 }
0x13c7   :  { %8386 = vtanh.f32 %v1248_v63  ;;  %v1165_v3 = vpop.f32.mrf.mxu1  ;;  %v6959_v14 = vmul.f32 -1.442695, %v1248_v63 }
0x13c8   :  { %v1245_v5 = vpop.f32.mrf.mxu0  ;;  %8388 = vpow2.f32 %v6956_v13 }
0x13c9   :  { %v7613_v6 = vpop.f32.mrf.mxu1  ;;  %8390 = vpow2.f32 %v6959_v14 }
0x13ca   :  { %v7621_v7 = vpop.f32.mrf.mxu0 }
0x13d3   :  { %v8385_v10 = vpop.eup %8384 }
0x13d4   :  { %v8387_v11 = vpop.eup %8386  ;;  %1177 = vrot.lane.b32.xlu1 %v8385_v10, %s8808_s21 }
0x13d5   :  { %1258 = vrot.lane.b32.xlu0 %v8387_v11, %s8808_s21  ;;  %v8389_v53 = vpop.eup %8388 }
0x13d6   :  { %v8391_v15 = vpop.eup %8390  ;;  %v1171_v16 = vadd.f32 1.0, %v8389_v53 }
0x13d7   :  { %v1252_v17 = vadd.f32 1.0, %v8391_v15 }
0x13d8   :  { %8392 = vrcp.f32 %v1171_v16 }
0x13d9   :  { %8394 = vrcp.f32 %v1252_v17 }
0x13e5   :  { %v8393_v18 = vpop.eup %8392 }
0x13e6   :  { %v8395_v20 = vpop.eup %8394  ;;  %v1175_v22 = vmul.f32 %v8393_v18, %v9235_v36  ;;  %v6962_v36 = vld [vmem:[%s11203_s0 + $0x20] sm:$0xf] }
0x13e7   :  { %v1256_v24 = vmul.f32 %v8395_v20, %v9237_v39 }
0x1446   :  { %v1178_v19 = vpop.permute.xlu1 %1177 }
0x1447   :  { %v1180_v9 = vmul.f32 %v8393_v18, %v1178_v19  ;;  %v1259_v12 = vpop.permute.xlu0 %1258 }
0x1448   :  { %v1261_v21 = vmul.f32 %v8395_v20, %v1259_v12 }
0x1449   :  { %1182 = vrot.lane.b32.xlu1 %v1180_v9, %s8809_s22 }
0x144a   :  { %1263 = vrot.lane.b32.xlu0 %v1261_v21, %s8809_s22 }
0x14bb   :  { %v1183_v23 = vpop.permute.xlu1 %1182 }
0x14bc   :  { %v9287_v25 = vadd.f32 %v1183_v23, %v1175_v22  ;;  %v1264_v26 = vpop.permute.xlu0 %1263 }
0x14bd   :  { %v9289_v27 = vadd.f32 %v1264_v26, %v1256_v24  ;;  %v6967_v26 = vld [vmem:[%s11203_s0 + $0x24] sm:$0xf] }
0x14be   :  { %8396 = vtanh.f32 %v9287_v25 }
0x14bf   :  { %8398 = vtanh.f32 %v9289_v27 }
0x14cb   :  { %v8397_v29 = vpop.eup %8396 }
0x14cc   :  { %v8399_v28 = vpop.eup %8398  ;;  %1188 = vrot.lane.b32.xlu1 %v8397_v29, %s8808_s21 }
0x14cd   :  { %1269 = vrot.lane.b32.xlu0 %v8399_v28, %s8808_s21 }
0x153e   :  { %v1189_v30 = vpop.permute.xlu1 %1188 }
0x153f   :  { %v1191_v31 = vmul.f32 %v8393_v18, %v1189_v30  ;;  %v1270_v33 = vpop.permute.xlu0 %1269 }
0x1540   :  { %v1272_v35 = vmul.f32 %v8395_v20, %v1270_v33 }
0x1541   :  { %1278 = vrot.lane.b32.xlu0 %v1191_v31, %s8808_s21 }
0x1542   :  { %1274 = vrot.lane.b32.xlu1 %v1272_v35, %s8809_s22  ;;  %v1359_v37 = vpack.c.bf16 %v1272_v35, %v1272_v35 }
0x1545   :  { %1354 = vperm.xlu0 %8278, %v6962_v36  }
0x1546   :  { %1361 = vrot.lane.b32.xlu1 %v1359_v37, %s8809_s22 }
0x15b3   :  { %v1279_v39 = vpop.permute.xlu0 %1278 }
0x15b4   :  { %v1275_v40 = vpop.permute.xlu1 %1274 }
0x15b5   :  { %v1281_v42 = vsel %vm95_vm1, %v1275_v40, %v1279_v39 }
0x15b6   :  { %v1282_v43 = vpack.c.bf16 %v1281_v42, %v1281_v42 }
0x15b8   :  { %7631 = vmatmul.mubr.msk.bf16.vlgmr.msra.gmra.mxu0 %vm176_vm2, %v1282_v43  ;;  %v1362_v44 = vpop.permute.xlu1 %1361 }
0x15b9   :  { %7639 = vmatmul.mubr.msk.bf16.vlgmr.msra.gmra.mxu1 %vm95_vm1, %v1362_v44  ;;  %7655 = vmatpush3.bf16.msra.mxu0 %v8907_v4 }
0x15ba   :  { %7643 = vmatpush3.bf16.msra.mxu1 %v8956_v32  ;;  %7656 = vmatprep.subr.bf16.mxu0 %v11220_v0 }
0x15bb   :  { %7644 = vmatprep.subr.bf16.mxu1 %v11220_v0  ;;  %7650 = vmatprep.mubr.msk.bf16.mxu1 %vm8806_vm0, %v11220_v0 }
0x15bc   :  { %7658 = vmatprep.mubr.msk.bf16.mxu0 %vm8806_vm0, %v11220_v0 }
0x15bd   :  { %7657 = vmatpush3.bf16.msra.mxu0 %v8919_v8 }
0x15be   :  { %7645 = vmatpush3.bf16.msra.mxu1 %v8962_v34  ;;  %7662 = vmatprep.subr.bf16.mxu0 %v11220_v0 }
0x15bf   :  { %7646 = vmatprep.subr.bf16.mxu1 %v11220_v0 }
0x15c0   :  { %v1355_v45 = vpop.permute.xlu0 %1354 }
0x15c1   :  { %v1357_v46 = vmul.f32 %v9271_v56, %v1355_v45 }
0x15c2   :  { %7647 = vmatpush3.bf16.msra.mxu1 %v8973_v38 }
0x15c3   :  { %7648 = vmatprep.subr.bf16.mxu1 %v11220_v0  ;;  %v1358_v48 = vadd.f32 %v9277_v59, %v1357_v46 }
0x15c6   :  { %7649 = vmatpush3.bf16.msra.mxu1 %v8984_v41 }
0x15c7   :  { %7674 = vmatprep.subr.bf16.mxu1 %v11220_v0 }
0x1678   :  { %v1320_v47 = vpop.f32.mrf.mxu0 }
0x1679   :  { %v1321_v50 = vadd.f32 %v9325_v49, %v1320_v47  ;;  %v1400_v51 = vpop.f32.mrf.mxu1 }
0x167a   :  { %v1406_v52 = vadd.f32 %v1400_v51, %v1358_v48  ;;  %v7632_v54 = vpop.f32.mrf.mxu0 }
0x167b   :  { %8400 = vtanh.f32 %v1321_v50  ;;  %v7640_v55 = vpop.f32.mrf.mxu1  ;;  %v6961_v1 = vmul.f32 -1.442695, %v1321_v50 }
0x167c   :  { %8402 = vtanh.f32 %v1406_v52  ;;  %v1323_v57 = vpop.f32.mrf.mxu0  ;;  %v6964_v2 = vmul.f32 -1.442695, %v1406_v52 }
0x167d   :  { %v1403_v58 = vpop.f32.mrf.mxu1  ;;  %8404 = vpow2.f32 %v6961_v1 }
0x167e   :  { %v7633_v60 = vpop.f32.mrf.mxu0  ;;  %8406 = vpow2.f32 %v6964_v2 }
0x167f   :  { %v7641_v61 = vpop.f32.mrf.mxu1 }
0x1688   :  { %v8401_v62 = vpop.eup %8400 }
0x1689   :  { %v8403_v63 = vpop.eup %8402  ;;  %1335 = vrot.lane.b32.xlu1 %v8401_v62, %s8808_s21 }
0x168a   :  { %1416 = vrot.lane.b32.xlu0 %v8403_v63, %s8808_s21  ;;  %v8405_v3 = vpop.eup %8404 }
0x168b   :  { %v8407_v5 = vpop.eup %8406  ;;  %v1329_v6 = vadd.f32 1.0, %v8405_v3 }
0x168c   :  { %v1410_v7 = vadd.f32 1.0, %v8407_v5 }
0x168d   :  { %8408 = vrcp.f32 %v1329_v6 }
0x168e   :  { %8410 = vrcp.f32 %v1410_v7 }
0x169a   :  { %v8409_v10 = vpop.eup %8408 }
0x169b   :  { %v8411_v13 = vpop.eup %8410  ;;  %v1333_v16 = vmul.f32 %v8409_v10, %v9287_v25 }
0x169c   :  { %v1414_v18 = vmul.f32 %v8411_v13, %v9289_v27 }
0x16fb   :  { %v1336_v11 = vpop.permute.xlu1 %1335 }
0x16fc   :  { %v1338_v14 = vmul.f32 %v8409_v10, %v1336_v11  ;;  %v1417_v53 = vpop.permute.xlu0 %1416 }
0x16fd   :  { %v1419_v15 = vmul.f32 %v8411_v13, %v1417_v53 }
0x16fe   :  { %1340 = vrot.lane.b32.xlu1 %v1338_v14, %s8809_s22 }
0x16ff   :  { %1421 = vrot.lane.b32.xlu0 %v1419_v15, %s8809_s22 }
0x1770   :  { %v1341_v17 = vpop.permute.xlu1 %1340 }
0x1771   :  { %v9334_v19 = vadd.f32 %v1341_v17, %v1333_v16  ;;  %v1422_v20 = vpop.permute.xlu0 %1421 }
0x1772   :  { %v9336_v9 = vadd.f32 %v1422_v20, %v1414_v18  ;;  %v6972_v20 = vld [vmem:[%s11203_s0 + $0x28] sm:$0xf] }
0x1773   :  { %8412 = vtanh.f32 %v9334_v19 }
0x1774   :  { %8414 = vtanh.f32 %v9336_v9 }
0x1780   :  { %v8413_v12 = vpop.eup %8412 }
0x1781   :  { %v8415_v21 = vpop.eup %8414  ;;  %1346 = vrot.lane.b32.xlu1 %v8413_v12, %s8808_s21 }
0x1782   :  { %1427 = vrot.lane.b32.xlu0 %v8415_v21, %s8808_s21 }
0x17f3   :  { %v1347_v22 = vpop.permute.xlu1 %1346 }
0x17f4   :  { %v1349_v23 = vmul.f32 %v8409_v10, %v1347_v22  ;;  %v1428_v24 = vpop.permute.xlu0 %1427 }
0x17f5   :  { %v1430_v25 = vmul.f32 %v8411_v13, %v1428_v24 }
0x17f6   :  { %1436 = vrot.lane.b32.xlu0 %v1349_v23, %s8808_s21 }
0x17f7   :  { %1432 = vrot.lane.b32.xlu1 %v1430_v25, %s8809_s22  ;;  %v1517_v27 = vpack.c.bf16 %v1430_v25, %v1430_v25 }
0x17fa   :  { %1512 = vperm.xlu0 %8278, %v6967_v26  }
0x17fb   :  { %1519 = vrot.lane.b32.xlu1 %v1517_v27, %s8809_s22 }
0x1868   :  { %v1437_v29 = vpop.permute.xlu0 %1436 }
0x1869   :  { %v1433_v28 = vpop.permute.xlu1 %1432 }
0x186a   :  { %v1439_v30 = vsel %vm95_vm1, %v1433_v28, %v1437_v29 }
0x186b   :  { %v1440_v31 = vpack.c.bf16 %v1439_v30, %v1439_v30 }
0x186d   :  { %7651 = vmatmul.mubr.msk.bf16.vlgmr.msra.gmra.mxu1 %vm176_vm2, %v1440_v31  ;;  %v1520_v33 = vpop.permute.xlu1 %1519 }
0x186e   :  { %7659 = vmatmul.mubr.msk.bf16.vlgmr.msra.gmra.mxu0 %vm95_vm1, %v1520_v33  ;;  %7675 = vmatpush3.bf16.msra.mxu1 %v8907_v4 }
0x186f   :  { %7663 = vmatpush3.bf16.msra.mxu0 %v8956_v32  ;;  %7676 = vmatprep.subr.bf16.mxu1 %v11220_v0 }
0x1870   :  { %7664 = vmatprep.subr.bf16.mxu0 %v11220_v0  ;;  %7670 = vmatprep.mubr.msk.bf16.mxu0 %vm8806_vm0, %v11220_v0 }
0x1871   :  { %7678 = vmatprep.mubr.msk.bf16.mxu1 %vm8806_vm0, %v11220_v0 }
0x1872   :  { %7677 = vmatpush3.bf16.msra.mxu1 %v8919_v8 }
0x1873   :  { %7665 = vmatpush3.bf16.msra.mxu0 %v8962_v34  ;;  %7682 = vmatprep.subr.bf16.mxu1 %v11220_v0 }
0x1874   :  { %7666 = vmatprep.subr.bf16.mxu0 %v11220_v0 }
0x1875   :  { %v1513_v35 = vpop.permute.xlu0 %1512 }
0x1876   :  { %v1515_v36 = vmul.f32 %v9271_v56, %v1513_v35 }
0x1877   :  { %7667 = vmatpush3.bf16.msra.mxu0 %v8973_v38 }
0x1878   :  { %7668 = vmatprep.subr.bf16.mxu0 %v11220_v0  ;;  %v1516_v39 = vadd.f32 %v9277_v59, %v1515_v36 }
0x187b   :  { %7669 = vmatpush3.bf16.msra.mxu0 %v8984_v41 }
0x187c   :  { %7694 = vmatprep.subr.bf16.mxu0 %v11220_v0 }
0x192d   :  { %v1478_v37 = vpop.f32.mrf.mxu1 }
0x192e   :  { %v1479_v40 = vadd.f32 %v9325_v49, %v1478_v37  ;;  %v1558_v42 = vpop.f32.mrf.mxu0 }
0x192f   :  { %v1564_v43 = vadd.f32 %v1558_v42, %v1516_v39  ;;  %v7652_v44 = vpop.f32.mrf.mxu1 }
0x1930   :  { %8416 = vtanh.f32 %v1479_v40  ;;  %v7660_v45 = vpop.f32.mrf.mxu0  ;;  %v6966_v54 = vmul.f32 -1.442695, %v1479_v40 }
0x1931   :  { %8418 = vtanh.f32 %v1564_v43  ;;  %v1481_v46 = vpop.f32.mrf.mxu1  ;;  %v6969_v55 = vmul.f32 -1.442695, %v1564_v43 }
0x1932   :  { %v1561_v47 = vpop.f32.mrf.mxu0  ;;  %8420 = vpow2.f32 %v6966_v54 }
0x1933   :  { %v7653_v48 = vpop.f32.mrf.mxu1  ;;  %8422 = vpow2.f32 %v6969_v55 }
0x1934   :  { %v7661_v50 = vpop.f32.mrf.mxu0 }
0x193d   :  { %v8417_v51 = vpop.eup %8416 }
0x193e   :  { %v8419_v52 = vpop.eup %8418  ;;  %1493 = vrot.lane.b32.xlu1 %v8417_v51, %s8808_s21 }
0x193f   :  { %1574 = vrot.lane.b32.xlu0 %v8419_v52, %s8808_s21  ;;  %v8421_v57 = vpop.eup %8420 }
0x1940   :  { %v8423_v58 = vpop.eup %8422  ;;  %v1487_v60 = vadd.f32 1.0, %v8421_v57 }
0x1941   :  { %v1568_v61 = vadd.f32 1.0, %v8423_v58 }
0x1942   :  { %8424 = vrcp.f32 %v1487_v60 }
0x1943   :  { %8426 = vrcp.f32 %v1568_v61 }
0x194f   :  { %v8425_v62 = vpop.eup %8424 }
0x1950   :  { %v8427_v1 = vpop.eup %8426  ;;  %v1491_v6 = vmul.f32 %v8425_v62, %v9334_v19 }
0x1951   :  { %v1572_v10 = vmul.f32 %v8427_v1, %v9336_v9 }
0x19b0   :  { %v1494_v63 = vpop.permute.xlu1 %1493 }
0x19b1   :  { %v1496_v2 = vmul.f32 %v8425_v62, %v1494_v63  ;;  %v1575_v3 = vpop.permute.xlu0 %1574 }
0x19b2   :  { %v1577_v5 = vmul.f32 %v8427_v1, %v1575_v3 }
0x19b3   :  { %1498 = vrot.lane.b32.xlu1 %v1496_v2, %s8809_s22 }
0x19b4   :  { %1579 = vrot.lane.b32.xlu0 %v1577_v5, %s8809_s22 }
0x1a25   :  { %v1499_v7 = vpop.permute.xlu1 %1498 }
0x1a26   :  { %v9376_v11 = vadd.f32 %v1499_v7, %v1491_v6  ;;  %v1580_v13 = vpop.permute.xlu0 %1579 }
0x1a27   :  { %v9378_v14 = vadd.f32 %v1580_v13, %v1572_v10  ;;  %v6977_v13 = vld [vmem:[%s11203_s0 + $0x2c] sm:$0xf] }
0x1a28   :  { %8428 = vtanh.f32 %v9376_v11 }
0x1a29   :  { %8430 = vtanh.f32 %v9378_v14 }
0x1a35   :  { %v8429_v53 = vpop.eup %8428 }
0x1a36   :  { %v8431_v15 = vpop.eup %8430  ;;  %1504 = vrot.lane.b32.xlu1 %v8429_v53, %s8808_s21 }
0x1a37   :  { %1585 = vrot.lane.b32.xlu0 %v8431_v15, %s8808_s21 }
0x1aa8   :  { %v1505_v16 = vpop.permute.xlu1 %1504 }
0x1aa9   :  { %v1507_v17 = vmul.f32 %v8425_v62, %v1505_v16  ;;  %v1586_v18 = vpop.permute.xlu0 %1585 }
0x1aaa   :  { %v1588_v19 = vmul.f32 %v8427_v1, %v1586_v18 }
0x1aab   :  { %1594 = vrot.lane.b32.xlu0 %v1507_v17, %s8808_s21 }
0x1aac   :  { %1590 = vrot.lane.b32.xlu1 %v1588_v19, %s8809_s22  ;;  %v1675_v9 = vpack.c.bf16 %v1588_v19, %v1588_v19 }
0x1aaf   :  { %1670 = vperm.xlu0 %8278, %v6972_v20  }
0x1ab0   :  { %1677 = vrot.lane.b32.xlu1 %v1675_v9, %s8809_s22 }
0x1b1d   :  { %v1595_v12 = vpop.permute.xlu0 %1594 }
0x1b1e   :  { %v1591_v21 = vpop.permute.xlu1 %1590 }
0x1b1f   :  { %v1597_v22 = vsel %vm95_vm1, %v1591_v21, %v1595_v12 }
0x1b20   :  { %v1598_v23 = vpack.c.bf16 %v1597_v22, %v1597_v22 }
0x1b22   :  { %7671 = vmatmul.mubr.msk.bf16.vlgmr.msra.gmra.mxu0 %vm176_vm2, %v1598_v23  ;;  %v1678_v24 = vpop.permute.xlu1 %1677 }
0x1b23   :  { %7679 = vmatmul.mubr.msk.bf16.vlgmr.msra.gmra.mxu1 %vm95_vm1, %v1678_v24  ;;  %7695 = vmatpush3.bf16.msra.mxu0 %v8907_v4 }
0x1b24   :  { %7683 = vmatpush3.bf16.msra.mxu1 %v8956_v32  ;;  %7696 = vmatprep.subr.bf16.mxu0 %v11220_v0 }
0x1b25   :  { %7684 = vmatprep.subr.bf16.mxu1 %v11220_v0  ;;  %7690 = vmatprep.mubr.msk.bf16.mxu1 %vm8806_vm0, %v11220_v0 }
0x1b26   :  { %7698 = vmatprep.mubr.msk.bf16.mxu0 %vm8806_vm0, %v11220_v0 }
0x1b27   :  { %7697 = vmatpush3.bf16.msra.mxu0 %v8919_v8 }
0x1b28   :  { %7685 = vmatpush3.bf16.msra.mxu1 %v8962_v34  ;;  %7702 = vmatprep.subr.bf16.mxu0 %v11220_v0 }
0x1b29   :  { %7686 = vmatprep.subr.bf16.mxu1 %v11220_v0 }
0x1b2a   :  { %v1671_v25 = vpop.permute.xlu0 %1670 }
0x1b2b   :  { %v1673_v26 = vmul.f32 %v9271_v56, %v1671_v25 }
0x1b2c   :  { %7687 = vmatpush3.bf16.msra.mxu1 %v8973_v38 }
0x1b2d   :  { %7688 = vmatprep.subr.bf16.mxu1 %v11220_v0  ;;  %v1674_v29 = vadd.f32 %v9277_v59, %v1673_v26 }
0x1b30   :  { %7689 = vmatpush3.bf16.msra.mxu1 %v8984_v41 }
0x1b31   :  { %7714 = vmatprep.subr.bf16.mxu1 %v11220_v0 }
0x1be2   :  { %v1636_v27 = vpop.f32.mrf.mxu0 }
0x1be3   :  { %v1637_v28 = vadd.f32 %v9325_v49, %v1636_v27  ;;  %v1716_v30 = vpop.f32.mrf.mxu1 }
0x1be4   :  { %v1722_v31 = vadd.f32 %v1716_v30, %v1674_v29  ;;  %v7672_v33 = vpop.f32.mrf.mxu0 }
0x1be5   :  { %8432 = vtanh.f32 %v1637_v28  ;;  %v7680_v35 = vpop.f32.mrf.mxu1  ;;  %v6971_v44 = vmul.f32 -1.442695, %v1637_v28 }
0x1be6   :  { %8434 = vtanh.f32 %v1722_v31  ;;  %v1639_v36 = vpop.f32.mrf.mxu0  ;;  %v6974_v45 = vmul.f32 -1.442695, %v1722_v31 }
0x1be7   :  { %v1719_v37 = vpop.f32.mrf.mxu1  ;;  %8436 = vpow2.f32 %v6971_v44 }
0x1be8   :  { %v7673_v39 = vpop.f32.mrf.mxu0  ;;  %8438 = vpow2.f32 %v6974_v45 }
0x1be9   :  { %v7681_v40 = vpop.f32.mrf.mxu1 }
0x1bf2   :  { %v8433_v42 = vpop.eup %8432 }
0x1bf3   :  { %v8435_v43 = vpop.eup %8434  ;;  %1651 = vrot.lane.b32.xlu1 %v8433_v42, %s8808_s21 }
0x1bf4   :  { %1732 = vrot.lane.b32.xlu0 %v8435_v43, %s8808_s21  ;;  %v8437_v46 = vpop.eup %8436 }
0x1bf5   :  { %v8439_v47 = vpop.eup %8438  ;;  %v1645_v48 = vadd.f32 1.0, %v8437_v46 }
0x1bf6   :  { %v1726_v50 = vadd.f32 1.0, %v8439_v47 }
0x1bf7   :  { %8440 = vrcp.f32 %v1645_v48 }
0x1bf8   :  { %8442 = vrcp.f32 %v1726_v50 }
0x1c04   :  { %v8441_v51 = vpop.eup %8440 }
0x1c05   :  { %v8443_v54 = vpop.eup %8442  ;;  %v1649_v60 = vmul.f32 %v8441_v51, %v9376_v11 }
0x1c06   :  { %v1730_v62 = vmul.f32 %v8443_v54, %v9378_v14 }
0x1c65   :  { %v1652_v52 = vpop.permute.xlu1 %1651 }
0x1c66   :  { %v1654_v55 = vmul.f32 %v8441_v51, %v1652_v52  ;;  %v1733_v57 = vpop.permute.xlu0 %1732 }
0x1c67   :  { %v1735_v58 = vmul.f32 %v8443_v54, %v1733_v57 }
0x1c68   :  { %1656 = vrot.lane.b32.xlu1 %v1654_v55, %s8809_s22 }
0x1c69   :  { %1737 = vrot.lane.b32.xlu0 %v1735_v58, %s8809_s22 }
0x1cda   :  { %v1657_v61 = vpop.permute.xlu1 %1656 }
0x1cdb   :  { %v9418_v63 = vadd.f32 %v1657_v61, %v1649_v60  ;;  %v1738_v1 = vpop.permute.xlu0 %1737 }
0x1cdc   :  { %v9420_v2 = vadd.f32 %v1738_v1, %v1730_v62  ;;  %v6982_v1 = vld [vmem:[%s11203_s0 + $0x30] sm:$0xf] }
0x1cdd   :  { %8444 = vtanh.f32 %v9418_v63 }
0x1cde   :  { %8446 = vtanh.f32 %v9420_v2 }
0x1cea   :  { %v8445_v3 = vpop.eup %8444 }
0x1ceb   :  { %v8447_v5 = vpop.eup %8446  ;;  %1662 = vrot.lane.b32.xlu1 %v8445_v3, %s8808_s21 }
0x1cec   :  { %1743 = vrot.lane.b32.xlu0 %v8447_v5, %s8808_s21 }
0x1d5d   :  { %v1663_v6 = vpop.permute.xlu1 %1662 }
0x1d5e   :  { %v1665_v7 = vmul.f32 %v8441_v51, %v1663_v6  ;;  %v1744_v10 = vpop.permute.xlu0 %1743 }
0x1d5f   :  { %v1746_v11 = vmul.f32 %v8443_v54, %v1744_v10 }
0x1d60   :  { %1752 = vrot.lane.b32.xlu0 %v1665_v7, %s8808_s21 }
0x1d61   :  { %1748 = vrot.lane.b32.xlu1 %v1746_v11, %s8809_s22  ;;  %v1833_v14 = vpack.c.bf16 %v1746_v11, %v1746_v11 }
0x1d64   :  { %1828 = vperm.xlu0 %8278, %v6977_v13  }
0x1d65   :  { %1835 = vrot.lane.b32.xlu1 %v1833_v14, %s8809_s22 }
0x1dd2   :  { %v1753_v53 = vpop.permute.xlu0 %1752 }
0x1dd3   :  { %v1749_v15 = vpop.permute.xlu1 %1748 }
0x1dd4   :  { %v1755_v16 = vsel %vm95_vm1, %v1749_v15, %v1753_v53 }
0x1dd5   :  { %v1756_v17 = vpack.c.bf16 %v1755_v16, %v1755_v16 }
0x1dd7   :  { %7691 = vmatmul.mubr.msk.bf16.vlgmr.msra.gmra.mxu1 %vm176_vm2, %v1756_v17  ;;  %v1836_v18 = vpop.permute.xlu1 %1835 }
0x1dd8   :  { %7699 = vmatmul.mubr.msk.bf16.vlgmr.msra.gmra.mxu0 %vm95_vm1, %v1836_v18  ;;  %7715 = vmatpush3.bf16.msra.mxu1 %v8907_v4 }
0x1dd9   :  { %7703 = vmatpush3.bf16.msra.mxu0 %v8956_v32  ;;  %7716 = vmatprep.subr.bf16.mxu1 %v11220_v0 }
0x1dda   :  { %7704 = vmatprep.subr.bf16.mxu0 %v11220_v0  ;;  %7710 = vmatprep.mubr.msk.bf16.mxu0 %vm8806_vm0, %v11220_v0 }
0x1ddb   :  { %7718 = vmatprep.mubr.msk.bf16.mxu1 %vm8806_vm0, %v11220_v0 }
0x1ddc   :  { %7717 = vmatpush3.bf16.msra.mxu1 %v8919_v8 }
0x1ddd   :  { %7705 = vmatpush3.bf16.msra.mxu0 %v8962_v34  ;;  %7722 = vmatprep.subr.bf16.mxu1 %v11220_v0 }
0x1dde   :  { %7706 = vmatprep.subr.bf16.mxu0 %v11220_v0 }
0x1ddf   :  { %v1829_v19 = vpop.permute.xlu0 %1828 }
0x1de0   :  { %v1831_v20 = vmul.f32 %v9271_v56, %v1829_v19 }
0x1de1   :  { %7707 = vmatpush3.bf16.msra.mxu0 %v8973_v38 }
0x1de2   :  { %7708 = vmatprep.subr.bf16.mxu0 %v11220_v0  ;;  %v1832_v12 = vadd.f32 %v9277_v59, %v1831_v20 }
0x1de5   :  { %7709 = vmatpush3.bf16.msra.mxu0 %v8984_v41 }
0x1de6   :  { %7734 = vmatprep.subr.bf16.mxu0 %v11220_v0 }
0x1e97   :  { %v1794_v9 = vpop.f32.mrf.mxu1 }
0x1e98   :  { %v1795_v21 = vadd.f32 %v9325_v49, %v1794_v9  ;;  %v1874_v22 = vpop.f32.mrf.mxu0 }
0x1e99   :  { %v1880_v23 = vadd.f32 %v1874_v22, %v1832_v12  ;;  %v7692_v24 = vpop.f32.mrf.mxu1 }
0x1e9a   :  { %8448 = vtanh.f32 %v1795_v21  ;;  %v7700_v25 = vpop.f32.mrf.mxu0  ;;  %v6976_v33 = vmul.f32 -1.442695, %v1795_v21 }
0x1e9b   :  { %8450 = vtanh.f32 %v1880_v23  ;;  %v1797_v26 = vpop.f32.mrf.mxu1  ;;  %v6979_v35 = vmul.f32 -1.442695, %v1880_v23 }
0x1e9c   :  { %v1877_v27 = vpop.f32.mrf.mxu0  ;;  %8452 = vpow2.f32 %v6976_v33 }
0x1e9d   :  { %v7693_v29 = vpop.f32.mrf.mxu1  ;;  %8454 = vpow2.f32 %v6979_v35 }
0x1e9e   :  { %v7701_v28 = vpop.f32.mrf.mxu0 }
0x1ea7   :  { %v8449_v30 = vpop.eup %8448 }
0x1ea8   :  { %v8451_v31 = vpop.eup %8450  ;;  %1809 = vrot.lane.b32.xlu1 %v8449_v30, %s8808_s21 }
0x1ea9   :  { %1890 = vrot.lane.b32.xlu0 %v8451_v31, %s8808_s21  ;;  %v8453_v36 = vpop.eup %8452 }
0x1eaa   :  { %v8455_v37 = vpop.eup %8454  ;;  %v1803_v39 = vadd.f32 1.0, %v8453_v36 }
0x1eab   :  { %v1884_v40 = vadd.f32 1.0, %v8455_v37 }
0x1eac   :  { %8456 = vrcp.f32 %v1803_v39 }
0x1ead   :  { %8458 = vrcp.f32 %v1884_v40 }
0x1eb9   :  { %v8457_v42 = vpop.eup %8456 }
0x1eba   :  { %v8459_v44 = vpop.eup %8458  ;;  %v1807_v48 = vmul.f32 %v8457_v42, %v9418_v63 }
0x1ebb   :  { %v1888_v51 = vmul.f32 %v8459_v44, %v9420_v2 }
0x1f1a   :  { %v1810_v43 = vpop.permute.xlu1 %1809 }
0x1f1b   :  { %v1812_v45 = vmul.f32 %v8457_v42, %v1810_v43  ;;  %v1891_v46 = vpop.permute.xlu0 %1890 }
0x1f1c   :  { %v1893_v47 = vmul.f32 %v8459_v44, %v1891_v46 }
0x1f1d   :  { %1814 = vrot.lane.b32.xlu1 %v1812_v45, %s8809_s22 }
0x1f1e   :  { %1895 = vrot.lane.b32.xlu0 %v1893_v47, %s8809_s22 }
0x1f8f   :  { %v1815_v50 = vpop.permute.xlu1 %1814 }
0x1f90   :  { %v9460_v52 = vadd.f32 %v1815_v50, %v1807_v48  ;;  %v1896_v54 = vpop.permute.xlu0 %1895 }
0x1f91   :  { %v9462_v55 = vadd.f32 %v1896_v54, %v1888_v51  ;;  %v6987_v54 = vld [vmem:[%s11203_s0 + $0x34] sm:$0xf] }
0x1f92   :  { %8460 = vtanh.f32 %v9460_v52 }
0x1f93   :  { %8462 = vtanh.f32 %v9462_v55 }
0x1f9f   :  { %v8461_v57 = vpop.eup %8460 }
0x1fa0   :  { %v8463_v58 = vpop.eup %8462  ;;  %1820 = vrot.lane.b32.xlu1 %v8461_v57, %s8808_s21 }
0x1fa1   :  { %1901 = vrot.lane.b32.xlu0 %v8463_v58, %s8808_s21 }
0x2012   :  { %v1821_v60 = vpop.permute.xlu1 %1820 }
0x2013   :  { %v1823_v61 = vmul.f32 %v8457_v42, %v1821_v60  ;;  %v1902_v62 = vpop.permute.xlu0 %1901 }
0x2014   :  { %v1904_v63 = vmul.f32 %v8459_v44, %v1902_v62 }
0x2015   :  { %1910 = vrot.lane.b32.xlu0 %v1823_v61, %s8808_s21 }
0x2016   :  { %1906 = vrot.lane.b32.xlu1 %v1904_v63, %s8809_s22  ;;  %v1991_v2 = vpack.c.bf16 %v1904_v63, %v1904_v63 }
0x2019   :  { %1986 = vperm.xlu0 %8278, %v6982_v1  }
0x201a   :  { %1993 = vrot.lane.b32.xlu1 %v1991_v2, %s8809_s22 }
0x2087   :  { %v1911_v3 = vpop.permute.xlu0 %1910 }
0x2088   :  { %v1907_v5 = vpop.permute.xlu1 %1906 }
0x2089   :  { %v1913_v6 = vsel %vm95_vm1, %v1907_v5, %v1911_v3 }
0x208a   :  { %v1914_v7 = vpack.c.bf16 %v1913_v6, %v1913_v6 }
0x208c   :  { %7711 = vmatmul.mubr.msk.bf16.vlgmr.msra.gmra.mxu0 %vm176_vm2, %v1914_v7  ;;  %v1994_v10 = vpop.permute.xlu1 %1993 }
0x208d   :  { %7719 = vmatmul.mubr.msk.bf16.vlgmr.msra.gmra.mxu1 %vm95_vm1, %v1994_v10  ;;  %7735 = vmatpush3.bf16.msra.mxu0 %v8907_v4 }
0x208e   :  { %7723 = vmatpush3.bf16.msra.mxu1 %v8956_v32  ;;  %7736 = vmatprep.subr.bf16.mxu0 %v11220_v0 }
0x208f   :  { %7724 = vmatprep.subr.bf16.mxu1 %v11220_v0  ;;  %7730 = vmatprep.mubr.msk.bf16.mxu1 %vm8806_vm0, %v11220_v0 }
0x2090   :  { %7738 = vmatprep.mubr.msk.bf16.mxu0 %vm8806_vm0, %v11220_v0 }
0x2091   :  { %7737 = vmatpush3.bf16.msra.mxu0 %v8919_v8 }
0x2092   :  { %7725 = vmatpush3.bf16.msra.mxu1 %v8962_v34  ;;  %7742 = vmatprep.subr.bf16.mxu0 %v11220_v0 }
0x2093   :  { %7726 = vmatprep.subr.bf16.mxu1 %v11220_v0 }
0x2094   :  { %v1987_v11 = vpop.permute.xlu0 %1986 }
0x2095   :  { %v1989_v13 = vmul.f32 %v9271_v56, %v1987_v11 }
0x2096   :  { %7727 = vmatpush3.bf16.msra.mxu1 %v8973_v38 }
0x2097   :  { %7728 = vmatprep.subr.bf16.mxu1 %v11220_v0  ;;  %v1990_v53 = vadd.f32 %v9277_v59, %v1989_v13 }
0x209a   :  { %7729 = vmatpush3.bf16.msra.mxu1 %v8984_v41 }
0x209b   :  { %7754 = vmatprep.subr.bf16.mxu1 %v11220_v0 }
0x214c   :  { %v1952_v14 = vpop.f32.mrf.mxu0 }
0x214d   :  { %v1953_v15 = vadd.f32 %v9325_v49, %v1952_v14  ;;  %v2032_v16 = vpop.f32.mrf.mxu1 }
0x214e   :  { %v2038_v17 = vadd.f32 %v2032_v16, %v1990_v53  ;;  %v7712_v18 = vpop.f32.mrf.mxu0 }
0x214f   :  { %8464 = vtanh.f32 %v1953_v15  ;;  %v7720_v19 = vpop.f32.mrf.mxu1  ;;  %v6981_v24 = vmul.f32 -1.442695, %v1953_v15 }
0x2150   :  { %8466 = vtanh.f32 %v2038_v17  ;;  %v1955_v20 = vpop.f32.mrf.mxu0  ;;  %v6984_v25 = vmul.f32 -1.442695, %v2038_v17 }
0x2151   :  { %v2035_v9 = vpop.f32.mrf.mxu1  ;;  %8468 = vpow2.f32 %v6981_v24 }
0x2152   :  { %v7713_v12 = vpop.f32.mrf.mxu0  ;;  %8470 = vpow2.f32 %v6984_v25 }
0x2153   :  { %v7721_v21 = vpop.f32.mrf.mxu1 }
0x215c   :  { %v8465_v22 = vpop.eup %8464 }
0x215d   :  { %v8467_v23 = vpop.eup %8466  ;;  %1967 = vrot.lane.b32.xlu1 %v8465_v22, %s8808_s21 }
0x215e   :  { %2048 = vrot.lane.b32.xlu0 %v8467_v23, %s8808_s21  ;;  %v8469_v26 = vpop.eup %8468 }
0x215f   :  { %v8471_v27 = vpop.eup %8470  ;;  %v1961_v29 = vadd.f32 1.0, %v8469_v26 }
0x2160   :  { %v2042_v28 = vadd.f32 1.0, %v8471_v27 }
0x2161   :  { %8472 = vrcp.f32 %v1961_v29 }
0x2162   :  { %8474 = vrcp.f32 %v2042_v28 }
0x216e   :  { %v8473_v30 = vpop.eup %8472 }
0x216f   :  { %v8475_v33 = vpop.eup %8474  ;;  %v1965_v39 = vmul.f32 %v8473_v30, %v9460_v52 }
0x2170   :  { %v2046_v42 = vmul.f32 %v8475_v33, %v9462_v55 }
0x21cf   :  { %v1968_v31 = vpop.permute.xlu1 %1967 }
0x21d0   :  { %v1970_v35 = vmul.f32 %v8473_v30, %v1968_v31  ;;  %v2049_v36 = vpop.permute.xlu0 %2048 }
0x21d1   :  { %v2051_v37 = vmul.f32 %v8475_v33, %v2049_v36 }
0x21d2   :  { %1972 = vrot.lane.b32.xlu1 %v1970_v35, %s8809_s22 }
0x21d3   :  { %2053 = vrot.lane.b32.xlu0 %v2051_v37, %s8809_s22 }
0x2244   :  { %v1973_v40 = vpop.permute.xlu1 %1972 }
0x2245   :  { %v9502_v43 = vadd.f32 %v1973_v40, %v1965_v39  ;;  %v2054_v44 = vpop.permute.xlu0 %2053 }
0x2246   :  { %v9504_v45 = vadd.f32 %v2054_v44, %v2046_v42  ;;  %v6992_v42 = vld [vmem:[%s11203_s0 + $0x38] sm:$0xf] }
0x2247   :  { %8476 = vtanh.f32 %v9502_v43 }
0x2248   :  { %8478 = vtanh.f32 %v9504_v45 }
0x2254   :  { %v8477_v46 = vpop.eup %8476 }
0x2255   :  { %v8479_v47 = vpop.eup %8478  ;;  %1978 = vrot.lane.b32.xlu1 %v8477_v46, %s8808_s21 }
0x2256   :  { %2059 = vrot.lane.b32.xlu0 %v8479_v47, %s8808_s21 }
0x22c7   :  { %v1979_v48 = vpop.permute.xlu1 %1978 }
0x22c8   :  { %v1981_v50 = vmul.f32 %v8473_v30, %v1979_v48  ;;  %v2060_v51 = vpop.permute.xlu0 %2059 }
0x22c9   :  { %v2062_v52 = vmul.f32 %v8475_v33, %v2060_v51  ;;  %v9580_v51 = vld [vmem:[%s11204_s2] ss:$0 sm:$0xff] }
0x22ca   :  { %2068 = vrot.lane.b32.xlu0 %v1981_v50, %s8808_s21 }
0x22cb   :  { %2064 = vrot.lane.b32.xlu1 %v2062_v52, %s8809_s22  ;;  %v2149_v55 = vpack.c.bf16 %v2062_v52, %v2062_v52 }
0x22ce   :  { %2144 = vperm.xlu0 %8278, %v6987_v54  }
0x22cf   :  { %2151 = vrot.lane.b32.xlu1 %v2149_v55, %s8809_s22  ;;  %v9586_v55 = vld [vmem:[%s11205_s4] ss:$0 sm:$0xff] }
0x233c   :  { %v2069_v57 = vpop.permute.xlu0 %2068 }
0x233d   :  { %v2065_v58 = vpop.permute.xlu1 %2064 }
0x233e   :  { %v2071_v60 = vsel %vm95_vm1, %v2065_v58, %v2069_v57 }
0x233f   :  { %v2072_v61 = vpack.c.bf16 %v2071_v60, %v2071_v60 }
0x2341   :  { %7731 = vmatmul.mubr.msk.bf16.vlgmr.msra.gmra.mxu1 %vm176_vm2, %v2072_v61  ;;  %v2152_v62 = vpop.permute.xlu1 %2151 }
0x2342   :  { %7739 = vmatmul.mubr.msk.bf16.vlgmr.msra.gmra.mxu0 %vm95_vm1, %v2152_v62  ;;  %7755 = vmatpush3.bf16.msra.mxu1 %v8907_v4 }
0x2343   :  { %7743 = vmatpush3.bf16.msra.mxu0 %v8956_v32  ;;  %7756 = vmatprep.subr.bf16.mxu1 %v11220_v0 }
0x2344   :  { %7744 = vmatprep.subr.bf16.mxu0 %v11220_v0  ;;  %7750 = vmatprep.mubr.msk.bf16.mxu0 %vm8806_vm0, %v11220_v0 }
0x2345   :  { %7758 = vmatprep.mubr.msk.bf16.mxu1 %vm8806_vm0, %v11220_v0 }
0x2346   :  { %7757 = vmatpush3.bf16.msra.mxu1 %v8919_v8 }
0x2347   :  { %7745 = vmatpush3.bf16.msra.mxu0 %v8962_v34  ;;  %7762 = vmatprep.subr.bf16.mxu1 %v11220_v0 }
0x2348   :  { %7746 = vmatprep.subr.bf16.mxu0 %v11220_v0 }
0x2349   :  { %v2145_v63 = vpop.permute.xlu0 %2144 }
0x234a   :  { %v2147_v1 = vmul.f32 %v9271_v56, %v2145_v63 }
0x234b   :  { %7747 = vmatpush3.bf16.msra.mxu0 %v8973_v38 }
0x234c   :  { %7748 = vmatprep.subr.bf16.mxu0 %v11220_v0  ;;  %v2148_v3 = vadd.f32 %v9277_v59, %v2147_v1 }
0x234f   :  { %7749 = vmatpush3.bf16.msra.mxu0 %v8984_v41 }
0x2350   :  { %7774 = vmatprep.subr.bf16.mxu0 %v11220_v0 }
0x2401   :  { %v2110_v2 = vpop.f32.mrf.mxu1 }
0x2402   :  { %v2111_v5 = vadd.f32 %v9325_v49, %v2110_v2  ;;  %v2190_v6 = vpop.f32.mrf.mxu0 }
0x2403   :  { %v2196_v7 = vadd.f32 %v2190_v6, %v2148_v3  ;;  %v7732_v10 = vpop.f32.mrf.mxu1 }
0x2404   :  { %8480 = vtanh.f32 %v2111_v5  ;;  %v7740_v11 = vpop.f32.mrf.mxu0  ;;  %v6986_v56 = vmul.f32 -1.442695, %v2111_v5 }
0x2405   :  { %8482 = vtanh.f32 %v2196_v7  ;;  %v2113_v13 = vpop.f32.mrf.mxu1  ;;  %v6989_v59 = vmul.f32 -1.442695, %v2196_v7 }
0x2406   :  { %v2193_v14 = vpop.f32.mrf.mxu0  ;;  %8484 = vpow2.f32 %v6986_v56 }
0x2407   :  { %v7733_v53 = vpop.f32.mrf.mxu1  ;;  %8486 = vpow2.f32 %v6989_v59 }
0x2408   :  { %v7741_v15 = vpop.f32.mrf.mxu0 }
0x2411   :  { %v8481_v16 = vpop.eup %8480 }
0x2412   :  { %v8483_v17 = vpop.eup %8482  ;;  %2125 = vrot.lane.b32.xlu1 %v8481_v16, %s8808_s21 }
0x2413   :  { %2206 = vrot.lane.b32.xlu0 %v8483_v17, %s8808_s21  ;;  %v8485_v18 = vpop.eup %8484 }
0x2414   :  { %v8487_v19 = vpop.eup %8486  ;;  %v2119_v20 = vadd.f32 1.0, %v8485_v18 }
0x2415   :  { %v2200_v9 = vadd.f32 1.0, %v8487_v19 }
0x2416   :  { %8488 = vrcp.f32 %v2119_v20 }
0x2417   :  { %8490 = vrcp.f32 %v2200_v9 }
0x2423   :  { %v8489_v12 = vpop.eup %8488 }
0x2424   :  { %v8491_v22 = vpop.eup %8490  ;;  %v2123_v26 = vmul.f32 %v8489_v12, %v9502_v43 }
0x2425   :  { %v2204_v29 = vmul.f32 %v8491_v22, %v9504_v45 }
0x2484   :  { %v2126_v21 = vpop.permute.xlu1 %2125 }
0x2485   :  { %v2128_v23 = vmul.f32 %v8489_v12, %v2126_v21  ;;  %v2207_v24 = vpop.permute.xlu0 %2206 }
0x2486   :  { %v2209_v25 = vmul.f32 %v8491_v22, %v2207_v24 }
0x2487   :  { %2130 = vrot.lane.b32.xlu1 %v2128_v23, %s8809_s22 }
0x2488   :  { %2211 = vrot.lane.b32.xlu0 %v2209_v25, %s8809_s22 }
0x24f9   :  { %v2131_v27 = vpop.permute.xlu1 %2130 }
0x24fa   :  { %v9544_v28 = vadd.f32 %v2131_v27, %v2123_v26  ;;  %v2212_v30 = vpop.permute.xlu0 %2211 }
0x24fb   :  { %v9546_v31 = vadd.f32 %v2212_v30, %v2204_v29 }
0x24fc   :  { %8492 = vtanh.f32 %v9544_v28 }
0x24fd   :  { %8494 = vtanh.f32 %v9546_v31 }
0x2509   :  { %v8493_v33 = vpop.eup %8492 }
0x250a   :  { %v8495_v35 = vpop.eup %8494  ;;  %2136 = vrot.lane.b32.xlu1 %v8493_v33, %s8808_s21 }
0x250b   :  { %2217 = vrot.lane.b32.xlu0 %v8495_v35, %s8808_s21 }
0x257c   :  { %v2137_v36 = vpop.permute.xlu1 %2136 }
0x257d   :  { %v2139_v37 = vmul.f32 %v8489_v12, %v2137_v36  ;;  %v2218_v39 = vpop.permute.xlu0 %2217 }
0x257e   :  { %v2220_v40 = vmul.f32 %v8491_v22, %v2218_v39 }
0x257f   :  { %2226 = vrot.lane.b32.xlu0 %v2139_v37, %s8808_s21 }
0x2580   :  { %2222 = vrot.lane.b32.xlu1 %v2220_v40, %s8809_s22  ;;  %v2307_v43 = vpack.c.bf16 %v2220_v40, %v2220_v40 }
0x2583   :  { %2302 = vperm.xlu0 %8278, %v6992_v42  }
0x2584   :  { %2309 = vrot.lane.b32.xlu1 %v2307_v43, %s8809_s22 }
0x25f1   :  { %v2227_v44 = vpop.permute.xlu0 %2226 }
0x25f2   :  { %v2223_v45 = vpop.permute.xlu1 %2222 }
0x25f3   :  { %v2229_v46 = vsel %vm95_vm1, %v2223_v45, %v2227_v44  ;;  %v9634_v44 = vld [vmem:[%s11207_s6] ss:$0 sm:$0xff] }
0x25f4   :  { %v2230_v47 = vpack.c.bf16 %v2229_v46, %v2229_v46 }
0x25f6   :  { %7751 = vmatmul.mubr.msk.bf16.vlgmr.msra.gmra.mxu0 %vm176_vm2, %v2230_v47  ;;  %v2310_v48 = vpop.permute.xlu1 %2309 }
0x25f7   :  { %7759 = vmatmul.mubr.msk.bf16.vlgmr.msra.gmra.mxu1 %vm95_vm1, %v2310_v48  ;;  %7775 = vmatpush3.bf16.msra.mxu0 %v8907_v4 }
0x25f8   :  { %7763 = vmatpush3.bf16.msra.mxu1 %v8956_v32  ;;  %7776 = vmatprep.subr.bf16.mxu0 %v11220_v0 }
0x25f9   :  { %7764 = vmatprep.subr.bf16.mxu1 %v11220_v0  ;;  %7770 = vmatprep.mubr.msk.bf16.mxu1 %vm8806_vm0, %v11220_v0 }
0x25fa   :  { %7778 = vmatprep.mubr.msk.bf16.mxu0 %vm8806_vm0, %v11220_v0 }
0x25fb   :  { %7777 = vmatpush3.bf16.msra.mxu0 %v8919_v8 }
0x25fc   :  { %7765 = vmatpush3.bf16.msra.mxu1 %v8962_v34  ;;  %7782 = vmatprep.subr.bf16.mxu0 %v11220_v0 }
0x25fd   :  { %7766 = vmatprep.subr.bf16.mxu1 %v11220_v0 }
0x25fe   :  { %v2303_v50 = vpop.permute.xlu0 %2302 }
0x25ff   :  { %v2305_v52 = vmul.f32 %v9580_v51, %v2303_v50 }
0x2600   :  { %7767 = vmatpush3.bf16.msra.mxu1 %v8973_v38 }
0x2601   :  { %7768 = vmatprep.subr.bf16.mxu1 %v11220_v0  ;;  %v2306_v57 = vadd.f32 %v9586_v55, %v2305_v52 }
0x2604   :  { %7769 = vmatpush3.bf16.msra.mxu1 %v8984_v41 }
0x2605   :  { %7794 = vmatprep.subr.bf16.mxu1 %v11220_v0 }
0x26b6   :  { %v2268_v54 = vpop.f32.mrf.mxu0 }
0x26b7   :  { %v2269_v58 = vadd.f32 %v9325_v49, %v2268_v54  ;;  %v2348_v60 = vpop.f32.mrf.mxu1 }
0x26b8   :  { %v2354_v61 = vadd.f32 %v2348_v60, %v2306_v57  ;;  %v7752_v62 = vpop.f32.mrf.mxu0 }
0x26b9   :  { %8496 = vtanh.f32 %v2269_v58  ;;  %v7760_v63 = vpop.f32.mrf.mxu1  ;;  %v6991_v10 = vmul.f32 -1.442695, %v2269_v58 }
0x26ba   :  { %8498 = vtanh.f32 %v2354_v61  ;;  %v2271_v1 = vpop.f32.mrf.mxu0  ;;  %v6994_v11 = vmul.f32 -1.442695, %v2354_v61 }
0x26bb   :  { %v2351_v2 = vpop.f32.mrf.mxu1  ;;  %8500 = vpow2.f32 %v6991_v10 }
0x26bc   :  { %v7753_v3 = vpop.f32.mrf.mxu0  ;;  %8502 = vpow2.f32 %v6994_v11 }
0x26bd   :  { %v7761_v5 = vpop.f32.mrf.mxu1 }
0x26c6   :  { %v8497_v6 = vpop.eup %8496 }
0x26c7   :  { %v8499_v7 = vpop.eup %8498  ;;  %2283 = vrot.lane.b32.xlu1 %v8497_v6, %s8808_s21 }
0x26c8   :  { %2364 = vrot.lane.b32.xlu0 %v8499_v7, %s8808_s21  ;;  %v8501_v49 = vpop.eup %8500 }
0x26c9   :  { %v8503_v13 = vpop.eup %8502  ;;  %v2277_v14 = vadd.f32 1.0, %v8501_v49 }
0x26ca   :  { %v2358_v53 = vadd.f32 1.0, %v8503_v13 }
0x26cb   :  { %8504 = vrcp.f32 %v2277_v14 }
0x26cc   :  { %8506 = vrcp.f32 %v2358_v53 }
0x26d8   :  { %v8505_v15 = vpop.eup %8504 }
0x26d9   :  { %v8507_v17 = vpop.eup %8506  ;;  %v2281_v19 = vmul.f32 %v8505_v15, %v9544_v28  ;;  %v6997_v28 = vld [vmem:[%s11203_s0 + $0x3c] sm:$0xf] }
0x26da   :  { %v2362_v9 = vmul.f32 %v8507_v17, %v9546_v31 }
0x2739   :  { %v2284_v16 = vpop.permute.xlu1 %2283 }
0x273a   :  { %v2286_v56 = vmul.f32 %v8505_v15, %v2284_v16  ;;  %v2365_v59 = vpop.permute.xlu0 %2364 }
0x273b   :  { %v2367_v18 = vmul.f32 %v8507_v17, %v2365_v59 }
0x273c   :  { %2288 = vrot.lane.b32.xlu1 %v2286_v56, %s8809_s22 }
0x273d   :  { %2369 = vrot.lane.b32.xlu0 %v2367_v18, %s8809_s22 }
0x27ae   :  { %v2289_v20 = vpop.permute.xlu1 %2288 }
0x27af   :  { %v9596_v12 = vadd.f32 %v2289_v20, %v2281_v19  ;;  %v2370_v21 = vpop.permute.xlu0 %2369 }
0x27b0   :  { %v9598_v22 = vadd.f32 %v2370_v21, %v2362_v9  ;;  %v7002_v21 = vld [vmem:[%s11203_s0 + $0x40] sm:$0xf] }
0x27b1   :  { %8508 = vtanh.f32 %v9596_v12 }
0x27b2   :  { %8510 = vtanh.f32 %v9598_v22 }
0x27be   :  { %v8509_v23 = vpop.eup %8508 }
0x27bf   :  { %v8511_v24 = vpop.eup %8510  ;;  %2294 = vrot.lane.b32.xlu1 %v8509_v23, %s8808_s21 }
0x27c0   :  { %2375 = vrot.lane.b32.xlu0 %v8511_v24, %s8808_s21 }
0x2831   :  { %v2295_v25 = vpop.permute.xlu1 %2294 }
0x2832   :  { %v2297_v26 = vmul.f32 %v8505_v15, %v2295_v25  ;;  %v2376_v27 = vpop.permute.xlu0 %2375 }
0x2833   :  { %v2378_v29 = vmul.f32 %v8507_v17, %v2376_v27 }
0x2834   :  { %2384 = vrot.lane.b32.xlu0 %v2297_v26, %s8808_s21 }
0x2835   :  { %2380 = vrot.lane.b32.xlu1 %v2378_v29, %s8809_s22  ;;  %v2465_v30 = vpack.c.bf16 %v2378_v29, %v2378_v29 }
0x2838   :  { %2460 = vperm.xlu0 %8278, %v6997_v28  }
0x2839   :  { %2467 = vrot.lane.b32.xlu1 %v2465_v30, %s8809_s22 }
0x28a6   :  { %v2385_v31 = vpop.permute.xlu0 %2384 }
0x28a7   :  { %v2381_v33 = vpop.permute.xlu1 %2380 }
0x28a8   :  { %v2387_v35 = vsel %vm95_vm1, %v2381_v33, %v2385_v31 }
0x28a9   :  { %v2388_v36 = vpack.c.bf16 %v2387_v35, %v2387_v35 }
0x28ab   :  { %7771 = vmatmul.mubr.msk.bf16.vlgmr.msra.gmra.mxu1 %vm176_vm2, %v2388_v36  ;;  %v2468_v37 = vpop.permute.xlu1 %2467 }
0x28ac   :  { %7779 = vmatmul.mubr.msk.bf16.vlgmr.msra.gmra.mxu0 %vm95_vm1, %v2468_v37  ;;  %7795 = vmatpush3.bf16.msra.mxu1 %v8907_v4 }
0x28ad   :  { %7783 = vmatpush3.bf16.msra.mxu0 %v8956_v32  ;;  %7796 = vmatprep.subr.bf16.mxu1 %v11220_v0 }
0x28ae   :  { %7784 = vmatprep.subr.bf16.mxu0 %v11220_v0  ;;  %7790 = vmatprep.mubr.msk.bf16.mxu0 %vm8806_vm0, %v11220_v0 }
0x28af   :  { %7798 = vmatprep.mubr.msk.bf16.mxu1 %vm8806_vm0, %v11220_v0 }
0x28b0   :  { %7797 = vmatpush3.bf16.msra.mxu1 %v8919_v8 }
0x28b1   :  { %7785 = vmatpush3.bf16.msra.mxu0 %v8962_v34  ;;  %7802 = vmatprep.subr.bf16.mxu1 %v11220_v0 }
0x28b2   :  { %7786 = vmatprep.subr.bf16.mxu0 %v11220_v0 }
0x28b3   :  { %v2461_v39 = vpop.permute.xlu0 %2460 }
0x28b4   :  { %v2463_v40 = vmul.f32 %v9580_v51, %v2461_v39 }
0x28b5   :  { %7787 = vmatpush3.bf16.msra.mxu0 %v8973_v38 }
0x28b6   :  { %7788 = vmatprep.subr.bf16.mxu0 %v11220_v0  ;;  %v2464_v43 = vadd.f32 %v9586_v55, %v2463_v40 }
0x28b9   :  { %7789 = vmatpush3.bf16.msra.mxu0 %v8984_v41 }
0x28ba   :  { %7814 = vmatprep.subr.bf16.mxu0 %v11220_v0 }
0x296b   :  { %v2426_v42 = vpop.f32.mrf.mxu1 }
0x296c   :  { %v2427_v45 = vadd.f32 %v9634_v44, %v2426_v42  ;;  %v2506_v46 = vpop.f32.mrf.mxu0 }
0x296d   :  { %v2512_v47 = vadd.f32 %v2506_v46, %v2464_v43  ;;  %v7772_v48 = vpop.f32.mrf.mxu1 }
0x296e   :  { %8512 = vtanh.f32 %v2427_v45  ;;  %v7780_v50 = vpop.f32.mrf.mxu0  ;;  %v6996_v62 = vmul.f32 -1.442695, %v2427_v45 }
0x296f   :  { %8514 = vtanh.f32 %v2512_v47  ;;  %v2429_v52 = vpop.f32.mrf.mxu1  ;;  %v6999_v63 = vmul.f32 -1.442695, %v2512_v47 }
0x2970   :  { %v2509_v54 = vpop.f32.mrf.mxu0  ;;  %8516 = vpow2.f32 %v6996_v62 }
0x2971   :  { %v7773_v57 = vpop.f32.mrf.mxu1  ;;  %8518 = vpow2.f32 %v6999_v63 }
0x2972   :  { %v7781_v58 = vpop.f32.mrf.mxu0 }
0x297b   :  { %v8513_v60 = vpop.eup %8512 }
0x297c   :  { %v8515_v61 = vpop.eup %8514  ;;  %2441 = vrot.lane.b32.xlu1 %v8513_v60, %s8808_s21 }
0x297d   :  { %2522 = vrot.lane.b32.xlu0 %v8515_v61, %s8808_s21  ;;  %v8517_v1 = vpop.eup %8516 }
0x297e   :  { %v8519_v2 = vpop.eup %8518  ;;  %v2435_v3 = vadd.f32 1.0, %v8517_v1 }
0x297f   :  { %v2516_v5 = vadd.f32 1.0, %v8519_v2 }
0x2980   :  { %8520 = vrcp.f32 %v2435_v3 }
0x2981   :  { %8522 = vrcp.f32 %v2516_v5 }
0x298d   :  { %v8521_v6 = vpop.eup %8520 }
0x298e   :  { %v8523_v10 = vpop.eup %8522  ;;  %v2439_v14 = vmul.f32 %v8521_v6, %v9596_v12 }
0x298f   :  { %v2520_v15 = vmul.f32 %v8523_v10, %v9598_v22 }
0x29ee   :  { %v2442_v7 = vpop.permute.xlu1 %2441 }
0x29ef   :  { %v2444_v11 = vmul.f32 %v8521_v6, %v2442_v7  ;;  %v2523_v49 = vpop.permute.xlu0 %2522 }
0x29f0   :  { %v2525_v13 = vmul.f32 %v8523_v10, %v2523_v49 }
0x29f1   :  { %2446 = vrot.lane.b32.xlu1 %v2444_v11, %s8809_s22 }
0x29f2   :  { %2527 = vrot.lane.b32.xlu0 %v2525_v13, %s8809_s22 }
0x2a63   :  { %v2447_v53 = vpop.permute.xlu1 %2446 }
0x2a64   :  { %v9643_v16 = vadd.f32 %v2447_v53, %v2439_v14  ;;  %v2528_v17 = vpop.permute.xlu0 %2527 }
0x2a65   :  { %v9645_v56 = vadd.f32 %v2528_v17, %v2520_v15  ;;  %v7007_v17 = vld [vmem:[%s11203_s0 + $0x44] sm:$0xf] }
0x2a66   :  { %8524 = vtanh.f32 %v9643_v16 }
0x2a67   :  { %8526 = vtanh.f32 %v9645_v56 }
0x2a73   :  { %v8525_v59 = vpop.eup %8524 }
0x2a74   :  { %v8527_v18 = vpop.eup %8526  ;;  %2452 = vrot.lane.b32.xlu1 %v8525_v59, %s8808_s21 }
0x2a75   :  { %2533 = vrot.lane.b32.xlu0 %v8527_v18, %s8808_s21 }
0x2ae6   :  { %v2453_v19 = vpop.permute.xlu1 %2452 }
0x2ae7   :  { %v2455_v20 = vmul.f32 %v8521_v6, %v2453_v19  ;;  %v2534_v9 = vpop.permute.xlu0 %2533 }
0x2ae8   :  { %v2536_v12 = vmul.f32 %v8523_v10, %v2534_v9 }
0x2ae9   :  { %2542 = vrot.lane.b32.xlu0 %v2455_v20, %s8808_s21 }
0x2aea   :  { %2538 = vrot.lane.b32.xlu1 %v2536_v12, %s8809_s22  ;;  %v2623_v22 = vpack.c.bf16 %v2536_v12, %v2536_v12 }
0x2aed   :  { %2618 = vperm.xlu0 %8278, %v7002_v21  }
0x2aee   :  { %2625 = vrot.lane.b32.xlu1 %v2623_v22, %s8809_s22 }
0x2b5b   :  { %v2543_v23 = vpop.permute.xlu0 %2542 }
0x2b5c   :  { %v2539_v24 = vpop.permute.xlu1 %2538 }
0x2b5d   :  { %v2545_v25 = vsel %vm95_vm1, %v2539_v24, %v2543_v23 }
0x2b5e   :  { %v2546_v26 = vpack.c.bf16 %v2545_v25, %v2545_v25 }
0x2b60   :  { %7791 = vmatmul.mubr.msk.bf16.vlgmr.msra.gmra.mxu0 %vm176_vm2, %v2546_v26  ;;  %v2626_v27 = vpop.permute.xlu1 %2625 }
0x2b61   :  { %7799 = vmatmul.mubr.msk.bf16.vlgmr.msra.gmra.mxu1 %vm95_vm1, %v2626_v27  ;;  %7815 = vmatpush3.bf16.msra.mxu0 %v8907_v4 }
0x2b62   :  { %7803 = vmatpush3.bf16.msra.mxu1 %v8956_v32  ;;  %7816 = vmatprep.subr.bf16.mxu0 %v11220_v0 }
0x2b63   :  { %7804 = vmatprep.subr.bf16.mxu1 %v11220_v0  ;;  %7810 = vmatprep.mubr.msk.bf16.mxu1 %vm8806_vm0, %v11220_v0 }
0x2b64   :  { %7818 = vmatprep.mubr.msk.bf16.mxu0 %vm8806_vm0, %v11220_v0 }
0x2b65   :  { %7817 = vmatpush3.bf16.msra.mxu0 %v8919_v8 }
0x2b66   :  { %7805 = vmatpush3.bf16.msra.mxu1 %v8962_v34  ;;  %7822 = vmatprep.subr.bf16.mxu0 %v11220_v0 }
0x2b67   :  { %7806 = vmatprep.subr.bf16.mxu1 %v11220_v0 }
0x2b68   :  { %v2619_v29 = vpop.permute.xlu0 %2618 }
0x2b69   :  { %v2621_v28 = vmul.f32 %v9580_v51, %v2619_v29 }
0x2b6a   :  { %7807 = vmatpush3.bf16.msra.mxu1 %v8973_v38 }
0x2b6b   :  { %7808 = vmatprep.subr.bf16.mxu1 %v11220_v0  ;;  %v2622_v31 = vadd.f32 %v9586_v55, %v2621_v28 }
0x2b6e   :  { %7809 = vmatpush3.bf16.msra.mxu1 %v8984_v41 }
0x2b6f   :  { %7834 = vmatprep.subr.bf16.mxu1 %v11220_v0 }
0x2c20   :  { %v2584_v30 = vpop.f32.mrf.mxu0 }
0x2c21   :  { %v2585_v33 = vadd.f32 %v9634_v44, %v2584_v30  ;;  %v2664_v35 = vpop.f32.mrf.mxu1 }
0x2c22   :  { %v2670_v36 = vadd.f32 %v2664_v35, %v2622_v31  ;;  %v7792_v37 = vpop.f32.mrf.mxu0 }
0x2c23   :  { %8528 = vtanh.f32 %v2585_v33  ;;  %v7800_v39 = vpop.f32.mrf.mxu1  ;;  %v7001_v48 = vmul.f32 -1.442695, %v2585_v33 }
0x2c24   :  { %8530 = vtanh.f32 %v2670_v36  ;;  %v2587_v40 = vpop.f32.mrf.mxu0  ;;  %v7004_v50 = vmul.f32 -1.442695, %v2670_v36 }
0x2c25   :  { %v2667_v42 = vpop.f32.mrf.mxu1  ;;  %8532 = vpow2.f32 %v7001_v48 }
0x2c26   :  { %v7793_v43 = vpop.f32.mrf.mxu0  ;;  %8534 = vpow2.f32 %v7004_v50 }
0x2c27   :  { %v7801_v45 = vpop.f32.mrf.mxu1 }
0x2c30   :  { %v8529_v46 = vpop.eup %8528 }
0x2c31   :  { %v8531_v47 = vpop.eup %8530  ;;  %2599 = vrot.lane.b32.xlu1 %v8529_v46, %s8808_s21 }
0x2c32   :  { %2680 = vrot.lane.b32.xlu0 %v8531_v47, %s8808_s21  ;;  %v8533_v52 = vpop.eup %8532 }
0x2c33   :  { %v8535_v54 = vpop.eup %8534  ;;  %v2593_v57 = vadd.f32 1.0, %v8533_v52 }
0x2c34   :  { %v2674_v58 = vadd.f32 1.0, %v8535_v54 }
0x2c35   :  { %8536 = vrcp.f32 %v2593_v57 }
0x2c36   :  { %8538 = vrcp.f32 %v2674_v58 }
0x2c42   :  { %v8537_v60 = vpop.eup %8536 }
0x2c43   :  { %v8539_v62 = vpop.eup %8538  ;;  %v2597_v3 = vmul.f32 %v8537_v60, %v9643_v16 }
0x2c44   :  { %v2678_v6 = vmul.f32 %v8539_v62, %v9645_v56 }
0x2ca3   :  { %v2600_v61 = vpop.permute.xlu1 %2599 }
0x2ca4   :  { %v2602_v63 = vmul.f32 %v8537_v60, %v2600_v61  ;;  %v2681_v1 = vpop.permute.xlu0 %2680 }
0x2ca5   :  { %v2683_v2 = vmul.f32 %v8539_v62, %v2681_v1 }
0x2ca6   :  { %2604 = vrot.lane.b32.xlu1 %v2602_v63, %s8809_s22 }
0x2ca7   :  { %2685 = vrot.lane.b32.xlu0 %v2683_v2, %s8809_s22 }
0x2d18   :  { %v2605_v5 = vpop.permute.xlu1 %2604 }
0x2d19   :  { %v9685_v7 = vadd.f32 %v2605_v5, %v2597_v3  ;;  %v2686_v10 = vpop.permute.xlu0 %2685 }
0x2d1a   :  { %v9687_v11 = vadd.f32 %v2686_v10, %v2678_v6  ;;  %v7012_v10 = vld [vmem:[%s11203_s0 + $0x48] sm:$0xf] }
0x2d1b   :  { %8540 = vtanh.f32 %v9685_v7 }
0x2d1c   :  { %8542 = vtanh.f32 %v9687_v11 }
0x2d28   :  { %v8541_v49 = vpop.eup %8540 }
0x2d29   :  { %v8543_v13 = vpop.eup %8542  ;;  %2610 = vrot.lane.b32.xlu1 %v8541_v49, %s8808_s21 }
0x2d2a   :  { %2691 = vrot.lane.b32.xlu0 %v8543_v13, %s8808_s21 }
0x2d9b   :  { %v2611_v14 = vpop.permute.xlu1 %2610 }
0x2d9c   :  { %v2613_v53 = vmul.f32 %v8537_v60, %v2611_v14  ;;  %v2692_v15 = vpop.permute.xlu0 %2691 }
0x2d9d   :  { %v2694_v16 = vmul.f32 %v8539_v62, %v2692_v15 }
0x2d9e   :  { %2700 = vrot.lane.b32.xlu0 %v2613_v53, %s8808_s21 }
0x2d9f   :  { %2696 = vrot.lane.b32.xlu1 %v2694_v16, %s8809_s22  ;;  %v2781_v56 = vpack.c.bf16 %v2694_v16, %v2694_v16 }
0x2da2   :  { %2776 = vperm.xlu0 %8278, %v7007_v17  }
0x2da3   :  { %2783 = vrot.lane.b32.xlu1 %v2781_v56, %s8809_s22 }
0x2e10   :  { %v2701_v59 = vpop.permute.xlu0 %2700 }
0x2e11   :  { %v2697_v18 = vpop.permute.xlu1 %2696 }
0x2e12   :  { %v2703_v19 = vsel %vm95_vm1, %v2697_v18, %v2701_v59 }
0x2e13   :  { %v2704_v20 = vpack.c.bf16 %v2703_v19, %v2703_v19 }
0x2e15   :  { %7811 = vmatmul.mubr.msk.bf16.vlgmr.msra.gmra.mxu1 %vm176_vm2, %v2704_v20  ;;  %v2784_v9 = vpop.permute.xlu1 %2783 }
0x2e16   :  { %7819 = vmatmul.mubr.msk.bf16.vlgmr.msra.gmra.mxu0 %vm95_vm1, %v2784_v9  ;;  %7835 = vmatpush3.bf16.msra.mxu1 %v8907_v4 }
0x2e17   :  { %7823 = vmatpush3.bf16.msra.mxu0 %v8956_v32  ;;  %7836 = vmatprep.subr.bf16.mxu1 %v11220_v0 }
0x2e18   :  { %7824 = vmatprep.subr.bf16.mxu0 %v11220_v0  ;;  %7830 = vmatprep.mubr.msk.bf16.mxu0 %vm8806_vm0, %v11220_v0 }
0x2e19   :  { %7838 = vmatprep.mubr.msk.bf16.mxu1 %vm8806_vm0, %v11220_v0 }
0x2e1a   :  { %7837 = vmatpush3.bf16.msra.mxu1 %v8919_v8 }
0x2e1b   :  { %7825 = vmatpush3.bf16.msra.mxu0 %v8962_v34  ;;  %7842 = vmatprep.subr.bf16.mxu1 %v11220_v0 }
0x2e1c   :  { %7826 = vmatprep.subr.bf16.mxu0 %v11220_v0 }
0x2e1d   :  { %v2777_v12 = vpop.permute.xlu0 %2776 }
0x2e1e   :  { %v2779_v21 = vmul.f32 %v9580_v51, %v2777_v12 }
0x2e1f   :  { %7827 = vmatpush3.bf16.msra.mxu0 %v8973_v38 }
0x2e20   :  { %7828 = vmatprep.subr.bf16.mxu0 %v11220_v0  ;;  %v2780_v23 = vadd.f32 %v9586_v55, %v2779_v21 }
0x2e23   :  { %7829 = vmatpush3.bf16.msra.mxu0 %v8984_v41 }
0x2e24   :  { %7854 = vmatprep.subr.bf16.mxu0 %v11220_v0 }
0x2ed5   :  { %v2742_v22 = vpop.f32.mrf.mxu1 }
0x2ed6   :  { %v2743_v24 = vadd.f32 %v9634_v44, %v2742_v22  ;;  %v2822_v25 = vpop.f32.mrf.mxu0 }
0x2ed7   :  { %v2828_v26 = vadd.f32 %v2822_v25, %v2780_v23  ;;  %v7812_v27 = vpop.f32.mrf.mxu1 }
0x2ed8   :  { %8544 = vtanh.f32 %v2743_v24  ;;  %v7820_v29 = vpop.f32.mrf.mxu0  ;;  %v7006_v37 = vmul.f32 -1.442695, %v2743_v24 }
0x2ed9   :  { %8546 = vtanh.f32 %v2828_v26  ;;  %v2745_v28 = vpop.f32.mrf.mxu1  ;;  %v7009_v39 = vmul.f32 -1.442695, %v2828_v26 }
0x2eda   :  { %v2825_v30 = vpop.f32.mrf.mxu0  ;;  %8548 = vpow2.f32 %v7006_v37 }
0x2edb   :  { %v7813_v31 = vpop.f32.mrf.mxu1  ;;  %8550 = vpow2.f32 %v7009_v39 }
0x2edc   :  { %v7821_v33 = vpop.f32.mrf.mxu0 }
0x2ee5   :  { %v8545_v35 = vpop.eup %8544 }
0x2ee6   :  { %v8547_v36 = vpop.eup %8546  ;;  %2757 = vrot.lane.b32.xlu1 %v8545_v35, %s8808_s21 }
0x2ee7   :  { %2838 = vrot.lane.b32.xlu0 %v8547_v36, %s8808_s21  ;;  %v8549_v40 = vpop.eup %8548 }
0x2ee8   :  { %v8551_v42 = vpop.eup %8550  ;;  %v2751_v43 = vadd.f32 1.0, %v8549_v40 }
0x2ee9   :  { %v2832_v45 = vadd.f32 1.0, %v8551_v42 }
0x2eea   :  { %8552 = vrcp.f32 %v2751_v43 }
0x2eeb   :  { %8554 = vrcp.f32 %v2832_v45 }
0x2ef7   :  { %v8553_v46 = vpop.eup %8552 }
0x2ef8   :  { %v8555_v48 = vpop.eup %8554  ;;  %v2755_v57 = vmul.f32 %v8553_v46, %v9685_v7 }
0x2ef9   :  { %v2836_v60 = vmul.f32 %v8555_v48, %v9687_v11 }
0x2f58   :  { %v2758_v47 = vpop.permute.xlu1 %2757 }
0x2f59   :  { %v2760_v50 = vmul.f32 %v8553_v46, %v2758_v47  ;;  %v2839_v52 = vpop.permute.xlu0 %2838 }
0x2f5a   :  { %v2841_v54 = vmul.f32 %v8555_v48, %v2839_v52 }
0x2f5b   :  { %2762 = vrot.lane.b32.xlu1 %v2760_v50, %s8809_s22 }
0x2f5c   :  { %2843 = vrot.lane.b32.xlu0 %v2841_v54, %s8809_s22 }
0x2fcd   :  { %v2763_v58 = vpop.permute.xlu1 %2762 }
0x2fce   :  { %v9727_v61 = vadd.f32 %v2763_v58, %v2755_v57  ;;  %v2844_v62 = vpop.permute.xlu0 %2843 }
0x2fcf   :  { %v9729_v63 = vadd.f32 %v2844_v62, %v2836_v60  ;;  %v7017_v62 = vld [vmem:[%s11203_s0 + $0x4c] sm:$0xf] }
0x2fd0   :  { %8556 = vtanh.f32 %v9727_v61 }
0x2fd1   :  { %8558 = vtanh.f32 %v9729_v63 }
0x2fdd   :  { %v8557_v1 = vpop.eup %8556 }
0x2fde   :  { %v8559_v2 = vpop.eup %8558  ;;  %2768 = vrot.lane.b32.xlu1 %v8557_v1, %s8808_s21 }
0x2fdf   :  { %2849 = vrot.lane.b32.xlu0 %v8559_v2, %s8808_s21 }
0x3050   :  { %v2769_v3 = vpop.permute.xlu1 %2768 }
0x3051   :  { %v2771_v5 = vmul.f32 %v8553_v46, %v2769_v3  ;;  %v2850_v6 = vpop.permute.xlu0 %2849 }
0x3052   :  { %v2852_v7 = vmul.f32 %v8555_v48, %v2850_v6 }
0x3053   :  { %2858 = vrot.lane.b32.xlu0 %v2771_v5, %s8808_s21 }
0x3054   :  { %2854 = vrot.lane.b32.xlu1 %v2852_v7, %s8809_s22  ;;  %v2939_v11 = vpack.c.bf16 %v2852_v7, %v2852_v7 }
0x3057   :  { %2934 = vperm.xlu0 %8278, %v7012_v10  }
0x3058   :  { %2941 = vrot.lane.b32.xlu1 %v2939_v11, %s8809_s22 }
0x30c5   :  { %v2859_v49 = vpop.permute.xlu0 %2858 }
0x30c6   :  { %v2855_v13 = vpop.permute.xlu1 %2854 }
0x30c7   :  { %v2861_v14 = vsel %vm95_vm1, %v2855_v13, %v2859_v49 }
0x30c8   :  { %v2862_v53 = vpack.c.bf16 %v2861_v14, %v2861_v14 }
0x30ca   :  { %7831 = vmatmul.mubr.msk.bf16.vlgmr.msra.gmra.mxu0 %vm176_vm2, %v2862_v53  ;;  %v2942_v15 = vpop.permute.xlu1 %2941 }
0x30cb   :  { %7839 = vmatmul.mubr.msk.bf16.vlgmr.msra.gmra.mxu1 %vm95_vm1, %v2942_v15  ;;  %7855 = vmatpush3.bf16.msra.mxu0 %v8907_v4 }
0x30cc   :  { %7843 = vmatpush3.bf16.msra.mxu1 %v8956_v32  ;;  %7856 = vmatprep.subr.bf16.mxu0 %v11220_v0 }
0x30cd   :  { %7844 = vmatprep.subr.bf16.mxu1 %v11220_v0  ;;  %7850 = vmatprep.mubr.msk.bf16.mxu1 %vm8806_vm0, %v11220_v0 }
0x30ce   :  { %7858 = vmatprep.mubr.msk.bf16.mxu0 %vm8806_vm0, %v11220_v0 }
0x30cf   :  { %7857 = vmatpush3.bf16.msra.mxu0 %v8919_v8 }
0x30d0   :  { %7845 = vmatpush3.bf16.msra.mxu1 %v8962_v34  ;;  %7862 = vmatprep.subr.bf16.mxu0 %v11220_v0 }
0x30d1   :  { %7846 = vmatprep.subr.bf16.mxu1 %v11220_v0 }
0x30d2   :  { %v2935_v16 = vpop.permute.xlu0 %2934 }
0x30d3   :  { %v2937_v17 = vmul.f32 %v9580_v51, %v2935_v16 }
0x30d4   :  { %7847 = vmatpush3.bf16.msra.mxu1 %v8973_v38 }
0x30d5   :  { %7848 = vmatprep.subr.bf16.mxu1 %v11220_v0  ;;  %v2938_v59 = vadd.f32 %v9586_v55, %v2937_v17 }
0x30d8   :  { %7849 = vmatpush3.bf16.msra.mxu1 %v8984_v41 }
0x30d9   :  { %7874 = vmatprep.subr.bf16.mxu1 %v11220_v0 }
0x318a   :  { %v2900_v56 = vpop.f32.mrf.mxu0 }
0x318b   :  { %v2901_v18 = vadd.f32 %v9634_v44, %v2900_v56  ;;  %v2980_v19 = vpop.f32.mrf.mxu1 }
0x318c   :  { %v2986_v20 = vadd.f32 %v2980_v19, %v2938_v59  ;;  %v7832_v9 = vpop.f32.mrf.mxu0 }
0x318d   :  { %8560 = vtanh.f32 %v2901_v18  ;;  %v7840_v12 = vpop.f32.mrf.mxu1  ;;  %v7011_v27 = vmul.f32 -1.442695, %v2901_v18 }
0x318e   :  { %8562 = vtanh.f32 %v2986_v20  ;;  %v2903_v21 = vpop.f32.mrf.mxu0  ;;  %v7014_v29 = vmul.f32 -1.442695, %v2986_v20 }
0x318f   :  { %v2983_v22 = vpop.f32.mrf.mxu1  ;;  %8564 = vpow2.f32 %v7011_v27 }
0x3190   :  { %v7833_v23 = vpop.f32.mrf.mxu0  ;;  %8566 = vpow2.f32 %v7014_v29 }
0x3191   :  { %v7841_v24 = vpop.f32.mrf.mxu1 }
0x319a   :  { %v8561_v25 = vpop.eup %8560 }
0x319b   :  { %v8563_v26 = vpop.eup %8562  ;;  %2915 = vrot.lane.b32.xlu1 %v8561_v25, %s8808_s21 }
0x319c   :  { %2996 = vrot.lane.b32.xlu0 %v8563_v26, %s8808_s21  ;;  %v8565_v28 = vpop.eup %8564 }
0x319d   :  { %v8567_v30 = vpop.eup %8566  ;;  %v2909_v31 = vadd.f32 1.0, %v8565_v28 }
0x319e   :  { %v2990_v33 = vadd.f32 1.0, %v8567_v30 }
0x319f   :  { %8568 = vrcp.f32 %v2909_v31 }
0x31a0   :  { %8570 = vrcp.f32 %v2990_v33 }
0x31ac   :  { %v8569_v35 = vpop.eup %8568 }
0x31ad   :  { %v8571_v37 = vpop.eup %8570  ;;  %v2913_v43 = vmul.f32 %v8569_v35, %v9727_v61 }
0x31ae   :  { %v2994_v46 = vmul.f32 %v8571_v37, %v9729_v63 }
0x320d   :  { %v2916_v36 = vpop.permute.xlu1 %2915 }
0x320e   :  { %v2918_v39 = vmul.f32 %v8569_v35, %v2916_v36  ;;  %v2997_v40 = vpop.permute.xlu0 %2996 }
0x320f   :  { %v2999_v42 = vmul.f32 %v8571_v37, %v2997_v40 }
0x3210   :  { %2920 = vrot.lane.b32.xlu1 %v2918_v39, %s8809_s22 }
0x3211   :  { %3001 = vrot.lane.b32.xlu0 %v2999_v42, %s8809_s22 }
0x3282   :  { %v2921_v45 = vpop.permute.xlu1 %2920 }
0x3283   :  { %v9769_v47 = vadd.f32 %v2921_v45, %v2913_v43  ;;  %v3002_v48 = vpop.permute.xlu0 %3001 }
0x3284   :  { %v9771_v50 = vadd.f32 %v3002_v48, %v2994_v46  ;;  %v7022_v48 = vld [vmem:[%s11203_s0 + $0x50] sm:$0xf] }
0x3285   :  { %8572 = vtanh.f32 %v9769_v47 }
0x3286   :  { %8574 = vtanh.f32 %v9771_v50 }
0x3292   :  { %v8573_v52 = vpop.eup %8572 }
0x3293   :  { %v8575_v54 = vpop.eup %8574  ;;  %2926 = vrot.lane.b32.xlu1 %v8573_v52, %s8808_s21 }
0x3294   :  { %3007 = vrot.lane.b32.xlu0 %v8575_v54, %s8808_s21 }
0x3305   :  { %v2927_v57 = vpop.permute.xlu1 %2926 }
0x3306   :  { %v2929_v58 = vmul.f32 %v8569_v35, %v2927_v57  ;;  %v3008_v60 = vpop.permute.xlu0 %3007 }
0x3307   :  { %v3010_v61 = vmul.f32 %v8571_v37, %v3008_v60 }
0x3308   :  { %3016 = vrot.lane.b32.xlu0 %v2929_v58, %s8808_s21 }
0x3309   :  { %3012 = vrot.lane.b32.xlu1 %v3010_v61, %s8809_s22  ;;  %v3097_v63 = vpack.c.bf16 %v3010_v61, %v3010_v61 }
0x330c   :  { %3092 = vperm.xlu0 %8278, %v7017_v62  }
0x330d   :  { %3099 = vrot.lane.b32.xlu1 %v3097_v63, %s8809_s22 }
0x337a   :  { %v3017_v1 = vpop.permute.xlu0 %3016 }
0x337b   :  { %v3013_v2 = vpop.permute.xlu1 %3012 }
0x337c   :  { %v3019_v3 = vsel %vm95_vm1, %v3013_v2, %v3017_v1 }
0x337d   :  { %v3020_v5 = vpack.c.bf16 %v3019_v3, %v3019_v3 }
0x337f   :  { %7851 = vmatmul.mubr.msk.bf16.vlgmr.msra.gmra.mxu1 %vm176_vm2, %v3020_v5  ;;  %v3100_v6 = vpop.permute.xlu1 %3099 }
0x3380   :  { %7859 = vmatmul.mubr.msk.bf16.vlgmr.msra.gmra.mxu0 %vm95_vm1, %v3100_v6  ;;  %7875 = vmatpush3.bf16.msra.mxu1 %v8907_v4 }
0x3381   :  { %7863 = vmatpush3.bf16.msra.mxu0 %v8956_v32  ;;  %7876 = vmatprep.subr.bf16.mxu1 %v11220_v0 }
0x3382   :  { %7864 = vmatprep.subr.bf16.mxu0 %v11220_v0  ;;  %7870 = vmatprep.mubr.msk.bf16.mxu0 %vm8806_vm0, %v11220_v0 }
0x3383   :  { %7878 = vmatprep.mubr.msk.bf16.mxu1 %vm8806_vm0, %v11220_v0 }
0x3384   :  { %7877 = vmatpush3.bf16.msra.mxu1 %v8919_v8 }
0x3385   :  { %7865 = vmatpush3.bf16.msra.mxu0 %v8962_v34  ;;  %7882 = vmatprep.subr.bf16.mxu1 %v11220_v0 }
0x3386   :  { %7866 = vmatprep.subr.bf16.mxu0 %v11220_v0 }
0x3387   :  { %v3093_v7 = vpop.permute.xlu0 %3092 }
0x3388   :  { %v3095_v10 = vmul.f32 %v9580_v51, %v3093_v7 }
0x3389   :  { %7867 = vmatpush3.bf16.msra.mxu0 %v8973_v38 }
0x338a   :  { %7868 = vmatprep.subr.bf16.mxu0 %v11220_v0  ;;  %v3096_v49 = vadd.f32 %v9586_v55, %v3095_v10 }
0x338d   :  { %7869 = vmatpush3.bf16.msra.mxu0 %v8984_v41 }
0x338e   :  { %7894 = vmatprep.subr.bf16.mxu0 %v11220_v0 }
0x343f   :  { %v3058_v11 = vpop.f32.mrf.mxu1 }
0x3440   :  { %v3059_v13 = vadd.f32 %v9634_v44, %v3058_v11  ;;  %v3138_v14 = vpop.f32.mrf.mxu0 }
0x3441   :  { %v3144_v53 = vadd.f32 %v3138_v14, %v3096_v49  ;;  %v7852_v15 = vpop.f32.mrf.mxu1 }
0x3442   :  { %8576 = vtanh.f32 %v3059_v13  ;;  %v7860_v16 = vpop.f32.mrf.mxu0  ;;  %v7016_v9 = vmul.f32 -1.442695, %v3059_v13 }
0x3443   :  { %8578 = vtanh.f32 %v3144_v53  ;;  %v3061_v17 = vpop.f32.mrf.mxu1  ;;  %v7019_v12 = vmul.f32 -1.442695, %v3144_v53 }
0x3444   :  { %v3141_v56 = vpop.f32.mrf.mxu0  ;;  %8580 = vpow2.f32 %v7016_v9 }
0x3445   :  { %v7853_v59 = vpop.f32.mrf.mxu1  ;;  %8582 = vpow2.f32 %v7019_v12 }
0x3446   :  { %v7861_v18 = vpop.f32.mrf.mxu0 }
0x344f   :  { %v8577_v19 = vpop.eup %8576 }
0x3450   :  { %v8579_v20 = vpop.eup %8578  ;;  %3073 = vrot.lane.b32.xlu1 %v8577_v19, %s8808_s21 }
0x3451   :  { %3154 = vrot.lane.b32.xlu0 %v8579_v20, %s8808_s21  ;;  %v8581_v21 = vpop.eup %8580 }
0x3452   :  { %v8583_v22 = vpop.eup %8582  ;;  %v3067_v23 = vadd.f32 1.0, %v8581_v21 }
0x3453   :  { %v3148_v24 = vadd.f32 1.0, %v8583_v22 }
0x3454   :  { %8584 = vrcp.f32 %v3067_v23 }
0x3455   :  { %8586 = vrcp.f32 %v3148_v24 }
0x3461   :  { %v8585_v25 = vpop.eup %8584 }
0x3462   :  { %v8587_v27 = vpop.eup %8586  ;;  %v3071_v31 = vmul.f32 %v8585_v25, %v9769_v47 }
0x3463   :  { %v3152_v35 = vmul.f32 %v8587_v27, %v9771_v50 }
0x34c2   :  { %v3074_v26 = vpop.permute.xlu1 %3073 }
0x34c3   :  { %v3076_v29 = vmul.f32 %v8585_v25, %v3074_v26  ;;  %v3155_v28 = vpop.permute.xlu0 %3154 }
0x34c4   :  { %v3157_v30 = vmul.f32 %v8587_v27, %v3155_v28 }
0x34c5   :  { %3078 = vrot.lane.b32.xlu1 %v3076_v29, %s8809_s22 }
0x34c6   :  { %3159 = vrot.lane.b32.xlu0 %v3157_v30, %s8809_s22 }
0x3537   :  { %v3079_v33 = vpop.permute.xlu1 %3078 }
0x3538   :  { %v9811_v36 = vadd.f32 %v3079_v33, %v3071_v31  ;;  %v3160_v37 = vpop.permute.xlu0 %3159 }
0x3539   :  { %v9813_v39 = vadd.f32 %v3160_v37, %v3152_v35  ;;  %v7027_v35 = vld [vmem:[%s11203_s0 + $0x54] sm:$0xf] }
0x353a   :  { %8588 = vtanh.f32 %v9811_v36 }
0x353b   :  { %8590 = vtanh.f32 %v9813_v39 }
0x3547   :  { %v8589_v40 = vpop.eup %8588 }
0x3548   :  { %v8591_v42 = vpop.eup %8590  ;;  %3084 = vrot.lane.b32.xlu1 %v8589_v40, %s8808_s21 }
0x3549   :  { %3165 = vrot.lane.b32.xlu0 %v8591_v42, %s8808_s21 }
0x35ba   :  { %v3085_v43 = vpop.permute.xlu1 %3084 }
0x35bb   :  { %v3087_v45 = vmul.f32 %v8585_v25, %v3085_v43  ;;  %v3166_v46 = vpop.permute.xlu0 %3165 }
0x35bc   :  { %v3168_v47 = vmul.f32 %v8587_v27, %v3166_v46  ;;  %v9889_v46 = vld [vmem:[%s11204_s2] ss:$0 sm:$0xff] }
0x35bd   :  { %3174 = vrot.lane.b32.xlu0 %v3087_v45, %s8808_s21 }
0x35be   :  { %3170 = vrot.lane.b32.xlu1 %v3168_v47, %s8809_s22  ;;  %v3255_v50 = vpack.c.bf16 %v3168_v47, %v3168_v47 }
0x35c1   :  { %3250 = vperm.xlu0 %8278, %v7022_v48  }
0x35c2   :  { %3257 = vrot.lane.b32.xlu1 %v3255_v50, %s8809_s22  ;;  %v9895_v50 = vld [vmem:[%s11205_s4] ss:$0 sm:$0xff] }
0x362f   :  { %v3175_v52 = vpop.permute.xlu0 %3174 }
0x3630   :  { %v3171_v54 = vpop.permute.xlu1 %3170 }
0x3631   :  { %v3177_v57 = vsel %vm95_vm1, %v3171_v54, %v3175_v52 }
0x3632   :  { %v3178_v58 = vpack.c.bf16 %v3177_v57, %v3177_v57 }
0x3634   :  { %7871 = vmatmul.mubr.msk.bf16.vlgmr.msra.gmra.mxu0 %vm176_vm2, %v3178_v58  ;;  %v3258_v60 = vpop.permute.xlu1 %3257 }
0x3635   :  { %7879 = vmatmul.mubr.msk.bf16.vlgmr.msra.gmra.mxu1 %vm95_vm1, %v3258_v60  ;;  %7895 = vmatpush3.bf16.msra.mxu0 %v8907_v4 }
0x3636   :  { %7883 = vmatpush3.bf16.msra.mxu1 %v8956_v32  ;;  %7896 = vmatprep.subr.bf16.mxu0 %v11220_v0 }
0x3637   :  { %7884 = vmatprep.subr.bf16.mxu1 %v11220_v0  ;;  %7890 = vmatprep.mubr.msk.bf16.mxu1 %vm8806_vm0, %v11220_v0 }
0x3638   :  { %7898 = vmatprep.mubr.msk.bf16.mxu0 %vm8806_vm0, %v11220_v0 }
0x3639   :  { %7897 = vmatpush3.bf16.msra.mxu0 %v8919_v8 }
0x363a   :  { %7885 = vmatpush3.bf16.msra.mxu1 %v8962_v34  ;;  %7902 = vmatprep.subr.bf16.mxu0 %v11220_v0 }
0x363b   :  { %7886 = vmatprep.subr.bf16.mxu1 %v11220_v0 }
0x363c   :  { %v3251_v61 = vpop.permute.xlu0 %3250 }
0x363d   :  { %v3253_v62 = vmul.f32 %v9580_v51, %v3251_v61 }
0x363e   :  { %7887 = vmatpush3.bf16.msra.mxu1 %v8973_v38 }
0x363f   :  { %7888 = vmatprep.subr.bf16.mxu1 %v11220_v0  ;;  %v3254_v1 = vadd.f32 %v9586_v55, %v3253_v62 }
0x3642   :  { %7889 = vmatpush3.bf16.msra.mxu1 %v8984_v41 }
0x3643   :  { %7914 = vmatprep.subr.bf16.mxu1 %v11220_v0 }
0x36f4   :  { %v3216_v63 = vpop.f32.mrf.mxu0 }
0x36f5   :  { %v3217_v2 = vadd.f32 %v9634_v44, %v3216_v63  ;;  %v3296_v3 = vpop.f32.mrf.mxu1 }
0x36f6   :  { %v3302_v5 = vadd.f32 %v3296_v3, %v3254_v1  ;;  %v7872_v6 = vpop.f32.mrf.mxu0 }
0x36f7   :  { %8592 = vtanh.f32 %v3217_v2  ;;  %v7880_v7 = vpop.f32.mrf.mxu1  ;;  %v7021_v51 = vmul.f32 -1.442695, %v3217_v2 }
0x36f8   :  { %8594 = vtanh.f32 %v3302_v5  ;;  %v3219_v10 = vpop.f32.mrf.mxu0  ;;  %v7024_v55 = vmul.f32 -1.442695, %v3302_v5 }
0x36f9   :  { %v3299_v11 = vpop.f32.mrf.mxu1  ;;  %8596 = vpow2.f32 %v7021_v51 }
0x36fa   :  { %v7873_v49 = vpop.f32.mrf.mxu0  ;;  %8598 = vpow2.f32 %v7024_v55 }
0x36fb   :  { %v7881_v13 = vpop.f32.mrf.mxu1 }
0x3704   :  { %v8593_v14 = vpop.eup %8592 }
0x3705   :  { %v8595_v53 = vpop.eup %8594  ;;  %3231 = vrot.lane.b32.xlu1 %v8593_v14, %s8808_s21 }
0x3706   :  { %3312 = vrot.lane.b32.xlu0 %v8595_v53, %s8808_s21  ;;  %v8597_v15 = vpop.eup %8596 }
0x3707   :  { %v8599_v16 = vpop.eup %8598  ;;  %v3225_v17 = vadd.f32 1.0, %v8597_v15 }
0x3708   :  { %v3306_v56 = vadd.f32 1.0, %v8599_v16 }
0x3709   :  { %8600 = vrcp.f32 %v3225_v17 }
0x370a   :  { %8602 = vrcp.f32 %v3306_v56 }
0x3716   :  { %v8601_v59 = vpop.eup %8600 }
0x3717   :  { %v8603_v19 = vpop.eup %8602  ;;  %v3229_v21 = vmul.f32 %v8601_v59, %v9811_v36 }
0x3718   :  { %v3310_v23 = vmul.f32 %v8603_v19, %v9813_v39 }
0x3777   :  { %v3232_v18 = vpop.permute.xlu1 %3231 }
0x3778   :  { %v3234_v20 = vmul.f32 %v8601_v59, %v3232_v18  ;;  %v3313_v9 = vpop.permute.xlu0 %3312 }
0x3779   :  { %v3315_v12 = vmul.f32 %v8603_v19, %v3313_v9 }
0x377a   :  { %3236 = vrot.lane.b32.xlu1 %v3234_v20, %s8809_s22 }
0x377b   :  { %3317 = vrot.lane.b32.xlu0 %v3315_v12, %s8809_s22 }
0x37ec   :  { %v3237_v22 = vpop.permute.xlu1 %3236 }
0x37ed   :  { %v9853_v24 = vadd.f32 %v3237_v22, %v3229_v21  ;;  %v3318_v25 = vpop.permute.xlu0 %3317 }
0x37ee   :  { %v9855_v26 = vadd.f32 %v3318_v25, %v3310_v23 }
0x37ef   :  { %8604 = vtanh.f32 %v9853_v24 }
0x37f0   :  { %8606 = vtanh.f32 %v9855_v26 }
0x37fc   :  { %v8605_v27 = vpop.eup %8604 }
0x37fd   :  { %v8607_v29 = vpop.eup %8606  ;;  %3242 = vrot.lane.b32.xlu1 %v8605_v27, %s8808_s21 }
0x37fe   :  { %3323 = vrot.lane.b32.xlu0 %v8607_v29, %s8808_s21 }
0x386f   :  { %v3243_v28 = vpop.permute.xlu1 %3242 }
0x3870   :  { %v3245_v30 = vmul.f32 %v8601_v59, %v3243_v28  ;;  %v3324_v31 = vpop.permute.xlu0 %3323 }
0x3871   :  { %v3326_v33 = vmul.f32 %v8603_v19, %v3324_v31 }
0x3872   :  { %3332 = vrot.lane.b32.xlu0 %v3245_v30, %s8808_s21 }
0x3873   :  { %3328 = vrot.lane.b32.xlu1 %v3326_v33, %s8809_s22  ;;  %v3413_v36 = vpack.c.bf16 %v3326_v33, %v3326_v33 }
0x3876   :  { %3408 = vperm.xlu0 %8278, %v7027_v35  }
0x3877   :  { %3415 = vrot.lane.b32.xlu1 %v3413_v36, %s8809_s22 }
0x38e4   :  { %v3333_v37 = vpop.permute.xlu0 %3332 }
0x38e5   :  { %v3329_v39 = vpop.permute.xlu1 %3328 }
0x38e6   :  { %v3335_v40 = vsel %vm95_vm1, %v3329_v39, %v3333_v37  ;;  %v9943_v37 = vld [vmem:[%s11207_s6] ss:$0 sm:$0xff] }
0x38e7   :  { %v3336_v42 = vpack.c.bf16 %v3335_v40, %v3335_v40 }
0x38e9   :  { %7891 = vmatmul.mubr.msk.bf16.vlgmr.msra.gmra.mxu1 %vm176_vm2, %v3336_v42  ;;  %v3416_v43 = vpop.permute.xlu1 %3415 }
0x38ea   :  { %7899 = vmatmul.mubr.msk.bf16.vlgmr.msra.gmra.mxu0 %vm95_vm1, %v3416_v43  ;;  %7915 = vmatpush3.bf16.msra.mxu1 %v8907_v4 }
0x38eb   :  { %7903 = vmatpush3.bf16.msra.mxu0 %v8956_v32  ;;  %7916 = vmatprep.subr.bf16.mxu1 %v11220_v0 }
0x38ec   :  { %7904 = vmatprep.subr.bf16.mxu0 %v11220_v0  ;;  %7910 = vmatprep.mubr.msk.bf16.mxu0 %vm8806_vm0, %v11220_v0 }
0x38ed   :  { %7918 = vmatprep.mubr.msk.bf16.mxu1 %vm8806_vm0, %v11220_v0 }
0x38ee   :  { %7917 = vmatpush3.bf16.msra.mxu1 %v8919_v8 }
0x38ef   :  { %7905 = vmatpush3.bf16.msra.mxu0 %v8962_v34  ;;  %7922 = vmatprep.subr.bf16.mxu1 %v11220_v0 }
0x38f0   :  { %7906 = vmatprep.subr.bf16.mxu0 %v11220_v0 }
0x38f1   :  { %v3409_v45 = vpop.permute.xlu0 %3408 }
0x38f2   :  { %v3411_v47 = vmul.f32 %v9889_v46, %v3409_v45 }
0x38f3   :  { %7907 = vmatpush3.bf16.msra.mxu0 %v8973_v38 }
0x38f4   :  { %7908 = vmatprep.subr.bf16.mxu0 %v11220_v0  ;;  %v3412_v52 = vadd.f32 %v9895_v50, %v3411_v47 }
0x38f7   :  { %7909 = vmatpush3.bf16.msra.mxu0 %v8984_v41 }
0x38f8   :  { %7934 = vmatprep.subr.bf16.mxu0 %v11220_v0 }
0x39a9   :  { %v3374_v48 = vpop.f32.mrf.mxu1 }
0x39aa   :  { %v3375_v54 = vadd.f32 %v9634_v44, %v3374_v48  ;;  %v3454_v57 = vpop.f32.mrf.mxu0 }
0x39ab   :  { %v3460_v58 = vadd.f32 %v3454_v57, %v3412_v52  ;;  %v7892_v60 = vpop.f32.mrf.mxu1 }
0x39ac   :  { %8608 = vtanh.f32 %v3375_v54  ;;  %v7900_v61 = vpop.f32.mrf.mxu0  ;;  %v7026_v6 = vmul.f32 -1.442695, %v3375_v54 }
0x39ad   :  { %8610 = vtanh.f32 %v3460_v58  ;;  %v3377_v62 = vpop.f32.mrf.mxu1  ;;  %v7029_v7 = vmul.f32 -1.442695, %v3460_v58 }
0x39ae   :  { %v3457_v63 = vpop.f32.mrf.mxu0  ;;  %8612 = vpow2.f32 %v7026_v6 }
0x39af   :  { %v7893_v1 = vpop.f32.mrf.mxu1  ;;  %8614 = vpow2.f32 %v7029_v7 }
0x39b0   :  { %v7901_v2 = vpop.f32.mrf.mxu0 }
0x39b9   :  { %v8609_v3 = vpop.eup %8608 }
0x39ba   :  { %v8611_v5 = vpop.eup %8610  ;;  %3389 = vrot.lane.b32.xlu1 %v8609_v3, %s8808_s21 }
0x39bb   :  { %3470 = vrot.lane.b32.xlu0 %v8611_v5, %s8808_s21  ;;  %v8613_v44 = vpop.eup %8612 }
0x39bc   :  { %v8615_v10 = vpop.eup %8614  ;;  %v3383_v11 = vadd.f32 1.0, %v8613_v44 }
0x39bd   :  { %v3464_v49 = vadd.f32 1.0, %v8615_v10 }
0x39be   :  { %8616 = vrcp.f32 %v3383_v11 }
0x39bf   :  { %8618 = vrcp.f32 %v3464_v49 }
0x39cb   :  { %v8617_v13 = vpop.eup %8616 }
0x39cc   :  { %v8619_v53 = vpop.eup %8618  ;;  %v3387_v16 = vmul.f32 %v8617_v13, %v9853_v24  ;;  %v7032_v24 = vld [vmem:[%s11203_s0 + $0x58] sm:$0xf] }
0x39cd   :  { %v3468_v56 = vmul.f32 %v8619_v53, %v9855_v26 }
0x3a2c   :  { %v3390_v14 = vpop.permute.xlu1 %3389 }
0x3a2d   :  { %v3392_v51 = vmul.f32 %v8617_v13, %v3390_v14  ;;  %v3471_v55 = vpop.permute.xlu0 %3470 }
0x3a2e   :  { %v3473_v15 = vmul.f32 %v8619_v53, %v3471_v55 }
0x3a2f   :  { %3394 = vrot.lane.b32.xlu1 %v3392_v51, %s8809_s22 }
0x3a30   :  { %3475 = vrot.lane.b32.xlu0 %v3473_v15, %s8809_s22 }
0x3aa1   :  { %v3395_v17 = vpop.permute.xlu1 %3394 }
0x3aa2   :  { %v9905_v59 = vadd.f32 %v3395_v17, %v3387_v16  ;;  %v3476_v18 = vpop.permute.xlu0 %3475 }
0x3aa3   :  { %v9907_v19 = vadd.f32 %v3476_v18, %v3468_v56  ;;  %v7037_v18 = vld [vmem:[%s11203_s0 + $0x5c] sm:$0xf] }
0x3aa4   :  { %8620 = vtanh.f32 %v9905_v59 }
0x3aa5   :  { %8622 = vtanh.f32 %v9907_v19 }
0x3ab1   :  { %v8621_v20 = vpop.eup %8620 }
0x3ab2   :  { %v8623_v9 = vpop.eup %8622  ;;  %3400 = vrot.lane.b32.xlu1 %v8621_v20, %s8808_s21 }
0x3ab3   :  { %3481 = vrot.lane.b32.xlu0 %v8623_v9, %s8808_s21 }
0x3b24   :  { %v3401_v12 = vpop.permute.xlu1 %3400 }
0x3b25   :  { %v3403_v21 = vmul.f32 %v8617_v13, %v3401_v12  ;;  %v3482_v22 = vpop.permute.xlu0 %3481 }
0x3b26   :  { %v3484_v23 = vmul.f32 %v8619_v53, %v3482_v22 }
0x3b27   :  { %3490 = vrot.lane.b32.xlu0 %v3403_v21, %s8808_s21 }
0x3b28   :  { %3486 = vrot.lane.b32.xlu1 %v3484_v23, %s8809_s22  ;;  %v3571_v25 = vpack.c.bf16 %v3484_v23, %v3484_v23 }
0x3b2b   :  { %3566 = vperm.xlu0 %8278, %v7032_v24  }
0x3b2c   :  { %3573 = vrot.lane.b32.xlu1 %v3571_v25, %s8809_s22 }
0x3b99   :  { %v3491_v26 = vpop.permute.xlu0 %3490 }
0x3b9a   :  { %v3487_v27 = vpop.permute.xlu1 %3486 }
0x3b9b   :  { %v3493_v29 = vsel %vm95_vm1, %v3487_v27, %v3491_v26 }
0x3b9c   :  { %v3494_v28 = vpack.c.bf16 %v3493_v29, %v3493_v29 }
0x3b9e   :  { %7911 = vmatmul.mubr.msk.bf16.vlgmr.msra.gmra.mxu0 %vm176_vm2, %v3494_v28  ;;  %v3574_v30 = vpop.permute.xlu1 %3573 }
0x3b9f   :  { %7919 = vmatmul.mubr.msk.bf16.vlgmr.msra.gmra.mxu1 %vm95_vm1, %v3574_v30  ;;  %7935 = vmatpush3.bf16.msra.mxu0 %v8907_v4 }
0x3ba0   :  { %7923 = vmatpush3.bf16.msra.mxu1 %v8956_v32  ;;  %7936 = vmatprep.subr.bf16.mxu0 %v11220_v0 }
0x3ba1   :  { %7924 = vmatprep.subr.bf16.mxu1 %v11220_v0  ;;  %7930 = vmatprep.mubr.msk.bf16.mxu1 %vm8806_vm0, %v11220_v0 }
0x3ba2   :  { %7938 = vmatprep.mubr.msk.bf16.mxu0 %vm8806_vm0, %v11220_v0 }
0x3ba3   :  { %7937 = vmatpush3.bf16.msra.mxu0 %v8919_v8 }
0x3ba4   :  { %7925 = vmatpush3.bf16.msra.mxu1 %v8962_v34  ;;  %7942 = vmatprep.subr.bf16.mxu0 %v11220_v0 }
0x3ba5   :  { %7926 = vmatprep.subr.bf16.mxu1 %v11220_v0 }
0x3ba6   :  { %v3567_v31 = vpop.permute.xlu0 %3566 }
0x3ba7   :  { %v3569_v33 = vmul.f32 %v9889_v46, %v3567_v31 }
0x3ba8   :  { %7927 = vmatpush3.bf16.msra.mxu1 %v8973_v38 }
0x3ba9   :  { %7928 = vmatprep.subr.bf16.mxu1 %v11220_v0  ;;  %v3570_v36 = vadd.f32 %v9895_v50, %v3569_v33 }
0x3bac   :  { %7929 = vmatpush3.bf16.msra.mxu1 %v8984_v41 }
0x3bad   :  { %7954 = vmatprep.subr.bf16.mxu1 %v11220_v0 }
0x3c5e   :  { %v3532_v35 = vpop.f32.mrf.mxu0 }
0x3c5f   :  { %v3533_v39 = vadd.f32 %v9943_v37, %v3532_v35  ;;  %v3612_v40 = vpop.f32.mrf.mxu1 }
0x3c60   :  { %v3618_v42 = vadd.f32 %v3612_v40, %v3570_v36  ;;  %v7912_v43 = vpop.f32.mrf.mxu0 }
0x3c61   :  { %8624 = vtanh.f32 %v3533_v39  ;;  %v7920_v45 = vpop.f32.mrf.mxu1  ;;  %v7031_v60 = vmul.f32 -1.442695, %v3533_v39 }
0x3c62   :  { %8626 = vtanh.f32 %v3618_v42  ;;  %v3535_v47 = vpop.f32.mrf.mxu0  ;;  %v7034_v61 = vmul.f32 -1.442695, %v3618_v42 }
0x3c63   :  { %v3615_v48 = vpop.f32.mrf.mxu1  ;;  %8628 = vpow2.f32 %v7031_v60 }
0x3c64   :  { %v7913_v52 = vpop.f32.mrf.mxu0  ;;  %8630 = vpow2.f32 %v7034_v61 }
0x3c65   :  { %v7921_v54 = vpop.f32.mrf.mxu1 }
0x3c6e   :  { %v8625_v57 = vpop.eup %8624 }
0x3c6f   :  { %v8627_v58 = vpop.eup %8626  ;;  %3547 = vrot.lane.b32.xlu1 %v8625_v57, %s8808_s21 }
0x3c70   :  { %3628 = vrot.lane.b32.xlu0 %v8627_v58, %s8808_s21  ;;  %v8629_v62 = vpop.eup %8628 }
0x3c71   :  { %v8631_v63 = vpop.eup %8630  ;;  %v3541_v1 = vadd.f32 1.0, %v8629_v62 }
0x3c72   :  { %v3622_v2 = vadd.f32 1.0, %v8631_v63 }
0x3c73   :  { %8632 = vrcp.f32 %v3541_v1 }
0x3c74   :  { %8634 = vrcp.f32 %v3622_v2 }
0x3c80   :  { %v8633_v3 = vpop.eup %8632 }
0x3c81   :  { %v8635_v6 = vpop.eup %8634  ;;  %v3545_v11 = vmul.f32 %v8633_v3, %v9905_v59 }
0x3c82   :  { %v3626_v13 = vmul.f32 %v8635_v6, %v9907_v19 }
0x3ce1   :  { %v3548_v5 = vpop.permute.xlu1 %3547 }
0x3ce2   :  { %v3550_v7 = vmul.f32 %v8633_v3, %v3548_v5  ;;  %v3629_v44 = vpop.permute.xlu0 %3628 }
0x3ce3   :  { %v3631_v10 = vmul.f32 %v8635_v6, %v3629_v44 }
0x3ce4   :  { %3552 = vrot.lane.b32.xlu1 %v3550_v7, %s8809_s22 }
0x3ce5   :  { %3633 = vrot.lane.b32.xlu0 %v3631_v10, %s8809_s22 }
0x3d56   :  { %v3553_v49 = vpop.permute.xlu1 %3552 }
0x3d57   :  { %v9952_v14 = vadd.f32 %v3553_v49, %v3545_v11  ;;  %v3634_v53 = vpop.permute.xlu0 %3633 }
0x3d58   :  { %v9954_v51 = vadd.f32 %v3634_v53, %v3626_v13  ;;  %v7042_v53 = vld [vmem:[%s11203_s0 + $0x60] sm:$0xf] }
0x3d59   :  { %8636 = vtanh.f32 %v9952_v14 }
0x3d5a   :  { %8638 = vtanh.f32 %v9954_v51 }
0x3d66   :  { %v8637_v55 = vpop.eup %8636 }
0x3d67   :  { %v8639_v15 = vpop.eup %8638  ;;  %3558 = vrot.lane.b32.xlu1 %v8637_v55, %s8808_s21 }
0x3d68   :  { %3639 = vrot.lane.b32.xlu0 %v8639_v15, %s8808_s21 }
0x3dd9   :  { %v3559_v16 = vpop.permute.xlu1 %3558 }
0x3dda   :  { %v3561_v17 = vmul.f32 %v8633_v3, %v3559_v16  ;;  %v3640_v56 = vpop.permute.xlu0 %3639 }
0x3ddb   :  { %v3642_v59 = vmul.f32 %v8635_v6, %v3640_v56 }
0x3ddc   :  { %3648 = vrot.lane.b32.xlu0 %v3561_v17, %s8808_s21 }
0x3ddd   :  { %3644 = vrot.lane.b32.xlu1 %v3642_v59, %s8809_s22  ;;  %v3729_v19 = vpack.c.bf16 %v3642_v59, %v3642_v59 }
0x3de0   :  { %3724 = vperm.xlu0 %8278, %v7037_v18  }
0x3de1   :  { %3731 = vrot.lane.b32.xlu1 %v3729_v19, %s8809_s22 }
0x3e4e   :  { %v3649_v20 = vpop.permute.xlu0 %3648 }
0x3e4f   :  { %v3645_v9 = vpop.permute.xlu1 %3644 }
0x3e50   :  { %v3651_v12 = vsel %vm95_vm1, %v3645_v9, %v3649_v20 }
0x3e51   :  { %v3652_v21 = vpack.c.bf16 %v3651_v12, %v3651_v12 }
0x3e53   :  { %7931 = vmatmul.mubr.msk.bf16.vlgmr.msra.gmra.mxu1 %vm176_vm2, %v3652_v21  ;;  %v3732_v22 = vpop.permute.xlu1 %3731 }
0x3e54   :  { %7939 = vmatmul.mubr.msk.bf16.vlgmr.msra.gmra.mxu0 %vm95_vm1, %v3732_v22  ;;  %7955 = vmatpush3.bf16.msra.mxu1 %v8907_v4 }
0x3e55   :  { %7943 = vmatpush3.bf16.msra.mxu0 %v8956_v32  ;;  %7956 = vmatprep.subr.bf16.mxu1 %v11220_v0 }
0x3e56   :  { %7944 = vmatprep.subr.bf16.mxu0 %v11220_v0  ;;  %7950 = vmatprep.mubr.msk.bf16.mxu0 %vm8806_vm0, %v11220_v0 }
0x3e57   :  { %7958 = vmatprep.mubr.msk.bf16.mxu1 %vm8806_vm0, %v11220_v0 }
0x3e58   :  { %7957 = vmatpush3.bf16.msra.mxu1 %v8919_v8 }
0x3e59   :  { %7945 = vmatpush3.bf16.msra.mxu0 %v8962_v34  ;;  %7962 = vmatprep.subr.bf16.mxu1 %v11220_v0 }
0x3e5a   :  { %7946 = vmatprep.subr.bf16.mxu0 %v11220_v0 }
0x3e5b   :  { %v3725_v23 = vpop.permute.xlu0 %3724 }
0x3e5c   :  { %v3727_v24 = vmul.f32 %v9889_v46, %v3725_v23 }
0x3e5d   :  { %7947 = vmatpush3.bf16.msra.mxu0 %v8973_v38 }
0x3e5e   :  { %7948 = vmatprep.subr.bf16.mxu0 %v11220_v0  ;;  %v3728_v26 = vadd.f32 %v9895_v50, %v3727_v24 }
0x3e61   :  { %7949 = vmatpush3.bf16.msra.mxu0 %v8984_v41 }
0x3e62   :  { %7974 = vmatprep.subr.bf16.mxu0 %v11220_v0 }
0x3f13   :  { %v3690_v25 = vpop.f32.mrf.mxu1 }
0x3f14   :  { %v3691_v27 = vadd.f32 %v9943_v37, %v3690_v25  ;;  %v3770_v29 = vpop.f32.mrf.mxu0 }
0x3f15   :  { %v3776_v28 = vadd.f32 %v3770_v29, %v3728_v26  ;;  %v7932_v30 = vpop.f32.mrf.mxu1 }
0x3f16   :  { %8640 = vtanh.f32 %v3691_v27  ;;  %v7940_v31 = vpop.f32.mrf.mxu0  ;;  %v7036_v43 = vmul.f32 -1.442695, %v3691_v27 }
0x3f17   :  { %8642 = vtanh.f32 %v3776_v28  ;;  %v3693_v33 = vpop.f32.mrf.mxu1  ;;  %v7039_v45 = vmul.f32 -1.442695, %v3776_v28 }
0x3f18   :  { %v3773_v35 = vpop.f32.mrf.mxu0  ;;  %8644 = vpow2.f32 %v7036_v43 }
0x3f19   :  { %v7933_v36 = vpop.f32.mrf.mxu1  ;;  %8646 = vpow2.f32 %v7039_v45 }
0x3f1a   :  { %v7941_v39 = vpop.f32.mrf.mxu0 }
0x3f23   :  { %v8641_v40 = vpop.eup %8640 }
0x3f24   :  { %v8643_v42 = vpop.eup %8642  ;;  %3705 = vrot.lane.b32.xlu1 %v8641_v40, %s8808_s21 }
0x3f25   :  { %3786 = vrot.lane.b32.xlu0 %v8643_v42, %s8808_s21  ;;  %v8645_v47 = vpop.eup %8644 }
0x3f26   :  { %v8647_v48 = vpop.eup %8646  ;;  %v3699_v52 = vadd.f32 1.0, %v8645_v47 }
0x3f27   :  { %v3780_v54 = vadd.f32 1.0, %v8647_v48 }
0x3f28   :  { %8648 = vrcp.f32 %v3699_v52 }
0x3f29   :  { %8650 = vrcp.f32 %v3780_v54 }
0x3f35   :  { %v8649_v57 = vpop.eup %8648 }
0x3f36   :  { %v8651_v60 = vpop.eup %8650  ;;  %v3703_v1 = vmul.f32 %v8649_v57, %v9952_v14 }
0x3f37   :  { %v3784_v3 = vmul.f32 %v8651_v60, %v9954_v51 }
0x3f96   :  { %v3706_v58 = vpop.permute.xlu1 %3705 }
0x3f97   :  { %v3708_v61 = vmul.f32 %v8649_v57, %v3706_v58  ;;  %v3787_v62 = vpop.permute.xlu0 %3786 }
0x3f98   :  { %v3789_v63 = vmul.f32 %v8651_v60, %v3787_v62 }
0x3f99   :  { %3710 = vrot.lane.b32.xlu1 %v3708_v61, %s8809_s22 }
0x3f9a   :  { %3791 = vrot.lane.b32.xlu0 %v3789_v63, %s8809_s22 }
0x400b   :  { %v3711_v2 = vpop.permute.xlu1 %3710 }
0x400c   :  { %v9994_v5 = vadd.f32 %v3711_v2, %v3703_v1  ;;  %v3792_v6 = vpop.permute.xlu0 %3791 }
0x400d   :  { %v9996_v7 = vadd.f32 %v3792_v6, %v3784_v3  ;;  %v7047_v6 = vld [vmem:[%s11203_s0 + $0x64] sm:$0xf] }
0x400e   :  { %8652 = vtanh.f32 %v9994_v5 }
0x400f   :  { %8654 = vtanh.f32 %v9996_v7 }
0x401b   :  { %v8653_v44 = vpop.eup %8652 }
0x401c   :  { %v8655_v10 = vpop.eup %8654  ;;  %3716 = vrot.lane.b32.xlu1 %v8653_v44, %s8808_s21 }
0x401d   :  { %3797 = vrot.lane.b32.xlu0 %v8655_v10, %s8808_s21 }
0x408e   :  { %v3717_v11 = vpop.permute.xlu1 %3716 }
0x408f   :  { %v3719_v49 = vmul.f32 %v8649_v57, %v3717_v11  ;;  %v3798_v13 = vpop.permute.xlu0 %3797 }
0x4090   :  { %v3800_v14 = vmul.f32 %v8651_v60, %v3798_v13 }
0x4091   :  { %3806 = vrot.lane.b32.xlu0 %v3719_v49, %s8808_s21 }
0x4092   :  { %3802 = vrot.lane.b32.xlu1 %v3800_v14, %s8809_s22  ;;  %v3887_v51 = vpack.c.bf16 %v3800_v14, %v3800_v14 }
0x4095   :  { %3882 = vperm.xlu0 %8278, %v7042_v53  }
0x4096   :  { %3889 = vrot.lane.b32.xlu1 %v3887_v51, %s8809_s22 }
0x4103   :  { %v3807_v55 = vpop.permute.xlu0 %3806 }
0x4104   :  { %v3803_v15 = vpop.permute.xlu1 %3802 }
0x4105   :  { %v3809_v16 = vsel %vm95_vm1, %v3803_v15, %v3807_v55 }
0x4106   :  { %v3810_v17 = vpack.c.bf16 %v3809_v16, %v3809_v16 }
0x4108   :  { %7951 = vmatmul.mubr.msk.bf16.vlgmr.msra.gmra.mxu0 %vm176_vm2, %v3810_v17  ;;  %v3890_v56 = vpop.permute.xlu1 %3889 }
0x4109   :  { %7959 = vmatmul.mubr.msk.bf16.vlgmr.msra.gmra.mxu1 %vm95_vm1, %v3890_v56  ;;  %7975 = vmatpush3.bf16.msra.mxu0 %v8907_v4 }
0x410a   :  { %7963 = vmatpush3.bf16.msra.mxu1 %v8956_v32  ;;  %7976 = vmatprep.subr.bf16.mxu0 %v11220_v0 }
0x410b   :  { %7964 = vmatprep.subr.bf16.mxu1 %v11220_v0  ;;  %7970 = vmatprep.mubr.msk.bf16.mxu1 %vm8806_vm0, %v11220_v0 }
0x410c   :  { %7978 = vmatprep.mubr.msk.bf16.mxu0 %vm8806_vm0, %v11220_v0 }
0x410d   :  { %7977 = vmatpush3.bf16.msra.mxu0 %v8919_v8 }
0x410e   :  { %7965 = vmatpush3.bf16.msra.mxu1 %v8962_v34  ;;  %7982 = vmatprep.subr.bf16.mxu0 %v11220_v0 }
0x410f   :  { %7966 = vmatprep.subr.bf16.mxu1 %v11220_v0 }
0x4110   :  { %v3883_v59 = vpop.permute.xlu0 %3882 }
0x4111   :  { %v3885_v18 = vmul.f32 %v9889_v46, %v3883_v59 }
0x4112   :  { %7967 = vmatpush3.bf16.msra.mxu1 %v8973_v38 }
0x4113   :  { %7968 = vmatprep.subr.bf16.mxu1 %v11220_v0  ;;  %v3886_v20 = vadd.f32 %v9895_v50, %v3885_v18 }
0x4116   :  { %7969 = vmatpush3.bf16.msra.mxu1 %v8984_v41 }
0x4117   :  { %7994 = vmatprep.subr.bf16.mxu1 %v11220_v0 }
0x41c8   :  { %v3848_v19 = vpop.f32.mrf.mxu0 }
0x41c9   :  { %v3849_v9 = vadd.f32 %v9943_v37, %v3848_v19  ;;  %v3928_v12 = vpop.f32.mrf.mxu1 }
0x41ca   :  { %v3934_v21 = vadd.f32 %v3928_v12, %v3886_v20  ;;  %v7952_v22 = vpop.f32.mrf.mxu0 }
0x41cb   :  { %8656 = vtanh.f32 %v3849_v9  ;;  %v7960_v23 = vpop.f32.mrf.mxu1  ;;  %v7041_v30 = vmul.f32 -1.442695, %v3849_v9 }
0x41cc   :  { %8658 = vtanh.f32 %v3934_v21  ;;  %v3851_v24 = vpop.f32.mrf.mxu0  ;;  %v7044_v31 = vmul.f32 -1.442695, %v3934_v21 }
0x41cd   :  { %v3931_v25 = vpop.f32.mrf.mxu1  ;;  %8660 = vpow2.f32 %v7041_v30 }
0x41ce   :  { %v7953_v26 = vpop.f32.mrf.mxu0  ;;  %8662 = vpow2.f32 %v7044_v31 }
0x41cf   :  { %v7961_v27 = vpop.f32.mrf.mxu1 }
0x41d8   :  { %v8657_v29 = vpop.eup %8656 }
0x41d9   :  { %v8659_v28 = vpop.eup %8658  ;;  %3863 = vrot.lane.b32.xlu1 %v8657_v29, %s8808_s21 }
0x41da   :  { %3944 = vrot.lane.b32.xlu0 %v8659_v28, %s8808_s21  ;;  %v8661_v33 = vpop.eup %8660 }
0x41db   :  { %v8663_v35 = vpop.eup %8662  ;;  %v3857_v36 = vadd.f32 1.0, %v8661_v33 }
0x41dc   :  { %v3938_v39 = vadd.f32 1.0, %v8663_v35 }
0x41dd   :  { %8664 = vrcp.f32 %v3857_v36 }
0x41de   :  { %8666 = vrcp.f32 %v3938_v39 }
0x41ea   :  { %v8665_v40 = vpop.eup %8664 }
0x41eb   :  { %v8667_v43 = vpop.eup %8666  ;;  %v3861_v52 = vmul.f32 %v8665_v40, %v9994_v5 }
0x41ec   :  { %v3942_v57 = vmul.f32 %v8667_v43, %v9996_v7 }
0x424b   :  { %v3864_v42 = vpop.permute.xlu1 %3863 }
0x424c   :  { %v3866_v45 = vmul.f32 %v8665_v40, %v3864_v42  ;;  %v3945_v47 = vpop.permute.xlu0 %3944 }
0x424d   :  { %v3947_v48 = vmul.f32 %v8667_v43, %v3945_v47 }
0x424e   :  { %3868 = vrot.lane.b32.xlu1 %v3866_v45, %s8809_s22 }
0x424f   :  { %3949 = vrot.lane.b32.xlu0 %v3947_v48, %s8809_s22 }
0x42c0   :  { %v3869_v54 = vpop.permute.xlu1 %3868 }
0x42c1   :  { %v10036_v58 = vadd.f32 %v3869_v54, %v3861_v52  ;;  %v3950_v60 = vpop.permute.xlu0 %3949 }
0x42c2   :  { %v10038_v61 = vadd.f32 %v3950_v60, %v3942_v57  ;;  %v7052_v60 = vld [vmem:[%s11203_s0 + $0x68] sm:$0xf] }
0x42c3   :  { %8668 = vtanh.f32 %v10036_v58 }
0x42c4   :  { %8670 = vtanh.f32 %v10038_v61 }
0x42d0   :  { %v8669_v62 = vpop.eup %8668 }
0x42d1   :  { %v8671_v63 = vpop.eup %8670  ;;  %3874 = vrot.lane.b32.xlu1 %v8669_v62, %s8808_s21 }
0x42d2   :  { %3955 = vrot.lane.b32.xlu0 %v8671_v63, %s8808_s21 }
0x4343   :  { %v3875_v1 = vpop.permute.xlu1 %3874 }
0x4344   :  { %v3877_v2 = vmul.f32 %v8665_v40, %v3875_v1  ;;  %v3956_v3 = vpop.permute.xlu0 %3955 }
0x4345   :  { %v3958_v5 = vmul.f32 %v8667_v43, %v3956_v3 }
0x4346   :  { %3964 = vrot.lane.b32.xlu0 %v3877_v2, %s8808_s21 }
0x4347   :  { %3960 = vrot.lane.b32.xlu1 %v3958_v5, %s8809_s22  ;;  %v4045_v7 = vpack.c.bf16 %v3958_v5, %v3958_v5 }
0x434a   :  { %4040 = vperm.xlu0 %8278, %v7047_v6  }
0x434b   :  { %4047 = vrot.lane.b32.xlu1 %v4045_v7, %s8809_s22 }
0x43b8   :  { %v3965_v44 = vpop.permute.xlu0 %3964 }
0x43b9   :  { %v3961_v10 = vpop.permute.xlu1 %3960 }
0x43ba   :  { %v3967_v11 = vsel %vm95_vm1, %v3961_v10, %v3965_v44 }
0x43bb   :  { %v3968_v49 = vpack.c.bf16 %v3967_v11, %v3967_v11 }
0x43bd   :  { %7971 = vmatmul.mubr.msk.bf16.vlgmr.msra.gmra.mxu1 %vm176_vm2, %v3968_v49  ;;  %v4048_v13 = vpop.permute.xlu1 %4047 }
0x43be   :  { %7979 = vmatmul.mubr.msk.bf16.vlgmr.msra.gmra.mxu0 %vm95_vm1, %v4048_v13  ;;  %7995 = vmatpush3.bf16.msra.mxu1 %v8907_v4 }
0x43bf   :  { %7983 = vmatpush3.bf16.msra.mxu0 %v8956_v32  ;;  %7996 = vmatprep.subr.bf16.mxu1 %v11220_v0 }
0x43c0   :  { %7984 = vmatprep.subr.bf16.mxu0 %v11220_v0  ;;  %7990 = vmatprep.mubr.msk.bf16.mxu0 %vm8806_vm0, %v11220_v0 }
0x43c1   :  { %7998 = vmatprep.mubr.msk.bf16.mxu1 %vm8806_vm0, %v11220_v0 }
0x43c2   :  { %7997 = vmatpush3.bf16.msra.mxu1 %v8919_v8 }
0x43c3   :  { %7985 = vmatpush3.bf16.msra.mxu0 %v8962_v34  ;;  %8002 = vmatprep.subr.bf16.mxu1 %v11220_v0 }
0x43c4   :  { %7986 = vmatprep.subr.bf16.mxu0 %v11220_v0 }
0x43c5   :  { %v4041_v14 = vpop.permute.xlu0 %4040 }
0x43c6   :  { %v4043_v53 = vmul.f32 %v9889_v46, %v4041_v14 }
0x43c7   :  { %7987 = vmatpush3.bf16.msra.mxu0 %v8973_v38 }
0x43c8   :  { %7988 = vmatprep.subr.bf16.mxu0 %v11220_v0  ;;  %v4044_v55 = vadd.f32 %v9895_v50, %v4043_v53 }
0x43cb   :  { %7989 = vmatpush3.bf16.msra.mxu0 %v8984_v41 }
0x43cc   :  { %8014 = vmatprep.subr.bf16.mxu0 %v11220_v0 }
0x447d   :  { %v4006_v51 = vpop.f32.mrf.mxu1 }
0x447e   :  { %v4007_v15 = vadd.f32 %v9943_v37, %v4006_v51  ;;  %v4086_v16 = vpop.f32.mrf.mxu0 }
0x447f   :  { %v4092_v17 = vadd.f32 %v4086_v16, %v4044_v55  ;;  %v7972_v56 = vpop.f32.mrf.mxu1 }
0x4480   :  { %8672 = vtanh.f32 %v4007_v15  ;;  %v7980_v59 = vpop.f32.mrf.mxu0  ;;  %v7046_v22 = vmul.f32 -1.442695, %v4007_v15 }
0x4481   :  { %8674 = vtanh.f32 %v4092_v17  ;;  %v4009_v18 = vpop.f32.mrf.mxu1  ;;  %v7049_v23 = vmul.f32 -1.442695, %v4092_v17 }
0x4482   :  { %v4089_v19 = vpop.f32.mrf.mxu0  ;;  %8676 = vpow2.f32 %v7046_v22 }
0x4483   :  { %v7973_v20 = vpop.f32.mrf.mxu1  ;;  %8678 = vpow2.f32 %v7049_v23 }
0x4484   :  { %v7981_v9 = vpop.f32.mrf.mxu0 }
0x448d   :  { %v8673_v12 = vpop.eup %8672 }
0x448e   :  { %v8675_v21 = vpop.eup %8674  ;;  %4021 = vrot.lane.b32.xlu1 %v8673_v12, %s8808_s21 }
0x448f   :  { %4102 = vrot.lane.b32.xlu0 %v8675_v21, %s8808_s21  ;;  %v8677_v24 = vpop.eup %8676 }
0x4490   :  { %v8679_v25 = vpop.eup %8678  ;;  %v4015_v26 = vadd.f32 1.0, %v8677_v24 }
0x4491   :  { %v4096_v27 = vadd.f32 1.0, %v8679_v25 }
0x4492   :  { %8680 = vrcp.f32 %v4015_v26 }
0x4493   :  { %8682 = vrcp.f32 %v4096_v27 }
0x449f   :  { %v8681_v29 = vpop.eup %8680 }
0x44a0   :  { %v8683_v30 = vpop.eup %8682  ;;  %v4019_v36 = vmul.f32 %v8681_v29, %v10036_v58 }
0x44a1   :  { %v4100_v40 = vmul.f32 %v8683_v30, %v10038_v61 }
0x4500   :  { %v4022_v28 = vpop.permute.xlu1 %4021 }
0x4501   :  { %v4024_v31 = vmul.f32 %v8681_v29, %v4022_v28  ;;  %v4103_v33 = vpop.permute.xlu0 %4102 }
0x4502   :  { %v4105_v35 = vmul.f32 %v8683_v30, %v4103_v33 }
0x4503   :  { %4026 = vrot.lane.b32.xlu1 %v4024_v31, %s8809_s22 }
0x4504   :  { %4107 = vrot.lane.b32.xlu0 %v4105_v35, %s8809_s22 }
0x4575   :  { %v4027_v39 = vpop.permute.xlu1 %4026 }
0x4576   :  { %v10078_v42 = vadd.f32 %v4027_v39, %v4019_v36  ;;  %v4108_v43 = vpop.permute.xlu0 %4107 }
0x4577   :  { %v10080_v45 = vadd.f32 %v4108_v43, %v4100_v40  ;;  %v7057_v43 = vld [vmem:[%s11203_s0 + $0x6c] sm:$0xf] }
0x4578   :  { %8684 = vtanh.f32 %v10078_v42 }
0x4579   :  { %8686 = vtanh.f32 %v10080_v45 }
0x4585   :  { %v8685_v47 = vpop.eup %8684 }
0x4586   :  { %v8687_v48 = vpop.eup %8686  ;;  %4032 = vrot.lane.b32.xlu1 %v8685_v47, %s8808_s21 }
0x4587   :  { %4113 = vrot.lane.b32.xlu0 %v8687_v48, %s8808_s21 }
0x45f8   :  { %v4033_v52 = vpop.permute.xlu1 %4032 }
0x45f9   :  { %v4035_v54 = vmul.f32 %v8681_v29, %v4033_v52  ;;  %v4114_v57 = vpop.permute.xlu0 %4113 }
0x45fa   :  { %v4116_v58 = vmul.f32 %v8683_v30, %v4114_v57 }
0x45fb   :  { %4122 = vrot.lane.b32.xlu0 %v4035_v54, %s8808_s21 }
0x45fc   :  { %4118 = vrot.lane.b32.xlu1 %v4116_v58, %s8809_s22  ;;  %v4203_v61 = vpack.c.bf16 %v4116_v58, %v4116_v58 }
0x45ff   :  { %4198 = vperm.xlu0 %8278, %v7052_v60  }
0x4600   :  { %4205 = vrot.lane.b32.xlu1 %v4203_v61, %s8809_s22 }
0x466d   :  { %v4123_v62 = vpop.permute.xlu0 %4122 }
0x466e   :  { %v4119_v63 = vpop.permute.xlu1 %4118 }
0x466f   :  { %v4125_v1 = vsel %vm95_vm1, %v4119_v63, %v4123_v62 }
0x4670   :  { %v4126_v2 = vpack.c.bf16 %v4125_v1, %v4125_v1 }
0x4672   :  { %7991 = vmatmul.mubr.msk.bf16.vlgmr.msra.gmra.mxu0 %vm176_vm2, %v4126_v2  ;;  %v4206_v3 = vpop.permute.xlu1 %4205 }
0x4673   :  { %7999 = vmatmul.mubr.msk.bf16.vlgmr.msra.gmra.mxu1 %vm95_vm1, %v4206_v3  ;;  %8015 = vmatpush3.bf16.msra.mxu0 %v8907_v4 }
0x4674   :  { %8003 = vmatpush3.bf16.msra.mxu1 %v8956_v32  ;;  %8016 = vmatprep.subr.bf16.mxu0 %v11220_v0 }
0x4675   :  { %8004 = vmatprep.subr.bf16.mxu1 %v11220_v0  ;;  %8010 = vmatprep.mubr.msk.bf16.mxu1 %vm8806_vm0, %v11220_v0 }
0x4676   :  { %8018 = vmatprep.mubr.msk.bf16.mxu0 %vm8806_vm0, %v11220_v0 }
0x4677   :  { %8017 = vmatpush3.bf16.msra.mxu0 %v8919_v8 }
0x4678   :  { %8005 = vmatpush3.bf16.msra.mxu1 %v8962_v34  ;;  %8022 = vmatprep.subr.bf16.mxu0 %v11220_v0 }
0x4679   :  { %8006 = vmatprep.subr.bf16.mxu1 %v11220_v0 }
0x467a   :  { %v4199_v5 = vpop.permute.xlu0 %4198 }
0x467b   :  { %v4201_v6 = vmul.f32 %v9889_v46, %v4199_v5 }
0x467c   :  { %8007 = vmatpush3.bf16.msra.mxu1 %v8973_v38 }
0x467d   :  { %8008 = vmatprep.subr.bf16.mxu1 %v11220_v0  ;;  %v4202_v44 = vadd.f32 %v9895_v50, %v4201_v6 }
0x4680   :  { %8009 = vmatpush3.bf16.msra.mxu1 %v8984_v41 }
0x4681   :  { %8034 = vmatprep.subr.bf16.mxu1 %v11220_v0 }
0x4732   :  { %v4164_v7 = vpop.f32.mrf.mxu0 }
0x4733   :  { %v4165_v10 = vadd.f32 %v9943_v37, %v4164_v7  ;;  %v4244_v11 = vpop.f32.mrf.mxu1 }
0x4734   :  { %v4250_v49 = vadd.f32 %v4244_v11, %v4202_v44  ;;  %v7992_v13 = vpop.f32.mrf.mxu0 }
0x4735   :  { %8688 = vtanh.f32 %v4165_v10  ;;  %v8000_v14 = vpop.f32.mrf.mxu1  ;;  %v7051_v56 = vmul.f32 -1.442695, %v4165_v10 }
0x4736   :  { %8690 = vtanh.f32 %v4250_v49  ;;  %v4167_v53 = vpop.f32.mrf.mxu0  ;;  %v7054_v59 = vmul.f32 -1.442695, %v4250_v49 }
0x4737   :  { %v4247_v51 = vpop.f32.mrf.mxu1  ;;  %8692 = vpow2.f32 %v7051_v56 }
0x4738   :  { %v7993_v55 = vpop.f32.mrf.mxu0  ;;  %8694 = vpow2.f32 %v7054_v59 }
0x4739   :  { %v8001_v15 = vpop.f32.mrf.mxu1 }
0x4742   :  { %v8689_v16 = vpop.eup %8688 }
0x4743   :  { %v8691_v17 = vpop.eup %8690  ;;  %4179 = vrot.lane.b32.xlu1 %v8689_v16, %s8808_s21 }
0x4744   :  { %4260 = vrot.lane.b32.xlu0 %v8691_v17, %s8808_s21  ;;  %v8693_v18 = vpop.eup %8692 }
0x4745   :  { %v8695_v19 = vpop.eup %8694  ;;  %v4173_v20 = vadd.f32 1.0, %v8693_v18 }
0x4746   :  { %v4254_v9 = vadd.f32 1.0, %v8695_v19 }
0x4747   :  { %8696 = vrcp.f32 %v4173_v20 }
0x4748   :  { %8698 = vrcp.f32 %v4254_v9 }
0x4754   :  { %v8697_v12 = vpop.eup %8696 }
0x4755   :  { %v8699_v22 = vpop.eup %8698  ;;  %v4177_v26 = vmul.f32 %v8697_v12, %v10078_v42 }
0x4756   :  { %v4258_v29 = vmul.f32 %v8699_v22, %v10080_v45 }
0x47b5   :  { %v4180_v21 = vpop.permute.xlu1 %4179 }
0x47b6   :  { %v4182_v23 = vmul.f32 %v8697_v12, %v4180_v21  ;;  %v4261_v24 = vpop.permute.xlu0 %4260 }
0x47b7   :  { %v4263_v25 = vmul.f32 %v8699_v22, %v4261_v24 }
0x47b8   :  { %4184 = vrot.lane.b32.xlu1 %v4182_v23, %s8809_s22 }
0x47b9   :  { %4265 = vrot.lane.b32.xlu0 %v4263_v25, %s8809_s22 }
0x482a   :  { %v4185_v27 = vpop.permute.xlu1 %4184 }
0x482b   :  { %v10120_v28 = vadd.f32 %v4185_v27, %v4177_v26  ;;  %v4266_v30 = vpop.permute.xlu0 %4265 }
0x482c   :  { %v10122_v31 = vadd.f32 %v4266_v30, %v4258_v29  ;;  %v7062_v29 = vld [vmem:[%s11203_s0 + $0x70] sm:$0xf] }
0x482d   :  { %8700 = vtanh.f32 %v10120_v28 }
0x482e   :  { %8702 = vtanh.f32 %v10122_v31 }
0x483a   :  { %v8701_v33 = vpop.eup %8700 }
0x483b   :  { %v8703_v35 = vpop.eup %8702  ;;  %4190 = vrot.lane.b32.xlu1 %v8701_v33, %s8808_s21 }
0x483c   :  { %4271 = vrot.lane.b32.xlu0 %v8703_v35, %s8808_s21 }
0x48ad   :  { %v4191_v36 = vpop.permute.xlu1 %4190 }
0x48ae   :  { %v4193_v39 = vmul.f32 %v8697_v12, %v4191_v36  ;;  %v4272_v40 = vpop.permute.xlu0 %4271 }
0x48af   :  { %v4274_v42 = vmul.f32 %v8699_v22, %v4272_v40  ;;  %v10198_v40 = vld [vmem:[%s11204_s2] ss:$0 sm:$0xff] }
0x48b0   :  { %4280 = vrot.lane.b32.xlu0 %v4193_v39, %s8808_s21 }
0x48b1   :  { %4276 = vrot.lane.b32.xlu1 %v4274_v42, %s8809_s22  ;;  %v4361_v45 = vpack.c.bf16 %v4274_v42, %v4274_v42 }
0x48b4   :  { %4356 = vperm.xlu0 %8278, %v7057_v43  }
0x48b5   :  { %4363 = vrot.lane.b32.xlu1 %v4361_v45, %s8809_s22  ;;  %v10204_v45 = vld [vmem:[%s11205_s4] ss:$0 sm:$0xff] }
0x4922   :  { %v4281_v47 = vpop.permute.xlu0 %4280 }
0x4923   :  { %v4277_v48 = vpop.permute.xlu1 %4276 }
0x4924   :  { %v4283_v52 = vsel %vm95_vm1, %v4277_v48, %v4281_v47 }
0x4925   :  { %v4284_v54 = vpack.c.bf16 %v4283_v52, %v4283_v52 }
0x4927   :  { %8011 = vmatmul.mubr.msk.bf16.vlgmr.msra.gmra.mxu1 %vm176_vm2, %v4284_v54  ;;  %v4364_v57 = vpop.permute.xlu1 %4363 }
0x4928   :  { %8019 = vmatmul.mubr.msk.bf16.vlgmr.msra.gmra.mxu0 %vm95_vm1, %v4364_v57  ;;  %8035 = vmatpush3.bf16.msra.mxu1 %v8907_v4 }
0x4929   :  { %8023 = vmatpush3.bf16.msra.mxu0 %v8956_v32  ;;  %8036 = vmatprep.subr.bf16.mxu1 %v11220_v0 }
0x492a   :  { %8024 = vmatprep.subr.bf16.mxu0 %v11220_v0  ;;  %8030 = vmatprep.mubr.msk.bf16.mxu0 %vm8806_vm0, %v11220_v0 }
0x492b   :  { %8038 = vmatprep.mubr.msk.bf16.mxu1 %vm8806_vm0, %v11220_v0 }
0x492c   :  { %8037 = vmatpush3.bf16.msra.mxu1 %v8919_v8 }
0x492d   :  { %8025 = vmatpush3.bf16.msra.mxu0 %v8962_v34  ;;  %8042 = vmatprep.subr.bf16.mxu1 %v11220_v0 }
0x492e   :  { %8026 = vmatprep.subr.bf16.mxu0 %v11220_v0 }
0x492f   :  { %v4357_v58 = vpop.permute.xlu0 %4356 }
0x4930   :  { %v4359_v60 = vmul.f32 %v9889_v46, %v4357_v58 }
0x4931   :  { %8027 = vmatpush3.bf16.msra.mxu0 %v8973_v38 }
0x4932   :  { %8028 = vmatprep.subr.bf16.mxu0 %v11220_v0  ;;  %v4360_v62 = vadd.f32 %v9895_v50, %v4359_v60 }
0x4935   :  { %8029 = vmatpush3.bf16.msra.mxu0 %v8984_v41 }
0x4936   :  { %8054 = vmatprep.subr.bf16.mxu0 %v11220_v0 }
0x49e7   :  { %v4322_v61 = vpop.f32.mrf.mxu1 }
0x49e8   :  { %v4323_v63 = vadd.f32 %v9943_v37, %v4322_v61  ;;  %v4402_v1 = vpop.f32.mrf.mxu0 }
0x49e9   :  { %v4408_v2 = vadd.f32 %v4402_v1, %v4360_v62  ;;  %v8012_v3 = vpop.f32.mrf.mxu1 }
0x49ea   :  { %8704 = vtanh.f32 %v4323_v63  ;;  %v8020_v5 = vpop.f32.mrf.mxu0  ;;  %v7056_v46 = vmul.f32 -1.442695, %v4323_v63 }
0x49eb   :  { %8706 = vtanh.f32 %v4408_v2  ;;  %v4325_v6 = vpop.f32.mrf.mxu1  ;;  %v7059_v50 = vmul.f32 -1.442695, %v4408_v2 }
0x49ec   :  { %v4405_v7 = vpop.f32.mrf.mxu0  ;;  %8708 = vpow2.f32 %v7056_v46 }
0x49ed   :  { %v8013_v44 = vpop.f32.mrf.mxu1  ;;  %8710 = vpow2.f32 %v7059_v50 }
0x49ee   :  { %v8021_v10 = vpop.f32.mrf.mxu0 }
0x49f7   :  { %v8705_v11 = vpop.eup %8704 }
0x49f8   :  { %v8707_v49 = vpop.eup %8706  ;;  %4337 = vrot.lane.b32.xlu1 %v8705_v11, %s8808_s21 }
0x49f9   :  { %4418 = vrot.lane.b32.xlu0 %v8707_v49, %s8808_s21  ;;  %v8709_v13 = vpop.eup %8708 }
0x49fa   :  { %v8711_v14 = vpop.eup %8710  ;;  %v4331_v53 = vadd.f32 1.0, %v8709_v13 }
0x49fb   :  { %v4412_v51 = vadd.f32 1.0, %v8711_v14 }
0x49fc   :  { %8712 = vrcp.f32 %v4331_v53 }
0x49fd   :  { %8714 = vrcp.f32 %v4412_v51 }
0x4a09   :  { %v8713_v55 = vpop.eup %8712 }
0x4a0a   :  { %v8715_v16 = vpop.eup %8714  ;;  %v4335_v18 = vmul.f32 %v8713_v55, %v10120_v28 }
0x4a0b   :  { %v4416_v20 = vmul.f32 %v8715_v16, %v10122_v31 }
0x4a6a   :  { %v4338_v15 = vpop.permute.xlu1 %4337 }
0x4a6b   :  { %v4340_v17 = vmul.f32 %v8713_v55, %v4338_v15  ;;  %v4419_v56 = vpop.permute.xlu0 %4418 }
0x4a6c   :  { %v4421_v59 = vmul.f32 %v8715_v16, %v4419_v56 }
0x4a6d   :  { %4342 = vrot.lane.b32.xlu1 %v4340_v17, %s8809_s22 }
0x4a6e   :  { %4423 = vrot.lane.b32.xlu0 %v4421_v59, %s8809_s22 }
0x4adf   :  { %v4343_v19 = vpop.permute.xlu1 %4342 }
0x4ae0   :  { %v10162_v9 = vadd.f32 %v4343_v19, %v4335_v18  ;;  %v4424_v12 = vpop.permute.xlu0 %4423 }
0x4ae1   :  { %v10164_v21 = vadd.f32 %v4424_v12, %v4416_v20 }
0x4ae2   :  { %8716 = vtanh.f32 %v10162_v9 }
0x4ae3   :  { %8718 = vtanh.f32 %v10164_v21 }
0x4aef   :  { %v8717_v22 = vpop.eup %8716 }
0x4af0   :  { %v8719_v23 = vpop.eup %8718  ;;  %4348 = vrot.lane.b32.xlu1 %v8717_v22, %s8808_s21 }
0x4af1   :  { %4429 = vrot.lane.b32.xlu0 %v8719_v23, %s8808_s21 }
0x4b62   :  { %v4349_v24 = vpop.permute.xlu1 %4348 }
0x4b63   :  { %v4351_v25 = vmul.f32 %v8713_v55, %v4349_v24  ;;  %v4430_v26 = vpop.permute.xlu0 %4429 }
0x4b64   :  { %v4432_v27 = vmul.f32 %v8715_v16, %v4430_v26 }
0x4b65   :  { %4438 = vrot.lane.b32.xlu0 %v4351_v25, %s8808_s21 }
0x4b66   :  { %4434 = vrot.lane.b32.xlu1 %v4432_v27, %s8809_s22  ;;  %v4519_v28 = vpack.c.bf16 %v4432_v27, %v4432_v27 }
0x4b69   :  { %4514 = vperm.xlu0 %8278, %v7062_v29  }
0x4b6a   :  { %4521 = vrot.lane.b32.xlu1 %v4519_v28, %s8809_s22 }
0x4bd7   :  { %v4439_v30 = vpop.permute.xlu0 %4438 }
0x4bd8   :  { %v4435_v31 = vpop.permute.xlu1 %4434 }
0x4bd9   :  { %v4441_v33 = vsel %vm95_vm1, %v4435_v31, %v4439_v30  ;;  %v10252_v30 = vld [vmem:[%s11207_s6] ss:$0 sm:$0xff] }
0x4bda   :  { %v4442_v35 = vpack.c.bf16 %v4441_v33, %v4441_v33 }
0x4bdc   :  { %8031 = vmatmul.mubr.msk.bf16.vlgmr.msra.gmra.mxu0 %vm176_vm2, %v4442_v35  ;;  %v4522_v36 = vpop.permute.xlu1 %4521 }
0x4bdd   :  { %8039 = vmatmul.mubr.msk.bf16.vlgmr.msra.gmra.mxu1 %vm95_vm1, %v4522_v36  ;;  %8055 = vmatpush3.bf16.msra.mxu0 %v8907_v4 }
0x4bde   :  { %8043 = vmatpush3.bf16.msra.mxu1 %v8956_v32  ;;  %8056 = vmatprep.subr.bf16.mxu0 %v11220_v0 }
0x4bdf   :  { %8044 = vmatprep.subr.bf16.mxu1 %v11220_v0  ;;  %8050 = vmatprep.mubr.msk.bf16.mxu1 %vm8806_vm0, %v11220_v0 }
0x4be0   :  { %8058 = vmatprep.mubr.msk.bf16.mxu0 %vm8806_vm0, %v11220_v0 }
0x4be1   :  { %8057 = vmatpush3.bf16.msra.mxu0 %v8919_v8 }
0x4be2   :  { %8045 = vmatpush3.bf16.msra.mxu1 %v8962_v34  ;;  %8062 = vmatprep.subr.bf16.mxu0 %v11220_v0 }
0x4be3   :  { %8046 = vmatprep.subr.bf16.mxu1 %v11220_v0 }
0x4be4   :  { %v4515_v39 = vpop.permute.xlu0 %4514 }
0x4be5   :  { %v4517_v42 = vmul.f32 %v10198_v40, %v4515_v39 }
0x4be6   :  { %8047 = vmatpush3.bf16.msra.mxu1 %v8973_v38 }
0x4be7   :  { %8048 = vmatprep.subr.bf16.mxu1 %v11220_v0  ;;  %v4518_v47 = vadd.f32 %v10204_v45, %v4517_v42 }
0x4bea   :  { %8049 = vmatpush3.bf16.msra.mxu1 %v8984_v41 }
0x4beb   :  { %8074 = vmatprep.subr.bf16.mxu1 %v11220_v0 }
0x4c9c   :  { %v4480_v43 = vpop.f32.mrf.mxu0 }
0x4c9d   :  { %v4481_v48 = vadd.f32 %v9943_v37, %v4480_v43  ;;  %v4560_v52 = vpop.f32.mrf.mxu1 }
0x4c9e   :  { %v4566_v54 = vadd.f32 %v4560_v52, %v4518_v47  ;;  %v8032_v57 = vpop.f32.mrf.mxu0 }
0x4c9f   :  { %8720 = vtanh.f32 %v4481_v48  ;;  %v8040_v58 = vpop.f32.mrf.mxu1  ;;  %v7061_v3 = vmul.f32 -1.442695, %v4481_v48 }
0x4ca0   :  { %8722 = vtanh.f32 %v4566_v54  ;;  %v4483_v60 = vpop.f32.mrf.mxu0  ;;  %v7064_v5 = vmul.f32 -1.442695, %v4566_v54 }
0x4ca1   :  { %v4563_v61 = vpop.f32.mrf.mxu1  ;;  %8724 = vpow2.f32 %v7061_v3 }
0x4ca2   :  { %v8033_v62 = vpop.f32.mrf.mxu0  ;;  %8726 = vpow2.f32 %v7064_v5 }
0x4ca3   :  { %v8041_v63 = vpop.f32.mrf.mxu1 }
0x4cac   :  { %v8721_v1 = vpop.eup %8720 }
0x4cad   :  { %v8723_v2 = vpop.eup %8722  ;;  %4495 = vrot.lane.b32.xlu1 %v8721_v1, %s8808_s21 }
0x4cae   :  { %4576 = vrot.lane.b32.xlu0 %v8723_v2, %s8808_s21  ;;  %v8725_v37 = vpop.eup %8724 }
0x4caf   :  { %v8727_v6 = vpop.eup %8726  ;;  %v4489_v7 = vadd.f32 1.0, %v8725_v37 }
0x4cb0   :  { %v4570_v44 = vadd.f32 1.0, %v8727_v6 }
0x4cb1   :  { %8728 = vrcp.f32 %v4489_v7 }
0x4cb2   :  { %8730 = vrcp.f32 %v4570_v44 }
0x4cbe   :  { %v8729_v10 = vpop.eup %8728 }
0x4cbf   :  { %v8731_v49 = vpop.eup %8730  ;;  %v4493_v14 = vmul.f32 %v8729_v10, %v10162_v9  ;;  %v7067_v9 = vld [vmem:[%s11203_s0 + $0x74] sm:$0xf] }
0x4cc0   :  { %v4574_v51 = vmul.f32 %v8731_v49, %v10164_v21 }
0x4d1f   :  { %v4496_v11 = vpop.permute.xlu1 %4495 }
0x4d20   :  { %v4498_v46 = vmul.f32 %v8729_v10, %v4496_v11  ;;  %v4577_v50 = vpop.permute.xlu0 %4576 }
0x4d21   :  { %v4579_v13 = vmul.f32 %v8731_v49, %v4577_v50 }
0x4d22   :  { %4500 = vrot.lane.b32.xlu1 %v4498_v46, %s8809_s22 }
0x4d23   :  { %4581 = vrot.lane.b32.xlu0 %v4579_v13, %s8809_s22 }
0x4d94   :  { %v4501_v53 = vpop.permute.xlu1 %4500 }
0x4d95   :  { %v10214_v55 = vadd.f32 %v4501_v53, %v4493_v14  ;;  %v4582_v15 = vpop.permute.xlu0 %4581 }
0x4d96   :  { %v10216_v16 = vadd.f32 %v4582_v15, %v4574_v51  ;;  %v7072_v15 = vld [vmem:[%s11203_s0 + $0x78] sm:$0xf] }
0x4d97   :  { %8732 = vtanh.f32 %v10214_v55 }
0x4d98   :  { %8734 = vtanh.f32 %v10216_v16 }
0x4da4   :  { %v8733_v17 = vpop.eup %8732 }
0x4da5   :  { %v8735_v56 = vpop.eup %8734  ;;  %4506 = vrot.lane.b32.xlu1 %v8733_v17, %s8808_s21 }
0x4da6   :  { %4587 = vrot.lane.b32.xlu0 %v8735_v56, %s8808_s21 }
0x4e17   :  { %v4507_v59 = vpop.permute.xlu1 %4506 }
0x4e18   :  { %v4509_v18 = vmul.f32 %v8729_v10, %v4507_v59  ;;  %v4588_v19 = vpop.permute.xlu0 %4587 }
0x4e19   :  { %v4590_v20 = vmul.f32 %v8731_v49, %v4588_v19 }
0x4e1a   :  { %4596 = vrot.lane.b32.xlu0 %v4509_v18, %s8808_s21 }
0x4e1b   :  { %4592 = vrot.lane.b32.xlu1 %v4590_v20, %s8809_s22  ;;  %v4677_v12 = vpack.c.bf16 %v4590_v20, %v4590_v20 }
0x4e1e   :  { %4672 = vperm.xlu0 %8278, %v7067_v9  }
0x4e1f   :  { %4679 = vrot.lane.b32.xlu1 %v4677_v12, %s8809_s22 }
0x4e8c   :  { %v4597_v21 = vpop.permute.xlu0 %4596 }
0x4e8d   :  { %v4593_v22 = vpop.permute.xlu1 %4592 }
0x4e8e   :  { %v4599_v23 = vsel %vm95_vm1, %v4593_v22, %v4597_v21 }
0x4e8f   :  { %v4600_v24 = vpack.c.bf16 %v4599_v23, %v4599_v23 }
0x4e91   :  { %8051 = vmatmul.mubr.msk.bf16.vlgmr.msra.gmra.mxu1 %vm176_vm2, %v4600_v24  ;;  %v4680_v25 = vpop.permute.xlu1 %4679 }
0x4e92   :  { %8059 = vmatmul.mubr.msk.bf16.vlgmr.msra.gmra.mxu0 %vm95_vm1, %v4680_v25  ;;  %8075 = vmatpush3.bf16.msra.mxu1 %v8907_v4 }
0x4e93   :  { %8063 = vmatpush3.bf16.msra.mxu0 %v8956_v32  ;;  %8076 = vmatprep.subr.bf16.mxu1 %v11220_v0 }
0x4e94   :  { %8064 = vmatprep.subr.bf16.mxu0 %v11220_v0  ;;  %8070 = vmatprep.mubr.msk.bf16.mxu0 %vm8806_vm0, %v11220_v0 }
0x4e95   :  { %8078 = vmatprep.mubr.msk.bf16.mxu1 %vm8806_vm0, %v11220_v0 }
0x4e96   :  { %8077 = vmatpush3.bf16.msra.mxu1 %v8919_v8 }
0x4e97   :  { %8065 = vmatpush3.bf16.msra.mxu0 %v8962_v34  ;;  %8082 = vmatprep.subr.bf16.mxu1 %v11220_v0 }
0x4e98   :  { %8066 = vmatprep.subr.bf16.mxu0 %v11220_v0 }
0x4e99   :  { %v4673_v26 = vpop.permute.xlu0 %4672 }
0x4e9a   :  { %v4675_v27 = vmul.f32 %v10198_v40, %v4673_v26 }
0x4e9b   :  { %8067 = vmatpush3.bf16.msra.mxu0 %v8973_v38 }
0x4e9c   :  { %8068 = vmatprep.subr.bf16.mxu0 %v11220_v0  ;;  %v4676_v28 = vadd.f32 %v10204_v45, %v4675_v27 }
0x4e9f   :  { %8069 = vmatpush3.bf16.msra.mxu0 %v8984_v41 }
0x4ea0   :  { %8094 = vmatprep.subr.bf16.mxu0 %v11220_v0 }
0x4f51   :  { %v4638_v29 = vpop.f32.mrf.mxu1 }
0x4f52   :  { %v4639_v31 = vadd.f32 %v10252_v30, %v4638_v29  ;;  %v4718_v33 = vpop.f32.mrf.mxu0 }
0x4f53   :  { %v4724_v35 = vadd.f32 %v4718_v33, %v4676_v28  ;;  %v8052_v36 = vpop.f32.mrf.mxu1 }
0x4f54   :  { %8736 = vtanh.f32 %v4639_v31  ;;  %v8060_v39 = vpop.f32.mrf.mxu0  ;;  %v7066_v57 = vmul.f32 -1.442695, %v4639_v31 }
0x4f55   :  { %8738 = vtanh.f32 %v4724_v35  ;;  %v4641_v42 = vpop.f32.mrf.mxu1  ;;  %v7069_v58 = vmul.f32 -1.442695, %v4724_v35 }
0x4f56   :  { %v4721_v43 = vpop.f32.mrf.mxu0  ;;  %8740 = vpow2.f32 %v7066_v57 }
0x4f57   :  { %v8053_v47 = vpop.f32.mrf.mxu1  ;;  %8742 = vpow2.f32 %v7069_v58 }
0x4f58   :  { %v8061_v48 = vpop.f32.mrf.mxu0 }
0x4f61   :  { %v8737_v52 = vpop.eup %8736 }
0x4f62   :  { %v8739_v54 = vpop.eup %8738  ;;  %4653 = vrot.lane.b32.xlu1 %v8737_v52, %s8808_s21 }
0x4f63   :  { %4734 = vrot.lane.b32.xlu0 %v8739_v54, %s8808_s21  ;;  %v8741_v60 = vpop.eup %8740 }
0x4f64   :  { %v8743_v61 = vpop.eup %8742  ;;  %v4647_v62 = vadd.f32 1.0, %v8741_v60 }
0x4f65   :  { %v4728_v63 = vadd.f32 1.0, %v8743_v61 }
0x4f66   :  { %8744 = vrcp.f32 %v4647_v62 }
0x4f67   :  { %8746 = vrcp.f32 %v4728_v63 }
0x4f73   :  { %v8745_v1 = vpop.eup %8744 }
0x4f74   :  { %v8747_v3 = vpop.eup %8746  ;;  %v4651_v7 = vmul.f32 %v8745_v1, %v10214_v55 }
0x4f75   :  { %v4732_v10 = vmul.f32 %v8747_v3, %v10216_v16 }
0x4fd4   :  { %v4654_v2 = vpop.permute.xlu1 %4653 }
0x4fd5   :  { %v4656_v5 = vmul.f32 %v8745_v1, %v4654_v2  ;;  %v4735_v37 = vpop.permute.xlu0 %4734 }
0x4fd6   :  { %v4737_v6 = vmul.f32 %v8747_v3, %v4735_v37 }
0x4fd7   :  { %4658 = vrot.lane.b32.xlu1 %v4656_v5, %s8809_s22 }
0x4fd8   :  { %4739 = vrot.lane.b32.xlu0 %v4737_v6, %s8809_s22 }
0x5049   :  { %v4659_v44 = vpop.permute.xlu1 %4658 }
0x504a   :  { %v10261_v11 = vadd.f32 %v4659_v44, %v4651_v7  ;;  %v4740_v49 = vpop.permute.xlu0 %4739 }
0x504b   :  { %v10263_v46 = vadd.f32 %v4740_v49, %v4732_v10  ;;  %v7077_v10 = vld [vmem:[%s11203_s0 + $0x7c] sm:$0xf] }
0x504c   :  { %8748 = vtanh.f32 %v10261_v11 }
0x504d   :  { %8750 = vtanh.f32 %v10263_v46 }
0x5059   :  { %v8749_v50 = vpop.eup %8748 }
0x505a   :  { %v8751_v13 = vpop.eup %8750  ;;  %4664 = vrot.lane.b32.xlu1 %v8749_v50, %s8808_s21 }
0x505b   :  { %4745 = vrot.lane.b32.xlu0 %v8751_v13, %s8808_s21 }
0x50cc   :  { %v4665_v14 = vpop.permute.xlu1 %4664 }
0x50cd   :  { %v4667_v53 = vmul.f32 %v8745_v1, %v4665_v14  ;;  %v4746_v51 = vpop.permute.xlu0 %4745 }
0x50ce   :  { %v4748_v55 = vmul.f32 %v8747_v3, %v4746_v51 }
0x50cf   :  { %4754 = vrot.lane.b32.xlu0 %v4667_v53, %s8808_s21 }
0x50d0   :  { %4750 = vrot.lane.b32.xlu1 %v4748_v55, %s8809_s22  ;;  %v4835_v16 = vpack.c.bf16 %v4748_v55, %v4748_v55 }
0x50d3   :  { %4830 = vperm.xlu0 %8278, %v7072_v15  }
0x50d4   :  { %4837 = vrot.lane.b32.xlu1 %v4835_v16, %s8809_s22 }
0x5141   :  { %v4755_v17 = vpop.permute.xlu0 %4754 }
0x5142   :  { %v4751_v56 = vpop.permute.xlu1 %4750 }
0x5143   :  { %v4757_v59 = vsel %vm95_vm1, %v4751_v56, %v4755_v17 }
0x5144   :  { %v4758_v18 = vpack.c.bf16 %v4757_v59, %v4757_v59 }
0x5146   :  { %8071 = vmatmul.mubr.msk.bf16.vlgmr.msra.gmra.mxu0 %vm176_vm2, %v4758_v18  ;;  %v4838_v19 = vpop.permute.xlu1 %4837 }
0x5147   :  { %8079 = vmatmul.mubr.msk.bf16.vlgmr.msra.gmra.mxu1 %vm95_vm1, %v4838_v19  ;;  %8095 = vmatpush3.bf16.msra.mxu0 %v8907_v4 }
0x5148   :  { %8083 = vmatpush3.bf16.msra.mxu1 %v8956_v32  ;;  %8096 = vmatprep.subr.bf16.mxu0 %v11220_v0 }
0x5149   :  { %8084 = vmatprep.subr.bf16.mxu1 %v11220_v0  ;;  %8090 = vmatprep.mubr.msk.bf16.mxu1 %vm8806_vm0, %v11220_v0 }
0x514a   :  { %8098 = vmatprep.mubr.msk.bf16.mxu0 %vm8806_vm0, %v11220_v0 }
0x514b   :  { %8097 = vmatpush3.bf16.msra.mxu0 %v8919_v8 }
0x514c   :  { %8085 = vmatpush3.bf16.msra.mxu1 %v8962_v34  ;;  %8102 = vmatprep.subr.bf16.mxu0 %v11220_v0 }
0x514d   :  { %8086 = vmatprep.subr.bf16.mxu1 %v11220_v0 }
0x514e   :  { %v4831_v4 = vpop.permute.xlu0 %4830 }
0x514f   :  { %v4833_v20 = vmul.f32 %v10198_v40, %v4831_v4 }
0x5150   :  { %8087 = vmatpush3.bf16.msra.mxu1 %v8973_v38 }
0x5151   :  { %8088 = vmatprep.subr.bf16.mxu1 %v11220_v0  ;;  %v4834_v12 = vadd.f32 %v10204_v45, %v4833_v20 }
0x5154   :  { %8089 = vmatpush3.bf16.msra.mxu1 %v8984_v41 }
0x5206   :  { %v4796_v9 = vpop.f32.mrf.mxu0 }
0x5207   :  { %v4797_v8 = vadd.f32 %v10252_v30, %v4796_v9  ;;  %v4876_v21 = vpop.f32.mrf.mxu1 }
0x5208   :  { %v4882_v22 = vadd.f32 %v4876_v21, %v4834_v12  ;;  %v8072_v23 = vpop.f32.mrf.mxu0 }
0x5209   :  { %8752 = vtanh.f32 %v4797_v8  ;;  %v8080_v24 = vpop.f32.mrf.mxu1  ;;  %v7071_v33 = vmul.f32 -1.442695, %v4797_v8 }
0x520a   :  { %8754 = vtanh.f32 %v4882_v22  ;;  %v4799_v25 = vpop.f32.mrf.mxu0  ;;  %v7074_v35 = vmul.f32 -1.442695, %v4882_v22 }
0x520b   :  { %v4879_v26 = vpop.f32.mrf.mxu1  ;;  %8756 = vpow2.f32 %v7071_v33 }
0x520c   :  { %v8073_v27 = vpop.f32.mrf.mxu0  ;;  %8758 = vpow2.f32 %v7074_v35 }
0x520d   :  { %v8081_v29 = vpop.f32.mrf.mxu1 }
0x5216   :  { %v8753_v28 = vpop.eup %8752 }
0x5217   :  { %v8755_v31 = vpop.eup %8754  ;;  %4811 = vrot.lane.b32.xlu1 %v8753_v28, %s8808_s21 }
0x5218   :  { %4892 = vrot.lane.b32.xlu0 %v8755_v31, %s8808_s21  ;;  %v8757_v36 = vpop.eup %8756 }
0x5219   :  { %v8759_v39 = vpop.eup %8758  ;;  %v4805_v42 = vadd.f32 1.0, %v8757_v36 }
0x521a   :  { %v4886_v43 = vadd.f32 1.0, %v8759_v39  ;;  %v5142_v39 = vld [vmem:[%s11208_s1] sm:$0xff] }
0x521b   :  { %8760 = vrcp.f32 %v4805_v42  ;;  %v5143_v42 = vld [vmem:[%s11208_s1 + $0x8] sm:$0xff] }
0x521c   :  { %8762 = vrcp.f32 %v4886_v43  ;;  %v5144_v43 = vld [vmem:[%s11208_s1 + $0x10] sm:$0xff] }
0x5228   :  { %v8761_v47 = vpop.eup %8760 }
0x5229   :  { %v8763_v52 = vpop.eup %8762  ;;  %v4809_v60 = vmul.f32 %v8761_v47, %v10261_v11 }
0x522a   :  { %v4890_v62 = vmul.f32 %v8763_v52, %v10263_v46 }
0x5289   :  { %v4812_v48 = vpop.permute.xlu1 %4811 }
0x528a   :  { %v4814_v54 = vmul.f32 %v8761_v47, %v4812_v48  ;;  %v4893_v57 = vpop.permute.xlu0 %4892  ;;  %v5146_v48 = vld [vmem:[%s11208_s1 + $0x20] sm:$0xff] }
0x528b   :  { %v4895_v58 = vmul.f32 %v8763_v52, %v4893_v57  ;;  %v5149_v57 = vld [vmem:[%s11208_s1 + $0x38] sm:$0xff] }
0x528c   :  { %4816 = vrot.lane.b32.xlu1 %v4814_v54, %s8809_s22  ;;  %v5148_v54 = vld [vmem:[%s11208_s1 + $0x30] sm:$0xff] }
0x528d   :  { %4897 = vrot.lane.b32.xlu0 %v4895_v58, %s8809_s22  ;;  %v5150_v58 = vld [vmem:[%s11208_s1 + $0x40] sm:$0xff] }
0x52fe   :  { %v4817_v61 = vpop.permute.xlu1 %4816 }
0x52ff   :  { %v10302_v63 = vadd.f32 %v4817_v61, %v4809_v60  ;;  %v4898_v1 = vpop.permute.xlu0 %4897  ;;  %v5151_v60 = vld [vmem:[%s11208_s1 + $0x48] sm:$0xff]  ;;  %v5152_v61 = vld [vmem:[%s11208_s1 + $0x50] sm:$0xff] }
0x5300   :  { %v10304_v2 = vadd.f32 %v4898_v1, %v4890_v62  ;;  %v5153_v62 = vld [vmem:[%s11208_s1 + $0x58] sm:$0xff]  ;;  %v5155_v1 = vld [vmem:[%s11208_s1 + $0x68] sm:$0xff] }
0x5301   :  { %8764 = vtanh.f32 %v10302_v63 }
0x5302   :  { %8766 = vtanh.f32 %v10304_v2 }
0x530e   :  { %v8765_v3 = vpop.eup %8764 }
0x530f   :  { %v8767_v5 = vpop.eup %8766  ;;  %4822 = vrot.lane.b32.xlu1 %v8765_v3, %s8808_s21  ;;  %v5157_v3 = vld [vmem:[%s11208_s1 + $0x78] sm:$0xff] }
0x5310   :  { %4903 = vrot.lane.b32.xlu0 %v8767_v5, %s8808_s21  ;;  %v5712_v5 = vld [vmem:[%s11209_s9] sm:$0xff] }
0x5381   :  { %v4823_v37 = vpop.permute.xlu1 %4822 }
0x5382   :  { %v4825_v6 = vmul.f32 %v8761_v47, %v4823_v37  ;;  %v4904_v7 = vpop.permute.xlu0 %4903  ;;  %v5145_v47 = vld [vmem:[%s11208_s1 + $0x18] sm:$0xff]  ;;  %v5724_v37 = vpack.c.bf16 %v5712_v5, %v5712_v5 }
0x5383   :  { %v4906_v44 = vmul.f32 %v8763_v52, %v4904_v7  ;;  %v5147_v52 = vld [vmem:[%s11208_s1 + $0x28] sm:$0xff]  ;;  %v5714_v7 = vld [vmem:[%s11209_s9 + $0x10] sm:$0xff] }
0x5384   :  { %4912 = vrot.lane.b32.xlu0 %v4825_v6, %s8808_s21  ;;  %8270 = vmatprep.subr.msk.bf16.mxu1 %vm5632_vm3, %v5724_v37  ;;  %v5757_v6 = vsel %vm5632_vm3, %v5724_v37, 0 }
0x5385   :  { %4908 = vrot.lane.b32.xlu1 %v4906_v44, %s8809_s22  ;;  %v4993_v11 = vpack.c.bf16 %v4906_v44, %v4906_v44  ;;  %v6053_v44 = vpack.c.bf16 %v5714_v7, %v5714_v7 }
0x5388   :  { %4988 = vperm.xlu0 %8278, %v7077_v10  }
0x5389   :  { %4995 = vrot.lane.b32.xlu1 %v4993_v11, %s8809_s22 }
0x53f6   :  { %v4913_v49 = vpop.permute.xlu0 %4912 }
0x53f7   :  { %v4909_v46 = vpop.permute.xlu1 %4908 }
0x53f8   :  { %v4915_v50 = vsel %vm95_vm1, %v4909_v46, %v4913_v49 }
0x53f9   :  { %v4916_v13 = vpack.c.bf16 %v4915_v50, %v4915_v50  ;;  %v5713_v50 = vld [vmem:[%s11209_s9 + $0x8] sm:$0xff] }
0x53fb   :  { %8091 = vmatmul.mubr.msk.bf16.vlgmr.msra.gmra.mxu1 %vm176_vm2, %v4916_v13  ;;  %v4996_v14 = vpop.permute.xlu1 %4995  ;;  %v10414_v13 = vpack.c.bf16 %v5713_v50, %v5713_v50 }
0x53fc   :  { %8099 = vmatmul.mubr.msk.bf16.vlgmr.msra.gmra.mxu0 %vm95_vm1, %v4996_v14  ;;  %8115 = vmatpush3.bf16.msra.mxu1 %v5757_v6  ;;  %v10421_v14 = vld [vmem:[%s11210_s7] ss:$0 sm:$0xff] }
0x53fd   :  { %8103 = vmatpush3.bf16.msra.mxu0 %v8956_v32  ;;  %8110 = vmatprep.mubr.msk.bf16.mxu0 %vm8806_vm0, %v11220_v0  ;;  %11237 = vst [vmem:[#allocation3_spill] sm:$0xff] %v10414_v13 }
0x53fe   :  { %8104 = vmatprep.subr.bf16.mxu0 %v11220_v0  ;;  %8272 = vmatprep.subr.msk.bf16.mxu1 %vm5632_vm3, %v6053_v44 }
0x5401   :  { %8105 = vmatpush3.bf16.msra.mxu0 %v8962_v34 }
0x5402   :  { %8106 = vmatprep.subr.bf16.mxu0 %v11220_v0 }
0x5403   :  { %v4989_v53 = vpop.permute.xlu0 %4988 }
0x5404   :  { %v4991_v51 = vmul.f32 %v10198_v40, %v4989_v53  ;;  %v10426_v53 = vld [vmem:[%s11210_s7 + $0x1] ss:$0 sm:$0xff] }
0x5405   :  { %8107 = vmatpush3.bf16.msra.mxu0 %v8973_v38 }
0x5406   :  { %8108 = vmatprep.subr.bf16.mxu0 %v11220_v0  ;;  %v4992_v32 = vadd.f32 %v10204_v45, %v4991_v51  ;;  %v10431_v51 = vld [vmem:[%s11210_s7 + $0x2] ss:$0 sm:$0xff] }
0x5409   :  { %8109 = vmatpush3.bf16.msra.mxu0 %v8984_v41 }
0x540a   :  { %8271 = vmatprep.subr.msk.bf16.mxu0 %vm5632_vm3, %v10414_v13 }
0x54bb   :  { %v4954_v55 = vpop.f32.mrf.mxu1 }
0x54bc   :  { %v4955_v15 = vadd.f32 %v10252_v30, %v4954_v55  ;;  %v5034_v16 = vpop.f32.mrf.mxu0  ;;  %v10436_v55 = vld [vmem:[%s11210_s7 + $0x3] ss:$0 sm:$0xff] }
0x54bd   :  { %v5040_v17 = vadd.f32 %v5034_v16, %v4992_v32  ;;  %v8092_v56 = vpop.f32.mrf.mxu1  ;;  %v10441_v32 = vld [vmem:[%s11210_s7 + $0x4] ss:$0 sm:$0xff] }
0x54be   :  { %8768 = vtanh.f32 %v4955_v15  ;;  %v8100_v34 = vpop.f32.mrf.mxu0  ;;  %v7076_v40 = vmul.f32 -1.442695, %v4955_v15 }
0x54bf   :  { %8770 = vtanh.f32 %v5040_v17  ;;  %v4957_v59 = vpop.f32.mrf.mxu1  ;;  %v7079_v45 = vmul.f32 -1.442695, %v5040_v17 }
0x54c0   :  { %v5037_v38 = vpop.f32.mrf.mxu0  ;;  %8772 = vpow2.f32 %v7076_v40  ;;  %v10449_v59 = vld [vmem:[%s11211_s8] ss:$0 sm:$0xff] }
0x54c1   :  { %v8093_v18 = vpop.f32.mrf.mxu1  ;;  %8774 = vpow2.f32 %v7079_v45 }
0x54c2   :  { %v8101_v19 = vpop.f32.mrf.mxu0 }
0x54cb   :  { %v8769_v4 = vpop.eup %8768 }
0x54cc   :  { %v8771_v41 = vpop.eup %8770  ;;  %4969 = vrot.lane.b32.xlu1 %v8769_v4, %s8808_s21 }
0x54cd   :  { %5050 = vrot.lane.b32.xlu0 %v8771_v41, %s8808_s21  ;;  %v8773_v30 = vpop.eup %8772 }
0x54ce   :  { %v8775_v20 = vpop.eup %8774  ;;  %v4963_v9 = vadd.f32 1.0, %v8773_v30 }
0x54cf   :  { %v5044_v12 = vadd.f32 1.0, %v8775_v20 }
0x54d0   :  { %8776 = vrcp.f32 %v4963_v9 }
0x54d1   :  { %8778 = vrcp.f32 %v5044_v12 }
0x54dd   :  { %v10333_v8 = vpop.eup %8776 }
0x54de   :  { %v10335_v22 = vpop.eup %8778  ;;  %v4967_v26 = vmul.f32 %v10333_v8, %v10302_v63  ;;  %v5154_v63 = vld [vmem:[%s11208_s1 + $0x60] sm:$0xff] }
0x54df   :  { %v5048_v29 = vmul.f32 %v10335_v22, %v10304_v2  ;;  %v5156_v2 = vld [vmem:[%s11208_s1 + $0x70] sm:$0xff] }
0x553e   :  { %v4970_v21 = vpop.permute.xlu1 %4969 }
0x553f   :  { %v4972_v23 = vmul.f32 %v10333_v8, %v4970_v21  ;;  %v5051_v24 = vpop.permute.xlu0 %5050 }
0x5540   :  { %v5053_v25 = vmul.f32 %v10335_v22, %v5051_v24 }
0x5541   :  { %4974 = vrot.lane.b32.xlu1 %v4972_v23, %s8809_s22 }
0x5542   :  { %5055 = vrot.lane.b32.xlu0 %v5053_v25, %s8809_s22  ;;  %v10471_v25 = vsel %vm5632_vm3, %v6053_v44, 0 }
0x55b3   :  { %v4975_v27 = vpop.permute.xlu1 %4974 }
0x55b4   :  { %v10345_v28 = vadd.f32 %v4975_v27, %v4967_v26  ;;  %v5056_v31 = vpop.permute.xlu0 %5055 }
0x55b5   :  { %v5058_v33 = vadd.f32 %v5056_v31, %v5048_v29 }
0x55b6   :  { %11236 = vst [vmem:[#allocation2_spill] sm:$0xff] %v10345_v28  ;;  %8780 = vtanh.f32 %v10345_v28 }
0x55b7   :  { %8782 = vtanh.f32 %v5058_v33 }
0x55c3   :  { %v8781_v35 = vpop.eup %8780 }
0x55c4   :  { %v8783_v36 = vpop.eup %8782  ;;  %4980 = vrot.lane.b32.xlu1 %v8781_v35, %s8808_s21 }
0x55c5   :  { %5061 = vrot.lane.b32.xlu0 %v8783_v36, %s8808_s21 }
0x55c8   :  { %5166 = vperm.xlu1 %8279, %v5142_v39  }
0x55c9   :  { %5171 = vperm.xlu0 %8278, %v5143_v42  }
0x55cc   :  { %5176 = vperm.xlu1 %8279, %v5144_v43  }
0x55cd   :  { %5181 = vperm.xlu0 %8278, %v5145_v47  }
0x55d0   :  { %5186 = vperm.xlu1 %8279, %v5146_v48  }
0x55d1   :  { %5191 = vperm.xlu0 %8278, %v5147_v52  }
0x55d4   :  { %5196 = vperm.xlu1 %8279, %v5148_v54  }
0x55d5   :  { %5201 = vperm.xlu0 %8278, %v5149_v57  }
0x55d8   :  { %5206 = vperm.xlu1 %8279, %v5150_v58  }
0x55d9   :  { %5211 = vperm.xlu0 %8278, %v5151_v60  }
0x55dc   :  { %5216 = vperm.xlu1 %8279, %v5152_v61  }
0x55dd   :  { %5221 = vperm.xlu0 %8278, %v5153_v62  }
0x55e0   :  { %5226 = vperm.xlu1 %8279, %v5154_v63  }
0x55e1   :  { %5231 = vperm.xlu0 %8278, %v5155_v1  }
0x55e4   :  { %5236 = vperm.xlu1 %8279, %v5156_v2  }
0x55e5   :  { %5241 = vperm.xlu0 %8278, %v5157_v3  }
0x5636   :  { %v4981_v10 = vpop.permute.xlu1 %4980 }
0x5637   :  { %v4983_v11 = vmul.f32 %v10333_v8, %v4981_v10  ;;  %v5062_v49 = vpop.permute.xlu0 %5061 }
0x5638   :  { %v5064_v46 = vmul.f32 %v10335_v22, %v5062_v49 }
0x5639   :  { %5070 = vrot.lane.b32.xlu0 %v4983_v11, %s8808_s21 }
0x563a   :  { %5066 = vrot.lane.b32.xlu1 %v5064_v46, %s8809_s22 }
0x5643   :  { %v5167_v15 = vpop.permute.xlu1 %5166 }
0x5644   :  { %v5250_v16 = vmul.f32 %v10421_v14, %v5167_v15  ;;  %v5294_v17 = vmul.f32 %v10426_v53, %v5167_v15  ;;  %v5396_v56 = vmul.f32 %v10431_v51, %v5167_v15  ;;  %v5172_v34 = vpop.permute.xlu0 %5171  ;;  %v10456_v4 = vmul.f32 %v10436_v55, %v5167_v15 }
0x5645   :  { %v5295_v38 = vmul.f32 %v10426_v53, %v5172_v34  ;;  %v10453_v18 = vmul.f32 %v10431_v51, %v5172_v34  ;;  %v10459_v41 = vmul.f32 %v10441_v32, %v5167_v15  ;;  %v5251_v45 = vmul.f32 %v10421_v14, %v5172_v34 }
0x5646   :  { %v5327_v19 = vrot.slane %v5294_v17, 1  ;;  %v5429_v40 = vrot.slane %v5396_v56, 2  ;;  %v5272_v12 = vadd.f32 %v10449_v59, %v5250_v16  ;;  %v10467_v22 = vmul.f32 %v10436_v55, %v5172_v34 }
0x5647   :  { %v5328_v30 = vrot.slane %v5295_v38, 1  ;;  %v5430_v20 = vrot.slane %v10453_v18, 2  ;;  %v5177_v9 = vpop.permute.xlu1 %5176  ;;  %v10476_v29 = vmul.f32 %v10441_v32, %v5172_v34  ;;  %v5273_v33 = vadd.f32 %v10449_v59, %v5251_v45 }
0x5648   :  { %v5296_v8 = vmul.f32 %v10426_v53, %v5177_v9  ;;  %v5252_v23 = vmul.f32 %v10421_v14, %v5177_v9  ;;  %v5182_v24 = vpop.permute.xlu0 %5181  ;;  %v5398_v31 = vmul.f32 %v10431_v51, %v5177_v9  ;;  %v10484_v39 = vmul.f32 %v10436_v55, %v5177_v9 }
0x5649   :  { %v5329_v21 = vsel %vm5326_vm4, %v5327_v19, %v5328_v30  ;;  %v10481_v35 = vsel %vm5428_vm5, %v5429_v40, %v5430_v20  ;;  %v5297_v43 = vmul.f32 %v10426_v53, %v5182_v24  ;;  %v5399_v47 = vmul.f32 %v10431_v51, %v5182_v24 }
0x564a   :  { %v5330_v36 = vrot.slane %v5296_v8, 1  ;;  %v10486_v42 = vadd.f32 %v5329_v21, %v5272_v12  ;;  %v5501_v48 = vmul.f32 %v10436_v55, %v5182_v24  ;;  %v5532_v54 = vrot.slane %v10467_v22, 3 }
0x564b   :  { %v5187_v52 = vpop.permute.xlu1 %5186  ;;  %v5274_v57 = vadd.f32 %v10449_v59, %v5252_v23  ;;  %v10494_v58 = vmul.f32 %v10441_v32, %v5177_v9  ;;  %v5253_v60 = vmul.f32 %v10421_v14, %v5182_v24  ;;  %v5432_v62 = vrot.slane %v5398_v31, 2 }
0x564c   :  { %v5332_v63 = vrot.slane %v5297_v43, 1  ;;  %v5434_v1 = vrot.slane %v5399_v47, 2  ;;  %v5331_v2 = vsel %vm5326_vm4, %v5328_v30, %v5330_v36  ;;  %v11229_v3 = vrot.slane %v10484_v39, 3  ;;  %v5192_v11 = vpop.permute.xlu0 %5191 }
0x564d   :  { %v5603_v5 = vmul.f32 %v10441_v32, %v5182_v24  ;;  %v5298_v37 = vmul.f32 %v10426_v53, %v5187_v52  ;;  %v5536_v7 = vrot.slane %v5501_v48, 3  ;;  %v5400_v44 = vmul.f32 %v10431_v51, %v5187_v52 }
0x564e   :  { %v5333_v6 = vsel %vm5326_vm4, %v5330_v36, %v5332_v63  ;;  %v10505_v10 = vmul.f32 %v10436_v55, %v5187_v52  ;;  %v11224_v49 = vrot.slane %v10494_v58, 4  ;;  %v5275_v46 = vadd.f32 %v10449_v59, %v5253_v60 }
0x564f   :  { %v5376_v50 = vadd.f32 %v5333_v6, %v5274_v57  ;;  %v5254_v15 = vmul.f32 %v10421_v14, %v5187_v52  ;;  %v5435_v16 = vsel %vm5428_vm5, %v5432_v62, %v5434_v1  ;;  %v5334_v17 = vrot.slane %v5298_v37, 1  ;;  %v5197_v48 = vpop.permute.xlu1 %5196 }
0x5650   :  { %v5436_v56 = vrot.slane %v5400_v44, 2  ;;  %v10512_v34 = vmul.f32 %v10441_v32, %v5187_v52  ;;  %v5638_v18 = vrot.slane %v5603_v5, 4  ;;  %v11223_v19 = vrot.slane %v10505_v10, 3 }
0x5651   :  { %v5478_v38 = vadd.f32 %v5435_v16, %v5376_v50  ;;  %v5299_v40 = vmul.f32 %v10426_v53, %v5192_v11  ;;  %v5537_v45 = vsel %vm5530_vm6, %v11229_v3, %v5536_v7  ;;  %v5335_v30 = vsel %vm5326_vm4, %v5332_v63, %v5334_v17 }
0x5652   :  { %v5255_v9 = vmul.f32 %v10421_v14, %v5192_v11  ;;  %v5401_v12 = vmul.f32 %v10431_v51, %v5192_v11  ;;  %v10523_v8 = vsel %vm5428_vm5, %v5430_v20, %v5432_v62  ;;  %v5377_v23 = vadd.f32 %v5335_v30, %v5275_v46 }
0x5653   :  { %v5580_v21 = vadd.f32 %v5537_v45, %v5478_v38  ;;  %v5336_v24 = vrot.slane %v5299_v40, 1  ;;  %v10525_v31 = vadd.f32 %v5331_v2, %v5273_v33  ;;  %v5276_v36 = vadd.f32 %v10449_v59, %v5254_v15  ;;  %v5202_v2 = vpop.permute.xlu0 %5201 }
0x5654   :  { %v5437_v43 = vsel %vm5428_vm5, %v5434_v1, %v5436_v56  ;;  %v11222_v47 = vrot.slane %v10512_v34, 4  ;;  %v5639_v52 = vsel %vm5632_vm3, %v11224_v49, %v5638_v18  ;;  %v5539_v20 = vsel %vm5530_vm6, %v5536_v7, %v11223_v19 }
0x5655   :  { %v5479_v57 = vadd.f32 %v5437_v43, %v5377_v23  ;;  %v5337_v60 = vsel %vm5326_vm4, %v5334_v17, %v5336_v24  ;;  %v5277_v33 = vadd.f32 %v10449_v59, %v5255_v9  ;;  %v5438_v62 = vrot.slane %v5401_v12, 2 }
0x5656   :  { %v10539_v63 = vmul.f32 %v10436_v55, %v5192_v11  ;;  %v5256_v1 = vmul.f32 %v10421_v14, %v5197_v48  ;;  %v5682_v5 = vadd.f32 %v5639_v52, %v5580_v21  ;;  %v10543_v6 = vmul.f32 %v10441_v32, %v5192_v11 }
0x5657   :  { %v5581_v37 = vadd.f32 %v5539_v20, %v5479_v57  ;;  %v5300_v44 = vmul.f32 %v10426_v53, %v5197_v48  ;;  %v5641_v7 = vsel %vm5632_vm3, %v5638_v18, %v11222_v47  ;;  %v10549_v46 = vadd.f32 %v5337_v60, %v5276_v36  ;;  %v5207_v36 = vpop.permute.xlu1 %5206 }
0x5658   :  { %v5402_v50 = vmul.f32 %v10431_v51, %v5197_v48  ;;  %v10553_v15 = vmul.f32 %v10436_v55, %v5197_v48  ;;  %v5301_v38 = vmul.f32 %v10426_v53, %v5202_v2  ;;  %v5403_v11 = vmul.f32 %v10431_v51, %v5202_v2 }
0x5659   :  { %v5683_v16 = vadd.f32 %v5641_v7, %v5581_v37  ;;  %v5338_v17 = vrot.slane %v5300_v44, 1  ;;  %v10558_v40 = vsel %vm5428_vm5, %v5436_v56, %v5438_v62  ;;  %v5278_v45 = vadd.f32 %v10449_v59, %v5256_v1 }
0x565a   :  { %v10562_v18 = vmul.f32 %v10441_v32, %v5197_v48  ;;  %v5257_v30 = vmul.f32 %v10421_v14, %v5202_v2  ;;  %v5698_v9 = vmax.f32 %v5682_v5, 0.0  ;;  %v5340_v23 = vrot.slane %v5301_v38, 1 }
0x565b   :  { %v5699_v43 = vmax.f32 %v5683_v16, 0.0  ;;  %v5440_v52 = vrot.slane %v5402_v50, 2  ;;  %v11226_v57 = vrot.slane %v10553_v15, 3  ;;  %v5505_v56 = vmul.f32 %v10436_v55, %v5202_v2 }
0x565c   :  { %v5339_v20 = vsel %vm5326_vm4, %v5336_v24, %v5338_v17  ;;  %v5341_v48 = vsel %vm5326_vm4, %v5338_v17, %v5340_v23  ;;  %v5442_v60 = vrot.slane %v5403_v11, 2  ;;  %v5607_v1 = vmul.f32 %v10441_v32, %v5202_v2  ;;  %v5212_v17 = vpop.permute.xlu0 %5211 }
0x565d   :  { %v11225_v5 = vrot.slane %v10562_v18, 4  ;;  %v5279_v37 = vadd.f32 %v10449_v59, %v5257_v30  ;;  %v5380_v44 = vadd.f32 %v5341_v48, %v5278_v45  ;;  %v5302_v7 = vmul.f32 %v10426_v53, %v5207_v36 }
0x565e   :  { %v5258_v50 = vmul.f32 %v10421_v14, %v5207_v36  ;;  %v5404_v16 = vmul.f32 %v10431_v51, %v5207_v36  ;;  %v10578_v38 = vmul.f32 %v10436_v55, %v5207_v36  ;;  %v10581_v24 = vmul.f32 %v10441_v32, %v5207_v36 }
0x565f   :  { %v10583_v11 = vadd.f32 %v5339_v20, %v5277_v33  ;;  %v10586_v2 = vsel %vm5428_vm5, %v5438_v62, %v5440_v52  ;;  %v5544_v30 = vrot.slane %v5505_v56, 3  ;;  %v5342_v45 = vrot.slane %v5302_v7, 1  ;;  %v5217_v33 = vpop.permute.xlu1 %5216 }
0x5660   :  { %v10588_v48 = vpack.c.bf16 %v5699_v43, %v5698_v9  ;;  %v5443_v0 = vsel %vm5428_vm5, %v5440_v52, %v5442_v60  ;;  %v5646_v47 = vrot.slane %v5607_v1, 4  ;;  %v5444_v21 = vrot.slane %v5404_v16, 2 }
0x5661   :  { %v5482_v19 = vadd.f32 %v5443_v0, %v5380_v44  ;;  %v5343_v12 = vsel %vm5326_vm4, %v5340_v23, %v5342_v45  ;;  %v5303_v36 = vmul.f32 %v10426_v53, %v5212_v17  ;;  %v5405_v49 = vmul.f32 %v10431_v51, %v5212_v17 }
0x5662   :  { %v5280_v20 = vadd.f32 %v10449_v59, %v5258_v50  ;;  %v5381_v62 = vadd.f32 %v5343_v12, %v5279_v37  ;;  %v11227_v56 = vrot.slane %v10578_v38, 3  ;;  %v11228_v9 = vrot.slane %v10581_v24, 4 }
0x5663   :  { %v5545_v43 = vsel %vm5530_vm6, %v11226_v57, %v5544_v30  ;;  %v5259_v0 = vmul.f32 %v10421_v14, %v5212_v17  ;;  %v5344_v52 = vrot.slane %v5303_v36, 1  ;;  %v5446_v23 = vrot.slane %v5405_v49, 2  ;;  %v5222_v36 = vpop.permute.xlu0 %5221 }
0x5664   :  { %v10604_v1 = vsel %vm5632_vm3, %v11225_v5, %v5646_v47  ;;  %v5445_v44 = vsel %vm5428_vm5, %v5442_v60, %v5444_v21  ;;  %v10608_v12 = vmul.f32 %v10436_v55, %v5212_v17  ;;  %v5304_v37 = vmul.f32 %v10426_v53, %v5217_v33 }
0x5665   :  { %v10611_v7 = vadd.f32 %v5545_v43, %v5482_v19  ;;  %v5483_v50 = vadd.f32 %v5445_v44, %v5381_v62  ;;  %v10614_v16 = vmul.f32 %v10441_v32, %v5212_v17  ;;  %v5406_v49 = vmul.f32 %v10431_v51, %v5217_v33 }
0x5666   :  { %v5547_v5 = vsel %vm5530_vm6, %v5544_v30, %v11227_v56  ;;  %v10623_v60 = vsel %vm5632_vm3, %v5646_v47, %v11228_v9  ;;  %v5345_v57 = vsel %vm5326_vm4, %v5342_v45, %v5344_v52  ;;  %v5260_v19 = vmul.f32 %v10421_v14, %v5217_v33 }
0x5667   :  { %v5281_v62 = vadd.f32 %v10449_v59, %v5259_v0  ;;  %v10629_v17 = vsel %vm5428_vm5, %v5444_v21, %v5446_v23  ;;  %v5346_v43 = vrot.slane %v5304_v37, 1  ;;  %v5448_v44 = vrot.slane %v5406_v49, 2 }
0x5668   :  { %v10633_v30 = vmul.f32 %v10436_v55, %v5217_v33  ;;  %v5305_v56 = vmul.f32 %v10426_v53, %v5222_v36  ;;  %v10637_v47 = vmul.f32 %v10431_v51, %v5222_v36  ;;  %v10639_v45 = vadd.f32 %v5547_v5, %v5483_v50  ;;  %v5227_v50 = vpop.permute.xlu1 %5226 }
0x5669   :  { %v10641_v9 = vadd.f32 %v5345_v57, %v5280_v20  ;;  %v10645_v21 = vmul.f32 %v10441_v32, %v5217_v33  ;;  %v5282_v37 = vadd.f32 %v10449_v59, %v5260_v19  ;;  %v5261_v49 = vmul.f32 %v10421_v14, %v5222_v36 }
0x566a   :  { %v5348_v27 = vrot.slane %v5305_v56, 1  ;;  %v5509_v61 = vmul.f32 %v10436_v55, %v5222_v36  ;;  %v5347_v3 = vsel %vm5326_vm4, %v5344_v52, %v5346_v43  ;;  %v10652_v26 = vsel %vm5428_vm5, %v5446_v23, %v5448_v44 }
0x566b   :  { %v5476_v57 = vadd.f32 %v10481_v35, %v10486_v42  ;;  %v5477_v5 = vadd.f32 %v10523_v8, %v10525_v31  ;;  %v5450_v56 = vrot.slane %v10637_v47, 2  ;;  %v11238_v52 = vrot.slane %v10456_v4, 3 }
0x566c   :  { %v5349_v20 = vsel %vm5326_vm4, %v5346_v43, %v5348_v27  ;;  %v5611_v35 = vmul.f32 %v10441_v32, %v5222_v36  ;;  %v11239_v42 = vrot.slane %v10484_v39, 3  ;;  %v5283_v43 = vadd.f32 %v10449_v59, %v5261_v49 }
0x566d   :  { %v5533_v23 = vsel %vm5530_vm6, %v11238_v52, %v5532_v54  ;;  %v5384_v47 = vadd.f32 %v5349_v20, %v5282_v37  ;;  %v11240_v4 = vrot.slane %v10476_v29, 4  ;;  %v11241_v52 = vrot.slane %v10459_v41, 4  ;;  %v5232_v41 = vpop.permute.xlu0 %5231 }
0x566e   :  { %v5535_v8 = vsel %vm5530_vm6, %v5532_v54, %v11239_v42  ;;  %v5578_v31 = vadd.f32 %v5533_v23, %v5476_v57  ;;  %v5552_v19 = vrot.slane %v5509_v61, 3  ;;  %v11242_v36 = vrot.slane %v10494_v58, 4 }
0x566f   :  { %v5579_v0 = vadd.f32 %v5535_v8, %v5477_v5  ;;  %v5635_v33 = vsel %vm5632_vm3, %v11241_v52, %v11240_v4  ;;  %v11243_v39 = vmov %v11240_v4  ;;  %v5306_v54 = vmul.f32 %v10426_v53, %v5227_v50 }
0x5670   :  { %v5637_v22 = vsel %vm5632_vm3, %v11243_v39, %v11242_v36  ;;  %v5680_v28 = vadd.f32 %v5635_v33, %v5578_v31  ;;  %v5451_v49 = vsel %vm5428_vm5, %v5448_v44, %v5450_v56  ;;  %v5408_v57 = vmul.f32 %v10431_v51, %v5227_v50  ;;  %v5237_v39 = vpop.permute.xlu1 %5236 }
0x5671   :  { %v5681_v37 = vadd.f32 %v5637_v22, %v5579_v0  ;;  %v10688_v5 = vmul.f32 %v10436_v55, %v5227_v50  ;;  %v5654_v20 = vrot.slane %v5611_v35, 4  ;;  %v5262_v61 = vmul.f32 %v10421_v14, %v5227_v50 }
0x5672   :  { %v5350_v58 = vrot.slane %v5306_v54, 1  ;;  %v10692_v29 = vmul.f32 %v10441_v32, %v5227_v50  ;;  %v5486_v23 = vadd.f32 %v5451_v49, %v5384_v47  ;;  %v5696_v33 = vmax.f32 %v5680_v28, 0.0 }
0x5673   :  { %v5697_v42 = vmax.f32 %v5681_v37, 0.0  ;;  %v5452_v8 = vrot.slane %v5408_v57, 2  ;;  %v11232_v0 = vrot.slane %v10688_v5, 3  ;;  %v5307_v31 = vmul.f32 %v10426_v53, %v5232_v41 }
0x5674   :  { %v5351_v44 = vsel %vm5326_vm4, %v5348_v27, %v5350_v58  ;;  %v5409_v4 = vmul.f32 %v10431_v51, %v5232_v41  ;;  %v11231_v36 = vrot.slane %v10692_v29, 4  ;;  %v5263_v50 = vmul.f32 %v10421_v14, %v5232_v41 }
0x5675   :  { %v10698_v52 = vpack.c.bf16 %v5697_v42, %v5696_v33  ;;  %v5385_v35 = vadd.f32 %v5351_v44, %v5283_v43  ;;  %v10702_v47 = vadd.f32 %v5347_v3, %v5281_v62  ;;  %v11244_v28 = vrot.slane %v10633_v30, 3  ;;  %v5242_v44 = vpop.permute.xlu0 %5241 }
0x5676   :  { %v5352_v22 = vrot.slane %v5307_v31, 1  ;;  %v5454_v54 = vrot.slane %v5409_v4, 2  ;;  %v11245_v37 = vrot.slane %v10645_v21, 4  ;;  %v5284_v43 = vadd.f32 %v10449_v59, %v5262_v61 }
0x5677   :  { %v5553_v27 = vsel %vm5530_vm6, %v11244_v28, %v5552_v19  ;;  %8116 = vmatprep.mubr.msk.bf16.mxu1 %vm5731_vm7, %v10698_v52  ;;  %v5453_v3 = vsel %vm5428_vm5, %v5450_v56, %v5452_v8  ;;  %v5555_v33 = vsel %vm5530_vm6, %v5552_v19, %v11232_v0  ;;  %v5410_v42 = vmul.f32 %v10431_v51, %v5237_v39 }
0x5678   :  { %v10707_v49 = vadd.f32 %v5553_v27, %v5486_v23  ;;  %v10712_v57 = vsel %vm5632_vm3, %v11245_v37, %v5654_v20  ;;  %v5487_v62 = vadd.f32 %v5453_v3, %v5385_v35  ;;  %8117 = vmatmul.mubr.msk.bf16.vlgmr.msra.gmra.mxu1 %vm5731_vm7, %v10588_v48  ;;  %v5308_v23 = vmul.f32 %v10426_v53, %v5237_v39 }
0x5679   :  { %v10728_v31 = vsel %vm5632_vm3, %v5654_v20, %v11231_v36  ;;  %v5285_v56 = vadd.f32 %v10449_v59, %v5263_v50  ;;  %v5353_v61 = vsel %vm5326_vm4, %v5350_v58, %v5352_v22  ;;  %v5264_v4 = vmul.f32 %v10421_v14, %v5237_v39  ;;  %8151 = vmatpush3.bf16.msra.mxu1 %v10471_v25 }
0x567a   :  { %v5455_v19 = vsel %vm5428_vm5, %v5452_v8, %v5454_v54  ;;  %v10736_v35 = vmul.f32 %v10436_v55, %v5232_v41  ;;  %v10739_v28 = vmul.f32 %v10441_v32, %v5232_v41  ;;  %v5354_v27 = vrot.slane %v5308_v23, 1 }
0x567b   :  { %v5456_v37 = vrot.slane %v5410_v42, 2  ;;  %v10742_v20 = vmul.f32 %v10436_v55, %v5237_v39  ;;  %v5265_v50 = vmul.f32 %v10421_v14, %v5242_v44  ;;  %v5309_v58 = vmul.f32 %v10426_v53, %v5242_v44 }
0x567c   :  { %v5589_v3 = vadd.f32 %v5555_v33, %v5487_v62  ;;  %v5386_v36 = vadd.f32 %v5353_v61, %v5284_v43  ;;  %v10747_v25 = vmul.f32 %v10441_v32, %v5237_v39  ;;  %v5411_v8 = vmul.f32 %v10431_v51, %v5242_v44 }
0x567d   :  { %v5286_v0 = vadd.f32 %v10449_v59, %v5264_v4  ;;  %v5355_v41 = vsel %vm5326_vm4, %v5352_v22, %v5354_v27  ;;  %v5287_v23 = vadd.f32 %v10449_v59, %v5265_v50  ;;  %v5356_v42 = vrot.slane %v5309_v58, 1 }
0x567e   :  { %v5556_v13 = vrot.slane %v10736_v35, 3  ;;  %v5658_v14 = vrot.slane %v10739_v28, 4  ;;  %v5513_v53 = vmul.f32 %v10436_v55, %v5242_v44  ;;  %v5480_v43 = vadd.f32 %v10558_v40, %v10549_v46 }
0x567f   :  { %v5457_v39 = vsel %vm5428_vm5, %v5454_v54, %v5456_v37  ;;  %v5558_v51 = vrot.slane %v10742_v20, 3  ;;  %v5357_v62 = vsel %vm5326_vm4, %v5354_v27, %v5356_v42  ;;  %v5481_v22 = vadd.f32 %v10586_v2, %v10583_v11 }
0x5680   :  { %v5387_v59 = vadd.f32 %v5355_v41, %v5285_v56  ;;  %v5660_v33 = vrot.slane %v10747_v25, 4  ;;  %v5458_v61 = vrot.slane %v5411_v8, 2  ;;  %v11246_v4 = vrot.slane %v10539_v63, 3 }
0x5681   :  { %v11247_v55 = vrot.slane %v10505_v10, 3  ;;  %v5388_v46 = vadd.f32 %v5357_v62, %v5286_v0  ;;  %v5389_v40 = vadd.f32 %v5356_v42, %v5287_v23  ;;  %v11248_v54 = vrot.slane %v10553_v15, 3 }
0x5682   :  { %v11249_v20 = vmov %v11246_v4  ;;  %v5560_v11 = vrot.slane %v5513_v53, 3  ;;  %v5615_v2 = vmul.f32 %v10441_v32, %v5242_v44  ;;  %v11250_v58 = vrot.slane %v10543_v6, 4 }
0x5683   :  { %v5541_v35 = vsel %vm5530_vm6, %v11247_v55, %v11246_v4  ;;  %v5543_v27 = vsel %vm5530_vm6, %v11249_v20, %v11248_v54  ;;  %v11251_v25 = vrot.slane %v10512_v34, 4  ;;  %v11252_v0 = vrot.slane %v10562_v18, 4 }
0x5684   :  { %v5582_v50 = vadd.f32 %v5541_v35, %v5480_v43  ;;  %v5583_v56 = vadd.f32 %v5543_v27, %v5481_v22  ;;  %v11253_v8 = vmov %v11250_v58  ;;  %v5686_v41 = vadd.f32 %v10604_v1, %v10611_v7 }
0x5685   :  { %v5643_v10 = vsel %vm5632_vm3, %v11251_v25, %v11250_v58  ;;  %v5645_v15 = vsel %vm5632_vm3, %v11253_v8, %v11252_v0  ;;  %v5687_v32 = vadd.f32 %v10623_v60, %v10639_v45  ;;  %v5459_v44 = vsel %vm5428_vm5, %v5456_v37, %v5458_v61 }
0x5686   :  { %v5684_v63 = vadd.f32 %v5643_v10, %v5582_v50  ;;  %v5685_v23 = vadd.f32 %v5645_v15, %v5583_v56  ;;  %v5484_v34 = vadd.f32 %v10629_v17, %v10641_v9  ;;  %v5485_v18 = vadd.f32 %v10652_v26, %v10702_v47 }
0x5687   :  { %v5490_v42 = vadd.f32 %v5459_v44, %v5388_v46  ;;  %v5491_v6 = vadd.f32 %v5458_v61, %v5389_v40  ;;  %v5702_v53 = vmax.f32 %v5686_v41, 0.0  ;;  %v5703_v43 = vmax.f32 %v5687_v32, 0.0 }
0x5688   :  { %v5700_v62 = vmax.f32 %v5684_v63, 0.0  ;;  %v5701_v22 = vmax.f32 %v5685_v23, 0.0  ;;  %v11254_v1 = vrot.slane %v10608_v12, 3  ;;  %v11255_v7 = vrot.slane %v10578_v38, 3 }
0x5689   :  { %v11256_v45 = vrot.slane %v10633_v30, 3  ;;  %v10804_v17 = vpack.c.bf16 %v5703_v43, %v5702_v53  ;;  %v11258_v61 = vrot.slane %v10614_v16, 4  ;;  %v11259_v4 = vrot.slane %v10581_v24, 4 }
0x568a   :  { %v5549_v60 = vsel %vm5530_vm6, %v11255_v7, %v11254_v1  ;;  %v11257_v37 = vmov %v11254_v1  ;;  %v10811_v35 = vpack.c.bf16 %v5701_v22, %v5700_v62  ;;  %v11260_v38 = vrot.slane %v10645_v21, 4 }
0x568b   :  { %v5551_v9 = vsel %vm5530_vm6, %v11257_v37, %v11256_v45  ;;  %v5586_v26 = vadd.f32 %v5549_v60, %v5484_v34  ;;  %v5651_v55 = vsel %vm5632_vm3, %v11259_v4, %v11258_v61  ;;  %v11261_v30 = vmov %v11258_v61 }
0x568c   :  { %v5587_v47 = vadd.f32 %v5551_v9, %v5485_v18  ;;  %v5653_v12 = vsel %vm5632_vm3, %v11261_v30, %v11260_v38  ;;  %v5690_v46 = vadd.f32 %v10712_v57, %v10707_v49  ;;  %v5691_v40 = vadd.f32 %v10728_v31, %v5589_v3  ;;  %8120 = vmatprep.mubr.msk.bf16.mxu1 %vm5731_vm7, %v10811_v35 }
0x568d   :  { %v5688_v54 = vadd.f32 %v5651_v55, %v5586_v26  ;;  %v5488_v27 = vadd.f32 %v5455_v19, %v5386_v36  ;;  %v5489_v50 = vadd.f32 %v5457_v39, %v5387_v59  ;;  %v5561_v24 = vsel %vm5530_vm6, %v5558_v51, %v5560_v11  ;;  %8121 = vmatmul.mubr.msk.bf16.gmra.mxu1 %vm5731_vm7, %v10804_v17  ;;  %v11264_v55 = vld [vmem:[#allocation3_spill] sm:$0xff] }
0x568e   :  { %v5689_v20 = vadd.f32 %v5653_v12, %v5587_v47  ;;  %v5662_v56 = vrot.slane %v5615_v2, 4  ;;  %v5707_v21 = vmax.f32 %v5691_v40, 0.0  ;;  %v11262_v16 = vrot.slane %v10688_v5, 3 }
0x568f   :  { %v5704_v49 = vmax.f32 %v5688_v54, 0.0  ;;  %v5559_v31 = vsel %vm5530_vm6, %v5556_v13, %v5558_v51  ;;  %v5592_v19 = vadd.f32 %v5561_v24, %v5490_v42  ;;  %v5593_v3 = vadd.f32 %v5560_v11, %v5491_v6 }
0x5690   :  { %v5557_v58 = vsel %vm5530_vm6, %v11262_v16, %v5556_v13  ;;  %v5705_v57 = vmax.f32 %v5689_v20, 0.0  ;;  %v5591_v39 = vadd.f32 %v5559_v31, %v5489_v50  ;;  %v11263_v59 = vrot.slane %v10692_v29, 4 }
0x5691   :  { %v5590_v36 = vadd.f32 %v5557_v58, %v5488_v27  ;;  %v5706_v25 = vmax.f32 %v5690_v46, 0.0  ;;  %v5661_v10 = vsel %vm5632_vm3, %v5658_v14, %v5660_v33  ;;  %v5663_v51 = vsel %vm5632_vm3, %v5660_v33, %v5662_v56 }
0x5692   :  { %v5659_v2 = vsel %vm5632_vm3, %v11263_v59, %v5658_v14  ;;  %v10835_v5 = vpack.c.bf16 %v5705_v57, %v5704_v49  ;;  %v5693_v8 = vadd.f32 %v5661_v10, %v5591_v39  ;;  %v5695_v15 = vadd.f32 %v5662_v56, %v5593_v3 }
0x5693   :  { %v5692_v0 = vadd.f32 %v5659_v2, %v5590_v36  ;;  %v10842_v13 = vpack.c.bf16 %v5707_v21, %v5706_v25  ;;  %v5694_v63 = vadd.f32 %v5663_v51, %v5592_v19  ;;  %v6064_v32 = vrot.slane %v10588_v48, 1 }
0x5694   :  { %8124 = vmatprep.mubr.msk.bf16.mxu1 %vm5731_vm7, %v10835_v5  ;;  %v5709_v29 = vmax.f32 %v5693_v8, 0.0  ;;  %v5711_v28 = vmax.f32 %v5695_v15, 0.0  ;;  %v6063_v33 = vrot.slane %v10698_v52, 1  ;;  %v6066_v34 = vrot.slane %v10811_v35, 1 }
0x5695   :  { %v5708_v11 = vmax.f32 %v5692_v0, 0.0  ;;  %8125 = vmatmul.mubr.msk.bf16.gmra.mxu1 %vm5731_vm7, %v10842_v13  ;;  %v5710_v14 = vmax.f32 %v5694_v63, 0.0  ;;  %v6068_v18 = vrot.slane %v10804_v17, 1  ;;  %v5860_v53 = vshll.u32 %v10698_v52, 16 }
0x5696   :  { %v6065_v23 = vsel %vm5326_vm4, %v6063_v33, %v6064_v32  ;;  %v6067_v42 = vsel %vm5326_vm4, %v6064_v32, %v6066_v34  ;;  %v6070_v43 = vrot.slane %v10835_v5, 1  ;;  %v5864_v62 = vshll.u32 %v10588_v48, 16  ;;  %v6236_v32 = vld [vmem:[%s11212_s11 + $0x10] sm:$0xff]  ;;  %v6238_v33 = vld [vmem:[%s11212_s11 + $0x20] sm:$0xff] }
0x5697   :  { %v10845_v41 = vpack.c.bf16 %v5709_v29, %v5708_v11  ;;  %v10852_v44 = vpack.c.bf16 %v5711_v28, %v5710_v14  ;;  %v6069_v6 = vsel %vm5326_vm4, %v6066_v34, %v6068_v18  ;;  %v6072_v22 = vrot.slane %v10842_v13, 1  ;;  %v6239_v34 = vld [vmem:[%s11212_s11 + $0x28] sm:$0xff] }
0x5698   :  { %v5862_v1 = vrot.slane %v5860_v53, 1  ;;  %v6071_v60 = vsel %vm5326_vm4, %v6068_v18, %v6070_v43  ;;  %v5858_v37 = vshrl.u32 %v10698_v52, 16  ;;  %v5866_v9 = vrot.slane %v5864_v62, 1 }
0x5699   :  { %8128 = vmatprep.mubr.msk.bf16.mxu1 %vm5731_vm7, %v10845_v41  ;;  %v6073_v26 = vsel %vm5326_vm4, %v6070_v43, %v6072_v22  ;;  %v5938_v38 = vsel %vm5632_vm3, %v11264_v55, 0  ;;  %v5871_v30 = vshll.u32 %v10811_v35, 16  ;;  %v6074_v12 = vrot.slane %v10845_v41, 1 }
0x569a   :  { %v5863_v4 = vor.u32 %v5862_v1, %v5858_v37  ;;  %v5878_v46 = vshll.u32 %v10804_v17, 16  ;;  %v6076_v40 = vrot.slane %v10852_v44, 1  ;;  %v5868_v20 = vshrl.u32 %v10588_v48, 16 }
0x569b   :  { %v5873_v54 = vrot.slane %v5871_v30, 1  ;;  %v6075_v27 = vsel %vm5326_vm4, %v6072_v22, %v6074_v12  ;;  %v5875_v50 = vshrl.u32 %v10811_v35, 16  ;;  %v5885_v58 = vshll.u32 %v10835_v5, 16 }
0x569c   :  { %v5867_v52 = vsel %vm5857_vm8, %v5863_v4, %v5866_v9  ;;  %v5880_v24 = vrot.slane %v5878_v46, 1  ;;  %v6077_v56 = vsel %vm5326_vm4, %v6074_v12, %v6076_v40  ;;  %v5870_v21 = vor.u32 %v5868_v20, %v5866_v9  ;;  %v8804_v20 = vld [vmem:[%s11207_s6] ss:$0 sm:$0xff] }
0x569d   :  { %8129 = vmatmul.mubr.msk.bf16.gmra.mxu1 %vm5731_vm7, %v10852_v44  ;;  %v5877_v16 = vor.u32 %v5875_v50, %v5873_v54  ;;  %v5892_v57 = vshll.u32 %v10842_v13, 16  ;;  %v5887_v35 = vrot.slane %v5885_v58, 1  ;;  %v5882_v31 = vshrl.u32 %v10804_v17, 16 }
0x569e   :  { %8152 = vmatprep.mubr.msk.bf16.mxu1 %vm5731_vm7, %v6065_v23  ;;  %v5874_v49 = vsel %vm5857_vm8, %v5870_v21, %v5873_v54  ;;  %v5889_v36 = vshrl.u32 %v10835_v5, 16  ;;  %v5899_v3 = vshll.u32 %v10845_v41, 16  ;;  %v5906_v0 = vshll.u32 %v10852_v44, 16  ;;  %v10960_v21 = vld [vmem:[%s11213_s10] ss:$0 sm:$0xff] }
0x569f   :  { %v5881_v48 = vsel %vm5857_vm8, %v5877_v16, %v5880_v24  ;;  %v5894_v19 = vrot.slane %v5892_v57, 1  ;;  %v5884_v39 = vor.u32 %v5882_v31, %v5880_v24  ;;  %v5903_v17 = vshrl.u32 %v10845_v41, 16  ;;  %v6235_v41 = vld [vmem:[%s11212_s11 + $0x8] sm:$0xff] }
0x56a0   :  { %v5891_v59 = vor.u32 %v5889_v36, %v5887_v35  ;;  %v5901_v10 = vrot.slane %v5899_v3, 1  ;;  %v5896_v5 = vshrl.u32 %v10842_v13, 16  ;;  %v5908_v51 = vrot.slane %v5906_v0, 1  ;;  %v6234_v13 = vld [vmem:[%s11212_s11] sm:$0xff] }
0x56a1   :  { %v5888_v2 = vsel %vm5857_vm8, %v5884_v39, %v5887_v35  ;;  %v5910_v63 = vshrl.u32 %v10852_v44, 16  ;;  %v6249_v14 = vpack.c.bf16 %v6235_v41, %v6234_v13  ;;  %v6237_v44 = vld [vmem:[%s11212_s11 + $0x18] sm:$0xff]  ;;  %v10931_v18 = vpack.c.bf16 %v6239_v34, %v6238_v33 }
0x56a2   :  { %v5895_v25 = vsel %vm5857_vm8, %v5891_v59, %v5894_v19  ;;  %v5905_v8 = vor.u32 %v5903_v17, %v5901_v10  ;;  %v5898_v11 = vor.u32 %v5896_v5, %v5894_v19  ;;  %v6378_v23 = vpack.c.bf16 %v6237_v44, %v6236_v32 }
0x56a3   :  { %v5912_v28 = vor.u32 %v5910_v63, %v5908_v51 }
0x56a4   :  { %v5902_v29 = vsel %vm5857_vm8, %v5898_v11, %v5901_v10  ;;  %v5909_v15 = vsel %vm5857_vm8, %v5905_v8, %v5908_v51  ;;  %8186 = vmatprep.subr.bf16.mxu1 %v6378_v23 }
0x56a5   :  { %8153 = vmatmul.mubr.msk.bf16.vlgmr.msra.gmra.mxu1 %vm5731_vm7, %v6067_v42  ;;  %v11265_v42 = vmov 0.0  }
0x56a6   :  { %8156 = vmatprep.mubr.msk.bf16.mxu1 %vm5731_vm7, %v6069_v6  ;;  %8187 = vmatpush3.bf16.msra.mxu1 %v6378_v23 }
0x56a7   :  { %8222 = vmatprep.subr.mxu1 %v11265_v42 }
0x56ab   :  { %v5071_v7 = vpop.permute.xlu0 %5070 }
0x56ac   :  { %v5067_v45 = vpop.permute.xlu1 %5066 }
0x56ad   :  { %8157 = vmatmul.mubr.msk.bf16.gmra.mxu1 %vm5731_vm7, %v6071_v60  ;;  %v5073_v47 = vsel %vm95_vm1, %v5067_v45, %v5071_v7 }
0x56ae   :  { %8160 = vmatprep.mubr.msk.bf16.mxu1 %vm5731_vm7, %v6073_v26  ;;  %v5074_v61 = vpack.c.bf16 %v5073_v47, %v5073_v47 }
0x56b0   :  { %8111 = vmatmul.mubr.msk.bf16.vlgmr.msra.gmra.mxu0 %vm176_vm2, %v5074_v61 }
0x56b1   :  { %8134 = vmatprep.mubr.msk.bf16.mxu0 %vm5731_vm7, %v5867_v52  ;;  %8133 = vmatpush3.bf16.msra.mxu0 %v5938_v38 }
0x56b2   :  { %8168 = vmatprep.subr.bf16.mxu0 %v6249_v14 }
0x56b5   :  { %8161 = vmatmul.mubr.msk.bf16.gmra.mxu1 %vm5731_vm7, %v6075_v27 }
0x56b6   :  { %8164 = vmatprep.mubr.msk.bf16.mxu1 %vm5731_vm7, %v6077_v56 }
0x56b8   :  { %8135 = vmatmul.mubr.msk.bf16.vlgmr.msra.gmra.mxu0 %vm5731_vm7, %v5874_v49 }
0x56b9   :  { %8138 = vmatprep.mubr.msk.bf16.mxu0 %vm5731_vm7, %v5881_v48  ;;  %8169 = vmatpush3.bf16.msra.mxu0 %v6249_v14 }
0x56ba   :  { %8204 = vmatprep.subr.bf16.mxu0 %v10931_v18 }
0x56bd   :  { %8165 = vmatmul.mubr.msk.bf16.gmra.mxu1 %vm5731_vm7, %v6076_v40 }
0x56c0   :  { %8139 = vmatmul.mubr.msk.bf16.gmra.mxu0 %vm5731_vm7, %v5888_v2 }
0x56c1   :  { %8142 = vmatprep.mubr.msk.bf16.mxu0 %vm5731_vm7, %v5895_v25 }
0x56c8   :  { %8143 = vmatmul.mubr.msk.bf16.gmra.mxu0 %vm5731_vm7, %v5902_v29 }
0x56c9   :  { %8146 = vmatprep.mubr.msk.bf16.mxu0 %vm5731_vm7, %v5909_v15 }
0x56d0   :  { %8147 = vmatmul.mubr.msk.bf16.gmra.mxu0 %vm5731_vm7, %v5912_v28 }
0x5738   :  { %v8118_v6 = vpop.f32.mrf.mxu1 }
0x5739   :  { %v5802_v58 = vadd.f32 %v8118_v6, %v10960_v21 }
0x573a   :  { %v5793_v53 = vpop.f32.mrf.mxu1 }
0x573b   :  { %v5794_v57 = vadd.f32 %v10960_v21, %v5793_v53 }
0x573c   :  { %v8119_v43 = vpop.f32.mrf.mxu1 }
0x573d   :  { %v5805_v36 = vadd.f32 %v8119_v43, %v10960_v21 }
0x573e   :  { %v5796_v62 = vpop.f32.mrf.mxu1 }
0x573f   :  { %v5797_v59 = vadd.f32 %v10960_v21, %v5796_v62 }
0x574d   :  { %v8122_v22 = vpop.f32.mrf.mxu1 }
0x574e   :  { %v5818_v51 = vadd.f32 %v8122_v22, %v10960_v21 }
0x574f   :  { %v5809_v1 = vpop.f32.mrf.mxu1 }
0x5750   :  { %v5810_v28 = vadd.f32 %v10960_v21, %v5809_v1 }
0x5751   :  { %v8123_v7 = vpop.f32.mrf.mxu1 }
0x5752   :  { %v5821_v32 = vadd.f32 %v8123_v7, %v10960_v21 }
0x5753   :  { %v5812_v60 = vpop.f32.mrf.mxu1 }
0x5754   :  { %v5813_v43 = vadd.f32 %v10960_v21, %v5812_v60 }
0x5755   :  { %v10935_v45 = vpop.f32.mrf.mxu1 }
0x5757   :  { %v10937_v37 = vpop.f32.mrf.mxu1 }
0x5759   :  { %v10939_v9 = vpop.f32.mrf.mxu1 }
0x575b   :  { %v10941_v26 = vpop.f32.mrf.mxu1 }
0x575d   :  { %v10943_v47 = vpop.f32.mrf.mxu1 }
0x575f   :  { %v10945_v61 = vpop.f32.mrf.mxu1 }
0x5761   :  { %v10947_v4 = vpop.f32.mrf.mxu1 }
0x5763   :  { %v10949_v55 = vpop.f32.mrf.mxu1 }
0x5765   :  { %v8154_v38 = vpop.f32.mrf.mxu1 }
0x5767   :  { %v6139_v30 = vpop.f32.mrf.mxu1 }
0x5769   :  { %v8155_v12 = vpop.f32.mrf.mxu1 }
0x576b   :  { %v6142_v52 = vpop.f32.mrf.mxu1 }
0x576d   :  { %v8158_v46 = vpop.f32.mrf.mxu1 }
0x576f   :  { %v6155_v40 = vpop.f32.mrf.mxu1 }
0x5770   :  { %v5112_v54 = vpop.f32.mrf.mxu0 }
0x5771   :  { %v10954_v27 = vadd.f32 %v8804_v20, %v5112_v54  ;;  %v8159_v24 = vpop.f32.mrf.mxu1  ;;  %v5834_v54 = vadd.f32 %v10935_v45, %v10960_v21 }
0x5772   :  { %v8112_v50 = vpop.f32.mrf.mxu0 }
0x5773   :  { %8784 = vtanh.f32 %v10954_v27  ;;  %v6158_v49 = vpop.f32.mrf.mxu1 }
0x5774   :  { %v5115_v56 = vpop.f32.mrf.mxu0 }
0x5775   :  { %v10965_v3 = vpop.f32.mrf.mxu1 }
0x5776   :  { %v8113_v16 = vpop.f32.mrf.mxu0 }
0x5777   :  { %v6171_v11 = vpop.f32.mrf.mxu1 }
0x5778   :  { %v8136_v48 = vpop.f32.mrf.mxu0 }
0x5779   :  { %v6039_v35 = vadd.f32 %v8136_v48, %v5802_v58  ;;  %v8163_v23 = vpop.f32.mrf.mxu1 }
0x577a   :  { %v5974_v31 = vpop.f32.mrf.mxu0 }
0x577b   :  { %v6037_v19 = vadd.f32 %v5974_v31, %v5794_v57  ;;  %v6204_v25 = vadd.f32 %v8154_v38, %v6039_v35  ;;  %v6174_v20 = vpop.f32.mrf.mxu1  ;;  %v5837_v57 = vadd.f32 %v10939_v9, %v10960_v21 }
0x577c   :  { %v8137_v39 = vpop.f32.mrf.mxu0 }
0x577d   :  { %v6040_v2 = vadd.f32 %v8137_v39, %v5805_v36  ;;  %v6202_v0 = vadd.f32 %v6139_v30, %v6037_v19  ;;  %v6220_v13 = vmax.f32 %v6204_v25, 0.0  ;;  %v8166_v19 = vpop.f32.mrf.mxu1  ;;  %v5829_v25 = vadd.f32 %v10960_v21, %v10941_v26 }
0x577e   :  { %v5977_v10 = vpop.f32.mrf.mxu0  ;;  %v5842_v26 = vadd.f32 %v10960_v21, %v10945_v61  ;;  %v5853_v61 = vadd.f32 %v10947_v4, %v10960_v21 }
0x577f   :  { %v6205_v17 = vadd.f32 %v8155_v12, %v6040_v2  ;;  %v6038_v5 = vadd.f32 %v5977_v10, %v5797_v59  ;;  %v6218_v44 = vmax.f32 %v6202_v0, 0.0  ;;  %v5850_v10 = vadd.f32 %v10943_v47, %v10960_v21  ;;  %v6187_v47 = vpop.f32.mrf.mxu1 }
0x5780   :  { %v8785_v8 = vpop.eup %8784  ;;  %v8140_v29 = vpop.f32.mrf.mxu0 }
0x5781   :  { %v6221_v15 = vmax.f32 %v6205_v17, 0.0  ;;  %v6203_v63 = vadd.f32 %v6142_v52, %v6038_v5  ;;  %5127 = vrot.lane.b32.xlu1 %v8785_v8, %s8808_s21  ;;  %v6043_v41 = vadd.f32 %v8140_v29, %v5818_v51 }
0x5782   :  { %v5990_v14 = vpop.f32.mrf.mxu0 }
0x5783   :  { %v6219_v33 = vmax.f32 %v6203_v63, 0.0  ;;  %v10972_v34 = vpack.c.bf16 %v6221_v15, %v6220_v13  ;;  %v6041_v6 = vadd.f32 %v5990_v14, %v5810_v28  ;;  %v6208_v38 = vadd.f32 %v8158_v46, %v6043_v41 }
0x5784   :  { %v8141_v53 = vpop.f32.mrf.mxu0  ;;  %v5826_v46 = vadd.f32 %v10960_v21, %v10937_v37 }
0x5785   :  { %v10975_v62 = vpack.c.bf16 %v6219_v33, %v6218_v44  ;;  %v6044_v22 = vadd.f32 %v8141_v53, %v5821_v32  ;;  %v6206_v30 = vadd.f32 %v6155_v40, %v6041_v6  ;;  %v6385_v60 = vshll.u32 %v10972_v34, 16 }
0x5786   :  { %v5993_v1 = vpop.f32.mrf.mxu0  ;;  %v6224_v16 = vmax.f32 %v6208_v38, 0.0  ;;  %v6389_v29 = vshrl.u32 %v10972_v34, 16 }
0x5787   :  { %v6209_v12 = vadd.f32 %v8159_v24, %v6044_v22  ;;  %v6042_v52 = vadd.f32 %v5993_v1, %v5813_v43  ;;  %8170 = vmatprep.mubr.msk.bf16.mxu0 %vm6256_vm9, %v10975_v62  ;;  %v6381_v7 = vshll.u32 %v10975_v62, 16  ;;  %v6379_v45 = vshrl.u32 %v10975_v62, 16  ;;  %v8167_v43 = vpop.f32.mrf.mxu1 }
0x5788   :  { %v8144_v50 = vpop.f32.mrf.mxu0  ;;  %8171 = vmatmul.mubr.msk.bf16.vlgmr.msra.gmra.mxu0 %vm6256_vm9, %v10972_v34  ;;  %v6222_v35 = vmax.f32 %v6206_v30, 0.0 }
0x5789   :  { %v6225_v40 = vmax.f32 %v6209_v12, 0.0  ;;  %v6207_v24 = vadd.f32 %v6158_v49, %v6042_v52  ;;  %8205 = vmatpush3.bf16.msra.mxu0 %v10931_v18  ;;  %v6383_v56 = vrot.slane %v6381_v7, 1  ;;  %v6047_v58 = vadd.f32 %v8144_v50, %v5834_v54 }
0x578a   :  { %v6006_v48 = vpop.f32.mrf.mxu0  ;;  %v6387_v49 = vrot.slane %v6385_v60, 1  ;;  %v5845_v52 = vadd.f32 %v10960_v21, %v10949_v55 }
0x578b   :  { %v6223_v31 = vmax.f32 %v6207_v24, 0.0  ;;  %v6045_v36 = vadd.f32 %v6006_v48, %v5826_v46  ;;  %v10991_v39 = vpack.c.bf16 %v6225_v40, %v6224_v16  ;;  %v6384_v59 = vor.u32 %v6383_v56, %v6379_v45  ;;  %v6190_v24 = vpop.f32.mrf.mxu1 }
0x578c   :  { %v8145_v37 = vpop.f32.mrf.mxu0  ;;  %v6212_v9 = vadd.f32 %v10965_v3, %v6047_v58  ;;  %v6391_v13 = vor.u32 %v6389_v29, %v6387_v49 }
0x578d   :  { %v10993_v2 = vpack.c.bf16 %v6223_v31, %v6222_v35  ;;  %v6048_v18 = vadd.f32 %v8145_v37, %v5837_v57  ;;  %v6388_v17 = vsel %vm5857_vm8, %v6384_v59, %v6387_v49  ;;  %v6210_v8 = vadd.f32 %v6171_v11, %v6045_v36 }
0x578e   :  { %v6009_v0 = vpop.f32.mrf.mxu0  ;;  %8188 = vmatprep.mubr.msk.bf16.mxu1 %vm6256_vm9, %v6388_v17  ;;  %v6399_v63 = vshll.u32 %v10991_v39, 16  ;;  %v6228_v14 = vmax.f32 %v6212_v9, 0.0  ;;  %v6403_v56 = vshrl.u32 %v10991_v39, 16  ;;  %v6580_v9 = vrot.slane %v10972_v34, 1 }
0x578f   :  { %v6392_v5 = vshll.u32 %v10993_v2, 16  ;;  %v6213_v51 = vadd.f32 %v8163_v23, %v6048_v18  ;;  %8174 = vmatprep.mubr.msk.bf16.mxu0 %vm6256_vm9, %v10993_v2  ;;  %v6046_v15 = vadd.f32 %v6009_v0, %v5829_v25  ;;  %v6396_v33 = vshrl.u32 %v10993_v2, 16 }
0x5790   :  { %v8148_v3 = vpop.f32.mrf.mxu0  ;;  %8175 = vmatmul.mubr.msk.bf16.gmra.mxu0 %vm6256_vm9, %v10991_v39  ;;  %v6226_v23 = vmax.f32 %v6210_v8, 0.0  ;;  %v6401_v12 = vrot.slane %v6399_v63, 1  ;;  %v6579_v25 = vrot.slane %v10975_v62, 1 }
0x5791   :  { %v6394_v11 = vrot.slane %v6392_v5, 1  ;;  %v6229_v28 = vmax.f32 %v6213_v51, 0.0  ;;  %v6051_v41 = vadd.f32 %v8148_v3, %v5850_v10  ;;  %v6211_v32 = vadd.f32 %v6174_v20, %v6046_v15 }
0x5792   :  { %v6022_v44 = vpop.f32.mrf.mxu0  ;;  %v6405_v45 = vor.u32 %v6403_v56, %v6401_v12  ;;  %v6581_v29 = vsel %vm5326_vm4, %v6579_v25, %v6580_v9  ;;  %v6582_v3 = vrot.slane %v10993_v2, 1 }
0x5793   :  { %v6049_v6 = vadd.f32 %v6022_v44, %v5842_v26  ;;  %v6395_v53 = vsel %vm5857_vm8, %v6391_v13, %v6394_v11  ;;  %v11015_v22 = vpack.c.bf16 %v6229_v28, %v6228_v14  ;;  %v6227_v38 = vmax.f32 %v6211_v32, 0.0 }
0x5794   :  { %v8149_v1 = vpop.f32.mrf.mxu0  ;;  %8189 = vmatmul.mubr.msk.bf16.vlgmr.msra.gmra.mxu1 %vm6256_vm9, %v6395_v53  ;;  %v6398_v30 = vor.u32 %v6396_v33, %v6394_v11  ;;  %v6216_v7 = vadd.f32 %v8166_v19, %v6051_v41  ;;  %v6584_v11 = vrot.slane %v10991_v39, 1  ;;  %v6583_v28 = vsel %vm5326_vm4, %v6580_v9, %v6582_v3 }
0x5795   :  { %v6052_v54 = vadd.f32 %v8149_v1, %v5853_v61  ;;  %v11020_v20 = vpack.c.bf16 %v6227_v38, %v6226_v23  ;;  %v6214_v60 = vadd.f32 %v6187_v47, %v6049_v6  ;;  %v6413_v21 = vshll.u32 %v11015_v22, 16 }
0x5796   :  { %v6025_v4 = vpop.f32.mrf.mxu0  ;;  %v6402_v50 = vsel %vm5857_vm8, %v6398_v30, %v6401_v12  ;;  %v6232_v16 = vmax.f32 %v6216_v7, 0.0  ;;  %v6417_v17 = vshrl.u32 %v11015_v22, 16  ;;  %v6585_v41 = vsel %vm5326_vm4, %v6582_v3, %v6584_v11 }
0x5797   :  { %v6217_v46 = vadd.f32 %v8167_v43, %v6052_v54  ;;  %v6050_v40 = vadd.f32 %v6025_v4, %v5845_v52  ;;  %8192 = vmatprep.mubr.msk.bf16.mxu1 %vm6256_vm9, %v6402_v50  ;;  %8178 = vmatprep.mubr.msk.bf16.mxu0 %vm6256_vm9, %v11020_v20  ;;  %v6406_v55 = vshll.u32 %v11020_v20, 16  ;;  %v6410_v35 = vshrl.u32 %v11020_v20, 16 }
0x5798   :  { %8179 = vmatmul.mubr.msk.bf16.gmra.mxu0 %vm6256_vm9, %v11015_v22  ;;  %v6230_v31 = vmax.f32 %v6214_v60, 0.0  ;;  %v6415_v49 = vrot.slane %v6413_v21, 1  ;;  %v6248_v0 = vpack.c.bf16 %v6232_v16, %v6232_v16  ;;  %v6586_v2 = vrot.slane %v11020_v20, 1  ;;  %v11075_v20 = vld [vmem:[%s11214_s12] ss:$0 sm:$0xff] }
0x5799   :  { %v6233_v58 = vmax.f32 %v6217_v46, 0.0  ;;  %v6215_v48 = vadd.f32 %v6190_v24, %v6050_v40  ;;  %v6408_v57 = vrot.slane %v6406_v55, 1  ;;  %v6588_v32 = vrot.slane %v11015_v22, 1 }
0x579a   :  { %v6419_v51 = vor.u32 %v6417_v17, %v6415_v49  ;;  %v6587_v39 = vsel %vm5326_vm4, %v6584_v11, %v6586_v2  ;;  %v7081_v53 = vmul.f32 -1.442695, %v10954_v27 }
0x579b   :  { %v6377_v36 = vpack.c.bf16 %v6233_v58, %v6232_v16  ;;  %v6231_v19 = vmax.f32 %v6215_v48, 0.0  ;;  %v6409_v37 = vsel %vm5857_vm8, %v6405_v45, %v6408_v57  ;;  %v6412_v59 = vor.u32 %v6410_v35, %v6408_v57 }
0x579c   :  { %8193 = vmatmul.mubr.msk.bf16.gmra.mxu1 %vm6256_vm9, %v6409_v37  ;;  %v6589_v44 = vsel %vm5326_vm4, %v6586_v2, %v6588_v32  ;;  %8786 = vpow2.f32 %v7081_v53 }
0x579d   :  { %v6247_v18 = vpack.c.bf16 %v6231_v19, %v6230_v31  ;;  %v6416_v10 = vsel %vm5857_vm8, %v6412_v59, %v6415_v49  ;;  %v6428_v8 = vshll.u32 %v6377_v36, 16  ;;  %v6432_v13 = vshrl.u32 %v6377_v36, 16 }
0x579e   :  { %8196 = vmatprep.mubr.msk.bf16.mxu1 %vm6256_vm9, %v6416_v10  ;;  %v6592_v61 = vrot.slane %v6377_v36, 1 }
0x579f   :  { %8182 = vmatprep.mubr.msk.bf16.mxu0 %vm6256_vm9, %v6247_v18  ;;  %v6420_v5 = vshll.u32 %v6247_v18, 16  ;;  %v6424_v62 = vshrl.u32 %v6247_v18, 16  ;;  %v6430_v15 = vrot.slane %v6428_v8, 1  ;;  %v6590_v33 = vrot.slane %v6247_v18, 1 }
0x57a0   :  { %8183 = vmatmul.mubr.msk.bf16.gmra.mxu0 %vm6256_vm9, %v6248_v0 }
0x57a1   :  { %v6422_v26 = vrot.slane %v6420_v5, 1  ;;  %8206 = vmatprep.mubr.msk.bf16.mxu0 %vm6256_vm9, %v6581_v29  ;;  %v6434_v14 = vor.u32 %v6432_v13, %v6430_v15  ;;  %v6591_v23 = vsel %vm5326_vm4, %v6588_v32, %v6590_v33  ;;  %v6593_v6 = vsel %vm5326_vm4, %v6590_v33, %v6592_v61 }
0x57a3   :  { %v6423_v34 = vsel %vm5857_vm8, %v6419_v51, %v6422_v26  ;;  %v6426_v47 = vor.u32 %v6424_v62, %v6422_v26  ;;  %v11266_v51 = vld [vmem:[#allocation2_spill] sm:$0xff] }
0x57a4   :  { %8197 = vmatmul.mubr.msk.bf16.gmra.mxu1 %vm6256_vm9, %v6423_v34 }
0x57a5   :  { %v6431_v63 = vsel %vm5857_vm8, %v6426_v47, %v6430_v15 }
0x57a6   :  { %8200 = vmatprep.mubr.msk.bf16.mxu1 %vm6256_vm9, %v6431_v63 }
0x57a8   :  { %8207 = vmatmul.mubr.msk.bf16.vlgmr.msra.gmra.mxu0 %vm6256_vm9, %v6583_v28 }
0x57a9   :  { %8210 = vmatprep.mubr.msk.bf16.mxu0 %vm6256_vm9, %v6585_v41  ;;  %v8787_v43 = vpop.eup %8786 }
0x57aa   :  { %v5121_v22 = vadd.f32 1.0, %v8787_v43 }
0x57ac   :  { %8201 = vmatmul.mubr.msk.bf16.gmra.mxu1 %vm6256_vm9, %v6434_v14  ;;  %8788 = vrcp.f32 %v5121_v22 }
0x57ad   :  { %8252 = vmatprep.mubr.msk.f32.mxu1 %vm8806_vm0, %v11265_v42 }
0x57b0   :  { %8211 = vmatmul.mubr.msk.bf16.gmra.mxu0 %vm6256_vm9, %v6587_v39 }
0x57b1   :  { %8214 = vmatprep.mubr.msk.bf16.mxu0 %vm6256_vm9, %v6589_v44 }
0x57b8   :  { %8215 = vmatmul.mubr.msk.bf16.gmra.mxu0 %vm6256_vm9, %v6591_v23 }
0x57b9   :  { %8218 = vmatprep.mubr.msk.bf16.mxu0 %vm6256_vm9, %v6593_v6  ;;  %v11068_v38 = vpop.eup %8788 }
0x57ba   :  { %v5125_v29 = vmul.f32 %v11068_v38, %v11266_v51 }
0x57c0   :  { %8219 = vmatmul.mubr.msk.bf16.gmra.mxu0 %vm6256_vm9, %v6592_v61 }
0x57f3   :  { %v5128_v1 = vpop.permute.xlu1 %5127 }
0x57f4   :  { %v5130_v30 = vmul.f32 %v11068_v38, %v5128_v1 }
0x57f6   :  { %5132 = vrot.lane.b32.xlu0 %v5130_v30, %s8809_s22 }
0x5848   :  { %v8172_v12 = vpop.f32.mrf.mxu0 }
0x5849   :  { %v6324_v50 = vadd.f32 %v8172_v12, %v11075_v20 }
0x584a   :  { %v6315_v52 = vpop.f32.mrf.mxu0 }
0x584b   :  { %v6316_v40 = vadd.f32 %v11075_v20, %v6315_v52 }
0x584c   :  { %v8173_v7 = vpop.f32.mrf.mxu0 }
0x584d   :  { %v6327_v21 = vadd.f32 %v8173_v7, %v11075_v20 }
0x584e   :  { %v6318_v54 = vpop.f32.mrf.mxu0 }
0x584f   :  { %v6319_v48 = vadd.f32 %v11075_v20, %v6318_v54 }
0x5850   :  { %v11077_v27 = vpop.f32.mrf.mxu0 }
0x5852   :  { %v11079_v4 = vpop.f32.mrf.mxu0 }
0x5854   :  { %v11082_v60 = vpop.f32.mrf.mxu0  ;;  %v8190_v46 = vpop.f32.mrf.mxu1 }
0x5855   :  { %v11085_v24 = vadd.f32 %v8190_v46, %v6324_v50 }
0x5856   :  { %v11087_v56 = vpop.f32.mrf.mxu0  ;;  %v6493_v55 = vpop.f32.mrf.mxu1 }
0x5857   :  { %v11090_v16 = vadd.f32 %v6493_v55, %v6316_v40 }
0x5858   :  { %v8191_v58 = vpop.f32.mrf.mxu1  ;;  %v8180_v45 = vpop.f32.mrf.mxu0 }
0x5859   :  { %v11093_v57 = vadd.f32 %v8191_v58, %v6327_v21  ;;  %v6356_v58 = vadd.f32 %v8180_v45, %v11075_v20 }
0x585a   :  { %v6496_v35 = vpop.f32.mrf.mxu1  ;;  %v6347_v31 = vpop.f32.mrf.mxu0 }
0x585b   :  { %v11095_v36 = vadd.f32 %v6496_v35, %v6319_v48 }
0x585c   :  { %v8181_v19 = vpop.f32.mrf.mxu0  ;;  %v11097_v37 = vpop.f32.mrf.mxu1 }
0x585d   :  { %v6359_v46 = vadd.f32 %v8181_v19, %v11075_v20 }
0x585e   :  { %v6350_v59 = vpop.f32.mrf.mxu0  ;;  %v11099_v49 = vpop.f32.mrf.mxu1 }
0x5860   :  { %v8184_v18 = vpop.f32.mrf.mxu0  ;;  %v11101_v25 = vpop.f32.mrf.mxu1 }
0x5861   :  { %v6372_v6 = vadd.f32 %v8184_v18, %v11075_v20 }
0x5862   :  { %v6363_v10 = vpop.f32.mrf.mxu0  ;;  %v11103_v9 = vpop.f32.mrf.mxu1 }
0x5863   :  { %v6364_v52 = vadd.f32 %v11075_v20, %v6363_v10 }
0x5864   :  { %v8185_v0 = vpop.f32.mrf.mxu0  ;;  %v8198_v17 = vpop.f32.mrf.mxu1 }
0x5865   :  { %v6351_v0 = vadd.f32 %v11075_v20, %v6350_v59  ;;  %v6565_v10 = vadd.f32 %v8198_v17, %v6356_v58  ;;  %v6340_v59 = vadd.f32 %v11077_v27, %v11075_v20  ;;  %v6332_v27 = vadd.f32 %v11075_v20, %v11079_v4 }
0x5866   :  { %v6366_v5 = vpop.f32.mrf.mxu0  ;;  %v6525_v8 = vpop.f32.mrf.mxu1 }
0x5867   :  { %v6367_v7 = vadd.f32 %v11075_v20, %v6366_v5 }
0x5868   :  { %v5133_v26 = vpop.permute.xlu0 %5132  ;;  %v8199_v34 = vpop.f32.mrf.mxu1 }
0x5869   :  { %v5135_v62 = vadd.f32 %v5133_v26, %v5125_v29  ;;  %v11107_v47 = vpop.f32.mrf.mxu0  ;;  %v6566_v48 = vadd.f32 %v8199_v34, %v6359_v46  ;;  %v6348_v29 = vadd.f32 %v11075_v20, %v6347_v31 }
0x586a   :  { %v6528_v15 = vpop.f32.mrf.mxu1 }
0x586b   :  { %8790 = vtanh.f32 %v5135_v62  ;;  %v11109_v3 = vpop.f32.mrf.mxu0  ;;  %v6564_v26 = vadd.f32 %v6528_v15, %v6351_v0  ;;  %v6563_v45 = vadd.f32 %v6525_v8, %v6348_v29 }
0x586c   :  { %v8202_v63 = vpop.f32.mrf.mxu1 }
0x586d   :  { %v11111_v11 = vpop.f32.mrf.mxu0  ;;  %v6569_v43 = vadd.f32 %v8202_v63, %v6372_v6  ;;  %v6343_v63 = vadd.f32 %v11082_v60, %v11075_v20  ;;  %v6561_v60 = vadd.f32 %v11097_v37, %v6340_v59 }
0x586e   :  { %v6541_v28 = vpop.f32.mrf.mxu1 }
0x586f   :  { %v11113_v13 = vpop.f32.mrf.mxu0  ;;  %v6567_v40 = vadd.f32 %v6541_v28, %v6364_v52  ;;  %v6562_v31 = vadd.f32 %v11101_v25, %v6343_v63 }
0x5870   :  { %v8203_v41 = vpop.f32.mrf.mxu1 }
0x5871   :  { %v8212_v14 = vpop.f32.mrf.mxu0  ;;  %v6335_v41 = vadd.f32 %v11075_v20, %v11087_v56  ;;  %v6717_v20 = vadd.f32 %v11111_v11, %v11093_v57  ;;  %v6714_v57 = vadd.f32 %v11109_v3, %v11090_v16  ;;  %v6833_v16 = vld [vmem:[%s11216_s14 + $0x28] sm:$0xff] }
0x5872   :  { %v6544_v30 = vpop.f32.mrf.mxu1 }
0x5873   :  { %v11115_v2 = vpop.f32.mrf.mxu0  ;;  %v6568_v55 = vadd.f32 %v6544_v30, %v6367_v7  ;;  %v6560_v25 = vadd.f32 %v11103_v9, %v6335_v41 }
0x5875   :  { %v8213_v32 = vpop.f32.mrf.mxu0 }
0x5876   :  { %v6721_v8 = vadd.f32 %v8213_v32, %v6562_v31 }
0x5877   :  { %v11117_v39 = vpop.f32.mrf.mxu0 }
0x5878   :  { %v8791_v44 = vpop.eup %8790  ;;  %v6736_v56 = vmax.f32 %v6721_v8, 0.0  ;;  %v6719_v37 = vadd.f32 %v11117_v39, %v6560_v25 }
0x5879   :  { %v8216_v33 = vpop.f32.mrf.mxu0  ;;  %5138 = vrot.lane.b32.xlu1 %v8791_v44, %s8808_s21 }
0x587a   :  { %v6724_v19 = vadd.f32 %v8216_v33, %v6565_v10  ;;  %v6720_v33 = vadd.f32 %v8212_v14, %v6561_v60  ;;  %v6734_v4 = vmax.f32 %v6719_v37, 0.0  ;;  %v6732_v14 = vmax.f32 %v6717_v20, 0.0 }
0x587b   :  { %v6684_v61 = vpop.f32.mrf.mxu0 }
0x587c   :  { %v6739_v17 = vmax.f32 %v6724_v19, 0.0  ;;  %v6722_v15 = vadd.f32 %v6684_v61, %v6563_v45  ;;  %v6735_v32 = vmax.f32 %v6720_v33, 0.0 }
0x587d   :  { %v8217_v23 = vpop.f32.mrf.mxu0 }
0x587e   :  { %v6725_v51 = vadd.f32 %v8217_v23, %v6566_v48  ;;  %v6737_v61 = vmax.f32 %v6722_v15, 0.0  ;;  %v6559_v23 = vadd.f32 %v11099_v49, %v6332_v27  ;;  %v6716_v49 = vadd.f32 %v11107_v47, %v11085_v24  ;;  %v6832_v47 = vld [vmem:[%s11216_s14 + $0x20] sm:$0xff] }
0x587f   :  { %v6687_v53 = vpop.f32.mrf.mxu0  ;;  %v6729_v24 = vmax.f32 %v6714_v57, 0.0 }
0x5880   :  { %v6740_v34 = vmax.f32 %v6725_v51, 0.0  ;;  %v6723_v28 = vadd.f32 %v6687_v53, %v6564_v26  ;;  %v6718_v6 = vadd.f32 %v11115_v2, %v6559_v23  ;;  %v6715_v2 = vadd.f32 %v11113_v13, %v11095_v36  ;;  %v6744_v36 = vld [vmem:[%s11215_s13] sm:$0xf]  ;;  %v6831_v53 = vld [vmem:[%s11216_s14 + $0x18] sm:$0xff] }
0x5881   :  { %v8220_v22 = vpop.f32.mrf.mxu0  ;;  %v6731_v39 = vmax.f32 %v6716_v49, 0.0 }
0x5882   :  { %v6728_v1 = vadd.f32 %v8220_v22, %v6569_v43  ;;  %v6738_v44 = vmax.f32 %v6723_v28, 0.0  ;;  %v6733_v9 = vmax.f32 %v6718_v6, 0.0  ;;  %v6730_v11 = vmax.f32 %v6715_v2, 0.0  ;;  %v6830_v43 = vld [vmem:[%s11216_s14 + $0x10] sm:$0xff]  ;;  %v6828_v22 = vld [vmem:[%s11216_s14] sm:$0xff] }
0x5883   :  { %v6700_v12 = vpop.f32.mrf.mxu0 }
0x5884   :  { %v6743_v54 = vmax.f32 %v6728_v1, 0.0  ;;  %v6726_v35 = vadd.f32 %v6700_v12, %v6567_v40 }
0x5885   :  { %v8221_v50 = vpop.f32.mrf.mxu0 }
0x5886   :  { %8223 = vmatpush3.msra.mxu1 %v6743_v54  ;;  %v6741_v62 = vmax.f32 %v6726_v35, 0.0  ;;  %v7139_v54 = vld [vmem:[%s11217_s15] ss:$0 sm:$0xff] }
0x5887   :  { %v6703_v21 = vpop.f32.mrf.mxu0  ;;  %8224 = vmatprep.subr.mxu1 %v11265_v42 }
0x5888   :  { %v6727_v18 = vadd.f32 %v6703_v21, %v6568_v55 }
0x588a   :  { %v6742_v5 = vmax.f32 %v6727_v18, 0.0 }
0x588c   :  { %8225 = vmatpush3.msra.mxu1 %v6742_v5 }
0x588d   :  { %8226 = vmatprep.subr.mxu1 %v11265_v42 }
0x588e   :  { %8227 = vmatpush3.msra.mxu1 %v6741_v62 }
0x588f   :  { %8228 = vmatprep.subr.mxu1 %v11265_v42 }
0x5890   :  { %8229 = vmatpush3.msra.mxu1 %v6740_v34 }
0x5891   :  { %8230 = vmatprep.subr.mxu1 %v11265_v42 }
0x5892   :  { %8231 = vmatpush3.msra.mxu1 %v6739_v17 }
0x5893   :  { %8232 = vmatprep.subr.mxu1 %v11265_v42 }
0x5894   :  { %8233 = vmatpush3.msra.mxu1 %v6738_v44 }
0x5895   :  { %8234 = vmatprep.subr.mxu1 %v11265_v42 }
0x5896   :  { %8235 = vmatpush3.msra.mxu1 %v6737_v61 }
0x5897   :  { %8236 = vmatprep.subr.mxu1 %v11265_v42 }
0x5898   :  { %8237 = vmatpush3.msra.mxu1 %v6736_v56 }
0x5899   :  { %8238 = vmatprep.subr.mxu1 %v11265_v42 }
0x589a   :  { %8239 = vmatpush3.msra.mxu1 %v6735_v32 }
0x589b   :  { %8240 = vmatprep.subr.mxu1 %v11265_v42 }
0x589c   :  { %8241 = vmatpush3.msra.mxu1 %v6734_v4 }
0x589d   :  { %8242 = vmatprep.subr.mxu1 %v11265_v42 }
0x589e   :  { %8243 = vmatpush3.msra.mxu1 %v6733_v9 }
0x589f   :  { %8244 = vmatprep.subr.mxu1 %v11265_v42 }
0x58a0   :  { %8245 = vmatpush3.msra.mxu1 %v6732_v14 }
0x58a1   :  { %8246 = vmatprep.subr.mxu1 %v11265_v42 }
0x58a2   :  { %8247 = vmatpush3.msra.mxu1 %v6731_v39 }
0x58a3   :  { %8248 = vmatprep.subr.mxu1 %v11265_v42 }
0x58a4   :  { %8249 = vmatpush3.msra.mxu1 %v6730_v11 }
0x58a5   :  { %8250 = vmatprep.subr.mxu1 %v11265_v42 }
0x58a6   :  { %8251 = vmatpush3.msra.mxu1 %v6729_v24 }
0x58a7   :  { %8253 = vmatmul.mubr.msk.f32.vlgmr.msra.gmra.mxu1 %vm6745_vm10, %v6744_v36  ;;  %8255 = vmatprep.subr.mxu1 %v11265_v42 }
0x58a8   :  { %8267 = vmatprep.mubr.msk.f32.mxu1 %vm8806_vm0, %v11265_v42  ;;  %8256 = vmatpush3.msra.mxu1 %v6833_v16 }
0x58a9   :  { %8257 = vmatprep.subr.mxu1 %v11265_v42 }
0x58aa   :  { %8258 = vmatpush3.msra.mxu1 %v6832_v47 }
0x58ab   :  { %8259 = vmatprep.subr.mxu1 %v11265_v42 }
0x58ac   :  { %8260 = vmatpush3.msra.mxu1 %v6831_v53 }
0x58ad   :  { %8261 = vmatprep.subr.mxu1 %v11265_v42 }
0x58ae   :  { %8262 = vmatpush3.msra.mxu1 %v6830_v43 }
0x58af   :  { %8263 = vmatprep.subr.mxu1 %v11265_v42 }
0x58eb   :  { %v5139_v3 = vpop.permute.xlu1 %5138 }
0x58ec   :  { %v5141_v13 = vmul.f32 %v11068_v38, %v5139_v3  ;;  %v6829_v38 = vld [vmem:[%s11216_s14 + $0x8] sm:$0xff] }
0x58ed   :  { %8264 = vmatpush3.msra.mxu1 %v6829_v38 }
0x58ee   :  { %6820 = vrot.lane.b32.xlu0 %v5141_v13, %s8809_s22  ;;  %8265 = vmatprep.subr.mxu1 %v11265_v42 }
0x58ef   :  { %8266 = vmatpush3.msra.mxu1 %v6828_v22 }
0x5960   :  { %v6821_v12 = vpop.permute.xlu0 %6820 }
0x5967   :  { %v6815_v1 = vpop.f32.mrf.mxu1 }
0x5968   :  { %6824 = vrot.lane.b32.xlu1 %v6815_v1, %s8809_s22 }
0x5969   :  { %v8254_v30 = vpop.f32.mrf.mxu1 }
0x59da   :  { %v6825_v52 = vpop.permute.xlu1 %6824 }
0x59db   :  { %v6827_v7 = vsel %vm95_vm1, %v6821_v12, %v6825_v52 }
0x59dc   :  { %8268 = vmatmul.mubr.msk.f32.vlgmr.msra.gmra.mxu1 %vm6841_vm11, %v6827_v7 }
0x5a9c   :  { %v6911_v42 = vpop.f32.mrf.mxu1 }
0x5a9d   :  { %v6912_v50 = vadd.f32 %v7139_v54, %v6911_v42 }
0x5a9e   :  { %v8269_v46 = vpop.f32.mrf.mxu1 }
0x5a9f   :  { %6916 = vst.msk [vmem:[%s11218_s16] sm:$0xf] %vm6915_vm12, %v6912_v50 }

</bundles_post_ra>
